<compile_context>
chip_gen: v7x
topology: tpu7x:2x2x1
jax: 0.10.0
libtpu: 0.0.40
codegen_flags: <defaults>
</compile_context>

<pallas_src>
import functools

import jax
import jax.numpy as jnp
from jax.experimental import pallas as pl
from jax.experimental.pallas import tpu as pltpu


def _zero_halo(pad_ref, H, W, Cp):
    """Zero only the 1-px border of a (H+2, W+2, Cp) scratch (interior is overwritten)."""
    z_row = jnp.zeros((W + 2, Cp), pad_ref.dtype)
    z_col = jnp.zeros((H + 2, 1, Cp), pad_ref.dtype)
    pad_ref[0] = z_row
    pad_ref[H + 1] = z_row
    pad_ref[:, 0:1, :] = z_col
    pad_ref[:, W + 1:W + 2, :] = z_col


def _conv3x3(pad_ref, w_ref, H, W, Cp):
    """3x3 'same' conv of a zero-haloed (H+2, W+2, Cp) bf16 scratch against a (9*Cp, Cp)
    bf16 weight (BN scale already folded in).  Single im2row matmul, K = 9*Cp, f32 acc."""
    lhs = jnp.concatenate(
        [pad_ref[kh:kh + H, kw:kw + W, :].reshape(H * W, Cp)
         for kh in range(3) for kw in range(3)],
        axis=-1)                                                   # (H*W, 9*Cp) bf16
    # TODO(synk): on v5e (128-deep MXU) 9 accumulating K=Cp dots (no concat temporary)
    # are preferable; this single deep-K matmul targets v6e/v7x.
    return jnp.dot(lhs, w_ref[...], preferred_element_type=jnp.float32)  # (H*W, Cp) f32


def _resblock_kernel(x_ref, w1_ref, b1_ref, w2_ref, b2_ref, out_ref,
                     xpad, ypad, *, H, W):
    Cp = out_ref.shape[-1]

    # Zero only the halo borders each step (interior fully overwritten).  Kept per-step
    # (not gated on a persistent flag / program_id) so it stays correct when the batch
    # axis is split across TensorCores and scratch starts uninitialized.
    _zero_halo(xpad, H, W, Cp)
    _zero_halo(ypad, H, W, Cp)

    x = x_ref[0]                                        # (H, W, Cp) bf16
    xpad[1:H + 1, 1:W + 1, :] = x                       # single interior store, no casts

    # conv1 (BN1 scale folded into w1) + bias + ReLU
    y = jnp.maximum(_conv3x3(xpad, w1_ref, H, W, Cp) + b1_ref[0], 0.0)
    ypad[1:H + 1, 1:W + 1, :] = y.reshape(H, W, Cp).astype(ypad.dtype)

    # conv2 (BN2 scale folded into w2) + bias + identity shortcut + ReLU
    y2 = _conv3x3(ypad, w2_ref, H, W, Cp) + b2_ref[0]
    res = x.reshape(H * W, Cp).astype(jnp.float32)
    out_ref[0] = jnp.maximum(y2 + res, 0.0).reshape(H, W, Cp).astype(out_ref.dtype)


def resblock_forward(x_nhwc, w1_hwio, s1, b1, w2_hwio, s2, b2, *, stride=1):
    """x_nhwc: (N,H,W,C).  w*_hwio: (3,3,C,C).  s*/b*: (C,) eval-mode-folded BN scale/bias."""
    if stride != 1:
        # TODO(synk): stride != 1 needs the conv1x1 + BN shortcut branch; not exercised here.
        raise NotImplementedError("only stride=1 (identity shortcut) is implemented")
    N, H, W, Cin = x_nhwc.shape
    Co = w1_hwio.shape[-1]
    assert Cin == Co, "identity shortcut requires in_channel == out_channel"

    LANE = 128
    Cp = ((Co + LANE - 1) // LANE) * LANE                          # lane-dense channels

    # Lane-dense channel pad + one-time bf16 cast (MXU consumes bf16; halves input DMA).
    # TODO(synk): in a full network keep the Cp-dense bf16 layout end-to-end instead of
    # re-padding on entry / slicing on exit around every block (extra HBM passes).
    x_p = jnp.pad(x_nhwc, ((0, 0), (0, 0), (0, 0), (0, Cp - Cin))).astype(jnp.bfloat16)

    def prep(w_hwio, s, b):
        # Fold BN scale into the conv weight, pad channels to Cp, flatten the 3x3 taps into
        # the contraction dim: row k = (kh*3 + kw)*Cp + cin (matches the im2row concat).
        # TODO(synk): for a C=64 stage, pack (kw, cin) densely into K instead of zero-padding
        # cin to 128 inside the contraction dim (removes 2x MXU/K waste on v6e/v7x).
        w = w_hwio * s.reshape(1, 1, 1, -1)
        w = jnp.pad(w, ((0, 0), (0, 0), (0, Cp - Cin), (0, Cp - Co)))
        w = w.reshape(9 * Cp, Cp).astype(jnp.bfloat16)
        bp = jnp.pad(b.reshape(-1), (0, Cp - Co)).reshape(1, Cp).astype(jnp.float32)
        return w, bp

    w1m, b1p = prep(w1_hwio, s1, b1)
    w2m, b2p = prep(w2_hwio, s2, b2)

    # Explicit scoped-VMEM limit sized from the per-step footprint (weights/biases are
    # single-buffered; activation block + output block are double-buffered by the pipeline).
    in_blk = H * W * Cp * 2                                       # bf16 activation block
    out_blk = H * W * Cp * jnp.dtype(x_nhwc.dtype).itemsize
    weights = 2 * (9 * Cp * Cp * 2) + 2 * (Cp * 4)
    halos = 2 * (H + 2) * (W + 2) * Cp * 2                        # bf16 scratches
    temps = H * W * 9 * Cp * 2 + 3 * H * W * Cp * 4               # im2row LHS + f32 temps
    footprint = 2 * in_blk + 2 * out_blk + weights + halos + temps
    vmem_limit = min(max(int(1.5 * footprint) + (2 << 20), 16 << 20), 64 << 20)

    # TODO(synk): for large stages (H=W=56, Cp>=256) add a second "parallel" grid axis over
    # H row-strips (strip + 2-row halo) so the per-step working set stays a few MiB on
    # v7x's 64 MiB VMEM and small-batch inference still fills both TensorCores.
    kernel = functools.partial(_resblock_kernel, H=H, W=W)
    out = pl.pallas_call(
        kernel,
        out_shape=jax.ShapeDtypeStruct((N, H, W, Cp), x_nhwc.dtype),
        grid_spec=pltpu.PrefetchScalarGridSpec(
            num_scalar_prefetch=0,
            grid=(N,),
            in_specs=[
                pl.BlockSpec((1, H, W, Cp), lambda n: (n, 0, 0, 0)),   # bf16 activation
                pl.BlockSpec((9 * Cp, Cp), lambda n: (0, 0),           # w1 (BN-folded bf16)
                             pipeline_mode=pl.Buffered(1)),
                pl.BlockSpec((1, Cp), lambda n: (0, 0),                # b1
                             pipeline_mode=pl.Buffered(1)),
                pl.BlockSpec((9 * Cp, Cp), lambda n: (0, 0),           # w2 (BN-folded bf16)
                             pipeline_mode=pl.Buffered(1)),
                pl.BlockSpec((1, Cp), lambda n: (0, 0),                # b2
                             pipeline_mode=pl.Buffered(1)),
            ],
            out_specs=pl.BlockSpec((1, H, W, Cp), lambda n: (n, 0, 0, 0)),
            scratch_shapes=[
                pltpu.VMEM((H + 2, W + 2, Cp), jnp.bfloat16),          # conv1 input halo
                pltpu.VMEM((H + 2, W + 2, Cp), jnp.bfloat16),          # conv2 input halo
            ],
        ),
        compiler_params=pltpu.CompilerParams(
            dimension_semantics=("parallel",),
            vmem_limit_bytes=vmem_limit,
        ),
    )(x_p, w1m, b1p, w2m, b2p)
    return out[..., :Co]


# ---------------- pure-JAX reference (NCHW, matches the PyTorch module in eval mode) ----
def _resblock_ref(x, w1, g1, be1, m1, v1, w2, g2, be2, m2, v2, eps=1e-5):
    def conv(inp, w):
        return jax.lax.conv_general_dilated(
            inp, w, window_strides=(1, 1), padding=((1, 1), (1, 1)),
            dimension_numbers=("NCHW", "OIHW", "NCHW"))

    def bn(inp, g, b, m, v):
        g, b, m, v = (t[None, :, None, None] for t in (g, b, m, v))
        return (inp - m) / jnp.sqrt(v + eps) * g + b

    out = jnp.maximum(bn(conv(x, w1), g1, be1, m1, v1), 0.0)
    out = bn(conv(out, w2), g2, be2, m2, v2)
    return jnp.maximum(out + x, 0.0)


if __name__ == "__main__":
    N, C, H, W = 2, 4, 16, 16      # in_channel == out_channel, stride = 1
    Co = C
    eps = 1e-5

    ks = jax.random.split(jax.random.PRNGKey(0), 12)
    x_nchw = jax.random.normal(ks[0], (N, C, H, W), jnp.float32)
    w1 = 0.1 * jax.random.normal(ks[1], (Co, C, 3, 3), jnp.float32)    # OIHW
    w2 = 0.1 * jax.random.normal(ks[2], (Co, Co, 3, 3), jnp.float32)   # OIHW
    g1 = 1.0 + 0.1 * jax.random.normal(ks[3], (Co,), jnp.float32)
    be1 = 0.1 * jax.random.normal(ks[4], (Co,), jnp.float32)
    m1 = 0.1 * jax.random.normal(ks[5], (Co,), jnp.float32)
    v1 = jnp.abs(jax.random.normal(ks[6], (Co,), jnp.float32)) + 0.5
    g2 = 1.0 + 0.1 * jax.random.normal(ks[7], (Co,), jnp.float32)
    be2 = 0.1 * jax.random.normal(ks[8], (Co,), jnp.float32)
    m2 = 0.1 * jax.random.normal(ks[9], (Co,), jnp.float32)
    v2 = jnp.abs(jax.random.normal(ks[10], (Co,), jnp.float32)) + 0.5

    # fold BatchNorm (inference mode) into per-channel scale/bias
    # TODO(synk): PyTorch training-mode BN (batch statistics) is not modeled; eval-mode only.
    s1 = g1 / jnp.sqrt(v1 + eps)
    b1 = be1 - m1 * s1
    s2 = g2 / jnp.sqrt(v2 + eps)
    b2 = be2 - m2 * s2

    # NCHW -> NHWC activations, OIHW -> HWIO weights
    x_nhwc = jnp.transpose(x_nchw, (0, 2, 3, 1))
    w1_hwio = jnp.transpose(w1, (2, 3, 1, 0))
    w2_hwio = jnp.transpose(w2, (2, 3, 1, 0))

    out_nhwc = resblock_forward(x_nhwc, w1_hwio, s1, b1, w2_hwio, s2, b2, stride=1)
    out_nchw = jnp.transpose(out_nhwc, (0, 3, 1, 2))
    jax.block_until_ready(out_nchw)

    ref = _resblock_ref(x_nchw, w1, g1, be1, m1, v1, w2, g2, be2, m2, v2, eps=eps)
    # bf16 MXU operands + bf16 activation DMA (residual included) -> loosened tolerance.
    if not jnp.allclose(out_nchw, ref, atol=3e-2, rtol=3e-2):
        raise AssertionError("Pallas ResBlock output mismatch vs. JAX reference")
    print("KERNEL_OK")
</pallas_src>

<mosaic_0001>
module attributes {stable_mosaic.version = 11 : i64} {
  func.func @_resblock_kernel(%arg0: i32, %arg1: memref<1x16x16x128xbf16, #tpu.memory_space<vmem>>, %arg2: memref<1152x128xbf16, #tpu.memory_space<vmem>>, %arg3: memref<1x128xf32, #tpu.memory_space<vmem>>, %arg4: memref<1152x128xbf16, #tpu.memory_space<vmem>>, %arg5: memref<1x128xf32, #tpu.memory_space<vmem>>, %arg6: memref<1x16x16x128xf32, #tpu.memory_space<vmem>>, %arg7: memref<18x18x128xbf16, #tpu.memory_space<vmem>>, %arg8: memref<18x18x128xbf16, #tpu.memory_space<vmem>>) attributes {dimension_semantics = [#tpu.dimension_semantics<parallel>], iteration_bounds = array<i64: 2>, scalar_prefetch = 0 : i64, scratch_operands = 2 : i64, tpu.core_type = #tpu.core_type<tc>, window_params = [{transform_indices = @transform_0, window_bounds = array<i64: 1, 16, 16, 128>}, {pipeline_mode = #tpu.pipeline_mode<synchronous>, transform_indices = @transform_1, window_bounds = array<i64: 1152, 128>}, {pipeline_mode = #tpu.pipeline_mode<synchronous>, transform_indices = @transform_2, window_bounds = array<i64: 1, 128>}, {pipeline_mode = #tpu.pipeline_mode<synchronous>, transform_indices = @transform_3, window_bounds = array<i64: 1152, 128>}, {pipeline_mode = #tpu.pipeline_mode<synchronous>, transform_indices = @transform_4, window_bounds = array<i64: 1, 128>}, {transform_indices = @transform_5, window_bounds = array<i64: 1, 16, 16, 128>}]} {
    %cst = arith.constant 0.000000e+00 : bf16
    %0 = vector.broadcast %cst : bf16 to vector<18x128xbf16>
    %cst_0 = arith.constant 0.000000e+00 : bf16
    %1 = vector.broadcast %cst_0 : bf16 to vector<18x1x128xbf16>
    %c0 = arith.constant 0 : index
    %c0_1 = arith.constant 0 : index
    %c0_2 = arith.constant 0 : index
    %2 = vector.load %arg7[%c0, %c0_1, %c0_2] : memref<18x18x128xbf16, #tpu.memory_space<vmem>>, vector<1x18x128xbf16>
    %3 = vector.shape_cast %2 : vector<1x18x128xbf16> to vector<18x128xbf16>
    %4 = vector.shape_cast %0 : vector<18x128xbf16> to vector<1x18x128xbf16>
    tpu.vector_store %arg7[%c0, %c0_1, %c0_2], %4 {strides = array<i32>} : memref<18x18x128xbf16, #tpu.memory_space<vmem>>, vector<1x18x128xbf16>,
    %c17 = arith.constant 17 : index
    %c0_3 = arith.constant 0 : index
    %c0_4 = arith.constant 0 : index
    %5 = vector.load %arg7[%c17, %c0_3, %c0_4] : memref<18x18x128xbf16, #tpu.memory_space<vmem>>, vector<1x18x128xbf16>
    %6 = vector.shape_cast %5 : vector<1x18x128xbf16> to vector<18x128xbf16>
    %7 = vector.shape_cast %0 : vector<18x128xbf16> to vector<1x18x128xbf16>
    tpu.vector_store %arg7[%c17, %c0_3, %c0_4], %7 {strides = array<i32>} : memref<18x18x128xbf16, #tpu.memory_space<vmem>>, vector<1x18x128xbf16>,
    %c0_5 = arith.constant 0 : index
    %c0_6 = arith.constant 0 : index
    %c0_7 = arith.constant 0 : index
    %8 = vector.load %arg7[%c0_5, %c0_6, %c0_7] : memref<18x18x128xbf16, #tpu.memory_space<vmem>>, vector<18x1x128xbf16>
    tpu.vector_store %arg7[%c0_5, %c0_6, %c0_7], %1 {strides = array<i32>} : memref<18x18x128xbf16, #tpu.memory_space<vmem>>, vector<18x1x128xbf16>,
    %c0_8 = arith.constant 0 : index
    %c17_9 = arith.constant 17 : index
    %c0_10 = arith.constant 0 : index
    %9 = vector.load %arg7[%c0_8, %c17_9, %c0_10] : memref<18x18x128xbf16, #tpu.memory_space<vmem>>, vector<18x1x128xbf16>
    tpu.vector_store %arg7[%c0_8, %c17_9, %c0_10], %1 {strides = array<i32>} : memref<18x18x128xbf16, #tpu.memory_space<vmem>>, vector<18x1x128xbf16>,
    %cst_11 = arith.constant 0.000000e+00 : bf16
    %10 = vector.broadcast %cst_11 : bf16 to vector<18x128xbf16>
    %cst_12 = arith.constant 0.000000e+00 : bf16
    %11 = vector.broadcast %cst_12 : bf16 to vector<18x1x128xbf16>
    %c0_13 = arith.constant 0 : index
    %c0_14 = arith.constant 0 : index
    %c0_15 = arith.constant 0 : index
    %12 = vector.load %arg8[%c0_13, %c0_14, %c0_15] : memref<18x18x128xbf16, #tpu.memory_space<vmem>>, vector<1x18x128xbf16>
    %13 = vector.shape_cast %12 : vector<1x18x128xbf16> to vector<18x128xbf16>
    %14 = vector.shape_cast %10 : vector<18x128xbf16> to vector<1x18x128xbf16>
    tpu.vector_store %arg8[%c0_13, %c0_14, %c0_15], %14 {strides = array<i32>} : memref<18x18x128xbf16, #tpu.memory_space<vmem>>, vector<1x18x128xbf16>,
    %c17_16 = arith.constant 17 : index
    %c0_17 = arith.constant 0 : index
    %c0_18 = arith.constant 0 : index
    %15 = vector.load %arg8[%c17_16, %c0_17, %c0_18] : memref<18x18x128xbf16, #tpu.memory_space<vmem>>, vector<1x18x128xbf16>
    %16 = vector.shape_cast %15 : vector<1x18x128xbf16> to vector<18x128xbf16>
    %17 = vector.shape_cast %10 : vector<18x128xbf16> to vector<1x18x128xbf16>
    tpu.vector_store %arg8[%c17_16, %c0_17, %c0_18], %17 {strides = array<i32>} : memref<18x18x128xbf16, #tpu.memory_space<vmem>>, vector<1x18x128xbf16>,
    %c0_19 = arith.constant 0 : index
    %c0_20 = arith.constant 0 : index
    %c0_21 = arith.constant 0 : index
    %18 = vector.load %arg8[%c0_19, %c0_20, %c0_21] : memref<18x18x128xbf16, #tpu.memory_space<vmem>>, vector<18x1x128xbf16>
    tpu.vector_store %arg8[%c0_19, %c0_20, %c0_21], %11 {strides = array<i32>} : memref<18x18x128xbf16, #tpu.memory_space<vmem>>, vector<18x1x128xbf16>,
    %c0_22 = arith.constant 0 : index
    %c17_23 = arith.constant 17 : index
    %c0_24 = arith.constant 0 : index
    %19 = vector.load %arg8[%c0_22, %c17_23, %c0_24] : memref<18x18x128xbf16, #tpu.memory_space<vmem>>, vector<18x1x128xbf16>
    tpu.vector_store %arg8[%c0_22, %c17_23, %c0_24], %11 {strides = array<i32>} : memref<18x18x128xbf16, #tpu.memory_space<vmem>>, vector<18x1x128xbf16>,
    %c0_25 = arith.constant 0 : index
    %c0_26 = arith.constant 0 : index
    %c0_27 = arith.constant 0 : index
    %c0_28 = arith.constant 0 : index
    %20 = vector.load %arg1[%c0_25, %c0_26, %c0_27, %c0_28] : memref<1x16x16x128xbf16, #tpu.memory_space<vmem>>, vector<1x16x16x128xbf16>
    %21 = vector.shape_cast %20 : vector<1x16x16x128xbf16> to vector<16x16x128xbf16>
    %c1 = arith.constant 1 : index
    %c1_29 = arith.constant 1 : index
    %c0_30 = arith.constant 0 : index
    %22 = vector.load %arg7[%c1, %c1_29, %c0_30] : memref<18x18x128xbf16, #tpu.memory_space<vmem>>, vector<16x16x128xbf16>
    tpu.vector_store %arg7[%c1, %c1_29, %c0_30], %21 {strides = array<i32>} : memref<18x18x128xbf16, #tpu.memory_space<vmem>>, vector<16x16x128xbf16>,
    %c0_31 = arith.constant 0 : index
    %c0_32 = arith.constant 0 : index
    %c0_33 = arith.constant 0 : index
    %23 = vector.load %arg7[%c0_31, %c0_32, %c0_33] : memref<18x18x128xbf16, #tpu.memory_space<vmem>>, vector<16x16x128xbf16>
    %24 = vector.shape_cast %23 : vector<16x16x128xbf16> to vector<256x128xbf16>
    %c0_34 = arith.constant 0 : index
    %c1_35 = arith.constant 1 : index
    %c0_36 = arith.constant 0 : index
    %25 = vector.load %arg7[%c0_34, %c1_35, %c0_36] : memref<18x18x128xbf16, #tpu.memory_space<vmem>>, vector<16x16x128xbf16>
    %26 = vector.shape_cast %25 : vector<16x16x128xbf16> to vector<256x128xbf16>
    %c0_37 = arith.constant 0 : index
    %c2 = arith.constant 2 : index
    %c0_38 = arith.constant 0 : index
    %27 = vector.load %arg7[%c0_37, %c2, %c0_38] : memref<18x18x128xbf16, #tpu.memory_space<vmem>>, vector<16x16x128xbf16>
    %28 = vector.shape_cast %27 : vector<16x16x128xbf16> to vector<256x128xbf16>
    %c1_39 = arith.constant 1 : index
    %c0_40 = arith.constant 0 : index
    %c0_41 = arith.constant 0 : index
    %29 = vector.load %arg7[%c1_39, %c0_40, %c0_41] : memref<18x18x128xbf16, #tpu.memory_space<vmem>>, vector<16x16x128xbf16>
    %30 = vector.shape_cast %29 : vector<16x16x128xbf16> to vector<256x128xbf16>
    %c1_42 = arith.constant 1 : index
    %c1_43 = arith.constant 1 : index
    %c0_44 = arith.constant 0 : index
    %31 = vector.load %arg7[%c1_42, %c1_43, %c0_44] : memref<18x18x128xbf16, #tpu.memory_space<vmem>>, vector<16x16x128xbf16>
    %32 = vector.shape_cast %31 : vector<16x16x128xbf16> to vector<256x128xbf16>
    %c1_45 = arith.constant 1 : index
    %c2_46 = arith.constant 2 : index
    %c0_47 = arith.constant 0 : index
    %33 = vector.load %arg7[%c1_45, %c2_46, %c0_47] : memref<18x18x128xbf16, #tpu.memory_space<vmem>>, vector<16x16x128xbf16>
    %34 = vector.shape_cast %33 : vector<16x16x128xbf16> to vector<256x128xbf16>
    %c2_48 = arith.constant 2 : index
    %c0_49 = arith.constant 0 : index
    %c0_50 = arith.constant 0 : index
    %35 = vector.load %arg7[%c2_48, %c0_49, %c0_50] : memref<18x18x128xbf16, #tpu.memory_space<vmem>>, vector<16x16x128xbf16>
    %36 = vector.shape_cast %35 : vector<16x16x128xbf16> to vector<256x128xbf16>
    %c2_51 = arith.constant 2 : index
    %c1_52 = arith.constant 1 : index
    %c0_53 = arith.constant 0 : index
    %37 = vector.load %arg7[%c2_51, %c1_52, %c0_53] : memref<18x18x128xbf16, #tpu.memory_space<vmem>>, vector<16x16x128xbf16>
    %38 = vector.shape_cast %37 : vector<16x16x128xbf16> to vector<256x128xbf16>
    %c2_54 = arith.constant 2 : index
    %c2_55 = arith.constant 2 : index
    %c0_56 = arith.constant 0 : index
    %39 = vector.load %arg7[%c2_54, %c2_55, %c0_56] : memref<18x18x128xbf16, #tpu.memory_space<vmem>>, vector<16x16x128xbf16>
    %40 = vector.shape_cast %39 : vector<16x16x128xbf16> to vector<256x128xbf16>
    %41 = tpu.concatenate %24, %26, %28, %30, %32, %34, %36, %38, %40 in 1 : vector<256x128xbf16>, vector<256x128xbf16>, vector<256x128xbf16>, vector<256x128xbf16>, vector<256x128xbf16>, vector<256x128xbf16>, vector<256x128xbf16>, vector<256x128xbf16>, vector<256x128xbf16> -> vector<256x1152xbf16>
    %c0_57 = arith.constant 0 : index
    %c0_58 = arith.constant 0 : index
    %42 = vector.load %arg2[%c0_57, %c0_58] : memref<1152x128xbf16, #tpu.memory_space<vmem>>, vector<1152x128xbf16>
    %cst_59 = arith.constant dense<0.000000e+00> : vector<256x128xf32>
    %43 = tpu.matmul %41, %42, %cst_59 {dimension_numbers = #tpu.dot_dimension_numbers<[1], [0], [0], [1], [0, 0, 1, 1], [], []>} : vector<256x1152xbf16>, vector<1152x128xbf16>, vector<256x128xf32> -> vector<256x128xf32>
    %c0_60 = arith.constant 0 : index
    %c0_61 = arith.constant 0 : index
    %44 = vector.load %arg3[%c0_60, %c0_61] : memref<1x128xf32, #tpu.memory_space<vmem>>, vector<1x128xf32>
    %45 = vector.shape_cast %44 : vector<1x128xf32> to vector<128xf32>
    %46 = vector.shape_cast %45 : vector<128xf32> to vector<1x128xf32>
    %47 = vector.broadcast %46 : vector<1x128xf32> to vector<256x128xf32>
    %48 = arith.addf %43, %47 : vector<256x128xf32>
    %cst_62 = arith.constant 0.000000e+00 : f32
    %49 = vector.broadcast %cst_62 : f32 to vector<256x128xf32>
    %50 = arith.maximumf %48, %49 : vector<256x128xf32>
    %51 = vector.shape_cast %50 : vector<256x128xf32> to vector<16x16x128xf32>
    %52 = arith.truncf %51 : vector<16x16x128xf32> to vector<16x16x128xbf16>
    %c1_63 = arith.constant 1 : index
    %c1_64 = arith.constant 1 : index
    %c0_65 = arith.constant 0 : index
    %53 = vector.load %arg8[%c1_63, %c1_64, %c0_65] : memref<18x18x128xbf16, #tpu.memory_space<vmem>>, vector<16x16x128xbf16>
    tpu.vector_store %arg8[%c1_63, %c1_64, %c0_65], %52 {strides = array<i32>} : memref<18x18x128xbf16, #tpu.memory_space<vmem>>, vector<16x16x128xbf16>,
    %c0_66 = arith.constant 0 : index
    %c0_67 = arith.constant 0 : index
    %c0_68 = arith.constant 0 : index
    %54 = vector.load %arg8[%c0_66, %c0_67, %c0_68] : memref<18x18x128xbf16, #tpu.memory_space<vmem>>, vector<16x16x128xbf16>
    %55 = vector.shape_cast %54 : vector<16x16x128xbf16> to vector<256x128xbf16>
    %c0_69 = arith.constant 0 : index
    %c1_70 = arith.constant 1 : index
    %c0_71 = arith.constant 0 : index
    %56 = vector.load %arg8[%c0_69, %c1_70, %c0_71] : memref<18x18x128xbf16, #tpu.memory_space<vmem>>, vector<16x16x128xbf16>
    %57 = vector.shape_cast %56 : vector<16x16x128xbf16> to vector<256x128xbf16>
    %c0_72 = arith.constant 0 : index
    %c2_73 = arith.constant 2 : index
    %c0_74 = arith.constant 0 : index
    %58 = vector.load %arg8[%c0_72, %c2_73, %c0_74] : memref<18x18x128xbf16, #tpu.memory_space<vmem>>, vector<16x16x128xbf16>
    %59 = vector.shape_cast %58 : vector<16x16x128xbf16> to vector<256x128xbf16>
    %c1_75 = arith.constant 1 : index
    %c0_76 = arith.constant 0 : index
    %c0_77 = arith.constant 0 : index
    %60 = vector.load %arg8[%c1_75, %c0_76, %c0_77] : memref<18x18x128xbf16, #tpu.memory_space<vmem>>, vector<16x16x128xbf16>
    %61 = vector.shape_cast %60 : vector<16x16x128xbf16> to vector<256x128xbf16>
    %c1_78 = arith.constant 1 : index
    %c1_79 = arith.constant 1 : index
    %c0_80 = arith.constant 0 : index
    %62 = vector.load %arg8[%c1_78, %c1_79, %c0_80] : memref<18x18x128xbf16, #tpu.memory_space<vmem>>, vector<16x16x128xbf16>
    %63 = vector.shape_cast %62 : vector<16x16x128xbf16> to vector<256x128xbf16>
    %c1_81 = arith.constant 1 : index
    %c2_82 = arith.constant 2 : index
    %c0_83 = arith.constant 0 : index
    %64 = vector.load %arg8[%c1_81, %c2_82, %c0_83] : memref<18x18x128xbf16, #tpu.memory_space<vmem>>, vector<16x16x128xbf16>
    %65 = vector.shape_cast %64 : vector<16x16x128xbf16> to vector<256x128xbf16>
    %c2_84 = arith.constant 2 : index
    %c0_85 = arith.constant 0 : index
    %c0_86 = arith.constant 0 : index
    %66 = vector.load %arg8[%c2_84, %c0_85, %c0_86] : memref<18x18x128xbf16, #tpu.memory_space<vmem>>, vector<16x16x128xbf16>
    %67 = vector.shape_cast %66 : vector<16x16x128xbf16> to vector<256x128xbf16>
    %c2_87 = arith.constant 2 : index
    %c1_88 = arith.constant 1 : index
    %c0_89 = arith.constant 0 : index
    %68 = vector.load %arg8[%c2_87, %c1_88, %c0_89] : memref<18x18x128xbf16, #tpu.memory_space<vmem>>, vector<16x16x128xbf16>
    %69 = vector.shape_cast %68 : vector<16x16x128xbf16> to vector<256x128xbf16>
    %c2_90 = arith.constant 2 : index
    %c2_91 = arith.constant 2 : index
    %c0_92 = arith.constant 0 : index
    %70 = vector.load %arg8[%c2_90, %c2_91, %c0_92] : memref<18x18x128xbf16, #tpu.memory_space<vmem>>, vector<16x16x128xbf16>
    %71 = vector.shape_cast %70 : vector<16x16x128xbf16> to vector<256x128xbf16>
    %72 = tpu.concatenate %55, %57, %59, %61, %63, %65, %67, %69, %71 in 1 : vector<256x128xbf16>, vector<256x128xbf16>, vector<256x128xbf16>, vector<256x128xbf16>, vector<256x128xbf16>, vector<256x128xbf16>, vector<256x128xbf16>, vector<256x128xbf16>, vector<256x128xbf16> -> vector<256x1152xbf16>
    %c0_93 = arith.constant 0 : index
    %c0_94 = arith.constant 0 : index
    %73 = vector.load %arg4[%c0_93, %c0_94] : memref<1152x128xbf16, #tpu.memory_space<vmem>>, vector<1152x128xbf16>
    %cst_95 = arith.constant dense<0.000000e+00> : vector<256x128xf32>
    %74 = tpu.matmul %72, %73, %cst_95 {dimension_numbers = #tpu.dot_dimension_numbers<[1], [0], [0], [1], [0, 0, 1, 1], [], []>} : vector<256x1152xbf16>, vector<1152x128xbf16>, vector<256x128xf32> -> vector<256x128xf32>
    %c0_96 = arith.constant 0 : index
    %c0_97 = arith.constant 0 : index
    %75 = vector.load %arg5[%c0_96, %c0_97] : memref<1x128xf32, #tpu.memory_space<vmem>>, vector<1x128xf32>
    %76 = vector.shape_cast %75 : vector<1x128xf32> to vector<128xf32>
    %77 = vector.shape_cast %76 : vector<128xf32> to vector<1x128xf32>
    %78 = vector.broadcast %77 : vector<1x128xf32> to vector<256x128xf32>
    %79 = arith.addf %74, %78 : vector<256x128xf32>
    %80 = vector.shape_cast %21 : vector<16x16x128xbf16> to vector<256x128xbf16>
    %81 = arith.extf %80 : vector<256x128xbf16> to vector<256x128xf32>
    %82 = arith.addf %79, %81 : vector<256x128xf32>
    %cst_98 = arith.constant 0.000000e+00 : f32
    %83 = vector.broadcast %cst_98 : f32 to vector<256x128xf32>
    %84 = arith.maximumf %82, %83 : vector<256x128xf32>
    %85 = vector.shape_cast %84 : vector<256x128xf32> to vector<16x16x128xf32>
    %c0_99 = arith.constant 0 : index
    %c0_100 = arith.constant 0 : index
    %c0_101 = arith.constant 0 : index
    %c0_102 = arith.constant 0 : index
    %86 = vector.load %arg6[%c0_99, %c0_100, %c0_101, %c0_102] : memref<1x16x16x128xf32, #tpu.memory_space<vmem>>, vector<1x16x16x128xf32>
    %87 = vector.shape_cast %86 : vector<1x16x16x128xf32> to vector<16x16x128xf32>
    %88 = vector.shape_cast %85 : vector<16x16x128xf32> to vector<1x16x16x128xf32>
    tpu.vector_store %arg6[%c0_99, %c0_100, %c0_101, %c0_102], %88 {strides = array<i32>} : memref<1x16x16x128xf32, #tpu.memory_space<vmem>>, vector<1x16x16x128xf32>,
    return
  }
  func.func @transform_0(%arg0: i32) -> (i32, i32, i32, i32) {
    %c0_i32 = arith.constant 0 : i32
    %c0_i32_0 = arith.constant 0 : i32
    %c0_i32_1 = arith.constant 0 : i32
    %c0_i32_2 = arith.constant 0 : i32
    return %arg0, %c0_i32, %c0_i32_0, %c0_i32_1 : i32, i32, i32, i32
  }
  func.func @transform_1(%arg0: i32) -> (i32, i32) {
    %c0_i32 = arith.constant 0 : i32
    %c0_i32_0 = arith.constant 0 : i32
    %c0_i32_1 = arith.constant 0 : i32
    return %c0_i32, %c0_i32_0 : i32, i32
  }
  func.func @transform_2(%arg0: i32) -> (i32, i32) {
    %c0_i32 = arith.constant 0 : i32
    %c0_i32_0 = arith.constant 0 : i32
    %c0_i32_1 = arith.constant 0 : i32
    return %c0_i32, %c0_i32_0 : i32, i32
  }
  func.func @transform_3(%arg0: i32) -> (i32, i32) {
    %c0_i32 = arith.constant 0 : i32
    %c0_i32_0 = arith.constant 0 : i32
    %c0_i32_1 = arith.constant 0 : i32
    return %c0_i32, %c0_i32_0 : i32, i32
  }
  func.func @transform_4(%arg0: i32) -> (i32, i32) {
    %c0_i32 = arith.constant 0 : i32
    %c0_i32_0 = arith.constant 0 : i32
    %c0_i32_1 = arith.constant 0 : i32
    return %c0_i32, %c0_i32_0 : i32, i32
  }
  func.func @transform_5(%arg0: i32) -> (i32, i32, i32, i32) {
    %c0_i32 = arith.constant 0 : i32
    %c0_i32_0 = arith.constant 0 : i32
    %c0_i32_1 = arith.constant 0 : i32
    %c0_i32_2 = arith.constant 0 : i32
    return %arg0, %c0_i32, %c0_i32_0, %c0_i32_1 : i32, i32, i32, i32
  }
}

</mosaic_0001>

<bundles_post_ra>
// kernel: tpu_custom_call.1
= control target key start
LH: loop header
LB: loop body
LE: loop exit
PB: predicated region body
PF: predicated region fallthrough
CT: control target
= control target key end

     0   :  { %10 = vsyncpa [#allocation5], 0  ;;  %s16205_s0 = inlined_call_operand.hbm [shape: bf16[2,16,16,128], index: 0, kind: input, shape index: {}]   ;;  %s16206_s1 = inlined_call_operand.hbm [shape: bf16[1152,128], index: 1, kind: input, shape index: {}]   ;;  %s16207_s2 = inlined_call_operand.vmem [shape: f32[1,128], index: 2, kind: input, shape index: {}]   ;;  %s16208_s3 = inlined_call_operand.hbm [shape: bf16[1152,128], index: 3, kind: input, shape index: {}]   ;;  %s16209_s4 = inlined_call_operand.vmem [shape: f32[1,128], index: 4, kind: input, shape index: {}]   ;;  %s16210_s5 = inlined_call_operand.hbm [shape: f32[2,16,16,128], index: 5, kind: output, shape index: {}]  }
   0x1   :  { %12 = vsyncpa [#allocation5 + $0x1], 0 }
   0x2   :  { %13 = vsyncpa [#allocation8], 0 }
   0x3   :  { %14 = vsyncpa [#allocation6], 0 }
   0x4   :  { %16 = vsyncpa [#allocation6 + $0x1], 0  ;;  %s11722_s18 = smov 0   ;;  %s11724_s19 = smov 0  }
   0x5   :  { %s11726_s20 = smov 0   ;;  %s11728_s21 = smov 0  }
   0x6 LB: > { %s11743_s22 = sadd.s32 4294967295, %s11681_s21   ;;  %s9452_s23 = sadd.s32 4294967294, %s11681_s21   ;;  %s11681_s21 = sphi %s11728_s21, %s16587_s21   ;;  %s11677_s20 = sphi %s11726_s20, %s16586_s20   ;;  %s11673_s19 = sphi %s11724_s19, %s16585_s19   ;;  %s11669_s18 = sphi %s11722_s18, %s16584_s18  }
   0x7   : > { %p42_p0 = scmp.ne.s32.totalorder %s11673_s19, %s11669_s18  ;;  %p16211_p1 = scmp.eq.s32.totalorder %s11743_s22, 0 }
   0x8   : > { %p156_p3 = scmp.eq.s32.totalorder %s9452_s23, 1  ;;  %p9453_p5 = scmp.ge.s32.totalorder %s11681_s21, 1 }
   0x9   : > { %p11752_p4 = por %p16211_p1, %p42_p0  ;;  %p163_p7 = scmp.lt.s32.totalorder %s11681_s21, 3 }
   0xa   : > { %p11757_p6 = por %p156_p3, %p42_p0  ;;  %s11683_s27 = smov [#allocation7]  }
   0xb   : > { %s16264_s24 = scalar_select %p11752_p4, 1, 0 }
   0xc   : > { %s16265_s25 = scalar_select %p11757_p6, 1, 0 }
   0xd   : > { %p11762_p8 = pnand %p9453_p5, %p163_p7  ;;  %s175_s28 = sshll.u32 %s11683_s27, 4  ;;  %s11766_s28 = int_to_ptr.vmem [resolvable:$true] %s175_s28 }
   0xe   : > { %s11684_s30 = smov [#allocation9]   ;;  %s11525_s9 = scalar_lea.hbm %s16206_s1, 9216 }
   0xf   : > { %p11118_p9 = pneg %p11762_p8  ;;  %s191_s6 = sshll.u32 %s11684_s30, 4  ;;  %s11777_s6 = int_to_ptr.vmem [resolvable:$true] %s191_s6 }
  0x10   : > { %p11526_p12 = scmp.ne.s32.totalorder %s16206_s1, %s11525_s9  ;;  %p11532_p5 = scmp.lt.u32.totalorder %s11525_s9, %s16206_s1 }
  0x11   : > { %p11773_p11 = pnand %p11118_p9, %p16211_p1 }
  0x13   : > { %p11527_p13 = pneg %p11773_p11 }
  0x15   : > { %p11528_p0 = pnand %p11527_p13, %p11526_p12 }
  0x17   : > { %p11529_p3 = pneg %p11528_p0 }
  0x19   : > { %p11534_p7 = pnand %p11532_p5, %p11529_p3 }
  0x1b   : > { %11537 = shalt.err (!%p11534_p7)
}
  0x1c   : > { %s11538_s14 = scalar_lea.vmem %s11766_s28, 9216  ;;  %p11546_p2 = scmp.lt.s32.totalorder %s11766_s28, %s11766_s28 }
  0x1d   : > { %p11539_p9 = scmp.ne.s32.totalorder %s11766_s28, %s11538_s14  ;;  %p11547_p12 = scmp.lt.s32.totalorder %s11538_s14, %s11538_s14 }
  0x1f   : > { %p11541_p10 = pnand %p11539_p9, %p11527_p13  ;;  %p11548_p0 = por %p11547_p12, %p11546_p2 }
  0x21   : > { %p11542_p1 = pneg %p11541_p10 }
  0x23   : > { %p11549_p6 = pnand %p11548_p0, %p11542_p1 }
  0x25   : > { %11552 = shalt.err (!%p11549_p6)
}
  0x26   : > { %s11685_s15 = smov 64   ;;  %s11686_s16 = smov 4  }
  0x27   : > { %11121 = dma.hbm_to_vmem [thread:$0]  (!%p11773_p11), %s16206_s1, 9216, %s11766_s28, [#allocation8], %s11685_s15, %s11685_s15, %s11686_s16  }
  0x28   : > { %s11553_s7 = scalar_lea.hbm %s16208_s3, 9216 }
  0x29   : > { %p11554_p1 = scmp.ne.s32.totalorder %s16208_s3, %s11553_s7  ;;  %p11560_p10 = scmp.lt.u32.totalorder %s11553_s7, %s16208_s3 }
  0x2b   : > { %p11556_p2 = pnand %p11554_p1, %p11527_p13 }
  0x2d   : > { %p11557_p6 = pneg %p11556_p2 }
  0x2f   : > { %p11562_p3 = pnand %p11560_p10, %p11557_p6 }
  0x31   : > { %11565 = shalt.err (!%p11562_p3)
}
  0x32   : > { %s11566_s28 = scalar_lea.vmem %s11777_s6, 9216  ;;  %p11574_p12 = scmp.lt.s32.totalorder %s11777_s6, %s11777_s6 }
  0x33   : > { %p11567_p5 = scmp.ne.s32.totalorder %s11777_s6, %s11566_s28  ;;  %p11575_p0 = scmp.lt.s32.totalorder %s11566_s28, %s11566_s28 }
  0x35   : > { %p11569_p7 = pnand %p11567_p5, %p11527_p13  ;;  %p11576_p1 = por %p11575_p0, %p11574_p12 }
  0x37   : > { %p11570_p9 = pneg %p11569_p7 }
  0x39   : > { %p11577_p2 = pnand %p11576_p1, %p11570_p9 }
  0x3b   : > { %11580 = shalt.err (!%p11577_p2)
}
  0x3c   : > { %11124 = dma.hbm_to_vmem [thread:$0]  (!%p11773_p11), %s16208_s3, 9216, %s11777_s6, [#allocation8], %s11685_s15, %s11685_s15, %s11686_s16  }
  0x3d   : > { %s11838_s29 = sadd.s32 1, %s11681_s21   ;;  %s29_s14 = sadd.s32 1, %s11677_s20 }
  0x3e   : > { %s26_s17 = ssub.s32 %s11681_s21, %s11838_s29  ;;  %p36_p13 = scmp.ne.s32.totalorder %s11677_s20, %s11673_s19 }
  0x3f   : > { %p27_p6 = scmp.eq.s32.totalorder %s26_s17, 0  ;;  %p37_p10 = scmp.eq.s32.totalorder %s11681_s21, 0 }
  0x40   : > { %p16268_p3 = scmp.eq.s32.totalorder %s11743_s22, 1  ;;  %p11135_p7 = scmp.lt.s32.totalorder %s11681_s21, 2 }
  0x41   : > { %s11854_s27 = scalar_select %p27_p6, %s11677_s20, %s29_s14  }
  0x42   : > { %p11848_p5 = por %p16268_p3, %p36_p13  ;;  %p38_p9 = por %p37_p10, %p36_p13 }
  0x43   : > { %s208_s30 = sand.u32 1, %s11677_s20   ;;  %s10032_s6 = sshll.u32 %s11681_s21, 11 }
  0x44   : > { %s16269_s23 = scalar_select %p11848_p5, 1, 0 }
  0x45   : > { %s9457_s7 = sshll.u32 %s208_s30, 7  ;;  %s11861_s10 = scalar_lea.hbm %s16205_s0, %s10032_s6 }
  0x46   : > { %s212_s11 = scalar_lea.vmem [#allocation4], %s9457_s7  ;;  %p11865_p11 = pnand %p11135_p7, %p38_p9 }
  0x47   : > { %s219_s28 = sshll.u32 %s212_s11, 4  ;;  %s11869_s13 = scalar_lea.sflag [#allocation5], %s208_s30  ;;  %s11863_s28 = int_to_ptr.vmem [resolvable:$true] %s219_s28 }
  0x48   : > { %s11581_s14 = scalar_lea.hbm %s11861_s10, 2048  ;;  %p11583_p0 = pneg %p11865_p11 }
  0x49   : > { %p11582_p12 = scmp.ne.s32.totalorder %s11861_s10, %s11581_s14  ;;  %s11586_s6 = scalar_lea.hbm %s16205_s0, 4096 }
  0x4a   : > { %p11587_p13 = scmp.lt.u32.totalorder %s11861_s10, %s16205_s0  ;;  %p11588_p6 = scmp.lt.u32.totalorder %s11586_s6, %s11581_s14 }
  0x4b   : > { %p11584_p1 = pnand %p11583_p0, %p11582_p12  ;;  %p11590_p3 = scmp.lt.u32.totalorder %s11581_s14, %s11861_s10 }
  0x4c   : > { %p11589_p10 = por %p11588_p6, %p11587_p13 }
  0x4d   : > { %p11585_p2 = pneg %p11584_p1 }
  0x4e   : > { %p11591_p7 = por %p11590_p3, %p11589_p10 }
  0x50   : > { %p11592_p9 = pnand %p11591_p7, %p11585_p2 }
  0x52   : > { %11595 = shalt.err (!%p11592_p9)
}
  0x53   : > { %s11596_s30 = scalar_lea.vmem %s11863_s28, 2048  ;;  %s11687_s11 = smov [#allocation4]  }
  0x54   : > { %p11597_p12 = scmp.ne.s32.totalorder %s11863_s28, %s11596_s30  ;;  %s11601_s17 = sshll.u32 %s11687_s11, 4  ;;  %s11602_s17 = int_to_ptr.vmem [resolvable:$false] %s11601_s17 }
  0x55   : > { %s11603_s7 = scalar_lea.vmem %s11602_s17, 4096  ;;  %p11604_p4 = scmp.lt.s32.totalorder %s11863_s28, %s11602_s17 }
  0x56   : > { %p11599_p1 = pnand %p11597_p12, %p11583_p0  ;;  %p11605_p13 = scmp.lt.s32.totalorder %s11603_s7, %s11596_s30 }
  0x58   : > { %p11600_p5 = pneg %p11599_p1  ;;  %p11606_p6 = por %p11605_p13, %p11604_p4 }
  0x5a   : > { %p11607_p10 = pnand %p11606_p6, %p11600_p5 }
  0x5c   : > { %11610 = shalt.err (!%p11607_p10)
}
  0x5d   : > { %11128 = dma.hbm_to_vmem [thread:$0]  (!%p11865_p11), %s11861_s10, 2048, %s11863_s28, %s11869_s13, %s11685_s15, %s11685_s15, %s11686_s16  }
  0x5e   : > { %231 = sbr.rel (%p11762_p8) target bundleno = 1377 (0x561), region = 40 }
  0x65   : > { %s11903_s14 = sand.u32 1, %s11673_s19   ;;  %p16271_p4 = scmp.ne.s32.totalorder %s16264_s24, 0 }
  0x66   : > { %s9461_s6 = sshll.u32 %s11903_s14, 7  ;;  %s234_s8 = scalar_lea.sflag [#allocation5], %s11903_s14 }
  0x67   : > { %s11907_s9 = scalar_lea.vmem [#allocation4], %s9461_s6 }
  0x68   : > { %11656 = dma.done.wait (%p16271_p4), %s234_s8, 2048  }
  0x69   : > { %11658 = vsyncadd (%p16271_p4), %s234_s8, 4294965248  ;;  %p16272_p5 = scmp.eq.s32.totalorder %s11743_s22, 0 }
  0x6b   : > { %11660 = dma.done.wait (%p16272_p5), [#allocation8], 18432   ;;  %p16273_p8 = pmov %p16272_p5 }
  0x6c   : > { %v11688_v0 = vmov 0   ;;  %v11178_v1 = vld [vmem:[#allocation7 + $0x40] sm:$0xff]   ;;  %v11182_v5 = vld [vmem:[#allocation7 + $0x48] sm:$0xff]   ;;  %v11186_v9 = vld [vmem:[#allocation7 + $0x50] sm:$0xff]   ;;  %vm281_vm0 = vsmask.f32 256 }
  0x6d   : > { %11662 = vsyncadd (%p16273_p8), [#allocation8], 4294948864  ;;  %273 = vst [vmem:[#allocation2] sm:$0xf] %v11688_v0  ;;  %v11179_v2 = vld [vmem:[#allocation7] sm:$0xff]   ;;  %10066 = vmatprep.subr.bf16.mxu0 %v11178_v1  ;;  %v11183_v6 = vld [vmem:[#allocation7 + $0x8] sm:$0xff]  }
  0x6e   : > { %274 = vst [vmem:[#allocation2 + $0x4] sm:$0xf] %v11688_v0  ;;  %275 = vst [vmem:[#allocation2 + $0x8] sm:$0x1] %v11688_v0  ;;  %v11180_v3 = vld [vmem:[#allocation7 + $0xc0] sm:$0xff]   ;;  %10067 = vmatpush3.bf16.msra.mxu0 %v11179_v2  ;;  %v11184_v7 = vld [vmem:[#allocation7 + $0xc8] sm:$0xff]  }
  0x6f   : > { %277 = vst [vmem:[#allocation2 + $0xcc] sm:$0xf] %v11688_v0  ;;  %278 = vst [vmem:[#allocation2 + $0xd0] sm:$0xf] %v11688_v0  ;;  %v11181_v4 = vld [vmem:[#allocation7 + $0x80] sm:$0xff]   ;;  %10178 = vmatprep.subr.bf16.mxu1 %v11180_v3  ;;  %10068 = vmatprep.subr.bf16.mxu0 %v11182_v5  ;;  %v11185_v8 = vld [vmem:[#allocation7 + $0x88] sm:$0xff]  }
  0x70   : > { %279 = vst [vmem:[#allocation2 + $0xd4] sm:$0x1] %v11688_v0  ;;  %393 = vst [vmem:[#allocation3] sm:$0xf] %v11688_v0  ;;  %10179 = vmatpush3.bf16.msra.mxu1 %v11181_v4  ;;  %v11187_v10 = vld [vmem:[#allocation7 + $0x10] sm:$0xff]   ;;  %v11190_v13 = vld [vmem:[#allocation7 + $0x58] sm:$0xff]  }
  0x71   : > { %394 = vst [vmem:[#allocation3 + $0x4] sm:$0xf] %v11688_v0  ;;  %395 = vst [vmem:[#allocation3 + $0x8] sm:$0x1] %v11688_v0  ;;  %10180 = vmatprep.subr.bf16.mxu1 %v11184_v7  ;;  %v11188_v11 = vld [vmem:[#allocation7 + $0xd0] sm:$0xff]   ;;  %v11191_v14 = vld [vmem:[#allocation7 + $0x18] sm:$0xff]  }
  0x72   : > { %397 = vst [vmem:[#allocation3 + $0xcc] sm:$0xf] %v11688_v0  ;;  %398 = vst [vmem:[#allocation3 + $0xd0] sm:$0xf] %v11688_v0  ;;  %10069 = vmatpush3.bf16.msra.mxu0 %v11183_v6  ;;  %vm337_vm1 = vsmask.f32 7938 }
  0x73   : > { %399 = vst [vmem:[#allocation3 + $0xd4] sm:$0x1] %v11688_v0  ;;  %10070 = vmatprep.subr.bf16.mxu0 %v11186_v9  ;;  %v11189_v12 = vld [vmem:[#allocation7 + $0x90] sm:$0xff]   ;;  %v11192_v15 = vld [vmem:[#allocation7 + $0xd8] sm:$0xff]   ;;  %v11194_v17 = vld [vmem:[#allocation7 + $0x60] sm:$0xff]   ;;  %vm280_vm2 = vcmask 1040384  }
  0x74   : > { %10181 = vmatpush3.bf16.msra.mxu1 %v11185_v8  ;;  %v11193_v16 = vld [vmem:[#allocation7 + $0x98] sm:$0xff]   ;;  %v11195_v18 = vld [vmem:[#allocation7 + $0x20] sm:$0xff]   ;;  %v11198_v21 = vld [vmem:[#allocation7 + $0x68] sm:$0xff]   ;;  %v16274_v23 = vmov 0  ;;  %v16277_v24 = vmov 0  ;;  %vm1476_vm8 = vcmask 1042432  }
  0x75   : > { %10182 = vmatprep.subr.bf16.mxu1 %v11188_v11  ;;  %v11196_v19 = vld [vmem:[#allocation7 + $0xe0] sm:$0xff]   ;;  %v11199_v22 = vld [vmem:[#allocation7 + $0x28] sm:$0xff]   ;;  %vm11918_vm3 = vmand %vm280_vm2, %vm281_vm0  ;;  %vm1025_vm5 = vsmask.f32 3328  ;;  %vm1026_vm6 = vsmask.f32 7440 }
  0x76   : > { %10071 = vmatpush3.bf16.msra.mxu0 %v11187_v10  ;;  %v11197_v20 = vld [vmem:[#allocation7 + $0xa0] sm:$0xff]   ;;  %v16275_v23 = vsel %vm11918_vm3, 4294967295, %v16274_v23  ;;  %vm11923_vm4 = vmand %vm280_vm2, %vm337_vm1  ;;  %v11200_v25 = vld [vmem:[#allocation7 + $0xe8] sm:$0xff]   ;;  %vm540_vm7 = vsmask.f32 4368  ;;  %vm863_vm9 = vcmask 1043456  }
  0x77   : > { %10072 = vmatprep.subr.bf16.mxu0 %v11190_v13  ;;  %16276 = vst [vmem:[#allocation14_spill] sm:$0xff] %v16275_v23  ;;  %v16278_v24 = vsel %vm11923_vm4, 4294967295, %v16277_v24  ;;  %v11201_v26 = vld [vmem:[#allocation7 + $0xa8] sm:$0xff]   ;;  %v11202_v27 = vld [vmem:[#allocation7 + $0x70] sm:$0xff]   ;;  %v11206_v31 = vld [vmem:[#allocation7 + $0x78] sm:$0xff]   ;;  %vm1477_vm10 = vcmask 1046532  }
  0x78   : > { %10183 = vmatpush3.bf16.msra.mxu1 %v11189_v12  ;;  %16279 = vst [vmem:[#allocation15_spill] sm:$0xff] %v16278_v24  ;;  %v11203_v28 = vld [vmem:[#allocation7 + $0x30] sm:$0xff]   ;;  %v11207_v32 = vld [vmem:[#allocation7 + $0x38] sm:$0xff]   ;;  %v11211_v44 = vld [vmem:[#allocation7 + $0x140] sm:$0xff]   ;;  %v16284_v10 = vmov 0  ;;  %s9464_s12 = sshll.u32 %s11903_s14, 8 }
  0x79   : > { %10184 = vmatprep.subr.bf16.mxu1 %v11192_v15  ;;  %v11204_v29 = vld [vmem:[#allocation7 + $0xf0] sm:$0xff]   ;;  %v11208_v33 = vld [vmem:[#allocation7 + $0xf8] sm:$0xff]   ;;  %v508_v47 = vld [vmem:[%s11907_s9] sm:$0xf]  ;;  %v16287_v15 = vmov 0  ;;  %s16062_s13 = scalar_lea.vmem [#allocation10], %s9464_s12 }
  0x7a   : > { %10073 = vmatpush3.bf16.msra.mxu0 %v11191_v14  ;;  %v11205_v30 = vld [vmem:[#allocation7 + $0xb0] sm:$0xff]   ;;  %v339_v35 = vld [vmem:[#allocation2 + $0x8] sm:$0x1]  ;;  %v286_v46 = vld [vmem:[#allocation2 + $0xc] sm:$0x1]  ;;  %v543_v51 = vshrl.u32 %v508_v47, 16 }
  0x7b   : > { %10074 = vmatprep.subr.bf16.mxu0 %v11194_v17  ;;  %v283_v34 = vld [vmem:[#allocation2] sm:$0x1]  ;;  %v11927_v36 = vld [vmem:[#allocation2 + $0x4] sm:$0xf]  ;;  %v340_v38 = vsel %vm11923_vm4, 0, %v339_v35  ;;  %v11209_v41 = vld [vmem:[#allocation7 + $0xb8] sm:$0xff]  }
  0x7c   : > { %10185 = vmatpush3.bf16.msra.mxu1 %v11193_v16  ;;  %v284_v37 = vsel %vm11918_vm3, 0, %v283_v34  ;;  %v1038_v39 = vshll.u32 %v11927_v36, 16  ;;  %v1042_v40 = vshrl.u32 %v11927_v36, 16  ;;  %341 = vst [vmem:[#allocation2 + $0x8] sm:$0x1] %v340_v38  ;;  %v1481_v45 = vrot.slane %v11927_v36, 5  ;;  %vm11947_vm11 = vmor %vm1476_vm8, %vm1477_vm10 }
  0x7d   : > { %10186 = vmatprep.subr.bf16.mxu1 %v11196_v19  ;;  %285 = vst [vmem:[#allocation2] sm:$0x1] %v284_v37  ;;  %v509_v48 = vld [vmem:[%s11907_s9 + $0x4] sm:$0xf]  ;;  %v287_v50 = vsel %vm11918_vm3, 0, %v286_v46  ;;  %v546_v52 = vshll.u32 %v508_v47, 16  ;;  %vm11958_vm12 = vmor %vm1025_vm5, %vm1026_vm6 }
  0x7e   : > { %10075 = vmatpush3.bf16.msra.mxu0 %v11195_v18  ;;  %v11935_v42 = vrot.slane %v1038_v39, 5  ;;  %v1044_v43 = vrot.slane %v1042_v40, 4  ;;  %288 = vst [vmem:[#allocation2 + $0xc] sm:$0x1] %v287_v50  ;;  %v551_v53 = vshrl.u32 %v509_v48, 16  ;;  %v554_v54 = vshll.u32 %v509_v48, 16  ;;  %vm11968_vm13 = vmor %vm281_vm0, %vm540_vm7 }
  0x7f   : > { %10076 = vmatprep.subr.bf16.mxu0 %v11198_v21  ;;  %v1412_v55 = vld [vmem:[#allocation2] sm:$0xe]  ;;  %v545_v57 = vrot.slane %v543_v51, 7  ;;  %v1483_v59 = vrot.slane %v1481_v45, 4  ;;  %v342_v60 = vld [vmem:[#allocation2 + $0x14] sm:$0x1]  ;;  %vm11975_vm14 = vmand %vm863_vm9, %vm337_vm1 }
  0x80   : > { %10187 = vmatpush3.bf16.msra.mxu1 %v11197_v20  ;;  %v1045_v49 = vor.u32 %v1044_v43, %v11935_v42  ;;  %v9465_v58 = vrot.slane %v1412_v55, 9  ;;  %v553_v61 = vrot.slane %v551_v53, 7  ;;  %v343_v63 = vsel %vm11923_vm4, 0, %v342_v60  ;;  %v289_v0 = vld [vmem:[#allocation2 + $0x18] sm:$0x1]  ;;  %s10065_s30 = sshll.u32 %s11743_s22, 12 }
  0x81   : > { %10188 = vmatprep.subr.bf16.mxu1 %v11200_v25  ;;  %v510_v1 = vld [vmem:[%s11907_s9 + $0x8] sm:$0xf]  ;;  %v549_v5 = vrot.slane %v545_v57, 4  ;;  %344 = vst [vmem:[#allocation2 + $0x14] sm:$0x1] %v343_v63  ;;  %v290_v6 = vsel %vm11918_vm3, 0, %v289_v0  ;;  %v548_v11 = vor.u32 %v546_v52, %v545_v57  ;;  %s16156_s6 = scalar_lea.hbm %s16210_s5, %s10065_s30 }
  0x82   : > { %10077 = vmatpush3.bf16.msra.mxu0 %v11199_v22  ;;  %v11943_v56 = vrot.slane %v1045_v49, 4  ;;  %v16285_v10 = vsel %vm11968_vm13, 4294967295, %v16284_v10  ;;  %291 = vst [vmem:[#allocation2 + $0x18] sm:$0x1] %v290_v6  ;;  %v511_v12 = vld [vmem:[%s11907_s9 + $0xc] sm:$0xf]  ;;  %v556_v14 = vor.u32 %v554_v54, %v553_v61  ;;  %v11981_v16 = vsel %vm11947_vm11, %v9465_v58, %v1481_v45 }
  0x83   : > { %10078 = vmatprep.subr.bf16.mxu0 %v11202_v27  ;;  %v1009_v3 = vld [vmem:[#allocation2 + $0x8] sm:$0x1]  ;;  %16286 = vst [vmem:[#allocation16_spill] sm:$0xff] %v16285_v10  ;;  %v16288_v15 = vsel %vm11975_vm14, 4294967295, %v16287_v15  ;;  %v560_v17 = vshrl.u32 %v510_v1, 16  ;;  %v558_v22 = vrot.slane %v553_v61, 4 }
  0x84   : > { %10189 = vmatpush3.bf16.msra.mxu1 %v11201_v26  ;;  %v11954_v2 = vld [vmem:[#allocation2] sm:$0xf]  ;;  %v1048_v9 = vshll.u32 %v1009_v3, 16  ;;  %v1484_v13 = vrot.slane %v1009_v3, 5  ;;  %16289 = vst [vmem:[#allocation17_spill] sm:$0xff] %v16288_v15  ;;  %v557_v26 = vsel %vm11968_vm13, %v549_v5, %v556_v14  ;;  %v568_v34 = vshrl.u32 %v511_v12, 16 }
  0x85   : > { %10190 = vmatprep.subr.bf16.mxu1 %v11204_v29  ;;  %v1029_v7 = vshrl.u32 %v11954_v2, 16  ;;  %v1032_v8 = vshll.u32 %v11954_v2, 16  ;;  %v345_v18 = vld [vmem:[#allocation2 + $0x20] sm:$0x1]  ;;  %v9513_v25 = vcombine.low %v11954_v2, %v11927_v36  ;;  %v865_v27 = vld [vmem:[#allocation2 + $0xc] sm:$0xf] }
  0x86   : > { %10079 = vmatpush3.bf16.msra.mxu0 %v11203_v28  ;;  %v1050_v21 = vrot.slane %v1048_v9, 5  ;;  %v562_v28 = vrot.slane %v560_v17, 7  ;;  %v563_v29 = vshll.u32 %v510_v1, 16  ;;  %868 = vst [vmem:[#allocation2 + $0x10] sm:$0xf] %v557_v26  ;;  %v571_v39 = vshll.u32 %v511_v12, 16 }
  0x87   : > { %10080 = vmatprep.subr.bf16.mxu0 %v11206_v31  ;;  %v1031_v19 = vrot.slane %v1029_v7, 4  ;;  %v1034_v20 = vrot.slane %v1032_v8, 5  ;;  %v512_v35 = vld [vmem:[%s11907_s9 + $0x10] sm:$0xf]  ;;  %v513_v37 = vld [vmem:[%s11907_s9 + $0x14] sm:$0xf]  ;;  %v1485_v47 = vsel %vm11947_vm11, %v1483_v59, %v1484_v13 }
  0x88   : > { %10191 = vmatpush3.bf16.msra.mxu1 %v11205_v30  ;;  %v292_v30 = vld [vmem:[#allocation2 + $0x24] sm:$0x1]  ;;  %v565_v36 = vor.u32 %v563_v29, %v562_v28  ;;  %v566_v38 = vrot.slane %v562_v28, 4  ;;  %v346_v40 = vsel %vm11923_vm4, 0, %v345_v18  ;;  %v869_v43 = vld [vmem:[#allocation2 + $0x14] sm:$0x1]  ;;  %v9545_v3 = vcombine.low %v11981_v16, %v1485_v47 }
  0x89   : > { %10192 = vmatprep.subr.bf16.mxu1 %v11208_v33  ;;  %v1035_v31 = vor.u32 %v1034_v20, %v1031_v19  ;;  %v866_v33 = vsel %vm11975_vm14, %v548_v11, %v865_v27  ;;  %347 = vst [vmem:[#allocation2 + $0x20] sm:$0x1] %v346_v40  ;;  %v293_v45 = vsel %vm11918_vm3, 0, %v292_v30  ;;  %v577_v46 = vshrl.u32 %v512_v35, 16  ;;  %v872_v49 = vld [vmem:[#allocation2 + $0x18] sm:$0xf] }
  0x8a   : > { %10081 = vmatpush3.bf16.msra.mxu0 %v11207_v32  ;;  %v1051_v32 = vsel %vm11958_vm12, %v11943_v56, %v1050_v21  ;;  %867 = vst [vmem:[#allocation2 + $0xc] sm:$0xf] %v866_v33  ;;  %v870_v48 = vsel %vm11918_vm3, %v558_v22, %v869_v43  ;;  %294 = vst [vmem:[#allocation2 + $0x24] sm:$0x1] %v293_v45  ;;  %v580_v50 = vshll.u32 %v512_v35, 16  ;;  %v585_v51 = vshrl.u32 %v513_v37, 16 }
  0x8b   : > { %10290 = vmatprep.subr.bf16.mxu0 %v11211_v44  ;;  %v11996_v44 = vrot.slane %v568_v34, 7  ;;  %871 = vst [vmem:[#allocation2 + $0x14] sm:$0x1] %v870_v48  ;;  %v873_v54 = vsel %vm11975_vm14, %v565_v36, %v872_v49  ;;  %v588_v55 = vshll.u32 %v513_v37, 16  ;;  %v348_v56 = vld [vmem:[#allocation2 + $0x2c] sm:$0x1] }
  0x8c   : > { %10193 = vmatpush3.bf16.msra.mxu1 %v11209_v41  ;;  %v1036_v41 = vrot.slane %v1035_v31, 4  ;;  %v11213_v58 = vld [vmem:[#allocation7 + $0x100] sm:$0xff]   ;;  %874 = vst [vmem:[#allocation2 + $0x18] sm:$0xf] %v873_v54  ;;  %v12010_v59 = vrot.slane %v577_v46, 7  ;;  %v12012_v60 = vrot.slane %v585_v51, 7 }
  0x8d   : > { %v573_v53 = vor.u32 %v571_v39, %v11996_v44  ;;  %v349_v61 = vsel %vm11923_vm4, 0, %v348_v56  ;;  %v295_v63 = vld [vmem:[#allocation2 + $0x30] sm:$0x1]  ;;  %v11217_v0 = vld [vmem:[#allocation7 + $0x148] sm:$0xff]   ;;  %v575_v6 = vrot.slane %v11996_v44, 4  ;;  %v11223_v28 = vld [vmem:[#allocation7 + $0x150] sm:$0xff]  }
  0x8e   : > { %v1041_v52 = vsel %vm11958_vm12, %v1036_v41, %v11935_v42  ;;  %350 = vst [vmem:[#allocation2 + $0x2c] sm:$0x1] %v349_v61  ;;  %v296_v1 = vsel %vm11918_vm3, 0, %v295_v63  ;;  %v12020_v2 = vld [vmem:[#allocation2 + $0x10] sm:$0xf]  ;;  %v12027_v7 = vor.u32 %v580_v50, %v12010_v59  ;;  %v583_v8 = vrot.slane %v12010_v59, 4 }
  0x8f   : > { %v9529_v57 = vcombine.low %v1041_v52, %v1051_v32  ;;  %v574_v42 = vsel %vm11968_vm13, %v566_v38, %v573_v53  ;;  %v12023_v5 = vld [vmem:[#allocation2 + $0x10] sm:$0xf]  ;;  %297 = vst [vmem:[#allocation2 + $0x30] sm:$0x1] %v296_v1  ;;  %v1649_v11 = vshll.u32 %v12020_v2, 16  ;;  %v1653_v12 = vshrl.u32 %v12020_v2, 16 }
  0x90   : > { %875 = vst [vmem:[#allocation2 + $0x1c] sm:$0xf] %v574_v42  ;;  %v1062_v13 = vshll.u32 %v12023_v5, 16  ;;  %v12034_v14 = vor.u32 %v588_v55, %v12012_v60  ;;  %v1066_v20 = vshrl.u32 %v12023_v5, 16  ;;  %v11219_v21 = vld [vmem:[#allocation7 + $0x108] sm:$0xff]   ;;  %v592_v45 = vrot.slane %v12012_v60, 4 }
  0x91   : > { %4047 = vmatprep.mubr.bf16.mxu0 %v9529_v57  ;;  %v1591_v9 = vld [vmem:[#allocation2 + $0xc] sm:$0xf]  ;;  %v12040_v22 = vrot.slane %v1649_v11, 5  ;;  %v11225_v46 = vld [vmem:[#allocation7 + $0x110] sm:$0xff]   ;;  %v1488_v11 = vrot.slane %v12023_v5, 5  ;;  %v11237_v44 = vld [vmem:[#allocation7 + $0x120] sm:$0xff]  }
  0x92   : > { %4048 = vmatmul.mubr.bf16.vlgmr.msra.gmra.mrb[0].mxu0 %v9513_v25  ;;  %v1640_v16 = vshrl.u32 %v1591_v9, 16  ;;  %v1643_v17 = vshll.u32 %v1591_v9, 16  ;;  %v9561_v18 = vcombine.low %v1591_v9, %v12020_v2  ;;  %v12037_v19 = vld [vmem:[#allocation2 + $0xc] sm:$0xf]  ;;  %v1655_v25 = vrot.slane %v1653_v12, 4  ;;  %s9360_s11 = sshll.u32 %s16062_s13, 4  ;;  %s16158_s11 = int_to_ptr.vmem [resolvable:$true] %s9360_s11 }
  0x93   : > { %10291 = vmatpush3.bf16.msra.mxu0 %v11213_v58  ;;  %v1053_v26 = vshrl.u32 %v12037_v19, 16  ;;  %v1056_v27 = vshll.u32 %v12037_v19, 16  ;;  %v12044_v31 = vld [vmem:[#allocation2 + $0x14] sm:$0x1]  ;;  %v1064_v32 = vrot.slane %v1062_v13, 5  ;;  %v1068_v33 = vrot.slane %v1066_v20, 4 }
  0x94   : > { %10292 = vmatprep.subr.bf16.mxu0 %v11217_v0  ;;  %v1642_v29 = vrot.slane %v1640_v16, 4  ;;  %v1645_v30 = vrot.slane %v1643_v17, 5  ;;  %4208 = vmatprep.mubr.bf16.mxu1 %v9561_v18  ;;  %v1656_v34 = vor.u32 %v1655_v25, %v12040_v22  ;;  %v1072_v36 = vshll.u32 %v12044_v31, 16  ;;  %v12048_v38 = vld [vmem:[#allocation2 + $0x18] sm:$0xf]  ;;  %v11229_v47 = vld [vmem:[#allocation7 + $0x158] sm:$0xff]  }
  0x95   : > { %4209 = vmatmul.mubr.bf16.vlgmr.msra.gmra.mrb[0].mxu1 %v9545_v3  ;;  %v1055_v35 = vrot.slane %v1053_v26, 4  ;;  %v1058_v37 = vrot.slane %v1056_v27, 5  ;;  %v1069_v40 = vor.u32 %v1068_v33, %v1064_v32  ;;  %v1664_v41 = vshrl.u32 %v12048_v38, 16  ;;  %v1413_v43 = vld [vmem:[#allocation2 + $0xc] sm:$0xe]  ;;  %v11235_v16 = vld [vmem:[#allocation7 + $0x160] sm:$0xff]  }
  0x96   : > { %v1646_v39 = vor.u32 %v1645_v30, %v1642_v29  ;;  %v1074_v50 = vrot.slane %v1072_v36, 5  ;;  %v9514_v51 = vcombine.low %v12037_v19, %v12023_v5  ;;  %v876_v53 = vld [vmem:[#allocation2 + $0x20] sm:$0x1]  ;;  %v12059_v55 = vrot.slane %v1656_v34, 4  ;;  %v12062_v58 = vld [vmem:[#allocation2 + $0x18] sm:$0xf] }
  0x97   : > { %10293 = vmatpush3.bf16.msra.mxu0 %v11219_v21  ;;  %v1059_v49 = vor.u32 %v1058_v37, %v1055_v35  ;;  %v12055_v52 = vld [vmem:[#allocation2 + $0x1c] sm:$0xf]  ;;  %v1070_v56 = vrot.slane %v1069_v40, 4  ;;  %v1667_v57 = vshll.u32 %v12048_v38, 16  ;;  %v12064_v63 = vrot.slane %v1664_v41, 4  ;;  %v11231_v13 = vld [vmem:[#allocation7 + $0x118] sm:$0xff]  }
  0x98   : > { %10294 = vmatprep.subr.bf16.mxu0 %v11223_v28  ;;  %v12057_v54 = vrot.slane %v1646_v39, 4  ;;  %v9562_v42 = vcombine.low %v12048_v38, %v12055_v52  ;;  %v9466_v0 = vrot.slane %v1413_v43, 9  ;;  %v12068_v1 = vld [vmem:[#allocation2 + $0x1c] sm:$0xf]  ;;  %v1491_v12 = vrot.slane %v12044_v31, 5  ;;  %s9347_s22 = scalar_lea.sflag [#allocation6], %s11903_s14 }
  0x99   : > { %v1060_v61 = vrot.slane %v1059_v49, 4  ;;  %v1075_v9 = vsel %vm11958_vm12, %v1070_v56, %v1074_v50  ;;  %v877_v18 = vsel %vm11918_vm3, %v575_v6, %v876_v53  ;;  %v1077_v19 = vshrl.u32 %v12062_v58, 16  ;;  %v879_v5 = vld [vmem:[#allocation2 + $0x24] sm:$0xf]  ;;  %v514_v21 = vld [vmem:[%s11907_s9 + $0x18] sm:$0xf] }
  0x9a   : > { %4216 = vmatprep.mubr.bf16.mxu1 %v9562_v42  ;;  %v1080_v20 = vshll.u32 %v12062_v58, 16  ;;  %v1489_v26 = vsel %vm11947_vm11, %v9466_v0, %v1488_v11  ;;  %v1490_v27 = vrot.slane %v1488_v11, 4  ;;  %878 = vst [vmem:[#allocation2 + $0x20] sm:$0x1] %v877_v18  ;;  %v1086_v28 = vshll.u32 %v12068_v1, 16  ;;  %v11241_v40 = vld [vmem:[#allocation7 + $0x168] sm:$0xff]  }
  0x9b   : > { %10295 = vmatpush3.bf16.msra.mxu0 %v11225_v46  ;;  %v1065_v17 = vsel %vm11958_vm12, %v1060_v61, %v1064_v32  ;;  %v12091_v29 = vld [vmem:[%s11907_s9 + $0x1c] sm:$0xf]  ;;  %v1079_v30 = vrot.slane %v1077_v19, 4  ;;  %v1090_v32 = vshrl.u32 %v12068_v1, 16  ;;  %v591_v37 = vsel %vm11968_vm13, %v583_v8, %v12034_v14  ;;  %v1414_v38 = vld [vmem:[#allocation2 + $0x18] sm:$0xe] }
  0x9c   : > { %10296 = vmatprep.subr.bf16.mxu0 %v11229_v47  ;;  %v9530_v25 = vcombine.low %v1065_v17, %v1075_v9  ;;  %v1082_v31 = vrot.slane %v1080_v20, 5  ;;  %v883_v33 = vld [vmem:[#allocation2 + $0x2c] sm:$0x1]  ;;  %v1492_v34 = vsel %vm11947_vm11, %v1490_v27, %v1491_v12  ;;  %v12097_v35 = vrot.slane %v1086_v28, 5  ;;  %v351_v39 = vld [vmem:[#allocation2 + $0x38] sm:$0x1] }
  0x9d   : > { %v880_v36 = vsel %vm11975_vm14, %v12027_v7, %v879_v5  ;;  %v12107_v41 = vrot.slane %v1667_v57, 5  ;;  %v9546_v43 = vcombine.low %v1489_v26, %v1492_v34  ;;  %v1092_v47 = vrot.slane %v1090_v32, 4  ;;  %882 = vst [vmem:[#allocation2 + $0x28] sm:$0xf] %v591_v37  ;;  %v298_v49 = vld [vmem:[#allocation2 + $0x3c] sm:$0x1] }
  0x9e   : > { %4055 = vmatprep.mubr.bf16.mxu0 %v9530_v25  ;;  %v1083_v46 = vor.u32 %v1082_v31, %v1079_v30  ;;  %881 = vst [vmem:[#allocation2 + $0x24] sm:$0xf] %v880_v36  ;;  %v1495_v59 = vrot.slane %v12068_v1, 5  ;;  %v884_v7 = vsel %vm11918_vm3, %v592_v45, %v883_v33  ;;  %v594_v8 = vshrl.u32 %v514_v21, 16  ;;  %v11243_v42 = vld [vmem:[#allocation7 + $0x128] sm:$0xff]   ;;  %v11247_v20 = vld [vmem:[#allocation7 + $0x170] sm:$0xff]  }
  0x9f   : > { %10297 = vmatpush3.bf16.msra.mxu0 %v11231_v13  ;;  %v597_v14 = vshll.u32 %v514_v21, 16  ;;  %4217 = vmatmul.mubr.bf16.gmra.mrb[4].mxu1 %v9546_v43  ;;  %v9467_v53 = vrot.slane %v1414_v38, 9  ;;  %885 = vst [vmem:[#allocation2 + $0x2c] sm:$0x1] %v884_v7  ;;  %v602_v56 = vshrl.u32 %v12091_v29, 16  ;;  %v605_v60 = vshll.u32 %v12091_v29, 16 }
  0xa0   : > { %4056 = vmatmul.mubr.bf16.gmra.mrb[4].mxu0 %v9514_v51  ;;  %10298 = vmatprep.subr.bf16.mxu0 %v11235_v16  ;;  %v1084_v50 = vrot.slane %v1083_v46, 4  ;;  %v1093_v51 = vor.u32 %v1092_v47, %v12097_v35  ;;  %v1497_v57 = vrot.slane %v1495_v59, 4  ;;  %v12116_v61 = vrot.slane %v594_v8, 7  ;;  %v886_v11 = vld [vmem:[#allocation2 + $0x30] sm:$0xf]  ;;  %s11611_s8 = scalar_lea.vmem %s16158_s11, 4096 }
  0xa1   : > { %v352_v45 = vsel %vm11923_vm4, 0, %v351_v39  ;;  %v1011_v0 = vld [vmem:[#allocation2 + $0x20] sm:$0x1]  ;;  %v12121_v9 = vrot.slane %v602_v56, 7  ;;  %v299_v12 = vsel %vm11918_vm3, 0, %v298_v49  ;;  %v9515_v21 = vcombine.low %v12062_v58, %v12068_v1  ;;  %v11250_v36 = vld [vmem:[#allocation7 + $0x1c0] sm:$0xff]   ;;  %p11612_p11 = scmp.ne.s32.totalorder %s16158_s11, %s11611_s8 }
  0xa2   : > { %353 = vst [vmem:[#allocation2 + $0x38] sm:$0x1] %v352_v45  ;;  %v1094_v13 = vrot.slane %v1093_v51, 4  ;;  %v1096_v16 = vshll.u32 %v1011_v0, 16  ;;  %v1498_v17 = vrot.slane %v1011_v0, 5  ;;  %v599_v18 = vor.u32 %v597_v14, %v12116_v61  ;;  %v11249_v1 = vld [vmem:[#allocation7 + $0x130] sm:$0xff]   ;;  %10402 = vmatprep.subr.bf16.mxu1 %v11250_v36 }
  0xa3   : > { %10299 = vmatpush3.bf16.msra.mxu0 %v11237_v44  ;;  %300 = vst [vmem:[#allocation2 + $0x3c] sm:$0x1] %v299_v12  ;;  %v12127_v19 = vld [vmem:[%s11907_s9 + $0x20] sm:$0xf]  ;;  %v1089_v5 = vsel %vm11958_vm12, %v1084_v50, %v12097_v35  ;;  %v1496_v25 = vsel %vm11947_vm11, %v9467_v53, %v1495_v59  ;;  %v600_v26 = vrot.slane %v12116_v61, 4  ;;  %v607_v31 = vor.u32 %v605_v60, %v12121_v9  ;;  %p16581_p0 = scmp.ne.s32.totalorder %s16269_s23, 0 }
  0xa4   : > { %10300 = vmatprep.subr.bf16.mxu0 %v11241_v40  ;;  %v12138_v27 = vld [vmem:[%s11907_s9 + $0x24] sm:$0xf]  ;;  %v1098_v28 = vrot.slane %v1096_v16, 5  ;;  %v12142_v44 = vld [vmem:[#allocation2 + $0x28] sm:$0xf]  ;;  %v1499_v30 = vsel %vm11947_vm11, %v1497_v57, %v1498_v17  ;;  %v887_v58 = vsel %vm11975_vm14, %v599_v18, %v886_v11  ;;  %v609_v34 = vrot.slane %v12121_v9, 4 }
  0xa5   : > { %v12140_v29 = vld [vmem:[#allocation2 + $0x24] sm:$0xf]  ;;  %888 = vst [vmem:[#allocation2 + $0x30] sm:$0xf] %v887_v58  ;;  %v611_v35 = vshrl.u32 %v12127_v19, 16  ;;  %v614_v37 = vshll.u32 %v12127_v19, 16  ;;  %v9547_v39 = vcombine.low %v1496_v25, %v1499_v30  ;;  %p11613_p2 = pnand %p11612_p11, %p16581_p0 }
  0xa6   : > { %v9563_v32 = vcombine.low %v12140_v29, %v12142_v44  ;;  %v12151_v33 = vld [vmem:[#allocation2 + $0x24] sm:$0xf]  ;;  %v1099_v38 = vsel %vm11958_vm12, %v1094_v13, %v1098_v28  ;;  %v12158_v40 = vld [vmem:[#allocation2 + $0x28] sm:$0xf]  ;;  %v1012_v43 = vld [vmem:[#allocation2 + $0x2c] sm:$0x1] }
  0xa7   : > { %10301 = vmatpush3.bf16.msra.mxu0 %v11243_v42  ;;  %v1101_v46 = vshrl.u32 %v12151_v33, 16  ;;  %v1104_v47 = vshll.u32 %v12151_v33, 16  ;;  %v9531_v59 = vcombine.low %v1089_v5, %v1099_v38  ;;  %v1688_v7 = vshrl.u32 %v12140_v29, 16  ;;  %v1415_v14 = vld [vmem:[#allocation2 + $0x24] sm:$0xe]  ;;  %v11251_v50 = vld [vmem:[#allocation7 + $0x180] sm:$0xff]   ;;  %p11614_p3 = pneg %p11613_p2 }
  0xa8   : > { %10302 = vmatprep.subr.bf16.mxu0 %v11247_v20  ;;  %4224 = vmatprep.mubr.bf16.mxu1 %v9563_v32  ;;  %v1110_v8 = vshll.u32 %v12158_v40, 16  ;;  %v619_v49 = vshrl.u32 %v12138_v27, 16  ;;  %v1114_v56 = vshrl.u32 %v12158_v40, 16  ;;  %v1120_v57 = vshll.u32 %v1012_v43, 16  ;;  %v11252_v16 = vld [vmem:[#allocation7 + $0x1c8] sm:$0xff]  }
  0xa9   : > { %4225 = vmatmul.mubr.bf16.gmra.mrb[8].mxu1 %v9547_v39  ;;  %v1103_v51 = vrot.slane %v1101_v46, 4  ;;  %v1106_v53 = vrot.slane %v1104_v47, 5  ;;  %v890_v61 = vld [vmem:[#allocation2 + $0x38] sm:$0x1]  ;;  %4063 = vmatprep.mubr.bf16.mxu0 %v9531_v59  ;;  %v1691_v60 = vshll.u32 %v12140_v29, 16  ;;  %v608_v42 = vsel %vm11968_vm13, %v600_v26, %v607_v31 }
  0xaa   : > { %v1112_v45 = vrot.slane %v1110_v8, 5  ;;  %v9468_v0 = vrot.slane %v1415_v14, 9  ;;  %10403 = vmatpush3.bf16.msra.mxu1 %v11251_v50  ;;  %4064 = vmatmul.mubr.bf16.gmra.mrb[8].mxu0 %v9515_v21  ;;  %v1116_v12 = vrot.slane %v1114_v56, 4  ;;  %889 = vst [vmem:[#allocation2 + $0x34] sm:$0xf] %v608_v42  ;;  %v1502_v13 = vrot.slane %v12158_v40, 5 }
  0xab   : > { %10303 = vmatpush3.bf16.msra.mxu0 %v11249_v1  ;;  %v1107_v11 = vor.u32 %v1106_v53, %v1103_v51  ;;  %v12171_v17 = vrot.slane %v1688_v7, 4  ;;  %v1505_v18 = vrot.slane %v1012_v43, 5  ;;  %v891_v19 = vsel %vm11918_vm3, %v609_v34, %v890_v61  ;;  %v11253_v5 = vld [vmem:[#allocation7 + $0x188] sm:$0xff]   ;;  %10404 = vmatprep.subr.bf16.mxu1 %v11252_v16  ;;  %v11256_v43 = vld [vmem:[#allocation7 + $0x1d0] sm:$0xff]   ;;  %v11258_v51 = vld [vmem:[#allocation7 + $0x1d8] sm:$0xff]  }
  0xac   : > { %v12175_v20 = vrot.slane %v611_v35, 7  ;;  %v1117_v26 = vor.u32 %v1116_v12, %v1112_v45  ;;  %v1122_v21 = vrot.slane %v1120_v57, 5  ;;  %v1504_v28 = vrot.slane %v1502_v13, 4  ;;  %892 = vst [vmem:[#allocation2 + $0x38] sm:$0x1] %v891_v19  ;;  %v11257_v7 = vld [vmem:[#allocation7 + $0x190] sm:$0xff]  }
  0xad   : > { %v1108_v25 = vrot.slane %v1107_v11, 4  ;;  %v12177_v29 = vld [vmem:[#allocation2 + $0x30] sm:$0xf]  ;;  %v1503_v30 = vsel %vm11947_vm11, %v9468_v0, %v1502_v13  ;;  %v12183_v1 = vrot.slane %v619_v49, 7  ;;  %v893_v39 = vld [vmem:[#allocation2 + $0x3c] sm:$0xf]  ;;  %v9516_v46 = vcombine.low %v12151_v33, %v12158_v40 }
  0xae   : > { %v1125_v31 = vshrl.u32 %v12177_v29, 16  ;;  %v1128_v58 = vshll.u32 %v12177_v29, 16  ;;  %10405 = vmatpush3.bf16.msra.mxu1 %v11253_v5  ;;  %v1118_v34 = vrot.slane %v1117_v26, 4  ;;  %v1597_v35 = vld [vmem:[#allocation2 + $0x30] sm:$0xf]  ;;  %v1506_v36 = vsel %vm11947_vm11, %v1504_v28, %v1505_v18 }
  0xaf   : > { %v1113_v32 = vsel %vm11958_vm12, %v1108_v25, %v1112_v45  ;;  %v616_v38 = vor.u32 %v614_v37, %v12175_v20  ;;  %v12192_v59 = vld [vmem:[#allocation2 + $0x30] sm:$0xe]  ;;  %v1712_v14 = vshrl.u32 %v1597_v35, 16  ;;  %v622_v50 = vshll.u32 %v12138_v27, 16  ;;  %10406 = vmatprep.subr.bf16.mxu1 %v11256_v43  ;;  %v354_v61 = vld [vmem:[#allocation2 + $0x44] sm:$0x1] }
  0xb0   : > { %v1127_v47 = vrot.slane %v1125_v31, 4  ;;  %v1123_v8 = vsel %vm11958_vm12, %v1118_v34, %v1122_v21  ;;  %v1130_v49 = vrot.slane %v1128_v58, 5  ;;  %v9548_v56 = vcombine.low %v1503_v30, %v1506_v36  ;;  %v301_v11 = vld [vmem:[#allocation2 + $0x48] sm:$0x1]  ;;  %v518_v12 = vld [vmem:[%s11907_s9 + $0x28] sm:$0xf] }
  0xb1   : > { %v9532_v37 = vcombine.low %v1113_v32, %v1123_v8  ;;  %v12197_v53 = vld [vmem:[#allocation2 + $0x34] sm:$0xf]  ;;  %v617_v33 = vrot.slane %v12175_v20, 4  ;;  %v894_v40 = vsel %vm11975_vm14, %v616_v38, %v893_v39  ;;  %v12204_v45 = vrot.slane %v1691_v60, 5  ;;  %v519_v60 = vld [vmem:[%s11907_s9 + $0x2c] sm:$0xf] }
  0xb2   : > { %v12199_v57 = vld [vmem:[#allocation2 + $0x34] sm:$0xf]  ;;  %10407 = vmatpush3.bf16.msra.mxu1 %v11257_v7  ;;  %v9564_v27 = vcombine.low %v1597_v35, %v12197_v53  ;;  %v1131_v42 = vor.u32 %v1130_v49, %v1127_v47  ;;  %895 = vst [vmem:[#allocation2 + $0x3c] sm:$0xf] %v894_v40  ;;  %v1715_v13 = vshll.u32 %v1597_v35, 16  ;;  %v624_v19 = vor.u32 %v622_v50, %v12183_v1  ;;  %v11259_v38 = vld [vmem:[#allocation7 + $0x198] sm:$0xff]  }
  0xb3   : > { %v1134_v0 = vshll.u32 %v12199_v57, 16  ;;  %10408 = vmatprep.subr.bf16.mxu1 %v11258_v51  ;;  %4071 = vmatprep.mubr.bf16.mxu0 %v9532_v37  ;;  %v1013_v16 = vld [vmem:[#allocation2 + $0x38] sm:$0x1]  ;;  %v1138_v18 = vshrl.u32 %v12199_v57, 16  ;;  %v1509_v20 = vrot.slane %v12199_v57, 5  ;;  %v12213_v5 = vrot.slane %v1712_v14, 4 }
  0xb4   : > { %4072 = vmatmul.mubr.bf16.gmra.mrb[12].mxu0 %v9516_v46  ;;  %4232 = vmatprep.mubr.bf16.mxu1 %v9564_v27  ;;  %v1144_v26 = vshll.u32 %v1013_v16, 16  ;;  %v9469_v21 = vrot.slane %v12192_v59, 9  ;;  %v357_v28 = vld [vmem:[#allocation2 + $0x50] sm:$0x1]  ;;  %v1132_v30 = vrot.slane %v1131_v42, 4  ;;  %v625_v58 = vsel %vm11968_vm13, %v617_v33, %v624_v19  ;;  %v11261_v49 = vld [vmem:[#allocation7 + $0x178] sm:$0xff]  }
  0xb5   : > { %v1136_v25 = vrot.slane %v1134_v0, 5  ;;  %4233 = vmatmul.mubr.bf16.gmra.mrb[12].mxu1 %v9548_v56  ;;  %v1140_v31 = vrot.slane %v1138_v18, 4  ;;  %v1512_v32 = vrot.slane %v1013_v16, 5  ;;  %896 = vst [vmem:[#allocation2 + $0x40] sm:$0xf] %v625_v58  ;;  %v1511_v34 = vrot.slane %v1509_v20, 4  ;;  %10304 = vmatprep.subr.bf16.mxu0 %v11261_v49 }
  0xb6   : > { %v355_v35 = vsel %vm11923_vm4, 0, %v354_v61  ;;  %v302_v36 = vsel %vm11918_vm3, 0, %v301_v11  ;;  %v12222_v39 = vrot.slane %v1715_v13, 5  ;;  %v1146_v46 = vrot.slane %v1144_v26, 5  ;;  %10409 = vmatpush3.bf16.msra.mxu1 %v11259_v38  ;;  %v360_v49 = vld [vmem:[#allocation2 + $0x5c] sm:$0x1] }
  0xb7   : > { %v1141_v43 = vor.u32 %v1140_v31, %v1136_v25  ;;  %356 = vst [vmem:[#allocation2 + $0x44] sm:$0x1] %v355_v35  ;;  %303 = vst [vmem:[#allocation2 + $0x48] sm:$0x1] %v302_v36  ;;  %v628_v47 = vshrl.u32 %v518_v12, 16  ;;  %v626_v59 = vrot.slane %v12183_v1, 4  ;;  %v1137_v50 = vsel %vm11958_vm12, %v1132_v30, %v1136_v25 }
  0xb8   : > { %v631_v7 = vshll.u32 %v518_v12, 16  ;;  %v636_v8 = vshrl.u32 %v519_v60, 16  ;;  %v358_v14 = vsel %vm11923_vm4, 0, %v357_v28  ;;  %v639_v33 = vshll.u32 %v519_v60, 16  ;;  %v304_v60 = vld [vmem:[#allocation2 + $0x54] sm:$0x1] }
  0xb9   : > { %v1142_v51 = vrot.slane %v1141_v43, 4  ;;  %v12229_v37 = vld [vmem:[#allocation2 + $0x3c] sm:$0xf]  ;;  %v630_v56 = vrot.slane %v628_v47, 7  ;;  %359 = vst [vmem:[#allocation2 + $0x50] sm:$0x1] %v358_v14  ;;  %v1510_v1 = vsel %vm11947_vm11, %v9469_v21, %v1509_v20  ;;  %v1513_v61 = vsel %vm11947_vm11, %v1511_v34, %v1512_v32 }
  0xba   : > { %v12231_v40 = vld [vmem:[#allocation2 + $0x3c] sm:$0xf]  ;;  %v1149_v27 = vshrl.u32 %v12229_v37, 16  ;;  %v1152_v42 = vshll.u32 %v12229_v37, 16  ;;  %v9517_v11 = vcombine.low %v12177_v29, %v12199_v57  ;;  %v638_v13 = vrot.slane %v636_v8, 7  ;;  %v11263_v25 = vld [vmem:[#allocation7 + $0x138] sm:$0xff]  }
  0xbb   : > { %v1147_v0 = vsel %vm11958_vm12, %v1142_v51, %v1146_v46  ;;  %v634_v12 = vrot.slane %v630_v56, 4  ;;  %v1736_v18 = vshrl.u32 %v12231_v40, 16  ;;  %v633_v20 = vor.u32 %v631_v7, %v630_v56  ;;  %v12249_v32 = vld [vmem:[%s11907_s9 + $0x30] sm:$0xf]  ;;  %v521_v29 = vld [vmem:[%s11907_s9 + $0x34] sm:$0xf]  ;;  %10305 = vmatpush3.bf16.msra.mxu0 %v11263_v25 }
  0xbc   : > { %v9533_v16 = vcombine.low %v1137_v50, %v1147_v0  ;;  %v1151_v19 = vrot.slane %v1149_v27, 4  ;;  %v12244_v26 = vld [vmem:[#allocation2 + $0x40] sm:$0xf]  ;;  %v9549_v21 = vcombine.low %v1510_v1, %v1513_v61  ;;  %v1154_v30 = vrot.slane %v1152_v42, 5  ;;  %v11264_v43 = vld [vmem:[#allocation7 + $0x1e0] sm:$0xff]  }
  0xbd   : > { %16290 = vst [vmem:[#allocation18_spill] sm:$0xff] %v12244_v26  ;;  %v12246_v28 = vld [vmem:[#allocation2 + $0x40] sm:$0xf]  ;;  %v641_v31 = vor.u32 %v639_v33, %v638_v13  ;;  %v643_v58 = vrot.slane %v638_v13, 4  ;;  %v9565_v34 = vcombine.low %v12231_v40, %v12244_v26  ;;  %v1417_v14 = vld [vmem:[#allocation2 + $0x3c] sm:$0xe]  ;;  %10410 = vmatprep.subr.bf16.mxu1 %v11264_v43 }
  0xbe   : > { %4079 = vmatprep.mubr.bf16.mxu0 %v9533_v16  ;;  %v897_v35 = vld [vmem:[#allocation2 + $0x44] sm:$0x1]  ;;  %v1158_v36 = vshll.u32 %v12246_v28, 16  ;;  %v1162_v38 = vshrl.u32 %v12246_v28, 16  ;;  %v1155_v47 = vor.u32 %v1154_v30, %v1151_v19  ;;  %v900_v8 = vld [vmem:[#allocation2 + $0x48] sm:$0xf] }
  0xbf   : > { %4080 = vmatmul.mubr.bf16.gmra.mrb[16].mxu0 %v9517_v11  ;;  %v898_v46 = vsel %vm11918_vm3, %v626_v59, %v897_v35  ;;  %v642_v7 = vsel %vm11968_vm13, %v634_v12, %v641_v31  ;;  %v1739_v50 = vshll.u32 %v12231_v40, 16  ;;  %4240 = vmatprep.mubr.bf16.mxu1 %v9565_v34  ;;  %v901_v33 = vsel %vm11975_vm14, %v633_v20, %v900_v8  ;;  %v11265_v59 = vld [vmem:[#allocation7 + $0x1a0] sm:$0xff]   ;;  %v307_v0 = vld [vmem:[#allocation2 + $0x60] sm:$0x1]  ;;  %v11266_v11 = vld [vmem:[#allocation7 + $0x1e8] sm:$0xff]  }
  0xc0   : > { %899 = vst [vmem:[#allocation2 + $0x44] sm:$0x1] %v898_v46  ;;  %v12262_v51 = vrot.slane %v1158_v36, 5  ;;  %v1164_v56 = vrot.slane %v1162_v38, 4  ;;  %903 = vst [vmem:[#allocation2 + $0x4c] sm:$0xf] %v642_v7  ;;  %4241 = vmatmul.mubr.bf16.gmra.mrb[16].mxu1 %v9549_v21 }
  0xc1   : > { %v904_v1 = vld [vmem:[#allocation2 + $0x50] sm:$0x1]  ;;  %v12266_v61 = vrot.slane %v1736_v18, 4  ;;  %902 = vst [vmem:[#allocation2 + $0x48] sm:$0xf] %v901_v33  ;;  %v1516_v27 = vrot.slane %v12246_v28, 5  ;;  %10411 = vmatpush3.bf16.msra.mxu1 %v11265_v59 }
  0xc2   : > { %v905_v40 = vsel %vm11918_vm3, %v643_v58, %v904_v1  ;;  %v305_v42 = vsel %vm11918_vm3, 0, %v304_v60  ;;  %v1165_v12 = vor.u32 %v1164_v56, %v12262_v51  ;;  %v9470_v13 = vrot.slane %v1417_v14, 9  ;;  %v12276_v19 = vld [vmem:[%s11907_s9 + $0x38] sm:$0xf]  ;;  %v11267_v20 = vld [vmem:[#allocation7 + $0x1a8] sm:$0xff]   ;;  %10412 = vmatprep.subr.bf16.mxu1 %v11266_v11 }
  0xc3   : > { %906 = vst [vmem:[#allocation2 + $0x50] sm:$0x1] %v905_v40  ;;  %306 = vst [vmem:[#allocation2 + $0x54] sm:$0x1] %v305_v42  ;;  %v645_v16 = vshrl.u32 %v12249_v32, 16  ;;  %v653_v18 = vshrl.u32 %v521_v29, 16 }
  0xc4   : > { %v1156_v25 = vrot.slane %v1155_v47, 4  ;;  %v656_v21 = vshll.u32 %v521_v29, 16  ;;  %v12278_v30 = vrot.slane %v1739_v50, 5  ;;  %v361_v58 = vsel %vm11923_vm4, 0, %v360_v49  ;;  %v12289_v43 = vld [vmem:[%s11907_s9 + $0x3c] sm:$0xf] }
  0xc5   : > { %v647_v60 = vrot.slane %v645_v16, 7  ;;  %v12280_v31 = vrot.slane %v653_v18, 7  ;;  %v1518_v35 = vrot.slane %v1516_v27, 4  ;;  %v648_v36 = vshll.u32 %v12249_v32, 16  ;;  %362 = vst [vmem:[#allocation2 + $0x5c] sm:$0x1] %v361_v58  ;;  %10413 = vmatpush3.bf16.msra.mxu1 %v11267_v20 }
  0xc6   : > { %v308_v38 = vsel %vm11918_vm3, 0, %v307_v0  ;;  %v1166_v29 = vrot.slane %v1165_v12, 4  ;;  %v662_v7 = vshrl.u32 %v12276_v19, 16  ;;  %v1161_v14 = vsel %vm11958_vm12, %v1156_v25, %v12262_v51  ;;  %v11270_v20 = vld [vmem:[#allocation7 + $0x1f0] sm:$0xff]  }
  0xc7   : > { %v651_v46 = vrot.slane %v647_v60, 4  ;;  %v658_v47 = vor.u32 %v656_v21, %v12280_v31  ;;  %309 = vst [vmem:[#allocation2 + $0x60] sm:$0x1] %v308_v38  ;;  %v1014_v8 = vld [vmem:[#allocation2 + $0x44] sm:$0x1]  ;;  %v9518_v32 = vcombine.low %v12229_v37, %v12246_v28  ;;  %v1517_v50 = vsel %vm11947_vm11, %v9470_v13, %v1516_v27  ;;  %10414 = vmatprep.subr.bf16.mxu1 %v11270_v20 }
  0xc8   : > { %v12298_v49 = vld [vmem:[#allocation2 + $0x4c] sm:$0xf]  ;;  %v1168_v33 = vshll.u32 %v1014_v8, 16  ;;  %v12304_v1 = vld [vmem:[#allocation2 + $0x48] sm:$0xf]  ;;  %v1519_v59 = vrot.slane %v1014_v8, 5  ;;  %v650_v28 = vor.u32 %v648_v36, %v647_v60 }
  0xc9   : > { %16291 = vst [vmem:[#allocation19_spill] sm:$0xff] %v12298_v49  ;;  %v12302_v56 = vld [vmem:[#allocation2 + $0x4c] sm:$0xf]  ;;  %v665_v42 = vshll.u32 %v12276_v19, 16  ;;  %v9566_v51 = vcombine.low %v12304_v1, %v12298_v49  ;;  %v12310_v0 = vld [vmem:[#allocation2 + $0x48] sm:$0xf]  ;;  %v659_v27 = vsel %vm11968_vm13, %v651_v46, %v658_v47 }
  0xca   : > { %v1182_v40 = vshll.u32 %v12302_v56, 16  ;;  %v12312_v37 = vld [vmem:[#allocation2 + $0x50] sm:$0x1]  ;;  %v670_v11 = vshrl.u32 %v12289_v43, 16  ;;  %v1170_v12 = vrot.slane %v1168_v33, 5  ;;  %v1520_v13 = vsel %vm11947_vm11, %v1518_v35, %v1519_v59  ;;  %v11271_v38 = vld [vmem:[#allocation7 + $0x1b0] sm:$0xff]  }
  0xcb   : > { %v1173_v16 = vshrl.u32 %v12310_v0, 16  ;;  %v1176_v18 = vshll.u32 %v12310_v0, 16  ;;  %v907_v19 = vld [vmem:[#allocation2 + $0x54] sm:$0xf]  ;;  %910 = vst [vmem:[#allocation2 + $0x58] sm:$0xf] %v659_v27  ;;  %4248 = vmatprep.mubr.bf16.mxu1 %v9566_v51  ;;  %v9550_v21 = vcombine.low %v1517_v50, %v1520_v13  ;;  %10415 = vmatpush3.bf16.msra.mxu1 %v11271_v38 }
  0xcc   : > { %v1184_v60 = vrot.slane %v1182_v40, 5  ;;  %v660_v58 = vrot.slane %v12280_v31, 4  ;;  %v1418_v36 = vld [vmem:[#allocation2 + $0x48] sm:$0xe]  ;;  %v1171_v46 = vsel %vm11958_vm12, %v1166_v29, %v1170_v12  ;;  %v1186_v8 = vshrl.u32 %v12302_v56, 16 }
  0xcd   : > { %v1175_v35 = vrot.slane %v1173_v16, 4  ;;  %v1178_v47 = vrot.slane %v1176_v18, 5  ;;  %v911_v33 = vld [vmem:[#allocation2 + $0x5c] sm:$0x1]  ;;  %v11272_v59 = vld [vmem:[#allocation7 + $0x1f8] sm:$0xff]   ;;  %v9534_v27 = vcombine.low %v1161_v14, %v1171_v46  ;;  %v1760_v25 = vshrl.u32 %v12304_v1, 16  ;;  %4249 = vmatmul.mubr.bf16.gmra.mrb[20].mxu1 %v9550_v21 }
  0xce   : > { %v1192_v50 = vshll.u32 %v12312_v37, 16  ;;  %v908_v31 = vsel %vm11975_vm14, %v650_v28, %v907_v19  ;;  %v1188_v51 = vrot.slane %v1186_v8, 4  ;;  %v9471_v29 = vrot.slane %v1418_v36, 9  ;;  %v11273_v13 = vld [vmem:[#allocation7 + $0x1b8] sm:$0xff]   ;;  %v11274_v16 = vld [vmem:[#allocation7 + $0x200] sm:$0xff]   ;;  %10416 = vmatprep.subr.bf16.mxu1 %v11272_v59 }
  0xcf   : > { %v1179_v40 = vor.u32 %v1178_v47, %v1175_v35  ;;  %909 = vst [vmem:[#allocation2 + $0x54] sm:$0xf] %v908_v31  ;;  %v1523_v12 = vrot.slane %v12302_v56, 5  ;;  %4087 = vmatprep.mubr.bf16.mxu0 %v9534_v27  ;;  %v1763_v14 = vshll.u32 %v12304_v1, 16  ;;  %v1526_v18 = vrot.slane %v12312_v37, 5  ;;  %11010 = vmatprep.subr.bf16.mxu0 %v11274_v16 }
  0xd0   : > { %v912_v20 = vsel %vm11918_vm3, %v660_v58, %v911_v33  ;;  %v664_v21 = vrot.slane %v662_v7, 7  ;;  %4088 = vmatmul.mubr.bf16.gmra.mrb[20].mxu0 %v9518_v32  ;;  %v1189_v19 = vor.u32 %v1188_v51, %v1184_v60  ;;  %v1194_v46 = vrot.slane %v1192_v50, 5  ;;  %v914_v58 = vld [vmem:[#allocation2 + $0x60] sm:$0xf]  ;;  %10417 = vmatpush3.bf16.msra.mxu1 %v11273_v13  ;;  %v310_v16 = vld [vmem:[#allocation2 + $0x6c] sm:$0x1] }
  0xd1   : > { %v1180_v28 = vrot.slane %v1179_v40, 4  ;;  %v1525_v36 = vrot.slane %v1523_v12, 4  ;;  %913 = vst [vmem:[#allocation2 + $0x5c] sm:$0x1] %v912_v20  ;;  %v12335_v38 = vrot.slane %v1760_v25, 4  ;;  %v1524_v35 = vsel %vm11947_vm11, %v9471_v29, %v1523_v12 }
  0xd2   : > { %v12339_v1 = vld [vmem:[#allocation2 + $0x58] sm:$0xf]  ;;  %v667_v37 = vor.u32 %v665_v42, %v664_v21  ;;  %v12341_v47 = vrot.slane %v670_v11, 7  ;;  %v1190_v32 = vrot.slane %v1189_v19, 4  ;;  %v9519_v8 = vcombine.low %v12310_v0, %v12302_v56 }
  0xd3   : > { %v1185_v7 = vsel %vm11958_vm12, %v1180_v28, %v1184_v60  ;;  %v12347_v33 = vld [vmem:[#allocation2 + $0x58] sm:$0xf]  ;;  %v1527_v25 = vsel %vm11947_vm11, %v1525_v36, %v1526_v18  ;;  %v1206_v59 = vshll.u32 %v12339_v1, 16  ;;  %v1210_v42 = vshrl.u32 %v12339_v1, 16 }
  0xd4   : > { %16292 = vst [vmem:[#allocation20_spill] sm:$0xff] %v12347_v33  ;;  %v668_v11 = vrot.slane %v664_v21, 4  ;;  %v673_v27 = vshll.u32 %v12289_v43, 16  ;;  %v1195_v60 = vsel %vm11958_vm12, %v1190_v32, %v1194_v46  ;;  %v9551_v50 = vcombine.low %v1524_v35, %v1527_v25  ;;  %v363_v43 = vld [vmem:[#allocation2 + $0x68] sm:$0x1] }
  0xd5   : > { %v915_v56 = vsel %vm11975_vm14, %v667_v37, %v914_v58  ;;  %v1530_v0 = vrot.slane %v12339_v1, 5  ;;  %v9535_v31 = vcombine.low %v1185_v7, %v1195_v60  ;;  %v1208_v29 = vrot.slane %v1206_v59, 5  ;;  %v12368_v46 = vld [vmem:[%s11907_s9 + $0x40] sm:$0xf]  ;;  %v525_v7 = vld [vmem:[%s11907_s9 + $0x44] sm:$0xf] }
  0xd6   : > { %v1603_v40 = vld [vmem:[#allocation2 + $0x54] sm:$0xf]  ;;  %v1212_v12 = vrot.slane %v1210_v42, 4  ;;  %v675_v13 = vor.u32 %v673_v27, %v12341_v47  ;;  %916 = vst [vmem:[#allocation2 + $0x60] sm:$0xf] %v915_v56  ;;  %v12362_v18 = vrot.slane %v1763_v14, 5 }
  0xd7   : > { %v12359_v51 = vld [vmem:[#allocation2 + $0x54] sm:$0xf]  ;;  %v9567_v21 = vcombine.low %v1603_v40, %v12347_v33  ;;  %4095 = vmatprep.mubr.bf16.mxu0 %v9535_v31  ;;  %v677_v14 = vrot.slane %v12341_v47, 4  ;;  %v1784_v32 = vshrl.u32 %v1603_v40, 16  ;;  %v1787_v25 = vshll.u32 %v1603_v40, 16 }
  0xd8   : > { %v1197_v28 = vshrl.u32 %v12359_v51, 16  ;;  %v1419_v19 = vld [vmem:[#allocation2 + $0x54] sm:$0xe]  ;;  %v1016_v36 = vld [vmem:[#allocation2 + $0x5c] sm:$0x1]  ;;  %v1200_v35 = vshll.u32 %v12359_v51, 16  ;;  %v1213_v37 = vor.u32 %v1212_v12, %v1208_v29  ;;  %v676_v58 = vsel %vm11968_vm13, %v668_v11, %v675_v13  ;;  %4096 = vmatmul.mubr.bf16.gmra.mrb[24].mxu0 %v9519_v8 }
  0xd9   : > { %4256 = vmatprep.mubr.bf16.mxu1 %v9567_v21  ;;  %v1216_v42 = vshll.u32 %v1016_v36, 16  ;;  %917 = vst [vmem:[#allocation2 + $0x64] sm:$0xf] %v676_v58  ;;  %v9472_v56 = vrot.slane %v1419_v19, 9  ;;  %v1532_v31 = vrot.slane %v1530_v0, 4  ;;  %v1533_v12 = vrot.slane %v1016_v36, 5 }
  0xda   : > { %v1199_v59 = vrot.slane %v1197_v28, 4  ;;  %4257 = vmatmul.mubr.bf16.gmra.mrb[24].mxu1 %v9551_v50  ;;  %v1202_v27 = vrot.slane %v1200_v35, 5  ;;  %v1214_v60 = vrot.slane %v1213_v37, 4  ;;  %v364_v11 = vsel %vm11923_vm4, 0, %v363_v43  ;;  %v316_v47 = vld [vmem:[#allocation2 + $0x84] sm:$0x1] }
  0xdb   : > { %v1218_v20 = vrot.slane %v1216_v42, 5  ;;  %v311_v13 = vsel %vm11918_vm3, 0, %v310_v16  ;;  %v9520_v40 = vcombine.low %v12359_v51, %v12339_v1  ;;  %v1531_v21 = vsel %vm11947_vm11, %v9472_v56, %v1530_v0  ;;  %365 = vst [vmem:[#allocation2 + $0x68] sm:$0x1] %v364_v11 }
  0xdc   : > { %v1203_v8 = vor.u32 %v1202_v27, %v1199_v59  ;;  %312 = vst [vmem:[#allocation2 + $0x6c] sm:$0x1] %v311_v13  ;;  %v679_v50 = vshrl.u32 %v12368_v46, 16  ;;  %v1534_v43 = vsel %vm11947_vm11, %v1532_v31, %v1533_v12  ;;  %v682_v16 = vshll.u32 %v12368_v46, 16 }
  0xdd   : > { %v1219_v28 = vsel %vm11958_vm12, %v1214_v60, %v1218_v20  ;;  %v1605_v19 = vld [vmem:[#allocation2 + $0x60] sm:$0xf]  ;;  %v687_v35 = vshrl.u32 %v525_v7, 16  ;;  %v690_v0 = vshll.u32 %v525_v7, 16  ;;  %v12395_v20 = vrot.slane %v1784_v32, 4 }
  0xde   : > { %v12388_v36 = vld [vmem:[#allocation2 + $0x60] sm:$0xf]  ;;  %v1204_v1 = vrot.slane %v1203_v8, 4  ;;  %v1808_v51 = vshrl.u32 %v1605_v19, 16  ;;  %v1811_v37 = vshll.u32 %v1605_v19, 16  ;;  %v681_v42 = vrot.slane %v679_v50, 7 }
  0xdf   : > { %v1221_v58 = vshrl.u32 %v12388_v36, 16  ;;  %v1224_v59 = vshll.u32 %v12388_v36, 16  ;;  %v12393_v27 = vrot.slane %v687_v35, 7  ;;  %v12397_v60 = vrot.slane %v1787_v25, 5  ;;  %v366_v50 = vld [vmem:[#allocation2 + $0x74] sm:$0x1] }
  0xe0   : > { %v1209_v46 = vsel %vm11958_vm12, %v1204_v1, %v1208_v29  ;;  %v12401_v56 = vld [vmem:[#allocation2 + $0x64] sm:$0xf]  ;;  %v9552_v31 = vcombine.low %v1531_v21, %v1534_v43  ;;  %v12405_v11 = vrot.slane %v1808_v51, 4  ;;  %v313_v32 = vld [vmem:[#allocation2 + $0x78] sm:$0x1]  ;;  %v12408_v25 = vrot.slane %v1811_v37, 5 }
  0xe1   : > { %16293 = vst [vmem:[#allocation21_spill] sm:$0xff] %v12401_v56  ;;  %v12403_v12 = vld [vmem:[#allocation2 + $0x64] sm:$0xf]  ;;  %v9536_v7 = vcombine.low %v1209_v46, %v1219_v28  ;;  %v9568_v13 = vcombine.low %v1605_v19, %v12401_v56  ;;  %v1223_v8 = vrot.slane %v1221_v58, 4  ;;  %v1226_v35 = vrot.slane %v1224_v59, 5 }
  0xe2   : > { %v1230_v34 = vshll.u32 %v12403_v12, 16  ;;  %v1234_v29 = vshrl.u32 %v12403_v12, 16  ;;  %v1420_v1 = vld [vmem:[#allocation2 + $0x60] sm:$0xe]  ;;  %v12413_v21 = vld [vmem:[%s11907_s9 + $0x48] sm:$0xf]  ;;  %v684_v19 = vor.u32 %v682_v16, %v681_v42  ;;  %v692_v58 = vor.u32 %v690_v0, %v12393_v27 }
  0xe3   : > { %4103 = vmatprep.mubr.bf16.mxu0 %v9536_v7  ;;  %4264 = vmatprep.mubr.bf16.mxu1 %v9568_v13  ;;  %v918_v43 = vld [vmem:[#allocation2 + $0x68] sm:$0x1]  ;;  %v685_v51 = vrot.slane %v681_v42, 4  ;;  %v921_v37 = vld [vmem:[#allocation2 + $0x6c] sm:$0xf]  ;;  %v1227_v57 = vor.u32 %v1226_v35, %v1223_v8  ;;  %v1537_v42 = vrot.slane %v12403_v12, 5 }
  0xe4   : > { %v527_v46 = vld [vmem:[%s11907_s9 + $0x4c] sm:$0xf]  ;;  %4104 = vmatmul.mubr.bf16.gmra.mrb[28].mxu0 %v9520_v40  ;;  %4265 = vmatmul.mubr.bf16.gmra.mrb[28].mxu1 %v9552_v31  ;;  %v919_v59 = vsel %vm11918_vm3, %v677_v14, %v918_v43  ;;  %v12422_v7 = vrot.slane %v1230_v34, 5  ;;  %v1236_v13 = vrot.slane %v1234_v29, 4  ;;  %v369_v28 = vld [vmem:[#allocation2 + $0x80] sm:$0x1]  ;;  %v922_v0 = vsel %vm11975_vm14, %v684_v19, %v921_v37 }
  0xe5   : > { %920 = vst [vmem:[#allocation2 + $0x68] sm:$0x1] %v919_v59  ;;  %v693_v16 = vsel %vm11968_vm13, %v685_v51, %v692_v58  ;;  %v9473_v40 = vrot.slane %v1420_v1, 9  ;;  %v528_v31 = vld [vmem:[%s11907_s9 + $0x50] sm:$0xf]  ;;  %v367_v8 = vsel %vm11923_vm4, 0, %v366_v50 }
  0xe6   : > { %v1237_v14 = vor.u32 %v1236_v13, %v12422_v7  ;;  %923 = vst [vmem:[#allocation2 + $0x6c] sm:$0xf] %v922_v0  ;;  %924 = vst [vmem:[#allocation2 + $0x70] sm:$0xf] %v693_v16  ;;  %v314_v35 = vsel %vm11918_vm3, 0, %v313_v32  ;;  %v12440_v43 = vrot.slane %v1227_v57, 4 }
  0xe7   : > { %v12438_v29 = vld [vmem:[%s11907_s9 + $0x54] sm:$0xf]  ;;  %v372_v1 = vld [vmem:[#allocation2 + $0x8c] sm:$0x1]  ;;  %v694_v19 = vrot.slane %v12393_v27, 4  ;;  %v1538_v51 = vsel %vm11947_vm11, %v9473_v40, %v1537_v42  ;;  %v696_v58 = vshrl.u32 %v12413_v21, 16 }
  0xe8   : > { %368 = vst [vmem:[#allocation2 + $0x74] sm:$0x1] %v367_v8  ;;  %315 = vst [vmem:[#allocation2 + $0x78] sm:$0x1] %v314_v35  ;;  %v319_v37 = vld [vmem:[#allocation2 + $0x90] sm:$0x1] }
  0xe9   : > { %v1539_v59 = vrot.slane %v1537_v42, 4  ;;  %v699_v50 = vshll.u32 %v12413_v21, 16  ;;  %v704_v13 = vshrl.u32 %v527_v46, 16  ;;  %v707_v32 = vshll.u32 %v527_v46, 16  ;;  %v322_v56 = vld [vmem:[#allocation2 + $0x9c] sm:$0x1] }
  0xea   : > { %v698_v16 = vrot.slane %v696_v58, 7  ;;  %v370_v57 = vsel %vm11923_vm4, 0, %v369_v28  ;;  %v317_v27 = vsel %vm11918_vm3, 0, %v316_v47  ;;  %v713_v0 = vshrl.u32 %v528_v31, 16 }
  0xeb   : > { %v1238_v9 = vrot.slane %v1237_v14, 4  ;;  %v12451_v40 = vrot.slane %v704_v13, 7  ;;  %371 = vst [vmem:[#allocation2 + $0x80] sm:$0x1] %v370_v57  ;;  %318 = vst [vmem:[#allocation2 + $0x84] sm:$0x1] %v317_v27  ;;  %v1233_v57 = vsel %vm11958_vm12, %v12440_v43, %v12422_v7 }
  0xec   : > { %v716_v8 = vshll.u32 %v528_v31, 16  ;;  %v721_v42 = vshrl.u32 %v12438_v29, 16  ;;  %v702_v35 = vrot.slane %v698_v16, 4  ;;  %v12454_v21 = vrot.slane %v713_v0, 7  ;;  %v1017_v58 = vld [vmem:[#allocation2 + $0x68] sm:$0x1] }
  0xed   : > { %v724_v46 = vshll.u32 %v12438_v29, 16  ;;  %v373_v28 = vsel %vm11923_vm4, 0, %v372_v1  ;;  %v709_v47 = vor.u32 %v707_v32, %v12451_v40  ;;  %v711_v14 = vrot.slane %v12451_v40, 4  ;;  %v1607_v27 = vld [vmem:[#allocation2 + $0x6c] sm:$0xf] }
  0xee   : > { %v12461_v13 = vrot.slane %v721_v42, 7  ;;  %374 = vst [vmem:[#allocation2 + $0x8c] sm:$0x1] %v373_v28  ;;  %v320_v31 = vsel %vm11918_vm3, 0, %v319_v37  ;;  %v1240_v29 = vshll.u32 %v1017_v58, 16  ;;  %v1540_v1 = vrot.slane %v1017_v58, 5 }
  0xef   : > { %v12469_v0 = vld [vmem:[#allocation2 + $0x70] sm:$0xf]  ;;  %v701_v6 = vor.u32 %v699_v50, %v698_v16  ;;  %321 = vst [vmem:[#allocation2 + $0x90] sm:$0x1] %v320_v31  ;;  %v1832_v32 = vshrl.u32 %v1607_v27, 16  ;;  %v1835_v40 = vshll.u32 %v1607_v27, 16  ;;  %v718_v3 = vor.u32 %v716_v8, %v12454_v21 }
  0xf0   : > { %16294 = vst [vmem:[#allocation22_spill] sm:$0xff] %v12469_v0  ;;  %v9569_v42 = vcombine.low %v1607_v27, %v12469_v0  ;;  %v925_v28 = vld [vmem:[#allocation2 + $0x74] sm:$0x1]  ;;  %v1242_v37 = vrot.slane %v1240_v29, 5  ;;  %v1541_v48 = vsel %vm11947_vm11, %v1539_v59, %v1540_v1  ;;  %v12477_v43 = vld [vmem:[#allocation2 + $0x6c] sm:$0xf]  ;;  %v710_v50 = vsel %vm11968_vm13, %v702_v35, %v709_v47 }
  0xf1   : > { %v926_v7 = vsel %vm11918_vm3, %v694_v19, %v925_v28  ;;  %v12479_v34 = vld [vmem:[#allocation2 + $0x70] sm:$0xf]  ;;  %v12483_v16 = vrot.slane %v1832_v32, 4  ;;  %v9553_v8 = vcombine.low %v1538_v51, %v1541_v48  ;;  %v1245_v31 = vshrl.u32 %v12477_v43, 16  ;;  %v928_v59 = vld [vmem:[#allocation2 + $0x78] sm:$0xf] }
  0xf2   : > { %4272 = vmatprep.mubr.bf16.mxu1 %v9569_v42  ;;  %927 = vst [vmem:[#allocation2 + $0x74] sm:$0x1] %v926_v7  ;;  %931 = vst [vmem:[#allocation2 + $0x7c] sm:$0xf] %v710_v50  ;;  %v1243_v19 = vsel %vm11958_vm12, %v1238_v9, %v1242_v37  ;;  %v1248_v29 = vshll.u32 %v12477_v43, 16  ;;  %v1254_v27 = vshll.u32 %v12479_v34, 16  ;;  %v929_v51 = vsel %vm11975_vm14, %v701_v6, %v928_v59 }
  0xf3   : > { %v1258_v35 = vshrl.u32 %v12479_v34, 16  ;;  %v1421_v47 = vld [vmem:[#allocation2 + $0x6c] sm:$0xe]  ;;  %v9537_v1 = vcombine.low %v1233_v57, %v1243_v19  ;;  %v12492_v32 = vrot.slane %v1835_v40, 5  ;;  %4273 = vmatmul.mubr.bf16.gmra.mrb[32].mxu1 %v9553_v8  ;;  %v1247_v48 = vrot.slane %v1245_v31, 4 }
  0xf4   : > { %v932_v42 = vld [vmem:[#allocation2 + $0x80] sm:$0x1]  ;;  %v935_v28 = vld [vmem:[#allocation2 + $0x84] sm:$0xf]  ;;  %v1250_v7 = vrot.slane %v1248_v29, 5  ;;  %v1256_v9 = vrot.slane %v1254_v27, 5  ;;  %v726_v8 = vor.u32 %v724_v46, %v12461_v13  ;;  %v16295_v31 = vcombine.low %v12388_v36, %v12403_v12 }
  0xf5   : > { %v1260_v37 = vrot.slane %v1258_v35, 4  ;;  %930 = vst [vmem:[#allocation2 + $0x78] sm:$0xf] %v929_v51  ;;  %v9474_v50 = vrot.slane %v1421_v47, 9  ;;  %v12497_v58 = vld [vmem:[%s11907_s9 + $0x58] sm:$0xf]  ;;  %4111 = vmatprep.mubr.bf16.mxu0 %v9537_v1  ;;  %v933_v57 = vsel %vm11918_vm3, %v711_v14, %v932_v42  ;;  %v936_v27 = vsel %vm11975_vm14, %v718_v3, %v935_v28 }
  0xf6   : > { %v1544_v0 = vrot.slane %v12479_v34, 5  ;;  %v719_v40 = vrot.slane %v12454_v21, 4  ;;  %v939_v6 = vld [vmem:[#allocation2 + $0x8c] sm:$0x1]  ;;  %4112 = vmatmul.mubr.bf16.gmra.mrb[32].mxu0 %v16295_v31  ;;  %v1251_v59 = vor.u32 %v1250_v7, %v1247_v48  ;;  %934 = vst [vmem:[#allocation2 + $0x80] sm:$0x1] %v933_v57  ;;  %v9522_v36 = vcombine.low %v12477_v43, %v12479_v34 }
  0xf7   : > { %v1261_v19 = vor.u32 %v1260_v37, %v1256_v9  ;;  %v728_v29 = vrot.slane %v12461_v13, 4  ;;  %937 = vst [vmem:[#allocation2 + $0x84] sm:$0xf] %v936_v27  ;;  %v730_v21 = vshrl.u32 %v12497_v58, 16  ;;  %v16299_v26 = vshll.u32 %v12497_v58, 16 }
  0xf8   : > { %v1546_v35 = vrot.slane %v1544_v0, 4  ;;  %v727_v14 = vsel %vm11968_vm13, %v719_v40, %v726_v8  ;;  %v1252_v47 = vrot.slane %v1251_v59, 4  ;;  %v1545_v13 = vsel %vm11947_vm11, %v9474_v50, %v1544_v0 }
  0xf9   : > { %v1018_v46 = vld [vmem:[#allocation2 + $0x74] sm:$0x1]  ;;  %v12515_v12 = vld [vmem:[#allocation2 + $0x7c] sm:$0xf]  ;;  %938 = vst [vmem:[#allocation2 + $0x88] sm:$0xf] %v727_v14  ;;  %v940_v3 = vsel %vm11918_vm3, %v728_v29, %v939_v6 }
  0xfa   : > { %16296 = vst [vmem:[#allocation23_spill] sm:$0xff] %v12515_v12  ;;  %v1262_v1 = vrot.slane %v1261_v19, 4  ;;  %v1264_v48 = vshll.u32 %v1018_v46, 16  ;;  %v1547_v42 = vrot.slane %v1018_v46, 5  ;;  %v12522_v28 = vld [vmem:[#allocation2 + $0x7c] sm:$0xf]  ;;  %v1257_v0 = vsel %vm11958_vm12, %v1252_v47, %v1256_v9 }
  0xfb   : > { %941 = vst [vmem:[#allocation2 + $0x8c] sm:$0x1] %v940_v3  ;;  %v1278_v7 = vshll.u32 %v12522_v28, 16  ;;  %v1282_v34 = vshrl.u32 %v12522_v28, 16  ;;  %v1551_v43 = vrot.slane %v12522_v28, 5  ;;  %v12527_v37 = vrot.slane %v730_v21, 7 }
  0xfc   : > { %v1266_v50 = vrot.slane %v1264_v48, 5  ;;  %v1609_v57 = vld [vmem:[#allocation2 + $0x78] sm:$0xf]  ;;  %v1548_v40 = vsel %vm11947_vm11, %v1546_v35, %v1547_v42 }
  0xfd   : > { %v12533_v8 = vld [vmem:[#allocation2 + $0x78] sm:$0xf]  ;;  %v1856_v31 = vshrl.u32 %v1609_v57, 16  ;;  %v1859_v59 = vshll.u32 %v1609_v57, 16  ;;  %v9570_v19 = vcombine.low %v1609_v57, %v12515_v12  ;;  %v9554_v29 = vcombine.low %v1545_v13, %v1548_v40  ;;  %v1019_v14 = vld [vmem:[#allocation2 + $0x80] sm:$0x1] }
  0xfe   : > { %v1267_v27 = vsel %vm11958_vm12, %v1262_v1, %v1266_v50  ;;  %v1269_v9 = vshrl.u32 %v12533_v8, 16  ;;  %v1272_v21 = vshll.u32 %v12533_v8, 16  ;;  %v1280_v46 = vrot.slane %v1278_v7, 5  ;;  %v1611_v48 = vld [vmem:[#allocation2 + $0x84] sm:$0xf] }
  0xff   : > { %v9538_v47 = vcombine.low %v1257_v0, %v1267_v27  ;;  %v12541_v35 = vrot.slane %v1856_v31, 4  ;;  %4280 = vmatprep.mubr.bf16.mxu1 %v9570_v19  ;;  %v1284_v3 = vrot.slane %v1282_v34, 4  ;;  %v1422_v42 = vld [vmem:[#allocation2 + $0x78] sm:$0xe]  ;;  %v12545_v13 = vrot.slane %v1859_v59, 5 }
 0x100   : > { %4281 = vmatmul.mubr.bf16.gmra.mrb[36].mxu1 %v9554_v29  ;;  %v1271_v1 = vrot.slane %v1269_v9, 4  ;;  %v1274_v50 = vrot.slane %v1272_v21, 5  ;;  %v1288_v40 = vshll.u32 %v1019_v14, 16  ;;  %v12547_v51 = vld [vmem:[#allocation2 + $0x88] sm:$0xf]  ;;  %v9523_v0 = vcombine.low %v12533_v8, %v12522_v28 }
 0x101   : > { %16297 = vst [vmem:[#allocation24_spill] sm:$0xff] %v12547_v51  ;;  %4119 = vmatprep.mubr.bf16.mxu0 %v9538_v47  ;;  %v1285_v7 = vor.u32 %v1284_v3, %v1280_v46  ;;  %v1880_v31 = vshrl.u32 %v1611_v48, 16  ;;  %v1883_v34 = vshll.u32 %v1611_v48, 16  ;;  %v12551_v19 = vld [vmem:[#allocation2 + $0x84] sm:$0xf]  ;;  %v9571_v29 = vcombine.low %v1611_v48, %v12547_v51 }
 0x102   : > { %4120 = vmatmul.mubr.bf16.gmra.mrb[36].mxu0 %v9522_v36  ;;  %v1275_v27 = vor.u32 %v1274_v50, %v1271_v1  ;;  %v1290_v59 = vrot.slane %v1288_v40, 5  ;;  %v9475_v9 = vrot.slane %v1422_v42, 9  ;;  %v12554_v21 = vld [vmem:[#allocation2 + $0x88] sm:$0xf]  ;;  %v1553_v3 = vrot.slane %v1551_v43, 4 }
 0x103   : > { %v1286_v57 = vrot.slane %v1285_v7, 4  ;;  %v12556_v6 = vrot.slane %v1880_v31, 4  ;;  %v12559_v28 = vld [vmem:[#allocation2 + $0x8c] sm:$0x1]  ;;  %4288 = vmatprep.mubr.bf16.mxu1 %v9571_v29  ;;  %v1554_v1 = vrot.slane %v1019_v14, 5  ;;  %v1293_v50 = vshrl.u32 %v12551_v19, 16 }
 0x104   : > { %v1276_v8 = vrot.slane %v1275_v27, 4  ;;  %v1552_v36 = vsel %vm11947_vm11, %v9475_v9, %v1551_v43  ;;  %v531_v48 = vld [vmem:[%s11907_s9 + $0x5c] sm:$0xf]  ;;  %v1296_v40 = vshll.u32 %v12551_v19, 16  ;;  %v1302_v7 = vshll.u32 %v12554_v21, 16 }
 0x105   : > { %16298 = vst [vmem:[#allocation25_spill] sm:$0xff] %v12556_v6  ;;  %v1291_v42 = vsel %vm11958_vm12, %v1286_v57, %v1290_v59  ;;  %v1306_v31 = vshrl.u32 %v12554_v21, 16  ;;  %v942_v47 = vld [vmem:[#allocation2 + $0x90] sm:$0xf]  ;;  %v1555_v43 = vsel %vm11947_vm11, %v1553_v3, %v1554_v1  ;;  %v1295_v14 = vrot.slane %v1293_v50, 4 }
 0x106   : > { %v1281_v27 = vsel %vm11958_vm12, %v1276_v8, %v1280_v46  ;;  %v1312_v29 = vshll.u32 %v12559_v28, 16  ;;  %v375_v9 = vld [vmem:[#allocation2 + $0x98] sm:$0x1]  ;;  %v9555_v57 = vcombine.low %v1552_v36, %v1555_v43  ;;  %v1298_v59 = vrot.slane %v1296_v40, 5  ;;  %v532_v8 = vld [vmem:[%s11907_s9 + $0x60] sm:$0xf] }
 0x107   : > { %v9539_v51 = vcombine.low %v1281_v27, %v1291_v42  ;;  %v1304_v12 = vrot.slane %v1302_v7, 5  ;;  %v12575_v33 = vrot.slane %v1883_v34, 5  ;;  %v1308_v49 = vrot.slane %v1306_v31, 4  ;;  %v1423_v42 = vld [vmem:[#allocation2 + $0x84] sm:$0xe] }
 0x108   : > { %v735_v46 = vor.u32 %v16299_v26, %v12527_v37  ;;  %4289 = vmatmul.mubr.bf16.gmra.mrb[40].mxu1 %v9555_v57  ;;  %v1299_v1 = vor.u32 %v1298_v59, %v1295_v14  ;;  %v738_v50 = vshrl.u32 %v531_v48, 16  ;;  %v741_v36 = vshll.u32 %v531_v48, 16  ;;  %v533_v31 = vld [vmem:[%s11907_s9 + $0x64] sm:$0xf]  ;;  %v378_v14 = vld [vmem:[#allocation2 + $0xa4] sm:$0x1] }
 0x109   : > { %4127 = vmatprep.mubr.bf16.mxu0 %v9539_v51  ;;  %v1309_v40 = vor.u32 %v1308_v49, %v1304_v12  ;;  %v1314_v7 = vrot.slane %v1312_v29, 5  ;;  %v1558_v26 = vrot.slane %v12554_v21, 5  ;;  %v736_v51 = vrot.slane %v12527_v37, 4 }
 0x10a   : > { %4128 = vmatmul.mubr.bf16.gmra.mrb[40].mxu0 %v9523_v0  ;;  %v943_v58 = vsel %vm11975_vm14, %v735_v46, %v942_v47  ;;  %v1300_v27 = vrot.slane %v1299_v1, 4  ;;  %v740_v43 = vrot.slane %v738_v50, 7  ;;  %v376_v48 = vsel %vm11923_vm4, 0, %v375_v9  ;;  %v325_v1 = vld [vmem:[#allocation2 + $0xa8] sm:$0x1] }
 0x10b   : > { %944 = vst [vmem:[#allocation2 + $0x90] sm:$0xf] %v943_v58  ;;  %v1310_v57 = vrot.slane %v1309_v40, 4  ;;  %v9476_v49 = vrot.slane %v1423_v42, 9  ;;  %v1561_v0 = vrot.slane %v12559_v28, 5  ;;  %v323_v47 = vsel %vm11918_vm3, 0, %v322_v56 }
 0x10c   : > { %377 = vst [vmem:[#allocation2 + $0x98] sm:$0x1] %v376_v48  ;;  %v1305_v29 = vsel %vm11958_vm12, %v1300_v27, %v1304_v12  ;;  %v743_v37 = vor.u32 %v741_v36, %v740_v43  ;;  %v1560_v59 = vrot.slane %v1558_v26, 4  ;;  %324 = vst [vmem:[#allocation2 + $0x9c] sm:$0x1] %v323_v47  ;;  %v747_v46 = vshrl.u32 %v532_v8, 16 }
 0x10d   : > { %v534_v50 = vld [vmem:[%s11907_s9 + $0x68] sm:$0xf]  ;;  %v1315_v9 = vsel %vm11958_vm12, %v1310_v57, %v1314_v7  ;;  %v9524_v42 = vcombine.low %v12551_v19, %v12554_v21  ;;  %v750_v28 = vshll.u32 %v532_v8, 16  ;;  %v755_v40 = vshrl.u32 %v533_v31, 16  ;;  %v12603_v58 = vld [vmem:[%s11907_s9 + $0x6c] sm:$0xf] }
 0x10e   : > { %v9540_v56 = vcombine.low %v1305_v29, %v1315_v9  ;;  %v744_v12 = vsel %vm11968_vm13, %v736_v51, %v743_v37  ;;  %v745_v36 = vrot.slane %v740_v43, 4  ;;  %v749_v27 = vrot.slane %v747_v46, 7 }
 0x10f   : > { %945 = vst [vmem:[#allocation2 + $0x94] sm:$0xf] %v744_v12  ;;  %v757_v48 = vrot.slane %v755_v40, 7  ;;  %v758_v47 = vshll.u32 %v533_v31, 16  ;;  %v379_v34 = vsel %vm11923_vm4, 0, %v378_v14  ;;  %v326_v7 = vsel %vm11918_vm3, 0, %v325_v1 }
 0x110   : > { %4135 = vmatprep.mubr.bf16.mxu0 %v9540_v56  ;;  %v1559_v19 = vsel %vm11947_vm11, %v9476_v49, %v1558_v26  ;;  %v1562_v21 = vsel %vm11947_vm11, %v1560_v59, %v1561_v0  ;;  %v753_v8 = vrot.slane %v749_v27, 4  ;;  %380 = vst [vmem:[#allocation2 + $0xa4] sm:$0x1] %v379_v34  ;;  %327 = vst [vmem:[#allocation2 + $0xa8] sm:$0x1] %v326_v7  ;;  %v764_v51 = vshrl.u32 %v534_v50, 16 }
 0x111   : > { %v752_v57 = vor.u32 %v750_v28, %v749_v27  ;;  %v760_v14 = vor.u32 %v758_v47, %v757_v48  ;;  %v767_v29 = vshll.u32 %v534_v50, 16  ;;  %v772_v37 = vshrl.u32 %v12603_v58, 16 }
 0x112   : > { %4136 = vmatmul.mubr.bf16.gmra.mrb[44].mxu0 %v9524_v42  ;;  %v1613_v43 = vld [vmem:[#allocation2 + $0x90] sm:$0xf]  ;;  %v762_v59 = vrot.slane %v757_v48, 4  ;;  %v766_v40 = vrot.slane %v764_v51, 7  ;;  %v328_v48 = vld [vmem:[#allocation2 + $0xb4] sm:$0x1]  ;;  %v9556_v51 = vcombine.low %v1559_v19, %v1562_v21 }
 0x113   : > { %v12615_v31 = vld [vmem:[#allocation2 + $0x90] sm:$0xf]  ;;  %v1904_v46 = vshrl.u32 %v1613_v43, 16  ;;  %v1907_v1 = vshll.u32 %v1613_v43, 16  ;;  %v946_v9 = vld [vmem:[#allocation2 + $0x98] sm:$0x1]  ;;  %v761_v0 = vsel %vm11968_vm13, %v753_v8, %v760_v14 }
 0x114   : > { %v1317_v26 = vshrl.u32 %v12615_v31, 16  ;;  %v1320_v49 = vshll.u32 %v12615_v31, 16  ;;  %v947_v34 = vsel %vm11918_vm3, %v745_v36, %v946_v9  ;;  %v949_v42 = vld [vmem:[#allocation2 + $0x9c] sm:$0xf]  ;;  %v1424_v28 = vld [vmem:[#allocation2 + $0x90] sm:$0xe]  ;;  %v769_v9 = vor.u32 %v767_v29, %v766_v40 }
 0x115   : > { %v12624_v50 = vrot.slane %v1904_v46, 4  ;;  %948 = vst [vmem:[#allocation2 + $0x98] sm:$0x1] %v947_v34  ;;  %952 = vst [vmem:[#allocation2 + $0xa0] sm:$0xf] %v761_v0  ;;  %v12626_v27 = vrot.slane %v772_v37, 7  ;;  %v950_v36 = vsel %vm11975_vm14, %v752_v57, %v949_v42 }
 0x116   : > { %v1319_v56 = vrot.slane %v1317_v26, 4  ;;  %v1322_v12 = vrot.slane %v1320_v49, 5  ;;  %v12628_v47 = vrot.slane %v1907_v1, 5  ;;  %v9477_v7 = vrot.slane %v1424_v28, 9  ;;  %v381_v8 = vld [vmem:[#allocation2 + $0xb0] sm:$0x1] }
 0x117   : > { %16300 = vst [vmem:[#allocation26_spill] sm:$0xff] %v12624_v50  ;;  %v12632_v14 = vld [vmem:[#allocation2 + $0x94] sm:$0xf]  ;;  %951 = vst [vmem:[#allocation2 + $0x9c] sm:$0xf] %v950_v36  ;;  %v770_v26 = vrot.slane %v766_v40, 4 }
 0x118   : > { %16301 = vst [vmem:[#allocation27_spill] sm:$0xff] %v12628_v47  ;;  %16302 = vst [vmem:[#allocation28_spill] sm:$0xff] %v12632_v14  ;;  %v12634_v46 = vld [vmem:[#allocation2 + $0x94] sm:$0xf]  ;;  %v1323_v34 = vor.u32 %v1322_v12, %v1319_v56  ;;  %v775_v37 = vshll.u32 %v12603_v58, 16  ;;  %v9572_v1 = vcombine.low %v1613_v43, %v12632_v14 }
 0x119   : > { %v1326_v49 = vshll.u32 %v12634_v46, 16  ;;  %v1330_v57 = vshrl.u32 %v12634_v46, 16  ;;  %v953_v0 = vld [vmem:[#allocation2 + $0xa4] sm:$0x1]  ;;  %v1565_v28 = vrot.slane %v12634_v46, 5 }
 0x11a   : > { %v1324_v42 = vrot.slane %v1323_v34, 4  ;;  %v954_v19 = vsel %vm11918_vm3, %v762_v59, %v953_v0  ;;  %v956_v21 = vld [vmem:[#allocation2 + $0xa8] sm:$0xf]  ;;  %4296 = vmatprep.mubr.bf16.mxu1 %v9572_v1  ;;  %v777_v56 = vor.u32 %v775_v37, %v12626_v27  ;;  %v382_v59 = vsel %vm11923_vm4, 0, %v381_v8 }
 0x11b   : > { %v1328_v58 = vrot.slane %v1326_v49, 5  ;;  %v1332_v43 = vrot.slane %v1330_v57, 4  ;;  %955 = vst [vmem:[#allocation2 + $0xa4] sm:$0x1] %v954_v19  ;;  %v957_v12 = vsel %vm11975_vm14, %v769_v9, %v956_v21  ;;  %4297 = vmatmul.mubr.bf16.gmra.mrb[44].mxu1 %v9556_v51  ;;  %v1567_v34 = vrot.slane %v1565_v28, 4 }
 0x11c   : > { %958 = vst [vmem:[#allocation2 + $0xa8] sm:$0xf] %v957_v12  ;;  %v329_v0 = vsel %vm11918_vm3, 0, %v328_v48  ;;  %v1021_v1 = vld [vmem:[#allocation2 + $0x98] sm:$0x1]  ;;  %v778_v9 = vsel %vm11968_vm13, %v770_v26, %v777_v56  ;;  %v9525_v48 = vcombine.low %v12615_v31, %v12634_v46 }
 0x11d   : > { %v1333_v49 = vor.u32 %v1332_v43, %v1328_v58  ;;  %v12654_v57 = vld [vmem:[#allocation2 + $0xa0] sm:$0xf]  ;;  %383 = vst [vmem:[#allocation2 + $0xb0] sm:$0x1] %v382_v59  ;;  %330 = vst [vmem:[#allocation2 + $0xb4] sm:$0x1] %v329_v0  ;;  %v1329_v12 = vsel %vm11958_vm12, %v1324_v42, %v1328_v58  ;;  %v1566_v59 = vsel %vm11947_vm11, %v9477_v7, %v1565_v28 }
 0x11e   : > { %16303 = vst [vmem:[#allocation29_spill] sm:$0xff] %v12654_v57  ;;  %v12656_v19 = vld [vmem:[#allocation2 + $0xa0] sm:$0xf]  ;;  %v1336_v37 = vshll.u32 %v1021_v1, 16  ;;  %v1568_v21 = vrot.slane %v1021_v1, 5 }
 0x11f   : > { %v1350_v43 = vshll.u32 %v12656_v19, 16  ;;  %959 = vst [vmem:[#allocation2 + $0xac] sm:$0xf] %v778_v9  ;;  %v1334_v26 = vrot.slane %v1333_v49, 4  ;;  %v1615_v56 = vld [vmem:[#allocation2 + $0x9c] sm:$0xf] }
 0x120   : > { %v12671_v0 = vld [vmem:[#allocation2 + $0x9c] sm:$0xf]  ;;  %v1354_v36 = vshrl.u32 %v12656_v19, 16  ;;  %v1338_v8 = vrot.slane %v1336_v37, 5  ;;  %v1928_v51 = vshrl.u32 %v1615_v56, 16  ;;  %v1931_v40 = vshll.u32 %v1615_v56, 16 }
 0x121   : > { %v9573_v31 = vcombine.low %v1615_v56, %v12654_v57  ;;  %v1569_v46 = vsel %vm11947_vm11, %v1567_v34, %v1568_v21  ;;  %v1341_v1 = vshrl.u32 %v12671_v0, 16  ;;  %v1344_v42 = vshll.u32 %v12671_v0, 16  ;;  %v1425_v3 = vld [vmem:[#allocation2 + $0x9c] sm:$0xe] }
 0x122   : > { %v1352_v58 = vrot.slane %v1350_v43, 5  ;;  %v1339_v7 = vsel %vm11958_vm12, %v1334_v26, %v1338_v8  ;;  %v12681_v28 = vrot.slane %v1928_v51, 4  ;;  %v9557_v9 = vcombine.low %v1566_v59, %v1569_v46  ;;  %v1022_v37 = vld [vmem:[#allocation2 + $0xa4] sm:$0x1]  ;;  %v384_v8 = vld [vmem:[#allocation2 + $0xbc] sm:$0x1] }
 0x123   : > { %4304 = vmatprep.mubr.bf16.mxu1 %v9573_v31  ;;  %v9541_v56 = vcombine.low %v1329_v12, %v1339_v7  ;;  %v1343_v29 = vrot.slane %v1341_v1, 4  ;;  %v1346_v14 = vrot.slane %v1344_v42, 5  ;;  %v1356_v34 = vrot.slane %v1354_v36, 4  ;;  %v1617_v43 = vld [vmem:[#allocation2 + $0xa8] sm:$0xf] }
 0x124   : > { %16304 = vst [vmem:[#allocation30_spill] sm:$0xff] %v12681_v28  ;;  %v12684_v21 = vrot.slane %v1931_v40, 5  ;;  %4305 = vmatmul.mubr.bf16.gmra.mrb[48].mxu1 %v9557_v9  ;;  %v1360_v47 = vshll.u32 %v1022_v37, 16  ;;  %v960_v50 = vld [vmem:[#allocation2 + $0xb0] sm:$0x1]  ;;  %v9478_v12 = vrot.slane %v1425_v3, 9  ;;  %v9526_v1 = vcombine.low %v12671_v0, %v12656_v19 }
 0x125   : > { %4143 = vmatprep.mubr.bf16.mxu0 %v9541_v56  ;;  %v1347_v26 = vor.u32 %v1346_v14, %v1343_v29  ;;  %v1357_v59 = vor.u32 %v1356_v34, %v1352_v58  ;;  %v1572_v36 = vrot.slane %v12656_v19, 5  ;;  %v12693_v40 = vld [vmem:[#allocation2 + $0xa8] sm:$0xf]  ;;  %v1952_v42 = vshrl.u32 %v1617_v43, 16 }
 0x126   : > { %16305 = vst [vmem:[#allocation31_spill] sm:$0xff] %v12684_v21  ;;  %v12690_v31 = vld [vmem:[#allocation2 + $0xac] sm:$0xf]  ;;  %4144 = vmatmul.mubr.bf16.gmra.mrb[48].mxu0 %v9525_v48  ;;  %v1362_v46 = vrot.slane %v1360_v47, 5  ;;  %v1955_v7 = vshll.u32 %v1617_v43, 16  ;;  %v1575_v49 = vrot.slane %v1022_v37, 5 }
 0x127   : > { %16306 = vst [vmem:[#allocation32_spill] sm:$0xff] %v12690_v31  ;;  %v12697_v9 = vld [vmem:[#allocation2 + $0xac] sm:$0xf]  ;;  %v1348_v14 = vrot.slane %v1347_v26, 4  ;;  %v1358_v29 = vrot.slane %v1357_v59, 4  ;;  %v9574_v56 = vcombine.low %v1617_v43, %v12690_v31  ;;  %v1573_v3 = vsel %vm11947_vm11, %v9478_v12, %v1572_v36 }
 0x128   : > { %v1574_v34 = vrot.slane %v1572_v36, 4  ;;  %v16307_v47 = vrot.slane %v12626_v27, 4  ;;  %v1365_v48 = vshrl.u32 %v12693_v40, 16  ;;  %v1368_v43 = vshll.u32 %v12693_v40, 16  ;;  %v536_v37 = vld [vmem:[%s11907_s9 + $0x70] sm:$0xf] }
 0x129   : > { %v1353_v0 = vsel %vm11958_vm12, %v1348_v14, %v1352_v58  ;;  %v1363_v26 = vsel %vm11958_vm12, %v1358_v29, %v1362_v46  ;;  %4312 = vmatprep.mubr.bf16.mxu1 %v9574_v56  ;;  %v1374_v59 = vshll.u32 %v12697_v9, 16  ;;  %v537_v12 = vld [vmem:[%s11907_s9 + $0x74] sm:$0xf]  ;;  %v331_v58 = vld [vmem:[#allocation2 + $0xc0] sm:$0x1]  ;;  %v12718_v14 = vrot.slane %v1952_v42, 4 }
 0x12a   : > { %v961_v19 = vsel %vm11918_vm3, %v16307_v47, %v960_v50  ;;  %v9542_v27 = vcombine.low %v1353_v0, %v1363_v26  ;;  %v1576_v50 = vsel %vm11947_vm11, %v1574_v34, %v1575_v49  ;;  %v1367_v36 = vrot.slane %v1365_v48, 4  ;;  %v538_v28 = vld [vmem:[%s11907_s9 + $0x78] sm:$0xf] }
 0x12b   : > { %962 = vst [vmem:[#allocation2 + $0xb0] sm:$0x1] %v961_v19  ;;  %v1378_v47 = vshrl.u32 %v12697_v9, 16  ;;  %16308 = vst [vmem:[#allocation33_spill] sm:$0xff] %v12718_v14  ;;  %v9558_v46 = vcombine.low %v1573_v3, %v1576_v50  ;;  %v1370_v29 = vrot.slane %v1368_v43, 5  ;;  %v1376_v56 = vrot.slane %v1374_v59, 5 }
 0x12c   : > { %v1426_v19 = vld [vmem:[#allocation2 + $0xa8] sm:$0xe]  ;;  %4151 = vmatprep.mubr.bf16.mxu0 %v9542_v27  ;;  %v781_v57 = vshrl.u32 %v536_v37, 16  ;;  %v784_v0 = vshll.u32 %v536_v37, 16  ;;  %v789_v26 = vshrl.u32 %v537_v12, 16  ;;  %v12720_v21 = vrot.slane %v1955_v7, 5 }
 0x12d   : > { %v1380_v51 = vrot.slane %v1378_v47, 4  ;;  %4313 = vmatmul.mubr.bf16.gmra.mrb[52].mxu1 %v9558_v46  ;;  %v1371_v49 = vor.u32 %v1370_v29, %v1367_v36  ;;  %v792_v34 = vshll.u32 %v537_v12, 16  ;;  %v1579_v48 = vrot.slane %v12697_v9, 5  ;;  %v539_v27 = vld [vmem:[%s11907_s9 + $0x7c] sm:$0xf] }
 0x12e   : > { %16309 = vst [vmem:[#allocation34_spill] sm:$0xff] %v12720_v21  ;;  %4152 = vmatmul.mubr.bf16.gmra.mrb[52].mxu0 %v9526_v1  ;;  %v783_v3 = vrot.slane %v781_v57, 7  ;;  %v791_v43 = vrot.slane %v789_v26, 7  ;;  %v385_v59 = vsel %vm11923_vm4, 0, %v384_v8  ;;  %v9527_v37 = vcombine.low %v12693_v40, %v12697_v9  ;;  %v963_v7 = vld [vmem:[#allocation2 + $0xb4] sm:$0xf] }
 0x12f   : > { %v1381_v42 = vor.u32 %v1380_v51, %v1376_v56  ;;  %v1372_v50 = vrot.slane %v1371_v49, 4  ;;  %v9479_v47 = vrot.slane %v1426_v19, 9  ;;  %386 = vst [vmem:[#allocation2 + $0xbc] sm:$0x1] %v385_v59  ;;  %v332_v12 = vsel %vm11918_vm3, 0, %v331_v58 }
 0x130   : > { %v786_v46 = vor.u32 %v784_v0, %v783_v3  ;;  %v787_v1 = vrot.slane %v783_v3, 4  ;;  %v794_v51 = vor.u32 %v792_v34, %v791_v43  ;;  %v1581_v57 = vrot.slane %v1579_v48, 4  ;;  %333 = vst [vmem:[#allocation2 + $0xc0] sm:$0x1] %v332_v12  ;;  %v1623_v29 = vld [vmem:[#allocation2 + $0x14] sm:$0x1] }
 0x131   : > { %v1377_v8 = vsel %vm11958_vm12, %v1372_v50, %v1376_v56  ;;  %v1382_v26 = vrot.slane %v1381_v42, 4  ;;  %v796_v24 = vrot.slane %v791_v43, 4  ;;  %v2023_v40 = vld [vmem:[#allocation2 + $0xc] sm:$0xe]  ;;  %v798_v19 = vshrl.u32 %v538_v28, 16 }
 0x132   : > { %v1023_v36 = vld [vmem:[#allocation2 + $0xb0] sm:$0x1]  ;;  %v795_v9 = vsel %vm11968_vm13, %v787_v1, %v794_v51  ;;  %v964_v58 = vsel %vm11975_vm14, %v786_v46, %v963_v7  ;;  %v801_v0 = vshll.u32 %v538_v28, 16  ;;  %v806_v59 = vshrl.u32 %v539_v27, 16  ;;  %v12745_v21 = vld [vmem:[#allocation2 + $0x18] sm:$0xf] }
 0x133   : > { %v1384_v49 = vshll.u32 %v1023_v36, 16  ;;  %965 = vst [vmem:[#allocation2 + $0xb4] sm:$0xf] %v964_v58  ;;  %966 = vst [vmem:[#allocation2 + $0xb8] sm:$0xf] %v795_v9  ;;  %v1582_v34 = vrot.slane %v1023_v36, 5  ;;  %v1580_v56 = vsel %vm11947_vm11, %v9479_v47, %v1579_v48 }
 0x134   : > { %v809_v12 = vshll.u32 %v539_v27, 16  ;;  %v800_v42 = vrot.slane %v798_v19, 7  ;;  %v1659_v43 = vshll.u32 %v1623_v29, 16  ;;  %v9481_v50 = vrot.slane %v2023_v40, 9 }
 0x135   : > { %v1386_v3 = vrot.slane %v1384_v49, 5  ;;  %v12741_v51 = vrot.slane %v806_v59, 7  ;;  %v16311_v7 = vrot.slane %v12020_v2, 5  ;;  %v2092_v46 = vrot.slane %v1623_v29, 5  ;;  %v12768_v2 = vld [vmem:[#allocation2 + $0x1c] sm:$0xf] }
 0x136   : > { %v967_v9 = vld [vmem:[#allocation2 + $0xbc] sm:$0x1]  ;;  %v803_v36 = vor.u32 %v801_v0, %v800_v42  ;;  %v804_v58 = vrot.slane %v800_v42, 4  ;;  %v1661_v27 = vrot.slane %v1659_v43, 5  ;;  %v1583_v48 = vsel %vm11947_vm11, %v1581_v57, %v1582_v34  ;;  %v12781_v43 = vld [vmem:[#allocation2 + $0x24] sm:$0xf] }
 0x137   : > { %v1387_v1 = vsel %vm11958_vm12, %v1382_v26, %v1386_v3  ;;  %16310 = vst [vmem:[#allocation35_spill] sm:$0xff] %v12741_v51  ;;  %v2091_v28 = vrot.slane %v16311_v7, 4  ;;  %v968_v47 = vsel %vm11918_vm3, %v796_v24, %v967_v9  ;;  %v811_v26 = vor.u32 %v809_v12, %v12741_v51  ;;  %v970_v40 = vld [vmem:[#allocation2 + $0xc0] sm:$0xf] }
 0x138   : > { %v9543_v49 = vcombine.low %v1377_v8, %v1387_v1  ;;  %v16312_v19 = vmov %v16311_v7  ;;  %969 = vst [vmem:[#allocation2 + $0xbc] sm:$0x1] %v968_v47  ;;  %v971_v0 = vsel %vm11975_vm14, %v803_v36, %v970_v40  ;;  %v1662_v24 = vsel %vm11958_vm12, %v12059_v55, %v1661_v27  ;;  %v12783_v55 = vld [vmem:[#allocation2 + $0x28] sm:$0xf]  ;;  %v12809_v47 = vld [vmem:[#allocation2 + $0x40] sm:$0xf] }
 0x139   : > { %v12756_v29 = vsel %vm11947_vm11, %v9481_v50, %v16312_v19  ;;  %v12763_v57 = vsel %vm11947_vm11, %v2091_v28, %v2092_v46  ;;  %v812_v3 = vsel %vm11968_vm13, %v804_v58, %v811_v26  ;;  %972 = vst [vmem:[#allocation2 + $0xc0] sm:$0xf] %v971_v0  ;;  %v16313_v59 = vsel %vm11958_vm12, %v12057_v54, %v12040_v22  ;;  %v12791_v46 = vld [vmem:[#allocation2 + $0x30] sm:$0xf]  ;;  %v12793_v22 = vld [vmem:[#allocation2 + $0x34] sm:$0xf] }
 0x13a   : > { %4159 = vmatprep.mubr.bf16.mxu0 %v9543_v49  ;;  %v12778_v12 = vcombine.low %v16313_v59, %v1662_v24  ;;  %v2249_v42 = vshrl.u32 %v12745_v21, 16  ;;  %v12785_v50 = vld [vmem:[#allocation2 + $0xb8] sm:$0xf]  ;;  %v9559_v1 = vcombine.low %v1580_v56, %v1583_v48  ;;  %v12787_v7 = vld [vmem:[#allocation2 + $0xb4] sm:$0xf]  ;;  %v2252_v58 = vshll.u32 %v12745_v21, 16 }
 0x13b   : > { %4160 = vmatmul.mubr.bf16.gmra.mrb[56].mxu0 %v9527_v37  ;;  %v1619_v37 = vld [vmem:[#allocation2 + $0xb4] sm:$0xf]  ;;  %16314 = vst [vmem:[#allocation36_spill] sm:$0xff] %v12785_v50  ;;  %973 = vst [vmem:[#allocation2 + $0xc4] sm:$0xf] %v812_v3  ;;  %v1389_v26 = vshrl.u32 %v12787_v7, 16 }
 0x13c   : > { %v12795_v54 = vld [vmem:[#allocation2 + $0x3c] sm:$0xf]  ;;  %v9575_v56 = vcombine.low %v1619_v37, %v12785_v50  ;;  %v12802_v36 = vld [vmem:[#allocation2 + $0xb8] sm:$0xf]  ;;  %v1392_v40 = vshll.u32 %v12787_v7, 16  ;;  %v1976_v3 = vshrl.u32 %v1619_v37, 16 }
 0x13d   : > { %v1398_v19 = vshll.u32 %v12802_v36, 16  ;;  %v1402_v0 = vshrl.u32 %v12802_v36, 16  ;;  %v1427_v24 = vld [vmem:[#allocation2 + $0xb4] sm:$0xe]  ;;  %v1391_v9 = vrot.slane %v1389_v26, 4  ;;  %v1979_v28 = vshll.u32 %v1619_v37, 16 }
 0x13e   : > { %4320 = vmatprep.mubr.bf16.mxu1 %v9575_v56  ;;  %v9480_v59 = vrot.slane %v1427_v24, 9  ;;  %v1394_v49 = vrot.slane %v1392_v40, 5  ;;  %v1586_v15 = vrot.slane %v12802_v36, 5  ;;  %v2251_v23 = vrot.slane %v2249_v42, 4  ;;  %v11418_v50 = vld [vmem:[#allocation2 + $0x1c] sm:$0xf] }
 0x13f   : > { %4321 = vmatmul.mubr.bf16.gmra.mrb[56].mxu1 %v9559_v1  ;;  %v1400_v48 = vrot.slane %v1398_v19, 5  ;;  %v1404_v27 = vrot.slane %v1402_v0, 4  ;;  %v1024_v10 = vld [vmem:[#allocation2 + $0xbc] sm:$0x1]  ;;  %v2254_v51 = vrot.slane %v2252_v58, 5  ;;  %v2258_v37 = vshll.u32 %v12768_v2, 16 }
 0x140   : > { %v1395_v31 = vor.u32 %v1394_v49, %v1391_v9  ;;  %v1408_v24 = vshll.u32 %v1024_v10, 16  ;;  %v12820_v14 = vld [vmem:[#allocation2 + $0xc0] sm:$0xf]  ;;  %v1589_v34 = vrot.slane %v1024_v10, 5  ;;  %v1587_v1 = vsel %vm11947_vm11, %v9480_v59, %v1586_v15  ;;  %v2024_v59 = vld [vmem:[#allocation2 + $0x18] sm:$0xe] }
 0x141   : > { %v1405_v56 = vor.u32 %v1404_v27, %v1400_v48  ;;  %v1588_v26 = vrot.slane %v1586_v15, 4  ;;  %v12826_v40 = vrot.slane %v1976_v3, 4  ;;  %v2232_v49 = vld [vmem:[#allocation2 + $0x20] sm:$0x1]  ;;  %v12828_v9 = vrot.slane %v1979_v28, 5 }
 0x142   : > { %v1622_v8 = vld [vmem:[#allocation2 + $0xc4] sm:$0xf]  ;;  %v1396_v19 = vrot.slane %v1395_v31, 4  ;;  %v1410_v58 = vrot.slane %v1408_v24, 5  ;;  %v9528_v10 = vcombine.low %v12787_v7, %v12802_v36  ;;  %v1624_v24 = vld [vmem:[#allocation2 + $0x20] sm:$0x1] }
 0x143   : > { %16315 = vst [vmem:[#allocation37_spill] sm:$0xff] %v12826_v40  ;;  %v1406_v42 = vrot.slane %v1405_v56, 4  ;;  %16316 = vst [vmem:[#allocation38_spill] sm:$0xff] %v12828_v9  ;;  %v9576_v27 = vcombine.low %v12820_v14, %v1622_v8  ;;  %v1590_v0 = vsel %vm11947_vm11, %v1588_v26, %v1589_v34  ;;  %v2255_v56 = vor.u32 %v2254_v51, %v2251_v23 }
 0x144   : > { %v1401_v15 = vsel %vm11958_vm12, %v1396_v19, %v1400_v48  ;;  %v9560_v3 = vcombine.low %v1587_v1, %v1590_v0  ;;  %v2260_v6 = vrot.slane %v2258_v37, 5  ;;  %v2262_v7 = vshrl.u32 %v12768_v2, 16 }
 0x145   : > { %v1411_v31 = vsel %vm11958_vm12, %v1406_v42, %v1410_v58  ;;  %4328 = vmatprep.mubr.bf16.mxu1 %v9576_v27  ;;  %v2268_v36 = vshll.u32 %v2232_v49, 16  ;;  %v2256_v34 = vrot.slane %v2255_v56, 4  ;;  %v9482_v26 = vrot.slane %v2024_v59, 9 }
 0x146   : > { %v9544_v28 = vcombine.low %v1401_v15, %v1411_v31  ;;  %v2096_v9 = vrot.slane %v11418_v50, 5  ;;  %v2264_v48 = vrot.slane %v2262_v7, 4  ;;  %v2099_v19 = vrot.slane %v1624_v24, 5 }
 0x147   : > { %4329 = vmatmul.mubr.bf16.gmra.mrb[60].mxu1 %v9560_v3  ;;  %v16317_v23 = vor.u32 %v12107_v41, %v12064_v63  ;;  %v1673_v1 = vshll.u32 %v11418_v50, 16  ;;  %v2261_v37 = vsel %vm11958_vm12, %v2256_v34, %v2260_v6  ;;  %v2270_v42 = vrot.slane %v2268_v36, 5  ;;  %v2233_v50 = vld [vmem:[#allocation2 + $0x2c] sm:$0x1] }
 0x148   : > { %4167 = vmatprep.mubr.bf16.mxu0 %v9544_v28  ;;  %v2098_v58 = vrot.slane %v2096_v9, 4  ;;  %v16318_v49 = vshrl.u32 %v12055_v52, 16  ;;  %v16319_v0 = vcombine.low %v12756_v29, %v12763_v57  ;;  %v2265_v59 = vor.u32 %v2264_v48, %v2260_v6  ;;  %v1625_v34 = vld [vmem:[#allocation2 + $0x2c] sm:$0x1] }
 0x149   : > { %v1671_v51 = vrot.slane %v16317_v23, 4  ;;  %4168 = vmatmul.mubr.bf16.gmra.mrb[60].mxu0 %v9528_v10  ;;  %v1675_v15 = vrot.slane %v1673_v1, 5  ;;  %v1683_v31 = vshll.u32 %v1624_v24, 16  ;;  %v2273_v63 = vshrl.u32 %v12781_v43, 16  ;;  %v2025_v24 = vld [vmem:[#allocation2 + $0x24] sm:$0xe] }
 0x14a   : > { %v1679_v27 = vrot.slane %v16318_v49, 4  ;;  %4369 = vmatprep.mubr.bf16.mxu0 %v16319_v0  ;;  %v2097_v41 = vsel %vm11947_vm11, %v9482_v26, %v2096_v9  ;;  %v2276_v10 = vshll.u32 %v12781_v43, 16  ;;  %v2282_v3 = vshll.u32 %v12783_v55, 16 }
 0x14b   : > { %v2286_v52 = vshrl.u32 %v12783_v55, 16  ;;  %v2266_v56 = vrot.slane %v2265_v59, 4  ;;  %v2100_v29 = vsel %vm11947_vm11, %v2098_v58, %v2099_v19  ;;  %v1676_v6 = vsel %vm11958_vm12, %v1671_v51, %v1675_v15  ;;  %v11277_v58 = vld [vmem:[#allocation7 + $0x208] sm:$0xff]  }
 0x14c   : > { %v1680_v57 = vor.u32 %v1679_v27, %v1675_v15  ;;  %v1685_v28 = vrot.slane %v1683_v31, 5  ;;  %v2275_v7 = vrot.slane %v2273_v63, 4  ;;  %v2278_v36 = vrot.slane %v2276_v10, 5  ;;  %v11419_v31 = vld [vmem:[#allocation2 + $0x28] sm:$0xf] }
 0x14d   : > { %v2284_v9 = vrot.slane %v2282_v3, 5  ;;  %v2271_v26 = vsel %vm11958_vm12, %v2266_v56, %v2270_v42  ;;  %v2288_v23 = vrot.slane %v2286_v52, 4  ;;  %v2292_v1 = vshll.u32 %v2233_v50, 16  ;;  %v11420_v50 = vld [vmem:[#allocation7 + $0x200] sm:$0xff]  }
 0x14e   : > { %v1681_v48 = vrot.slane %v1680_v57, 4  ;;  %v9625_v49 = vcombine.low %v2261_v37, %v2271_v26  ;;  %v9594_v0 = vcombine.low %v2097_v41, %v2100_v29  ;;  %v2279_v59 = vor.u32 %v2278_v36, %v2275_v7  ;;  %v11280_v7 = vld [vmem:[#allocation7 + $0x210] sm:$0xff]   ;;  %v2234_v26 = vld [vmem:[#allocation2 + $0x38] sm:$0x1] }
 0x14f   : > { %v9483_v19 = vrot.slane %v2025_v24, 9  ;;  %v2289_v27 = vor.u32 %v2288_v23, %v2284_v9  ;;  %v2294_v15 = vrot.slane %v2292_v1, 5  ;;  %v2103_v63 = vrot.slane %v11419_v31, 5  ;;  %v2026_v23 = vld [vmem:[#allocation2 + $0x30] sm:$0xe] }
 0x150   : > { %v1686_v51 = vsel %vm11958_vm12, %v1681_v48, %v1685_v28  ;;  %4530 = vmatprep.mubr.bf16.mxu1 %v9625_v49  ;;  %v2280_v42 = vrot.slane %v2279_v59, 4  ;;  %v2106_v3 = vrot.slane %v1625_v34, 5  ;;  %v16320_v37 = vor.u32 %v12204_v45, %v12171_v17 }
 0x151   : > { %4370 = vmatmul.mubr.bf16.vlgmr.msra.gmra.mrb[64].mxu0 %v12778_v12  ;;  %v9578_v10 = vcombine.low %v1676_v6, %v1686_v51  ;;  %v16321_v52 = vcombine.low %v12745_v21, %v12768_v2  ;;  %v2290_v56 = vrot.slane %v2289_v27, 4  ;;  %v2104_v29 = vsel %vm11947_vm11, %v9483_v19, %v2103_v63 }
 0x152   : > { %v1695_v41 = vrot.slane %v16320_v37, 4  ;;  %11011 = vmatpush3.bf16.msra.mxu0 %v11420_v50  ;;  %v2105_v57 = vrot.slane %v2103_v63, 4  ;;  %v1697_v12 = vshll.u32 %v11419_v31, 16  ;;  %4377 = vmatprep.mubr.bf16.mxu0 %v9594_v0  ;;  %v2285_v6 = vsel %vm11958_vm12, %v2280_v42, %v2284_v9  ;;  %v11421_v63 = vld [vmem:[#allocation2 + $0x34] sm:$0xf] }
 0x153   : > { %4531 = vmatmul.mubr.bf16.vlgmr.msra.gmra.mrb[64].mxu1 %v16321_v52  ;;  %v16322_v24 = vshrl.u32 %v12142_v44, 16  ;;  %v1707_v45 = vshll.u32 %v1625_v34, 16  ;;  %11012 = vmatprep.subr.bf16.mxu0 %v11277_v58  ;;  %v2297_v28 = vshrl.u32 %v12791_v46, 16  ;;  %v2295_v21 = vsel %vm11958_vm12, %v2290_v56, %v2294_v15  ;;  %v1626_v34 = vld [vmem:[#allocation2 + $0x38] sm:$0x1]  ;;  %v11283_v56 = vld [vmem:[#allocation7 + $0x218] sm:$0xff]  }
 0x154   : > { %v2107_v2 = vsel %vm11947_vm11, %v2105_v57, %v2106_v3  ;;  %v1699_v36 = vrot.slane %v1697_v12, 5  ;;  %v2300_v48 = vshll.u32 %v12791_v46, 16  ;;  %v9626_v9 = vcombine.low %v2285_v6, %v2295_v21 }
 0x155   : > { %v1703_v17 = vrot.slane %v16322_v24, 4  ;;  %v9595_v1 = vcombine.low %v2104_v29, %v2107_v2  ;;  %v1709_v44 = vrot.slane %v1707_v45, 5  ;;  %v2299_v49 = vrot.slane %v2297_v28, 4 }
 0x156   : > { %v1700_v0 = vsel %vm11958_vm12, %v1695_v41, %v1699_v36  ;;  %v2302_v19 = vrot.slane %v2300_v48, 5  ;;  %v2306_v51 = vshll.u32 %v12793_v22, 16  ;;  %11013 = vmatpush3.bf16.msra.mxu0 %v11277_v58  ;;  %4538 = vmatprep.mubr.bf16.mxu1 %v9626_v9  ;;  %v2310_v27 = vshrl.u32 %v12793_v22, 16  ;;  %v11286_v9 = vld [vmem:[#allocation7 + $0x220] sm:$0xff]  }
 0x157   : > { %v1704_v59 = vor.u32 %v1703_v17, %v1699_v36  ;;  %v2316_v15 = vshll.u32 %v2234_v26, 16  ;;  %v9484_v31 = vrot.slane %v2026_v23, 9  ;;  %v2110_v42 = vrot.slane %v11421_v63, 5  ;;  %11014 = vmatprep.subr.bf16.mxu0 %v11280_v7 }
 0x158   : > { %v2303_v37 = vor.u32 %v2302_v19, %v2299_v49  ;;  %v2308_v50 = vrot.slane %v2306_v51, 5  ;;  %v2113_v52 = vrot.slane %v1626_v34, 5  ;;  %v2312_v41 = vrot.slane %v2310_v27, 4  ;;  %v1627_v19 = vld [vmem:[#allocation2 + $0x44] sm:$0x1] }
 0x159   : > { %v1705_v3 = vrot.slane %v1704_v59, 4  ;;  %4378 = vmatmul.mubr.bf16.gmra.mrb[68].mxu0 %v9578_v10  ;;  %v2318_v29 = vrot.slane %v2316_v15, 5  ;;  %v2111_v57 = vsel %vm11947_vm11, %v9484_v31, %v2110_v42  ;;  %v2112_v58 = vrot.slane %v2110_v42, 4  ;;  %v2027_v51 = vld [vmem:[#allocation2 + $0x3c] sm:$0xe] }
 0x15a   : > { %v16323_v12 = vcombine.low %v12781_v43, %v12783_v55  ;;  %4385 = vmatprep.mubr.bf16.mxu0 %v9595_v1  ;;  %v2304_v24 = vrot.slane %v2303_v37, 4  ;;  %v16324_v17 = vor.u32 %v12222_v39, %v12213_v5  ;;  %v1721_v10 = vshll.u32 %v11421_v63, 16  ;;  %11015 = vmatpush3.bf16.msra.mxu0 %v11280_v7  ;;  %v2235_v39 = vld [vmem:[#allocation2 + $0x44] sm:$0x1] }
 0x15b   : > { %v1710_v6 = vsel %vm11958_vm12, %v1705_v3, %v1709_v44  ;;  %v2313_v21 = vor.u32 %v2312_v41, %v2308_v50  ;;  %v2114_v2 = vsel %vm11947_vm11, %v2112_v58, %v2113_v52  ;;  %v16325_v36 = vshrl.u32 %v12197_v53, 16  ;;  %11016 = vmatprep.subr.bf16.mxu0 %v11283_v56 }
 0x15c   : > { %4539 = vmatmul.mubr.bf16.gmra.mrb[68].mxu1 %v16323_v12  ;;  %v1719_v45 = vrot.slane %v16324_v17, 4  ;;  %v9579_v28 = vcombine.low %v1700_v0, %v1710_v6  ;;  %v2309_v43 = vsel %vm11958_vm12, %v2304_v24, %v2308_v50  ;;  %v9596_v55 = vcombine.low %v2111_v57, %v2114_v2  ;;  %v11289_v50 = vld [vmem:[#allocation7 + $0x228] sm:$0xff]   ;;  %v11422_v57 = vld [vmem:[#allocation2 + $0x40] sm:$0xf] }
 0x15d   : > { %v1727_v26 = vrot.slane %v16325_v36, 4  ;;  %v1723_v48 = vrot.slane %v1721_v10, 5  ;;  %v1731_v23 = vshll.u32 %v1626_v34, 16  ;;  %v2314_v5 = vrot.slane %v2313_v21, 4 }
 0x15e   : > { %v2321_v1 = vshrl.u32 %v12795_v54, 16  ;;  %v2324_v44 = vshll.u32 %v12795_v54, 16  ;;  %v2330_v49 = vshll.u32 %v12809_v47, 16  ;;  %v2334_v59 = vshrl.u32 %v12809_v47, 16  ;;  %11017 = vmatpush3.bf16.msra.mxu0 %v11283_v56 }
 0x15f   : > { %v1724_v53 = vsel %vm11958_vm12, %v1719_v45, %v1723_v48  ;;  %v1728_v7 = vor.u32 %v1727_v26, %v1723_v48  ;;  %v1733_v0 = vrot.slane %v1731_v23, 5  ;;  %v2319_v34 = vsel %vm11958_vm12, %v2314_v5, %v2318_v29  ;;  %11018 = vmatprep.subr.bf16.mxu0 %v11286_v9  ;;  %v12919_v45 = vld [vmem:[#allocation2 + $0x48] sm:$0xf]  ;;  %v11292_v26 = vld [vmem:[#allocation7 + $0x230] sm:$0xff]   ;;  %v16328_v48 = vld [vmem:[#allocation18_spill] sm:$0xff] }
 0x160   : > { %v2323_v27 = vrot.slane %v2321_v1, 4  ;;  %v2326_v15 = vrot.slane %v2324_v44, 5  ;;  %v2332_v31 = vrot.slane %v2330_v49, 5  ;;  %v9627_v63 = vcombine.low %v2309_v43, %v2319_v34  ;;  %v12928_v5 = vld [vmem:[#allocation2 + $0x4c] sm:$0xf] }
 0x161   : > { %v1729_v42 = vrot.slane %v1728_v7, 4  ;;  %v2336_v3 = vrot.slane %v2334_v59, 4  ;;  %v2340_v37 = vshll.u32 %v2235_v39, 16  ;;  %4386 = vmatmul.mubr.bf16.gmra.mrb[72].mxu0 %v9579_v28  ;;  %v9485_v41 = vrot.slane %v2027_v51, 9  ;;  %v2236_v39 = vld [vmem:[#allocation2 + $0x50] sm:$0x1] }
 0x162   : > { %v2327_v52 = vor.u32 %v2326_v15, %v2323_v27  ;;  %v2117_v58 = vrot.slane %v11422_v57, 5  ;;  %v2120_v12 = vrot.slane %v1627_v19, 5  ;;  %4546 = vmatprep.mubr.bf16.mxu1 %v9627_v63  ;;  %4393 = vmatprep.mubr.bf16.mxu0 %v9596_v55  ;;  %v16326_v56 = vor.u32 %v12278_v30, %v12266_v61  ;;  %v2028_v59 = vld [vmem:[#allocation2 + $0x48] sm:$0xe] }
 0x163   : > { %v1734_v29 = vsel %vm11958_vm12, %v1729_v42, %v1733_v0  ;;  %v2337_v6 = vor.u32 %v2336_v3, %v2332_v31  ;;  %v2342_v24 = vrot.slane %v2340_v37, 5  ;;  %v16327_v10 = vcombine.low %v12791_v46, %v12793_v22  ;;  %11019 = vmatpush3.bf16.msra.mxu0 %v11286_v9  ;;  %v12938_v0 = vld [vmem:[#allocation2 + $0x50] sm:$0x1] }
 0x164   : > { %v12917_v17 = vrot.slane %v16326_v56, 4  ;;  %v9580_v28 = vcombine.low %v1724_v53, %v1734_v29  ;;  %v2328_v21 = vrot.slane %v2327_v52, 4  ;;  %v2118_v2 = vsel %vm11947_vm11, %v9485_v41, %v2117_v58  ;;  %11020 = vmatprep.subr.bf16.mxu0 %v11289_v50  ;;  %v11295_v52 = vld [vmem:[#allocation7 + $0x238] sm:$0xff]  }
 0x165   : > { %4547 = vmatmul.mubr.bf16.gmra.mrb[72].mxu1 %v16327_v10  ;;  %v2119_v36 = vrot.slane %v2117_v58, 4  ;;  %v2338_v43 = vrot.slane %v2337_v6, 4  ;;  %v1745_v55 = vshll.u32 %v11422_v57, 16  ;;  %v16329_v61 = vshrl.u32 %v16328_v48, 16  ;;  %v12941_v15 = vpop.f32.mrb[0].mxu0 }
 0x166   : > { %v1755_v23 = vshll.u32 %v1627_v19, 16  ;;  %v2333_v46 = vsel %vm11958_vm12, %v2328_v21, %v2332_v31  ;;  %v2345_v1 = vshrl.u32 %v12919_v45, 16  ;;  %v2348_v9 = vshll.u32 %v12919_v45, 16  ;;  %v12947_v37 = vpop.f32.mrb[1].mxu0 }
 0x167   : > { %v1751_v30 = vrot.slane %v16329_v61, 4  ;;  %v2121_v22 = vsel %vm11947_vm11, %v2119_v36, %v2120_v12  ;;  %v2343_v44 = vsel %vm11958_vm12, %v2338_v43, %v2342_v24  ;;  %v1747_v53 = vrot.slane %v1745_v55, 5  ;;  %11021 = vmatpush3.bf16.msra.mxu0 %v11289_v50  ;;  %v12951_v12 = vld [vmem:[#allocation2 + $0x54] sm:$0xf]  ;;  %v12953_v29 = vpop.f32.mrb[2].mxu0 }
 0x168   : > { %v9597_v49 = vcombine.low %v2118_v2, %v2121_v22  ;;  %v1757_v7 = vrot.slane %v1755_v23, 5  ;;  %v9628_v19 = vcombine.low %v2333_v46, %v2343_v44  ;;  %v2347_v51 = vrot.slane %v2345_v1, 4  ;;  %11022 = vmatprep.subr.bf16.mxu0 %v11292_v26  ;;  %v12955_v21 = vpop.f32.mrb[3].mxu0  ;;  %v12964_v61 = vpop.f32.mrb[0].mxu1 }
 0x169   : > { %v2350_v34 = vrot.slane %v2348_v9, 5  ;;  %v2354_v27 = vshll.u32 %v12928_v5, 16  ;;  %v1748_v31 = vsel %vm11958_vm12, %v12917_v17, %v1747_v53  ;;  %v1752_v63 = vor.u32 %v1751_v30, %v1747_v53  ;;  %4394 = vmatmul.mubr.bf16.gmra.mrb[76].mxu0 %v9580_v28  ;;  %v11423_v17 = vld [vmem:[#allocation2 + $0x4c] sm:$0xf] }
 0x16a   : > { %v2358_v42 = vshrl.u32 %v12928_v5, 16  ;;  %v2364_v3 = vshll.u32 %v2236_v39, 16  ;;  %4554 = vmatprep.mubr.bf16.mxu1 %v9628_v19  ;;  %v9613_v50 = vcombine.low %v12919_v45, %v12928_v5  ;;  %v9486_v58 = vrot.slane %v2028_v59, 9  ;;  %4401 = vmatprep.mubr.bf16.mxu0 %v9597_v49  ;;  %v16332_v39 = vld [vmem:[#allocation19_spill] sm:$0xff]  ;;  %v16335_v45 = vld [vmem:[#allocation20_spill] sm:$0xff] }
 0x16b   : > { %v2351_v41 = vor.u32 %v2350_v34, %v2347_v51  ;;  %v2356_v57 = vrot.slane %v2354_v27, 5  ;;  %v1753_v6 = vrot.slane %v1752_v63, 4  ;;  %v2124_v10 = vrot.slane %v11423_v17, 5  ;;  %11023 = vmatpush3.bf16.msra.mxu0 %v11292_v26  ;;  %v12976_v26 = vld [vmem:[#allocation2 + $0x58] sm:$0xf] }
 0x16c   : > { %v2360_v24 = vrot.slane %v2358_v42, 4  ;;  %v2366_v56 = vrot.slane %v2364_v3, 5  ;;  %v16330_v28 = vcombine.low %v12795_v54, %v12809_v47  ;;  %v2127_v36 = vrot.slane %v12938_v0, 5  ;;  %v12970_v47 = vpop.f32.mrb[1].mxu1  ;;  %11024 = vmatprep.subr.bf16.mxu0 %v11295_v52  ;;  %v2029_v42 = vld [vmem:[#allocation2 + $0x54] sm:$0xe] }
 0x16d   : > { %v2352_v2 = vrot.slane %v2351_v41, 4  ;;  %v16331_v43 = vor.u32 %v12362_v18, %v12335_v38  ;;  %v1769_v48 = vshll.u32 %v11423_v17, 16  ;;  %v1758_v30 = vsel %vm11958_vm12, %v1753_v6, %v1757_v7  ;;  %v12978_v44 = vpop.f32.mrb[2].mxu1 }
 0x16e   : > { %4555 = vmatmul.mubr.bf16.gmra.mrb[76].mxu1 %v16330_v28  ;;  %v2361_v23 = vor.u32 %v2360_v24, %v2356_v57  ;;  %v2125_v46 = vsel %vm11947_vm11, %v9486_v58, %v2124_v10  ;;  %v2126_v54 = vrot.slane %v2124_v10, 4  ;;  %v9581_v22 = vcombine.low %v1748_v31, %v1758_v30  ;;  %v12984_v19 = vpop.f32.mrb[3].mxu1  ;;  %v2237_v31 = vld [vmem:[#allocation2 + $0x5c] sm:$0x1] }
 0x16f   : > { %v1767_v55 = vrot.slane %v16331_v43, 4  ;;  %v2357_v38 = vsel %vm11958_vm12, %v2352_v2, %v2356_v57  ;;  %v1771_v18 = vrot.slane %v1769_v48, 5  ;;  %v16333_v1 = vshrl.u32 %v16332_v39, 16  ;;  %11025 = vmatpush3.bf16.msra.mxu0 %v11295_v52  ;;  %v1629_v10 = vld [vmem:[#allocation2 + $0x5c] sm:$0x1] }
 0x170   : > { %v2362_v49 = vrot.slane %v2361_v23, 4  ;;  %v2128_v53 = vsel %vm11947_vm11, %v2126_v54, %v2127_v36  ;;  %v1779_v7 = vshll.u32 %v12938_v0, 16  ;;  %v2369_v59 = vshrl.u32 %v12951_v12, 16  ;;  %v11424_v48 = vld [vmem:[#allocation2 + $0x58] sm:$0xf] }
 0x171   : > { %v1775_v9 = vrot.slane %v16333_v1, 4  ;;  %v9598_v51 = vcombine.low %v2125_v46, %v2128_v53  ;;  %v1772_v34 = vsel %vm11958_vm12, %v1767_v55, %v1771_v18  ;;  %v2372_v63 = vshll.u32 %v12951_v12, 16  ;;  %4402 = vmatmul.mubr.bf16.gmra.mrb[80].mxu0 %v9581_v22  ;;  %v12997_v23 = vld [vmem:[#allocation2 + $0x60] sm:$0xf]  ;;  %v13005_v39 = vld [vmem:[#allocation2 + $0x64] sm:$0xf] }
 0x172   : > { %v2367_v3 = vsel %vm11958_vm12, %v2362_v49, %v2366_v56  ;;  %v1781_v41 = vrot.slane %v1779_v7, 5  ;;  %v2371_v57 = vrot.slane %v2369_v59, 4  ;;  %v2378_v0 = vshll.u32 %v12976_v26, 16 }
 0x173   : > { %v1776_v27 = vor.u32 %v1775_v9, %v1771_v18  ;;  %v9629_v58 = vcombine.low %v2357_v38, %v2367_v3  ;;  %v2374_v24 = vrot.slane %v2372_v63, 5  ;;  %v2382_v17 = vshrl.u32 %v12976_v26, 16  ;;  %4409 = vmatprep.mubr.bf16.mxu0 %v9598_v51  ;;  %v13009_v7 = vpop.f32.mrb[4].mxu0  ;;  %v2238_v63 = vld [vmem:[#allocation2 + $0x68] sm:$0x1] }
 0x174   : > { %v2380_v28 = vrot.slane %v2378_v0, 5  ;;  %v2388_v2 = vshll.u32 %v2237_v31, 16  ;;  %v9614_v52 = vcombine.low %v12951_v12, %v12976_v26  ;;  %v9487_v36 = vrot.slane %v2029_v42, 9 }
 0x175   : > { %v1777_v6 = vrot.slane %v1776_v27, 4  ;;  %4562 = vmatprep.mubr.bf16.mxu1 %v9629_v58  ;;  %v2375_v43 = vor.u32 %v2374_v24, %v2371_v57  ;;  %v2384_v55 = vrot.slane %v2382_v17, 4  ;;  %v2131_v30 = vrot.slane %v11424_v48, 5  ;;  %v13014_v27 = vpop.f32.mrb[5].mxu0  ;;  %v1630_v24 = vld [vmem:[#allocation2 + $0x68] sm:$0x1] }
 0x176   : > { %4563 = vmatmul.mubr.bf16.gmra.mrb[80].mxu1 %v9613_v50  ;;  %v2390_v54 = vrot.slane %v2388_v2, 5  ;;  %v2134_v22 = vrot.slane %v1629_v10, 5  ;;  %v16334_v38 = vor.u32 %v12397_v60, %v12395_v20  ;;  %v1793_v59 = vshll.u32 %v11424_v48, 16  ;;  %v13021_v3 = vpop.f32.mrb[6].mxu0 }
 0x177   : > { %v1782_v56 = vsel %vm11958_vm12, %v1777_v6, %v1781_v41  ;;  %v2376_v1 = vrot.slane %v2375_v43, 4  ;;  %v2385_v9 = vor.u32 %v2384_v55, %v2380_v28  ;;  %v2132_v49 = vsel %vm11947_vm11, %v9487_v36, %v2131_v30  ;;  %v13023_v41 = vpop.f32.mrb[4].mxu1  ;;  %v13025_v17 = vpop.f32.mrb[7].mxu0  ;;  %v2030_v43 = vld [vmem:[#allocation2 + $0x60] sm:$0xe] }
 0x178   : > { %v9582_v46 = vcombine.low %v1772_v34, %v1782_v56  ;;  %v1791_v18 = vrot.slane %v16334_v38, 4  ;;  %v2133_v53 = vrot.slane %v2131_v30, 4  ;;  %v16336_v5 = vshrl.u32 %v16335_v45, 16 }
 0x179   : > { %v1803_v51 = vshll.u32 %v1629_v10, 16  ;;  %v2393_v34 = vshrl.u32 %v12997_v23, 16  ;;  %v2381_v20 = vsel %vm11958_vm12, %v2376_v1, %v2380_v28  ;;  %v2386_v60 = vrot.slane %v2385_v9, 4  ;;  %v13027_v10 = vpop.f32.mrb[5].mxu1 }
 0x17a   : > { %v1799_v50 = vrot.slane %v16336_v5, 4  ;;  %v2135_v31 = vsel %vm11947_vm11, %v2133_v53, %v2134_v22  ;;  %v2396_v42 = vshll.u32 %v12997_v23, 16  ;;  %v1795_v0 = vrot.slane %v1793_v59, 5  ;;  %4410 = vmatmul.mubr.bf16.gmra.mrb[84].mxu0 %v9582_v46  ;;  %v13033_v55 = vpop.f32.mrb[6].mxu1  ;;  %v13041_v53 = vld [vmem:[#allocation2 + $0x6c] sm:$0xf] }
 0x17b   : > { %v9599_v57 = vcombine.low %v2132_v49, %v2135_v31  ;;  %v1805_v58 = vrot.slane %v1803_v51, 5  ;;  %v2395_v6 = vrot.slane %v2393_v34, 4  ;;  %v2391_v28 = vsel %vm11958_vm12, %v2386_v60, %v2390_v54  ;;  %v13037_v1 = vpop.f32.mrb[7].mxu1  ;;  %v11425_v51 = vld [vmem:[#allocation2 + $0x64] sm:$0xf] }
 0x17c   : > { %v2398_v2 = vrot.slane %v2396_v42, 5  ;;  %v2402_v36 = vshll.u32 %v13005_v39, 16  ;;  %v2406_v56 = vshrl.u32 %v13005_v39, 16  ;;  %v9630_v48 = vcombine.low %v2381_v20, %v2391_v28  ;;  %v13043_v20 = vld [vmem:[#allocation2 + $0x70] sm:$0xf] }
 0x17d   : > { %4417 = vmatprep.mubr.bf16.mxu0 %v9599_v57  ;;  %v1796_v30 = vsel %vm11958_vm12, %v1791_v18, %v1795_v0  ;;  %v1800_v22 = vor.u32 %v1799_v50, %v1795_v0  ;;  %v2412_v38 = vshll.u32 %v2238_v63, 16  ;;  %v9615_v49 = vcombine.low %v12997_v23, %v13005_v39 }
 0x17e   : > { %v2399_v46 = vor.u32 %v2398_v2, %v2395_v6  ;;  %v2404_v9 = vrot.slane %v2402_v36, 5  ;;  %v2408_v54 = vrot.slane %v2406_v56, 4  ;;  %4570 = vmatprep.mubr.bf16.mxu1 %v9630_v48  ;;  %v9488_v5 = vrot.slane %v2030_v43, 9  ;;  %v2239_v2 = vld [vmem:[#allocation2 + $0x74] sm:$0x1]  ;;  %v13062_v48 = vpop.f32.mrb[8].mxu1 }
 0x17f   : > { %v1801_v59 = vrot.slane %v1800_v22, 4  ;;  %v2414_v45 = vrot.slane %v2412_v38, 5  ;;  %v2138_v34 = vrot.slane %v11425_v51, 5  ;;  %4571 = vmatmul.mubr.bf16.gmra.mrb[84].mxu1 %v9614_v52  ;;  %v2141_v60 = vrot.slane %v1630_v24, 5  ;;  %v16338_v52 = vld [vmem:[#allocation21_spill] sm:$0xff] }
 0x180   : > { %v2400_v18 = vrot.slane %v2399_v46, 4  ;;  %v2409_v50 = vor.u32 %v2408_v54, %v2404_v9  ;;  %v16337_v23 = vor.u32 %v12408_v25, %v12405_v11  ;;  %v1817_v57 = vshll.u32 %v11425_v51, 16  ;;  %v1631_v56 = vld [vmem:[#allocation2 + $0x74] sm:$0x1]  ;;  %v2031_v43 = vld [vmem:[#allocation2 + $0x6c] sm:$0xe] }
 0x181   : > { %v1806_v31 = vsel %vm11958_vm12, %v1801_v59, %v1805_v58  ;;  %v2139_v63 = vsel %vm11947_vm11, %v9488_v5, %v2138_v34  ;;  %v2140_v42 = vrot.slane %v2138_v34, 4  ;;  %v16339_v6 = vshrl.u32 %v16338_v52, 16  ;;  %v13072_v51 = vpop.f32.mrb[8].mxu0 }
 0x182   : > { %v1815_v39 = vrot.slane %v16337_v23, 4  ;;  %v9583_v0 = vcombine.low %v1796_v30, %v1806_v31  ;;  %v2405_v12 = vsel %vm11958_vm12, %v2400_v18, %v2404_v9  ;;  %v2410_v26 = vrot.slane %v2409_v50, 4  ;;  %v13068_v9 = vpop.f32.mrb[9].mxu1  ;;  %v13077_v23 = vpop.f32.mrb[9].mxu0 }
 0x183   : > { %v1823_v28 = vrot.slane %v16339_v6, 4  ;;  %v2142_v11 = vsel %vm11947_vm11, %v2140_v42, %v2141_v60  ;;  %v1819_v25 = vrot.slane %v1817_v57, 5  ;;  %v1827_v36 = vshll.u32 %v1630_v24, 16  ;;  %v13074_v34 = vpop.f32.mrb[10].mxu1  ;;  %v11426_v6 = vld [vmem:[#allocation2 + $0x70] sm:$0xf] }
 0x184   : > { %v2417_v58 = vshrl.u32 %v13041_v53, 16  ;;  %4418 = vmatmul.mubr.bf16.gmra.mrb[88].mxu0 %v9583_v0  ;;  %v2415_v30 = vsel %vm11958_vm12, %v2410_v26, %v2414_v45  ;;  %v9600_v22 = vcombine.low %v2139_v63, %v2142_v11  ;;  %v2420_v38 = vshll.u32 %v13041_v53, 16  ;;  %v13079_v31 = vpop.f32.mrb[11].mxu1  ;;  %v13083_v0 = vld [vmem:[#allocation2 + $0x78] sm:$0xf] }
 0x185   : > { %v2426_v46 = vshll.u32 %v13043_v20, 16  ;;  %v9631_v54 = vcombine.low %v2405_v12, %v2415_v30  ;;  %v1820_v24 = vsel %vm11958_vm12, %v1815_v39, %v1819_v25  ;;  %v1824_v59 = vor.u32 %v1823_v28, %v1819_v25  ;;  %v13085_v12 = vpop.f32.mrb[10].mxu0 }
 0x186   : > { %v1829_v5 = vrot.slane %v1827_v36, 5  ;;  %4425 = vmatprep.mubr.bf16.mxu0 %v9600_v22  ;;  %v2419_v18 = vrot.slane %v2417_v58, 4  ;;  %v2422_v45 = vrot.slane %v2420_v38, 5  ;;  %v2430_v60 = vshrl.u32 %v13043_v20, 16  ;;  %v13087_v25 = vpop.f32.mrb[11].mxu0 }
 0x187   : > { %v2428_v50 = vrot.slane %v2426_v46, 5  ;;  %4578 = vmatprep.mubr.bf16.mxu1 %v9631_v54  ;;  %v1825_v63 = vrot.slane %v1824_v59, 4  ;;  %v2436_v42 = vshll.u32 %v2239_v2, 16  ;;  %v9616_v39 = vcombine.low %v13041_v53, %v13043_v20  ;;  %v13096_v38 = vld [vmem:[#allocation2 + $0x7c] sm:$0xf]  ;;  %v16341_v59 = vld [vmem:[#allocation22_spill] sm:$0xff] }
 0x188   : > { %v9489_v57 = vrot.slane %v2031_v43, 9  ;;  %4579 = vmatmul.mubr.bf16.gmra.mrb[88].mxu1 %v9615_v49  ;;  %v2423_v26 = vor.u32 %v2422_v45, %v2419_v18  ;;  %v2432_v52 = vrot.slane %v2430_v60, 4  ;;  %v2145_v28 = vrot.slane %v11426_v6, 5  ;;  %v2240_v60 = vld [vmem:[#allocation2 + $0x80] sm:$0x1] }
 0x189   : > { %v2148_v11 = vrot.slane %v1631_v56, 5  ;;  %v1830_v36 = vsel %vm11958_vm12, %v1825_v63, %v1829_v5  ;;  %v2438_v2 = vrot.slane %v2436_v42, 5  ;;  %v16340_v53 = vor.u32 %v12492_v32, %v12483_v16  ;;  %v2032_v63 = vld [vmem:[#allocation2 + $0x78] sm:$0xe] }
 0x18a   : > { %v1841_v58 = vshll.u32 %v11426_v6, 16  ;;  %v9584_v43 = vcombine.low %v1820_v24, %v1830_v36  ;;  %v2424_v30 = vrot.slane %v2423_v26, 4  ;;  %v2433_v22 = vor.u32 %v2432_v52, %v2428_v50 }
 0x18b   : > { %v1839_v20 = vrot.slane %v16340_v53, 4  ;;  %v2146_v49 = vsel %vm11947_vm11, %v9489_v57, %v2145_v28  ;;  %v2147_v46 = vrot.slane %v2145_v28, 4  ;;  %v16342_v18 = vshrl.u32 %v16341_v59, 16  ;;  %v13112_v59 = vpop.f32.mrb[12].mxu0 }
 0x18c   : > { %v1843_v54 = vrot.slane %v1841_v58, 5  ;;  %v1851_v5 = vshll.u32 %v1631_v56, 16  ;;  %4426 = vmatmul.mubr.bf16.gmra.mrb[92].mxu0 %v9584_v43  ;;  %v2429_v16 = vsel %vm11958_vm12, %v2424_v30, %v2428_v50  ;;  %v2434_v32 = vrot.slane %v2433_v22, 4  ;;  %v1632_v56 = vld [vmem:[#allocation2 + $0x80] sm:$0x1] }
 0x18d   : > { %v1847_v45 = vrot.slane %v16342_v18, 4  ;;  %v2441_v24 = vshrl.u32 %v13083_v0, 16  ;;  %v2444_v42 = vshll.u32 %v13083_v0, 16  ;;  %v2149_v57 = vsel %vm11947_vm11, %v2147_v46, %v2148_v11  ;;  %v13116_v18 = vld [vmem:[#allocation2 + $0x84] sm:$0xf] }
 0x18e   : > { %v1844_v26 = vsel %vm11958_vm12, %v1839_v20, %v1843_v54  ;;  %v1853_v6 = vrot.slane %v1851_v5, 5  ;;  %v2439_v28 = vsel %vm11958_vm12, %v2434_v32, %v2438_v2  ;;  %v9601_v36 = vcombine.low %v2146_v49, %v2149_v57  ;;  %v13118_v2 = vpop.f32.mrb[13].mxu0  ;;  %v13120_v49 = vpop.f32.mrb[12].mxu1  ;;  %v11427_v32 = vld [vmem:[#allocation2 + $0x7c] sm:$0xf] }
 0x18f   : > { %v1848_v52 = vor.u32 %v1847_v45, %v1843_v54  ;;  %v2443_v53 = vrot.slane %v2441_v24, 4  ;;  %v2446_v50 = vrot.slane %v2444_v42, 5  ;;  %v9632_v58 = vcombine.low %v2429_v16, %v2439_v28  ;;  %v13124_v42 = vpop.f32.mrb[14].mxu0 }
 0x190   : > { %v2450_v30 = vshll.u32 %v13096_v38, 16  ;;  %v2454_v22 = vshrl.u32 %v13096_v38, 16  ;;  %4433 = vmatprep.mubr.bf16.mxu0 %v9601_v36  ;;  %v2460_v20 = vshll.u32 %v2240_v60, 16  ;;  %v9617_v46 = vcombine.low %v13083_v0, %v13096_v38  ;;  %v13126_v60 = vpop.f32.mrb[13].mxu1 }
 0x191   : > { %v1849_v43 = vrot.slane %v1848_v52, 4  ;;  %v2447_v11 = vor.u32 %v2446_v50, %v2443_v53  ;;  %v9490_v54 = vrot.slane %v2032_v63, 9  ;;  %4586 = vmatprep.mubr.bf16.mxu1 %v9632_v58  ;;  %v2152_v24 = vrot.slane %v11427_v32, 5  ;;  %v13128_v52 = vpop.f32.mrb[15].mxu0  ;;  %v13130_v28 = vpop.f32.mrb[14].mxu1 }
 0x192   : > { %v2452_v5 = vrot.slane %v2450_v30, 5  ;;  %v2456_v16 = vrot.slane %v2454_v22, 4  ;;  %4587 = vmatmul.mubr.bf16.gmra.mrb[92].mxu1 %v9616_v39  ;;  %v2462_v63 = vrot.slane %v2460_v20, 5  ;;  %v2155_v57 = vrot.slane %v1632_v56, 5  ;;  %16343 = vst [vmem:[#allocation18_spill] sm:$0xff] %v13130_v28  ;;  %v13139_v39 = vpop.f32.mrb[15].mxu1 }
 0x193   : > { %v1854_v45 = vsel %vm11958_vm12, %v1849_v43, %v1853_v6  ;;  %v2448_v38 = vrot.slane %v2447_v11, 4  ;;  %v2153_v6 = vsel %vm11947_vm11, %v9490_v54, %v2152_v24  ;;  %v2154_v53 = vrot.slane %v2152_v24, 4  ;;  %v13137_v43 = vld [vmem:[#allocation2 + $0x88] sm:$0xf]  ;;  %16345 = vst [vmem:[#allocation19_spill] sm:$0xff] %v13139_v39  ;;  %v16346_v22 = vld [vmem:[#allocation23_spill] sm:$0xff] }
 0x194   : > { %v9585_v0 = vcombine.low %v1844_v26, %v1854_v45  ;;  %v2457_v36 = vor.u32 %v2456_v16, %v2452_v5  ;;  %v16344_v50 = vor.u32 %v12545_v13, %v12541_v35  ;;  %v1865_v30 = vshll.u32 %v11427_v32, 16  ;;  %v2241_v16 = vld [vmem:[#allocation2 + $0x8c] sm:$0x1] }
 0x195   : > { %v2453_v26 = vsel %vm11958_vm12, %v2448_v38, %v2452_v5  ;;  %v16347_v11 = vshrl.u32 %v16346_v22, 16  ;;  %v1875_v45 = vshll.u32 %v1632_v56, 16  ;;  %v2156_v24 = vsel %vm11947_vm11, %v2154_v53, %v2155_v57 }
 0x196   : > { %v1863_v58 = vrot.slane %v16344_v50, 4  ;;  %4434 = vmatmul.mubr.bf16.gmra.mrb[96].mxu0 %v9585_v0  ;;  %v2458_v54 = vrot.slane %v2457_v36, 4  ;;  %v2465_v35 = vshrl.u32 %v13116_v18, 16  ;;  %v2468_v13 = vshll.u32 %v13116_v18, 16  ;;  %v13149_v50 = vld [vmem:[#allocation2 + $0x8c] sm:$0x1] }
 0x197   : > { %v1871_v20 = vrot.slane %v16347_v11, 4  ;;  %v2033_v0 = vld [vmem:[#allocation2 + $0x84] sm:$0xe]  ;;  %v9602_v8 = vcombine.low %v2153_v6, %v2156_v24  ;;  %v1867_v40 = vrot.slane %v1865_v30, 5  ;;  %v1877_v5 = vrot.slane %v1875_v45, 5 }
 0x198   : > { %v2474_v32 = vshll.u32 %v13137_v43, 16  ;;  %v2463_v56 = vsel %vm11958_vm12, %v2458_v54, %v2462_v63  ;;  %v2467_v38 = vrot.slane %v2465_v35, 4  ;;  %v2470_v36 = vrot.slane %v2468_v13, 5  ;;  %v11428_v54 = vld [vmem:[#allocation2 + $0x88] sm:$0xf] }
 0x199   : > { %v2478_v22 = vshrl.u32 %v13137_v43, 16  ;;  %v9633_v57 = vcombine.low %v2453_v26, %v2463_v56  ;;  %4441 = vmatprep.mubr.bf16.mxu0 %v9602_v8  ;;  %v1868_v53 = vsel %vm11958_vm12, %v1863_v58, %v1867_v40  ;;  %v1872_v11 = vor.u32 %v1871_v20, %v1867_v40  ;;  %v13160_v26 = vpop.f32.mrb[16].mxu0  ;;  %v16348_v20 = vld [vmem:[#allocation25_spill] sm:$0xff]  ;;  %v13165_v56 = vld [vmem:[#allocation2 + $0x90] sm:$0xf] }
 0x19a   : > { %v2476_v39 = vrot.slane %v2474_v32, 5  ;;  %v2471_v28 = vor.u32 %v2470_v36, %v2467_v38  ;;  %v2484_v30 = vshll.u32 %v2241_v16, 16  ;;  %v9618_v45 = vcombine.low %v13116_v18, %v13137_v43  ;;  %v13167_v18 = vpop.f32.mrb[17].mxu0 }
 0x19b   : > { %v2480_v6 = vrot.slane %v2478_v22, 4  ;;  %4594 = vmatprep.mubr.bf16.mxu1 %v9633_v57  ;;  %v1873_v24 = vrot.slane %v1872_v11, 4  ;;  %v9491_v63 = vrot.slane %v2033_v0, 9  ;;  %v2159_v35 = vrot.slane %v11428_v54, 5  ;;  %v13177_v22 = vpop.f32.mrb[16].mxu1 }
 0x19c   : > { %v2162_v13 = vrot.slane %v13149_v50, 5  ;;  %4595 = vmatmul.mubr.bf16.gmra.mrb[96].mxu1 %v9617_v46  ;;  %v2472_v8 = vrot.slane %v2471_v28, 4  ;;  %v2486_v40 = vrot.slane %v2484_v30, 5  ;;  %v16349_v32 = vor.u32 %v12575_v33, %v16348_v20  ;;  %v13173_v46 = vld [vmem:[#allocation2 + $0x94] sm:$0xf]  ;;  %v13175_v28 = vpop.f32.mrb[18].mxu0 }
 0x19d   : > { %v2481_v58 = vor.u32 %v2480_v6, %v2476_v39  ;;  %v1878_v43 = vsel %vm11958_vm12, %v1873_v24, %v1877_v5  ;;  %v2160_v0 = vsel %vm11947_vm11, %v9491_v63, %v2159_v35  ;;  %v2161_v38 = vrot.slane %v2159_v35, 4  ;;  %16350 = vst [vmem:[#allocation20_spill] sm:$0xff] %v13175_v28  ;;  %16351 = vst [vmem:[#allocation21_spill] sm:$0xff] %v13177_v22  ;;  %v16352_v6 = vld [vmem:[#allocation24_spill] sm:$0xff]  ;;  %v2242_v5 = vld [vmem:[#allocation2 + $0x98] sm:$0x1] }
 0x19e   : > { %v1887_v16 = vrot.slane %v16349_v32, 4  ;;  %v1889_v36 = vshll.u32 %v11428_v54, 16  ;;  %v9586_v33 = vcombine.low %v1868_v53, %v1878_v43  ;;  %v2477_v57 = vsel %vm11958_vm12, %v2472_v8, %v2476_v39  ;;  %v13183_v24 = vpop.f32.mrb[19].mxu0  ;;  %v13185_v63 = vpop.f32.mrb[17].mxu1 }
 0x19f   : > { %v2482_v11 = vrot.slane %v2481_v58, 4  ;;  %v16353_v30 = vshrl.u32 %v16352_v6, 16  ;;  %16354 = vst [vmem:[#allocation22_spill] sm:$0xff] %v13183_v24  ;;  %16355 = vst [vmem:[#allocation23_spill] sm:$0xff] %v13185_v63  ;;  %v2163_v54 = vsel %vm11947_vm11, %v2161_v38, %v2162_v13  ;;  %v1899_v32 = vshll.u32 %v13149_v50, 16  ;;  %v13191_v43 = vpop.f32.mrb[18].mxu1 }
 0x1a0   : > { %v1891_v35 = vrot.slane %v1889_v36, 5  ;;  %v2489_v53 = vshrl.u32 %v13165_v56, 16  ;;  %16356 = vst [vmem:[#allocation25_spill] sm:$0xff] %v13191_v43  ;;  %4442 = vmatmul.mubr.bf16.gmra.mrb[100].mxu0 %v9586_v33  ;;  %v9603_v8 = vcombine.low %v2160_v0, %v2163_v54  ;;  %v2492_v58 = vshll.u32 %v13165_v56, 16  ;;  %v13197_v63 = vpop.f32.mrb[19].mxu1 }
 0x1a1   : > { %v1895_v20 = vrot.slane %v16353_v30, 4  ;;  %v2487_v39 = vsel %vm11958_vm12, %v2482_v11, %v2486_v40  ;;  %v2498_v6 = vshll.u32 %v13173_v46, 16  ;;  %v2034_v30 = vld [vmem:[#allocation2 + $0x90] sm:$0xe]  ;;  %16357 = vst [vmem:[#allocation24_spill] sm:$0xff] %v13197_v63  ;;  %v1901_v22 = vrot.slane %v1899_v32, 5 }
 0x1a2   : > { %v13199_v13 = vld [vmem:[#allocation2 + $0xc0] sm:$0xf]  ;;  %v9634_v38 = vcombine.low %v2477_v57, %v2487_v39  ;;  %4449 = vmatprep.mubr.bf16.mxu0 %v9603_v8  ;;  %v2491_v33 = vrot.slane %v2489_v53, 4  ;;  %v2494_v43 = vrot.slane %v2492_v58, 5  ;;  %v2502_v40 = vshrl.u32 %v13173_v46, 16 }
 0x1a3   : > { %v1896_v36 = vor.u32 %v1895_v20, %v1891_v35  ;;  %v2500_v24 = vrot.slane %v2498_v6, 5  ;;  %v1634_v0 = vld [vmem:[#allocation2 + $0x98] sm:$0x1]  ;;  %v1892_v11 = vsel %vm11958_vm12, %v1887_v16, %v1891_v35  ;;  %v2508_v63 = vshll.u32 %v2242_v5, 16  ;;  %v13217_v39 = vld [vmem:[#allocation2 + $0xc4] sm:$0xf] }
 0x1a4   : > { %4602 = vmatprep.mubr.bf16.mxu1 %v9634_v38  ;;  %v13207_v28 = vadd.f32 %v12947_v37, %v12941_v15  ;;  %v2495_v57 = vor.u32 %v2494_v43, %v2491_v33  ;;  %v2504_v20 = vrot.slane %v2502_v40, 4  ;;  %v13211_v32 = vadd.f32 %v12955_v21, %v12953_v29  ;;  %v13226_v8 = vld [vmem:[#allocation2 + $0xa0] sm:$0xf]  ;;  %v16361_v38 = vld [vmem:[#allocation27_spill] sm:$0xff] }
 0x1a5   : > { %v1897_v54 = vrot.slane %v1896_v36, 4  ;;  %4603 = vmatmul.mubr.bf16.gmra.mrb[100].mxu1 %v9618_v45  ;;  %v13215_v53 = vadd.f32 %v12970_v47, %v12964_v61  ;;  %v9619_v15 = vcombine.low %v13165_v56, %v13173_v46  ;;  %v9492_v37 = vrot.slane %v2034_v30, 9  ;;  %v13224_v45 = vld [vmem:[#allocation2 + $0x9c] sm:$0xf]  ;;  %v11431_v61 = vld [vmem:[#allocation2 + $0x94] sm:$0xf] }
 0x1a6   : > { %v2496_v29 = vrot.slane %v2495_v57, 4  ;;  %v2505_v21 = vor.u32 %v2504_v20, %v2500_v24  ;;  %v2510_v43 = vrot.slane %v2508_v63, 5  ;;  %v2166_v47 = vrot.slane %v11431_v61, 5  ;;  %v16362_v33 = vld [vmem:[#allocation28_spill] sm:$0xff] }
 0x1a7   : > { %16358 = vst [vmem:[#allocation39_spill] sm:$0xff] %v13215_v53  ;;  %v1902_v5 = vsel %vm11958_vm12, %v1897_v54, %v1901_v22  ;;  %v2169_v58 = vrot.slane %v1634_v0, 5  ;;  %v13230_v6 = vadd.f32 %v12984_v19, %v12978_v44  ;;  %v16360_v22 = vld [vmem:[#allocation26_spill] sm:$0xff]  ;;  %v1913_v30 = vshll.u32 %v11431_v61, 16  ;;  %v13240_v19 = vpop.f32.mrb[20].mxu1 }
 0x1a8   : > { %v9587_v35 = vcombine.low %v1892_v11, %v1902_v5  ;;  %v1910_v36 = vor.u32 %v16361_v38, %v16360_v22  ;;  %v2501_v56 = vsel %vm11958_vm12, %v2496_v29, %v2500_v24  ;;  %v2506_v46 = vrot.slane %v2505_v21, 4  ;;  %v2243_v11 = vld [vmem:[#allocation2 + $0xa4] sm:$0x1]  ;;  %v13246_v21 = vpop.f32.mrb[21].mxu1 }
 0x1a9   : > { %16359 = vst [vmem:[#allocation40_spill] sm:$0xff] %v13230_v6  ;;  %v16363_v63 = vshrl.u32 %v16362_v33, 16  ;;  %v2167_v54 = vsel %vm11947_vm11, %v9492_v37, %v2166_v47  ;;  %v2168_v57 = vrot.slane %v2166_v47, 4  ;;  %v1923_v44 = vshll.u32 %v1634_v0, 16  ;;  %v2035_v47 = vld [vmem:[#allocation2 + $0x9c] sm:$0xe] }
 0x1aa   : > { %4450 = vmatmul.mubr.bf16.gmra.mrb[104].mxu0 %v9587_v35  ;;  %v1911_v20 = vrot.slane %v1910_v36, 4  ;;  %v2511_v5 = vsel %vm11958_vm12, %v2506_v46, %v2510_v43  ;;  %v1915_v35 = vrot.slane %v1913_v30, 5  ;;  %v2513_v24 = vshrl.u32 %v13224_v45, 16  ;;  %v13251_v0 = vpop.f32.mrb[22].mxu1  ;;  %v13253_v46 = vpop.f32.mrb[20].mxu0 }
 0x1ab   : > { %v1919_v40 = vrot.slane %v16363_v63, 4  ;;  %v2516_v29 = vshll.u32 %v13224_v45, 16  ;;  %v9635_v61 = vcombine.low %v2501_v56, %v2511_v5  ;;  %v2170_v22 = vsel %vm11947_vm11, %v2168_v57, %v2169_v58  ;;  %v13255_v30 = vpop.f32.mrb[23].mxu1  ;;  %v13258_v58 = vpop.f32.mrb[21].mxu0 }
 0x1ac   : > { %v2522_v37 = vshll.u32 %v13226_v8, 16  ;;  %v9604_v38 = vcombine.low %v2167_v54, %v2170_v22  ;;  %v1925_v33 = vrot.slane %v1923_v44, 5  ;;  %v2515_v43 = vrot.slane %v2513_v24, 4  ;;  %v13270_v24 = vpop.f32.mrb[22].mxu0 }
 0x1ad   : > { %v1920_v36 = vor.u32 %v1919_v40, %v1915_v35  ;;  %4610 = vmatprep.mubr.bf16.mxu1 %v9635_v61  ;;  %v2518_v63 = vrot.slane %v2516_v29, 5  ;;  %v2526_v56 = vshrl.u32 %v13226_v8, 16  ;;  %v2532_v5 = vshll.u32 %v2243_v11, 16  ;;  %v1635_v61 = vld [vmem:[#allocation2 + $0xa4] sm:$0x1]  ;;  %v13276_v22 = vpop.f32.mrb[23].mxu0 }
 0x1ae   : > { %v2524_v16 = vrot.slane %v2522_v37, 5  ;;  %4611 = vmatmul.mubr.bf16.gmra.mrb[104].mxu1 %v9619_v15  ;;  %4457 = vmatprep.mubr.bf16.mxu0 %v9604_v38  ;;  %v1916_v54 = vsel %vm11958_vm12, %v1911_v20, %v1915_v35  ;;  %v13264_v57 = vadd.f32 %v13014_v27, %v13009_v7  ;;  %v13268_v44 = vadd.f32 %v13025_v17, %v13021_v3  ;;  %v13282_v17 = vld [vmem:[#allocation2 + $0xa8] sm:$0xf] }
 0x1af   : > { %v1921_v40 = vrot.slane %v1920_v36, 4  ;;  %v2519_v29 = vor.u32 %v2518_v63, %v2515_v43  ;;  %v2528_v11 = vrot.slane %v2526_v56, 4  ;;  %v13274_v15 = vadd.f32 %v13027_v10, %v13023_v41  ;;  %v11432_v36 = vld [vmem:[#allocation2 + $0xa0] sm:$0xf]  ;;  %v16367_v63 = vld [vmem:[#allocation30_spill] sm:$0xff]  ;;  %v16368_v56 = vld [vmem:[#allocation31_spill] sm:$0xff] }
 0x1b0   : > { %16364 = vst [vmem:[#allocation26_spill] sm:$0xff] %v13268_v44  ;;  %v2534_v7 = vrot.slane %v2532_v5, 5  ;;  %v9620_v27 = vcombine.low %v13224_v45, %v13226_v8  ;;  %v9493_v3 = vrot.slane %v2035_v47, 9  ;;  %v2173_v43 = vrot.slane %v11432_v36, 5 }
 0x1b1   : > { %16365 = vst [vmem:[#allocation27_spill] sm:$0xff] %v13274_v15  ;;  %v1926_v20 = vsel %vm11958_vm12, %v1921_v40, %v1925_v33  ;;  %v2520_v37 = vrot.slane %v2519_v29, 4  ;;  %v2529_v38 = vor.u32 %v2528_v11, %v2524_v16  ;;  %v2176_v41 = vrot.slane %v1635_v61, 5  ;;  %v13290_v40 = vld [vmem:[#allocation2 + $0xac] sm:$0xf] }
 0x1b2   : > { %v9588_v35 = vcombine.low %v1916_v54, %v1926_v20  ;;  %v13286_v10 = vadd.f32 %v13037_v1, %v13033_v55  ;;  %v1934_v33 = vor.u32 %v16368_v56, %v16367_v63  ;;  %v1937_v5 = vshll.u32 %v11432_v36, 16  ;;  %v2244_v29 = vld [vmem:[#allocation2 + $0xb0] sm:$0x1]  ;;  %v16369_v55 = vld [vmem:[#allocation29_spill] sm:$0xff]  ;;  %v13298_v63 = vpop.f32.mrb[24].mxu0  ;;  %v13308_v36 = vpop.f32.mrb[24].mxu1 }
 0x1b3   : > { %v2525_v45 = vsel %vm11958_vm12, %v2520_v37, %v2524_v16  ;;  %v2530_v8 = vrot.slane %v2529_v38, 4  ;;  %v2174_v47 = vsel %vm11947_vm11, %v9493_v3, %v2173_v43  ;;  %v2175_v54 = vrot.slane %v2173_v43, 4  ;;  %v13306_v38 = vpop.f32.mrb[25].mxu0 }
 0x1b4   : > { %16366 = vst [vmem:[#allocation28_spill] sm:$0xff] %v13286_v10  ;;  %4458 = vmatmul.mubr.bf16.gmra.mrb[108].mxu0 %v9588_v35  ;;  %v1935_v11 = vrot.slane %v1934_v33, 4  ;;  %v1939_v20 = vrot.slane %v1937_v5, 5  ;;  %v16370_v1 = vshrl.u32 %v16369_v55, 16  ;;  %v1947_v10 = vshll.u32 %v1635_v61, 16  ;;  %v13310_v61 = vpop.f32.mrb[26].mxu0 }
 0x1b5   : > { %v2535_v35 = vsel %vm11958_vm12, %v2530_v8, %v2534_v7  ;;  %v2177_v16 = vsel %vm11947_vm11, %v2175_v54, %v2176_v41  ;;  %v2537_v37 = vshrl.u32 %v13282_v17, 16  ;;  %v2540_v3 = vshll.u32 %v13282_v17, 16  ;;  %v13312_v5 = vpop.f32.mrb[25].mxu1  ;;  %v1636_v54 = vld [vmem:[#allocation2 + $0xb0] sm:$0x1]  ;;  %v13315_v15 = vpop.f32.mrb[27].mxu0 }
 0x1b6   : > { %v1943_v50 = vrot.slane %v16370_v1, 4  ;;  %v9636_v43 = vcombine.low %v2525_v45, %v2535_v35  ;;  %v9605_v56 = vcombine.low %v2174_v47, %v2177_v16  ;;  %v1949_v55 = vrot.slane %v1947_v10, 5  ;;  %v2036_v1 = vld [vmem:[#allocation2 + $0xa8] sm:$0xe]  ;;  %v13317_v6 = vpop.f32.mrb[26].mxu1 }
 0x1b7   : > { %v2539_v7 = vrot.slane %v2537_v37, 4  ;;  %v2542_v8 = vrot.slane %v2540_v3, 5  ;;  %v2546_v41 = vshll.u32 %v13290_v40, 16  ;;  %v2550_v47 = vshrl.u32 %v13290_v40, 16  ;;  %v13322_v10 = vpop.f32.mrb[27].mxu1 }
 0x1b8   : > { %v1944_v33 = vor.u32 %v1943_v50, %v1939_v20  ;;  %4618 = vmatprep.mubr.bf16.mxu1 %v9636_v43  ;;  %4465 = vmatprep.mubr.bf16.mxu0 %v9605_v56  ;;  %v1940_v50 = vsel %vm11958_vm12, %v1935_v11, %v1939_v20  ;;  %v2556_v35 = vshll.u32 %v2244_v29, 16  ;;  %v13326_v3 = vadd.f32 %v13077_v23, %v13072_v51 }
 0x1b9   : > { %4619 = vmatmul.mubr.bf16.gmra.mrb[108].mxu1 %v9620_v27  ;;  %v2543_v16 = vor.u32 %v2542_v8, %v2539_v7  ;;  %v2548_v37 = vrot.slane %v2546_v41, 5  ;;  %v13330_v43 = vadd.f32 %v13087_v25, %v13085_v12  ;;  %v16373_v56 = vshrl.u32 %v12820_v14, 16  ;;  %v13346_v25 = vld [vmem:[#allocation2 + $0xb8] sm:$0xf]  ;;  %v11433_v41 = vld [vmem:[#allocation2 + $0xac] sm:$0xf] }
 0x1ba   : > { %v1945_v45 = vrot.slane %v1944_v33, 4  ;;  %16371 = vst [vmem:[#allocation30_spill] sm:$0xff] %v13326_v3  ;;  %v2552_v20 = vrot.slane %v2550_v47, 4  ;;  %v13340_v27 = vadd.f32 %v13068_v9, %v13062_v48  ;;  %v13342_v33 = vld [vmem:[#allocation2 + $0xb4] sm:$0xf]  ;;  %v2558_v7 = vrot.slane %v2556_v35, 5 }
 0x1bb   : > { %16372 = vst [vmem:[#allocation31_spill] sm:$0xff] %v13330_v43  ;;  %v13334_v11 = vrot.slane %v16373_v56, 4  ;;  %v2544_v23 = vrot.slane %v2543_v16, 4  ;;  %v9621_v12 = vcombine.low %v13282_v17, %v13290_v40  ;;  %16375 = vst [vmem:[#allocation41_spill] sm:$0xff] %v13346_v25  ;;  %v9494_v8 = vrot.slane %v2036_v1, 9  ;;  %v16379_v16 = vld [vmem:[#allocation32_spill] sm:$0xff] }
 0x1bc   : > { %v1950_v29 = vsel %vm11958_vm12, %v1945_v45, %v1949_v55  ;;  %16374 = vst [vmem:[#allocation29_spill] sm:$0xff] %v13340_v27  ;;  %v2553_v14 = vor.u32 %v2552_v20, %v2548_v37  ;;  %v2180_v56 = vrot.slane %v11433_v41, 5  ;;  %v2183_v55 = vrot.slane %v1636_v54, 5  ;;  %v16378_v45 = vld [vmem:[#allocation34_spill] sm:$0xff]  ;;  %v1637_v43 = vld [vmem:[#allocation2 + $0xbc] sm:$0x1] }
 0x1bd   : > { %v9589_v51 = vcombine.low %v1940_v50, %v1950_v29  ;;  %v2549_v48 = vsel %vm11958_vm12, %v2544_v23, %v2548_v37  ;;  %v13352_v9 = vadd.f32 %v13079_v31, %v13074_v34  ;;  %v16377_v50 = vld [vmem:[#allocation33_spill] sm:$0xff]  ;;  %v1961_v35 = vshll.u32 %v11433_v41, 16  ;;  %v13363_v31 = vpop.f32.mrb[28].mxu0 }
 0x1be   : > { %v1958_v47 = vor.u32 %v16378_v45, %v16377_v50  ;;  %v2554_v17 = vrot.slane %v2553_v14, 4  ;;  %v2181_v40 = vsel %vm11947_vm11, %v9494_v8, %v2180_v56  ;;  %v2182_v1 = vrot.slane %v2180_v56, 4  ;;  %v2037_v50 = vld [vmem:[#allocation2 + $0xb4] sm:$0xe]  ;;  %v13373_v45 = vpop.f32.mrb[29].mxu0 }
 0x1bf   : > { %4466 = vmatmul.mubr.bf16.gmra.mrb[112].mxu0 %v9589_v51  ;;  %16376 = vst [vmem:[#allocation42_spill] sm:$0xff] %v13352_v9  ;;  %v16380_v29 = vshrl.u32 %v16379_v16, 16  ;;  %v13360_v51 = vld [vmem:[#allocation2 + $0xbc] sm:$0x1]  ;;  %v1963_v37 = vrot.slane %v1961_v35, 5  ;;  %v1971_v23 = vshll.u32 %v1636_v54, 16 }
 0x1c0   : > { %16381 = vst [vmem:[#allocation33_spill] sm:$0xff] %v13360_v51  ;;  %v1959_v27 = vrot.slane %v1958_v47, 4  ;;  %v2561_v34 = vshrl.u32 %v13342_v33, 16  ;;  %v13365_v9 = vpop.f32.mrb[28].mxu1  ;;  %v2559_v14 = vsel %vm11958_vm12, %v2554_v17, %v2558_v7  ;;  %v2184_v8 = vsel %vm11947_vm11, %v2182_v1, %v2183_v55 }
 0x1c1   : > { %v1967_v20 = vrot.slane %v16380_v29, 4  ;;  %v2564_v41 = vshll.u32 %v13342_v33, 16  ;;  %v2570_v56 = vshll.u32 %v13346_v25, 16  ;;  %v13375_v54 = vpop.f32.mrb[29].mxu1  ;;  %v9637_v47 = vcombine.low %v2549_v48, %v2559_v14  ;;  %v13377_v29 = vpop.f32.mrb[30].mxu0 }
 0x1c2   : > { %v9606_v35 = vcombine.low %v2181_v40, %v2184_v8  ;;  %v13379_v53 = vpop.f32.mrb[30].mxu1  ;;  %v1964_v7 = vsel %vm11958_vm12, %v1959_v27, %v1963_v37  ;;  %v1973_v55 = vrot.slane %v1971_v23, 5  ;;  %v2563_v17 = vrot.slane %v2561_v34, 4  ;;  %v13383_v3 = vpop.f32.mrb[31].mxu0 }
 0x1c3   : > { %v1968_v16 = vor.u32 %v1967_v20, %v1963_v37  ;;  %v2566_v1 = vrot.slane %v2564_v41, 5  ;;  %v13385_v44 = vpop.f32.mrb[31].mxu1  ;;  %4626 = vmatprep.mubr.bf16.mxu1 %v9637_v47  ;;  %v2572_v40 = vrot.slane %v2570_v56, 5  ;;  %v2574_v20 = vshrl.u32 %v13346_v25, 16  ;;  %v387_v47 = vld [vmem:[#allocation2 + $0xc8] sm:$0x1] }
 0x1c4   : > { %4473 = vmatprep.mubr.bf16.mxu0 %v9606_v35  ;;  %v2580_v14 = vshll.u32 %v13360_v51, 16  ;;  %4627 = vmatmul.mubr.bf16.gmra.mrb[112].mxu1 %v9621_v12  ;;  %v13391_v27 = vadd.f32 %v13118_v2, %v13112_v59  ;;  %v13395_v37 = vadd.f32 %v13128_v52, %v13124_v42  ;;  %v13399_v23 = vadd.f32 %v13126_v60, %v13120_v49  ;;  %v13403_v12 = vld [vmem:[#allocation2 + $0xc0] sm:$0xf]  ;;  %v11298_v42 = vld [vmem:[#allocation9 + $0x40] sm:$0xff]   ;;  %v16386_v51 = vld [vmem:[#allocation19_spill] sm:$0xff] }
 0x1c5   : > { %v1969_v48 = vrot.slane %v1968_v16, 4  ;;  %v2567_v8 = vor.u32 %v2566_v1, %v2563_v17  ;;  %v2576_v41 = vrot.slane %v2574_v20, 4  ;;  %v9495_v56 = vrot.slane %v2037_v50, 9  ;;  %v11299_v52 = vld [vmem:[#allocation9] sm:$0xff]   ;;  %v11434_v1 = vld [vmem:[#allocation2 + $0xb8] sm:$0xf]  ;;  %10538 = vmatprep.subr.bf16.mxu1 %v11298_v42 }
 0x1c6   : > { %16382 = vst [vmem:[#allocation34_spill] sm:$0xff] %v13391_v27  ;;  %16383 = vst [vmem:[#allocation32_spill] sm:$0xff] %v13395_v37  ;;  %v2582_v59 = vrot.slane %v2580_v14, 5  ;;  %v9622_v2 = vcombine.low %v13342_v33, %v13346_v25  ;;  %v2187_v49 = vrot.slane %v11434_v1, 5  ;;  %v2190_v60 = vrot.slane %v1637_v43, 5  ;;  %10539 = vmatpush3.bf16.msra.mxu1 %v11299_v52 }
 0x1c7   : > { %16384 = vst [vmem:[#allocation43_spill] sm:$0xff] %v13399_v23  ;;  %v1974_v34 = vsel %vm11958_vm12, %v1969_v48, %v1973_v55  ;;  %v2568_v16 = vrot.slane %v2567_v8, 4  ;;  %v2577_v17 = vor.u32 %v2576_v41, %v2572_v40  ;;  %v16385_v23 = vld [vmem:[#allocation18_spill] sm:$0xff]  ;;  %v1985_v14 = vshll.u32 %v11434_v1, 16  ;;  %v16390_v8 = vld [vmem:[#allocation36_spill] sm:$0xff] }
 0x1c8   : > { %v9590_v35 = vcombine.low %v1964_v7, %v1974_v34  ;;  %v13409_v55 = vadd.f32 %v16386_v51, %v16385_v23  ;;  %v16388_v7 = vld [vmem:[#allocation37_spill] sm:$0xff]  ;;  %v16389_v48 = vld [vmem:[#allocation38_spill] sm:$0xff]  ;;  %v16391_v33 = vshrl.u32 %v16390_v8, 16  ;;  %v13417_v25 = vld [vmem:[#allocation2 + $0xc4] sm:$0xf]  ;;  %v2188_v37 = vsel %vm11947_vm11, %v9495_v56, %v2187_v49 }
 0x1c9   : > { %v2573_v50 = vsel %vm11958_vm12, %v2568_v16, %v2572_v40  ;;  %v1982_v20 = vor.u32 %v16389_v48, %v16388_v7  ;;  %v2578_v41 = vrot.slane %v2577_v17, 4  ;;  %v2189_v51 = vrot.slane %v2187_v49, 4  ;;  %v13431_v8 = vld [vmem:[#allocation2 + $0xc0] sm:$0xe] }
 0x1ca   : > { %16387 = vst [vmem:[#allocation18_spill] sm:$0xff] %v13409_v55  ;;  %4474 = vmatmul.mubr.bf16.gmra.mrb[116].mxu0 %v9590_v35  ;;  %v1991_v34 = vrot.slane %v16391_v33, 4  ;;  %v1995_v23 = vshll.u32 %v1637_v43, 16  ;;  %v1987_v55 = vrot.slane %v1985_v14, 5  ;;  %v388_v16 = vsel %vm11923_vm4, 0, %v387_v47  ;;  %v13433_v33 = vpop.f32.mrb[32].mxu1 }
 0x1cb   : > { %v1983_v35 = vrot.slane %v1982_v20, 4  ;;  %v2585_v1 = vshrl.u32 %v13403_v12, 16  ;;  %v2583_v7 = vsel %vm11958_vm12, %v2578_v41, %v2582_v59  ;;  %v2191_v42 = vsel %vm11947_vm11, %v2189_v51, %v2190_v60  ;;  %389 = vst [vmem:[#allocation2 + $0xc8] sm:$0x1] %v388_v16  ;;  %v13445_v51 = vpop.f32.mrb[33].mxu1 }
 0x1cc   : > { %v1997_v17 = vrot.slane %v1995_v23, 5  ;;  %v2588_v56 = vshll.u32 %v13403_v12, 16  ;;  %v9638_v49 = vcombine.low %v2573_v50, %v2583_v7  ;;  %v9607_v43 = vcombine.low %v2188_v37, %v2191_v42  ;;  %v16394_v50 = vld [vmem:[#allocation20_spill] sm:$0xff]  ;;  %v16398_v42 = vld [vmem:[#allocation21_spill] sm:$0xff] }
 0x1cd   : > { %v1992_v52 = vor.u32 %v1991_v34, %v1987_v55  ;;  %v2587_v48 = vrot.slane %v2585_v1, 4  ;;  %v2594_v14 = vshll.u32 %v13417_v25, 16  ;;  %v2598_v47 = vshrl.u32 %v13417_v25, 16  ;;  %v16395_v34 = vld [vmem:[#allocation22_spill] sm:$0xff] }
 0x1ce   : > { %v2590_v20 = vrot.slane %v2588_v56, 5  ;;  %4634 = vmatprep.mubr.bf16.mxu1 %v9638_v49  ;;  %4481 = vmatprep.mubr.bf16.mxu0 %v9607_v43  ;;  %v1988_v59 = vsel %vm11958_vm12, %v1983_v35, %v1987_v55  ;;  %v13439_v37 = vadd.f32 %v13167_v18, %v13160_v26  ;;  %v13443_v41 = vadd.f32 %v16395_v34, %v16394_v50  ;;  %v16399_v55 = vld [vmem:[#allocation23_spill] sm:$0xff]  ;;  %v334_v56 = vld [vmem:[#allocation2 + $0xcc] sm:$0x1]  ;;  %v13455_v26 = vpop.f32.mrb[34].mxu1 }
 0x1cf   : > { %v1993_v60 = vrot.slane %v1992_v52, 4  ;;  %v16397_v23 = vshll.u32 %v13199_v13, 16  ;;  %4635 = vmatmul.mubr.bf16.gmra.mrb[116].mxu1 %v9622_v2  ;;  %v13449_v1 = vrot.slane %v2594_v14, 5  ;;  %v2600_v7 = vrot.slane %v2598_v47, 4  ;;  %v390_v43 = vld [vmem:[#allocation2 + $0xd4] sm:$0x1] }
 0x1d0   : > { %16393 = vst [vmem:[#allocation19_spill] sm:$0xff] %v13439_v37  ;;  %16396 = vst [vmem:[#allocation37_spill] sm:$0xff] %v13443_v41  ;;  %v13453_v35 = vadd.f32 %v16399_v55, %v16398_v42  ;;  %v2591_v49 = vor.u32 %v2590_v20, %v2587_v48  ;;  %v13459_v52 = vpop.f32.mrb[32].mxu0  ;;  %v13461_v13 = vpop.f32.mrb[35].mxu1  ;;  %v13463_v2 = vld [vmem:[#allocation2 + $0x2c] sm:$0x1] }
 0x1d1   : > { %v2005_v16 = vrot.slane %v16397_v23, 5  ;;  %v1998_v18 = vsel %vm11958_vm12, %v1993_v60, %v1997_v17  ;;  %16401 = vst [vmem:[#allocation36_spill] sm:$0xff] %v13461_v13  ;;  %v13466_v50 = vld [vmem:[#allocation2 + $0xd0] sm:$0xf]  ;;  %v13468_v34 = vpop.f32.mrb[33].mxu0  ;;  %v9496_v42 = vrot.slane %v13431_v8, 9  ;;  %v2601_v27 = vor.u32 %v2600_v7, %v13449_v1 }
 0x1d2   : > { %16400 = vst [vmem:[#allocation38_spill] sm:$0xff] %v13453_v35  ;;  %v9591_v47 = vcombine.low %v1988_v59, %v1998_v18  ;;  %v974_v23 = vld [vmem:[#allocation2 + $0xc8] sm:$0x1]  ;;  %v16403_v17 = vld [vmem:[#allocation24_spill] sm:$0xff]  ;;  %v2009_v20 = vshll.u32 %v13217_v39, 16  ;;  %v16405_v60 = vshrl.u32 %v13217_v39, 16 }
 0x1d3   : > { %v16402_v55 = vld [vmem:[#allocation25_spill] sm:$0xff]  ;;  %v13478_v41 = vpop.f32.mrb[34].mxu0  ;;  %v16406_v59 = vld [vmem:[#allocation35_spill] sm:$0xff]  ;;  %v2194_v8 = vrot.slane %v13217_v39, 5  ;;  %v391_v7 = vsel %vm11923_vm4, 0, %v390_v43  ;;  %v2618_v39 = vshll.u32 %v13466_v50, 16 }
 0x1d4   : > { %v13473_v48 = vadd.f32 %v16403_v17, %v16402_v55  ;;  %v2015_v35 = vrot.slane %v16405_v60, 4  ;;  %4482 = vmatmul.mubr.bf16.gmra.mrb[120].mxu0 %v9591_v47  ;;  %v16407_v18 = vrot.slane %v16406_v59, 4  ;;  %v2632_v13 = vld [vmem:[#allocation2 + $0x18] sm:$0xe]  ;;  %v13486_v55 = vpop.f32.mrb[35].mxu0  ;;  %v13488_v17 = vrot.slane %v2591_v49, 4 }
 0x1d5   : > { %v2006_v60 = vor.u32 %v2005_v16, %v13334_v11  ;;  %v335_v47 = vsel %vm11918_vm3, 0, %v334_v56  ;;  %v13495_v59 = vld [vmem:[#allocation2 + $0x24] sm:$0xe]  ;;  %392 = vst [vmem:[#allocation2 + $0xd4] sm:$0x1] %v391_v7  ;;  %v13510_v56 = vadd.f32 %v13276_v22, %v13270_v24  ;;  %v13514_v49 = vadd.f32 %v13246_v21, %v13240_v19  ;;  %v11301_v7 = vld [vmem:[#allocation9 + $0x8] sm:$0xff]  }
 0x1d6   : > { %16404 = vst [vmem:[#allocation20_spill] sm:$0xff] %v13473_v48  ;;  %v975_v37 = vsel %vm11918_vm3, %v16407_v18, %v974_v23  ;;  %v13491_v48 = vrot.slane %v2009_v20, 5  ;;  %336 = vst [vmem:[#allocation2 + $0xcc] sm:$0x1] %v335_v47  ;;  %v2622_v23 = vshrl.u32 %v13466_v50, 16  ;;  %v2602_v43 = vrot.slane %v2601_v27, 4 }
 0x1d7   : > { %976 = vst [vmem:[#allocation2 + $0xc8] sm:$0x1] %v975_v37  ;;  %v13503_v37 = vadd.f32 %v13258_v58, %v13253_v46  ;;  %16410 = vst [vmem:[#allocation21_spill] sm:$0xff] %v13510_v56  ;;  %v2196_v20 = vrot.slane %v2194_v8, 4  ;;  %v13516_v18 = vrot.slane %v2618_v39, 5  ;;  %v2007_v58 = vrot.slane %v2006_v60, 4 }
 0x1d8   : > { %v2016_v16 = vor.u32 %v2015_v35, %v13491_v48  ;;  %16411 = vst [vmem:[#allocation23_spill] sm:$0xff] %v13514_v49  ;;  %v2624_v46 = vrot.slane %v2622_v23, 4  ;;  %v9497_v40 = vrot.slane %v2632_v13, 9  ;;  %v11436_v11 = vld [vmem:[#allocation2 + $0x1c] sm:$0xf]  ;;  %v13521_v19 = vadd.f32 %v13255_v30, %v13251_v0  ;;  %v13524_v27 = vpop.f32.mrb[36].mxu1 }
 0x1d9   : > { %16409 = vst [vmem:[#allocation22_spill] sm:$0xff] %v13503_v37  ;;  %v2698_v14 = vrot.slane %v11436_v11, 5  ;;  %v11300_v35 = vld [vmem:[#allocation9 + $0x48] sm:$0xff]   ;;  %v11437_v24 = vld [vmem:[#allocation2 + $0x20] sm:$0x1]  ;;  %v9498_v21 = vrot.slane %v13495_v59, 9  ;;  %v2597_v13 = vsel %vm11958_vm12, %v13488_v17, %v13449_v1  ;;  %v13532_v39 = vadd.f32 %v13306_v38, %v13298_v63 }
 0x1da   : > { %v2017_v47 = vrot.slane %v2016_v16, 4  ;;  %v2625_v37 = vor.u32 %v2624_v46, %v13516_v18  ;;  %v2701_v22 = vrot.slane %v11437_v24, 5  ;;  %16412 = vst [vmem:[#allocation25_spill] sm:$0xff] %v13521_v19  ;;  %v13536_v23 = vadd.f32 %v13315_v15, %v13310_v61  ;;  %v13538_v0 = vpop.f32.mrb[37].mxu1  ;;  %10540 = vmatprep.subr.bf16.mxu1 %v11300_v35  ;;  %v11438_v1 = vld [vmem:[#allocation2 + $0x28] sm:$0xf] }
 0x1db   : > { %v2700_v60 = vrot.slane %v2698_v14, 4  ;;  %16413 = vst [vmem:[#allocation24_spill] sm:$0xff] %v13532_v39  ;;  %v2195_v11 = vsel %vm11947_vm11, %v9496_v42, %v2194_v8  ;;  %v2705_v17 = vrot.slane %v11438_v1, 5  ;;  %v13548_v63 = vadd.f32 %v13312_v5, %v13308_v36  ;;  %10541 = vmatpush3.bf16.msra.mxu1 %v11301_v7  ;;  %v13556_v42 = vpop.f32.mrb[36].mxu0  ;;  %v2634_v24 = vld [vmem:[#allocation2 + $0x30] sm:$0xe] }
 0x1dc   : > { %16414 = vst [vmem:[#allocation35_spill] sm:$0xff] %v13536_v23  ;;  %v13544_v16 = vrot.slane %v2625_v37, 4  ;;  %v2012_v61 = vsel %vm11958_vm12, %v2007_v58, %v13491_v48  ;;  %v13558_v8 = vld [vmem:[#allocation2 + $0xd4] sm:$0x1]  ;;  %v2699_v5 = vsel %vm11947_vm11, %v9497_v40, %v2698_v14  ;;  %v13566_v1 = vpop.f32.mrb[37].mxu0  ;;  %v13568_v48 = vpop.f32.mrb[38].mxu1 }
 0x1dd   : > { %16416 = vst [vmem:[#allocation45_spill] sm:$0xff] %v13548_v63  ;;  %v13554_v35 = vld [vmem:[#allocation2 + $0xcc] sm:$0xf]  ;;  %16417 = vst [vmem:[#allocation46_spill] sm:$0xff] %v13558_v8  ;;  %v2702_v7 = vsel %vm11947_vm11, %v2700_v60, %v2701_v22  ;;  %v2628_v63 = vshll.u32 %v13558_v8, 16  ;;  %v13573_v19 = vpop.f32.mrb[38].mxu0 }
 0x1de   : > { %v13540_v30 = vld [vmem:[#allocation2 + $0xc8] sm:$0x1]  ;;  %v2609_v37 = vshrl.u32 %v13554_v35, 16  ;;  %v2612_v36 = vshll.u32 %v13554_v35, 16  ;;  %v13575_v49 = vpop.f32.mrb[39].mxu1  ;;  %v2707_v22 = vrot.slane %v2705_v17, 4 }
 0x1df   : > { %16415 = vst [vmem:[#allocation44_spill] sm:$0xff] %v13540_v30  ;;  %v1638_v59 = vld [vmem:[#allocation2 + $0xc8] sm:$0x1]  ;;  %v2604_v15 = vshll.u32 %v13540_v30, 16  ;;  %v13577_v60 = vpop.f32.mrb[39].mxu0 }
 0x1e0   : > { %v2197_v38 = vrot.slane %v1638_v59, 5  ;;  %v2019_v46 = vshll.u32 %v1638_v59, 16  ;;  %v2611_v14 = vrot.slane %v2609_v37, 4  ;;  %v2614_v23 = vrot.slane %v2612_v36, 5  ;;  %v11439_v56 = vld [vmem:[#allocation2 + $0x34] sm:$0xf] }
 0x1e1   : > { %v2606_v58 = vrot.slane %v2604_v15, 5  ;;  %v2706_v36 = vsel %vm11947_vm11, %v9498_v21, %v2705_v17  ;;  %v13599_v21 = vpop.f32.mrb[40].mxu0 }
 0x1e2   : > { %v2198_v59 = vsel %vm11947_vm11, %v2196_v20, %v2197_v38  ;;  %v2021_v30 = vrot.slane %v2019_v46, 5  ;;  %v2630_v20 = vrot.slane %v2628_v63, 5  ;;  %v9641_v38 = vcombine.low %v2699_v5, %v2702_v7  ;;  %v13586_v46 = vld [vmem:[%s16207_s2] ss:$0 sm:$0xff]  ;;  %v11440_v63 = vld [vmem:[#allocation2 + $0x38] sm:$0x1] }
 0x1e3   : > { %v9608_v40 = vcombine.low %v2195_v11, %v2198_v59  ;;  %v2607_v39 = vsel %vm11958_vm12, %v2602_v43, %v2606_v58  ;;  %v2615_v37 = vor.u32 %v2614_v23, %v2611_v14  ;;  %v9499_v59 = vrot.slane %v2634_v24, 9  ;;  %v13590_v58 = vpop.f32.mrb[40].mxu1  ;;  %v2635_v23 = vld [vmem:[#allocation2 + $0x3c] sm:$0xe]  ;;  %v2636_v7 = vld [vmem:[#allocation2 + $0x48] sm:$0xe] }
 0x1e4   : > { %v2022_v15 = vsel %vm11958_vm12, %v2017_v47, %v2021_v30  ;;  %v9639_v8 = vcombine.low %v2597_v13, %v2607_v39  ;;  %v2712_v43 = vrot.slane %v11439_v56, 5  ;;  %v2631_v30 = vsel %vm11958_vm12, %v13544_v16, %v2630_v20  ;;  %v13601_v17 = vpop.f32.mrb[41].mxu1  ;;  %v13612_v24 = vpop.f32.mrb[41].mxu0 }
 0x1e5   : > { %4489 = vmatprep.mubr.bf16.mxu0 %v9608_v40  ;;  %v9592_v11 = vcombine.low %v2012_v61, %v2022_v15  ;;  %v2616_v47 = vrot.slane %v2615_v37, 4  ;;  %v2715_v13 = vrot.slane %v11440_v63, 5  ;;  %v13597_v39 = vadd.f32 %v13322_v10, %v13317_v6  ;;  %v11441_v10 = vld [vmem:[#allocation2 + $0x40] sm:$0xf]  ;;  %v13614_v40 = vpop.f32.mrb[42].mxu1  ;;  %v13631_v15 = vpop.f32.mrb[42].mxu0 }
 0x1e6   : > { %4642 = vmatprep.mubr.bf16.mxu1 %v9639_v8  ;;  %v16418_v56 = vcombine.low %v13403_v12, %v13417_v25  ;;  %v16419_v61 = vrot.slane %v13463_v2, 5  ;;  %v2713_v8 = vsel %vm11947_vm11, %v9499_v59, %v2712_v43  ;;  %v2714_v6 = vrot.slane %v2712_v43, 4  ;;  %v13633_v20 = vpop.f32.mrb[43].mxu1  ;;  %v11442_v37 = vld [vmem:[#allocation2 + $0x44] sm:$0x1] }
 0x1e7   : > { %4490 = vmatmul.mubr.bf16.gmra.mrb[124].mxu0 %v9592_v11  ;;  %v2719_v5 = vrot.slane %v11441_v10, 5  ;;  %v2621_v12 = vsel %vm11958_vm12, %v2616_v47, %v13516_v18  ;;  %v13621_v2 = vadd.f32 %v13373_v45, %v13363_v31  ;;  %v13625_v14 = vadd.f32 %v13383_v3, %v13377_v29  ;;  %v13641_v11 = vld [vmem:[#allocation2 + $0x54] sm:$0xe]  ;;  %v13643_v3 = vpop.f32.mrb[43].mxu0  ;;  %v11443_v47 = vld [vmem:[#allocation2 + $0x4c] sm:$0xf] }
 0x1e8   : > { %4643 = vmatmul.mubr.bf16.gmra.mrb[120].mxu1 %v16418_v56  ;;  %11026 = vmatprep.mubr.bf16.mxu0 %v9641_v38  ;;  %v2709_v16 = vsel %vm11947_vm11, %v2707_v22, %v16419_v61  ;;  %v13629_v22 = vadd.f32 %v13375_v54, %v13365_v9  ;;  %v13637_v38 = vadd.f32 %v13207_v28, %v13586_v46  ;;  %v9500_v45 = vrot.slane %v2635_v23, 9  ;;  %v11445_v56 = vld [vmem:[#allocation2 + $0x58] sm:$0xf]  ;;  %v11303_v10 = vld [vmem:[#allocation9 + $0x10] sm:$0xff]  }
 0x1e9   : > { %v9640_v18 = vcombine.low %v2621_v12, %v2631_v30  ;;  %v2716_v31 = vsel %vm11947_vm11, %v2714_v6, %v2715_v13  ;;  %v13647_v9 = vadd.f32 %v13211_v32, %v13586_v46  ;;  %v9642_v54 = vcombine.low %v2706_v36, %v2709_v16  ;;  %v11444_v36 = vld [vmem:[#allocation2 + $0x50] sm:$0x1]  ;;  %v2638_v16 = vld [vmem:[#allocation2 + $0x60] sm:$0xe]  ;;  %v11446_v12 = vld [vmem:[#allocation2 + $0x5c] sm:$0x1] }
 0x1ea   : > { %v2721_v29 = vrot.slane %v2719_v5, 4  ;;  %v2722_v59 = vrot.slane %v11442_v37, 5  ;;  %v9624_v28 = vcombine.low %v13554_v35, %v13466_v50  ;;  %v9643_v43 = vcombine.low %v2713_v8, %v2716_v31  ;;  %v13670_v31 = vpop.f32.mrb[44].mxu0  ;;  %v16421_v37 = vld [vmem:[#allocation36_spill] sm:$0xff] }
 0x1eb   : > { %4650 = vmatprep.mubr.bf16.mxu1 %v9640_v18  ;;  %v2726_v30 = vrot.slane %v11443_v47, 5  ;;  %v13653_v63 = vadd.f32 %v13385_v44, %v13379_v53  ;;  %v13657_v13 = vadd.f32 %v13264_v57, %v13586_v46  ;;  %v9501_v32 = vrot.slane %v2636_v7, 9  ;;  %v11302_v44 = vld [vmem:[#allocation9 + $0x50] sm:$0xff]  }
 0x1ec   : > { %v2729_v23 = vrot.slane %v11444_v36, 5  ;;  %v2733_v61 = vrot.slane %v11445_v56, 5  ;;  %v2720_v35 = vsel %vm11947_vm11, %v9500_v45, %v2719_v5  ;;  %v10132_v6 = vadd.f32 %v13468_v34, %v13459_v52  ;;  %v16420_v52 = vld [vmem:[#allocation26_spill] sm:$0xff]  ;;  %v11447_v45 = vld [vmem:[#allocation2 + $0x64] sm:$0xf]  ;;  %10542 = vmatprep.subr.bf16.mxu1 %v11302_v44 }
 0x1ed   : > { %v2728_v8 = vrot.slane %v2726_v30, 4  ;;  %v10135_v53 = vadd.f32 %v13486_v55, %v13478_v41  ;;  %v2723_v57 = vsel %vm11947_vm11, %v2721_v29, %v2722_v59  ;;  %v9502_v7 = vrot.slane %v13641_v11, 9  ;;  %v13678_v11 = vpop.f32.mrb[45].mxu0  ;;  %10543 = vmatpush3.bf16.msra.mxu1 %v11303_v10 }
 0x1ee   : > { %v2736_v18 = vrot.slane %v11446_v12, 5  ;;  %v10244_v5 = vadd.f32 %v13445_v51, %v13433_v33  ;;  %v13674_v34 = vadd.f32 %v16420_v52, %v13586_v46  ;;  %v4114_v41 = vadd.f32 %v10132_v6, %v13586_v46 }
 0x1ef   : > { %11027 = vmatmul.mubr.bf16.vlgmr.msra.gmra.mrb[128].mxu0 %v9642_v54  ;;  %v4117_v55 = vadd.f32 %v10135_v53, %v13586_v46  ;;  %v2740_v54 = vrot.slane %v11447_v45, 5  ;;  %v2727_v29 = vsel %vm11947_vm11, %v9501_v32, %v2726_v30  ;;  %v2730_v33 = vsel %vm11947_vm11, %v2728_v8, %v2729_v23  ;;  %v2639_v53 = vld [vmem:[#allocation2 + $0x6c] sm:$0xe]  ;;  %v11448_v23 = vld [vmem:[#allocation2 + $0x68] sm:$0x1] }
 0x1f0   : > { %4651 = vmatmul.mubr.bf16.gmra.mrb[124].mxu1 %v9624_v28  ;;  %11030 = vmatprep.mubr.bf16.mxu0 %v9643_v43  ;;  %v2735_v51 = vrot.slane %v2733_v61, 4  ;;  %v10247_v59 = vadd.f32 %v16421_v37, %v13455_v26  ;;  %v13686_v28 = vpop.f32.mrb[46].mxu0  ;;  %v16422_v43 = vld [vmem:[#allocation30_spill] sm:$0xff]  ;;  %v9644_v36 = vcombine.low %v2720_v35, %v2723_v57  ;;  %v13692_v56 = vadd.f32 %v10244_v5, %v4114_v41  ;;  %v16423_v57 = vld [vmem:[#allocation31_spill] sm:$0xff] }
 0x1f1   : > { %v13690_v47 = vadd.f32 %v16422_v43, %v13586_v46  ;;  %v9503_v6 = vrot.slane %v2638_v16, 9  ;;  %v13694_v30 = vpop.f32.mrb[47].mxu0  ;;  %v2742_v32 = vrot.slane %v2740_v54, 4  ;;  %v2743_v8 = vrot.slane %v11448_v23, 5  ;;  %v11449_v26 = vld [vmem:[#allocation2 + $0x70] sm:$0xf] }
 0x1f2   : > { %v13696_v12 = vadd.f32 %v10247_v59, %v4117_v55  ;;  %v2747_v52 = vrot.slane %v11449_v26, 5  ;;  %v9645_v44 = vcombine.low %v2727_v29, %v2730_v33  ;;  %v10138_v45 = vadd.f32 %v13566_v1, %v13556_v42  ;;  %v16424_v5 = vld [vmem:[#allocation34_spill] sm:$0xff]  ;;  %v16425_v55 = vld [vmem:[#allocation32_spill] sm:$0xff]  ;;  %v16426_v42 = vld [vmem:[#allocation19_spill] sm:$0xff] }
 0x1f3   : > { %v10141_v35 = vadd.f32 %v13577_v60, %v13573_v19  ;;  %v10250_v16 = vadd.f32 %v13538_v0, %v13524_v27  ;;  %v13706_v10 = vadd.f32 %v16423_v57, %v13586_v46  ;;  %v13710_v41 = vadd.f32 %v16424_v5, %v13586_v46  ;;  %v2640_v19 = vld [vmem:[#allocation2 + $0x78] sm:$0xe]  ;;  %v11450_v33 = vld [vmem:[#allocation2 + $0x7c] sm:$0xf] }
 0x1f4   : > { %v13714_v29 = vadd.f32 %v16425_v55, %v13586_v46  ;;  %v13718_v1 = vadd.f32 %v16426_v42, %v13586_v46  ;;  %v2734_v27 = vsel %vm11947_vm11, %v9502_v7, %v2733_v61  ;;  %v4122_v0 = vadd.f32 %v10138_v45, %v13586_v46  ;;  %v11451_v45 = vld [vmem:[#allocation2 + $0x74] sm:$0x1]  ;;  %v11452_v55 = vld [vmem:[#allocation2 + $0x80] sm:$0x1] }
 0x1f5   : > { %v4125_v60 = vadd.f32 %v10141_v35, %v13586_v46  ;;  %v2754_v37 = vrot.slane %v11450_v33, 5  ;;  %v2737_v59 = vsel %vm11947_vm11, %v2735_v51, %v2736_v18  ;;  %v2741_v43 = vsel %vm11947_vm11, %v9503_v6, %v2740_v54  ;;  %v11453_v54 = vld [vmem:[#allocation2 + $0x88] sm:$0xf] }
 0x1f6   : > { %v9504_v23 = vrot.slane %v2639_v53, 9  ;;  %v10253_v26 = vadd.f32 %v13575_v49, %v13568_v48  ;;  %v2744_v61 = vsel %vm11947_vm11, %v2742_v32, %v2743_v8  ;;  %v2749_v7 = vrot.slane %v2747_v52, 4  ;;  %v2641_v49 = vld [vmem:[#allocation2 + $0x84] sm:$0xe] }
 0x1f7   : > { %11031 = vmatmul.mubr.bf16.gmra.mrb[132].mxu0 %v9644_v36  ;;  %v2750_v35 = vrot.slane %v11451_v45, 5  ;;  %v13732_v57 = vadd.f32 %v10250_v16, %v4122_v0  ;;  %v10260_v36 = vpop.f32.mrb[44].mxu1  ;;  %v9505_v5 = vrot.slane %v2640_v19, 9  ;;  %v2757_v18 = vrot.slane %v11452_v55, 5  ;;  %v16427_v16 = vld [vmem:[#allocation37_spill] sm:$0xff]  ;;  %v16428_v0 = vld [vmem:[#allocation22_spill] sm:$0xff] }
 0x1f8   : > { %11034 = vmatprep.mubr.bf16.mxu0 %v9645_v44  ;;  %v13734_v51 = vadd.f32 %v10253_v26, %v4125_v60  ;;  %v2761_v6 = vrot.slane %v11453_v54, 5  ;;  %v10261_v53 = vpop.f32.mrb[45].mxu1  ;;  %v2756_v42 = vrot.slane %v2754_v37, 4  ;;  %v10144_v48 = vadd.f32 %v13612_v24, %v13599_v21 }
 0x1f9   : > { %v10147_v32 = vadd.f32 %v13643_v3, %v13631_v15  ;;  %v10256_v8 = vadd.f32 %v13601_v17, %v13590_v58  ;;  %v10263_v44 = vpop.f32.mrb[46].mxu1  ;;  %v13744_v19 = vadd.f32 %v16427_v16, %v13586_v46  ;;  %v13748_v60 = vadd.f32 %v16428_v0, %v13586_v46 }
 0x1fa   : > { %v9646_v33 = vcombine.low %v2734_v27, %v2737_v59  ;;  %v9647_v26 = vcombine.low %v2741_v43, %v2744_v61  ;;  %v10264_v45 = vpop.f32.mrb[47].mxu1  ;;  %v13752_v21 = vsel %vm11947_vm11, %v9504_v23, %v2747_v52  ;;  %v13756_v24 = vsel %vm11947_vm11, %v2749_v7, %v2750_v35  ;;  %v11454_v43 = vld [vmem:[#allocation2 + $0x8c] sm:$0x1]  ;;  %v11455_v35 = vld [vmem:[#allocation2 + $0x94] sm:$0xf] }
 0x1fb   : > { %v4130_v58 = vadd.f32 %v10144_v48, %v13586_v46  ;;  %v4133_v17 = vadd.f32 %v10147_v32, %v13586_v46  ;;  %v13762_v15 = vsel %vm11947_vm11, %v9505_v5, %v2754_v37  ;;  %v9506_v3 = vrot.slane %v2641_v49, 9  ;;  %v11305_v49 = vld [vmem:[#allocation9 + $0x18] sm:$0xff]   ;;  %v16430_v48 = vld [vmem:[#allocation24_spill] sm:$0xff] }
 0x1fc   : > { %v2763_v27 = vrot.slane %v2761_v6, 4  ;;  %v10259_v59 = vadd.f32 %v13633_v20, %v13614_v40  ;;  %v2758_v52 = vsel %vm11947_vm11, %v2756_v42, %v2757_v18  ;;  %v2764_v23 = vrot.slane %v11454_v43, 5  ;;  %v2645_v40 = vld [vmem:[#allocation2 + $0xb4] sm:$0xe]  ;;  %v11304_v20 = vld [vmem:[#allocation9 + $0x58] sm:$0xff]   ;;  %v10154_v43 = vpop.f32.mrb[48].mxu0 }
 0x1fd   : > { %v13768_v61 = vadd.f32 %v10256_v8, %v4130_v58  ;;  %v10150_v7 = vadd.f32 %v13678_v11, %v13670_v31  ;;  %v2768_v55 = vrot.slane %v11455_v35, 5  ;;  %v10153_v5 = vadd.f32 %v13694_v30, %v13686_v28  ;;  %v16429_v18 = vld [vmem:[#allocation21_spill] sm:$0xff]  ;;  %v16431_v31 = vld [vmem:[#allocation35_spill] sm:$0xff]  ;;  %v2642_v8 = vld [vmem:[#allocation2 + $0x90] sm:$0xe]  ;;  %v10266_v30 = vpop.f32.mrb[48].mxu1  ;;  %10544 = vmatprep.subr.bf16.mxu1 %v11304_v20 }
 0x1fe   : > { %v13772_v37 = vadd.f32 %v10259_v59, %v4133_v17  ;;  %v10262_v54 = vadd.f32 %v10261_v53, %v10260_v36  ;;  %v13778_v42 = vadd.f32 %v16429_v18, %v13586_v46  ;;  %v13782_v32 = vadd.f32 %v16430_v48, %v13586_v46  ;;  %10545 = vmatpush3.bf16.msra.mxu1 %v11305_v49  ;;  %v10155_v35 = vpop.f32.mrb[49].mxu0  ;;  %v2643_v20 = vld [vmem:[#allocation2 + $0x9c] sm:$0xe] }
 0x1ff   : > { %11035 = vmatmul.mubr.bf16.gmra.mrb[136].mxu0 %v9646_v33  ;;  %v13786_v11 = vadd.f32 %v16431_v31, %v13586_v46  ;;  %v4138_v28 = vadd.f32 %v10150_v7, %v13586_v46  ;;  %v9648_v36 = vcombine.low %v13752_v21, %v13756_v24  ;;  %v9649_v53 = vcombine.low %v13762_v15, %v2758_v52  ;;  %v10267_v33 = vpop.f32.mrb[49].mxu1  ;;  %v11456_v52 = vld [vmem:[#allocation2 + $0x98] sm:$0x1]  ;;  %v10157_v48 = vpop.f32.mrb[50].mxu0 }
 0x200   : > { %11038 = vmatprep.mubr.bf16.mxu0 %v9647_v26  ;;  %v13794_v16 = vsel %vm11947_vm11, %v9506_v3, %v2761_v6  ;;  %v4141_v0 = vadd.f32 %v10153_v5, %v13586_v46  ;;  %v13799_v26 = vsel %vm11947_vm11, %v2763_v27, %v2764_v23  ;;  %v10265_v17 = vadd.f32 %v10264_v45, %v10263_v44  ;;  %v10269_v21 = vpop.f32.mrb[50].mxu1  ;;  %v16432_v3 = vld [vmem:[#allocation41_spill] sm:$0xff] }
 0x201   : > { %v13801_v58 = vadd.f32 %v10262_v54, %v4138_v28  ;;  %v9510_v59 = vrot.slane %v2645_v40, 9  ;;  %v9507_v24 = vrot.slane %v2642_v8, 9  ;;  %v2770_v15 = vrot.slane %v2768_v55, 4  ;;  %v10270_v5 = vpop.f32.mrb[51].mxu1  ;;  %v16433_v27 = vld [vmem:[#allocation33_spill] sm:$0xff]  ;;  %v10158_v28 = vpop.f32.mrb[51].mxu0 }
 0x202   : > { %v2771_v6 = vrot.slane %v11456_v52, 5  ;;  %v2789_v7 = vrot.slane %v16432_v3, 5  ;;  %v13804_v18 = vadd.f32 %v10265_v17, %v4141_v0  ;;  %v2792_v23 = vrot.slane %v16433_v27, 5  ;;  %v11457_v40 = vld [vmem:[#allocation2 + $0xa0] sm:$0xf]  ;;  %v10272_v27 = vpop.f32.mrb[52].mxu1 }
 0x203   : > { %v10156_v54 = vadd.f32 %v10155_v35, %v10154_v43  ;;  %v10268_v44 = vadd.f32 %v10267_v33, %v10266_v30  ;;  %v13809_v45 = vadd.f32 %v13621_v2, %v13586_v46  ;;  %v2775_v49 = vrot.slane %v11457_v40, 5  ;;  %v2644_v3 = vld [vmem:[#allocation2 + $0xa8] sm:$0xe]  ;;  %v11459_v35 = vld [vmem:[#allocation2 + $0xac] sm:$0xf]  ;;  %v16437_v40 = vld [vmem:[#allocation28_spill] sm:$0xff] }
 0x204   : > { %v13813_v31 = vsel %vm11947_vm11, %v9510_v59, %v2789_v7  ;;  %v2791_v8 = vrot.slane %v2789_v7, 4  ;;  %v13817_v0 = vadd.f32 %v13625_v14, %v13586_v46  ;;  %v9650_v17 = vcombine.low %v13794_v16, %v13799_v26 }
 0x205   : > { %v4146_v30 = vadd.f32 %v10156_v54, %v13586_v46  ;;  %v10159_v33 = vadd.f32 %v10158_v28, %v10157_v48  ;;  %v2769_v2 = vsel %vm11947_vm11, %v9507_v24, %v2768_v55  ;;  %v9508_v43 = vrot.slane %v2643_v20, 9  ;;  %v11458_v55 = vld [vmem:[#allocation2 + $0xa4] sm:$0x1]  ;;  %v16436_v48 = vld [vmem:[#allocation27_spill] sm:$0xff] }
 0x206   : > { %v13826_v59 = vsel %vm11947_vm11, %v2791_v8, %v2792_v23  ;;  %v10271_v52 = vadd.f32 %v10270_v5, %v10269_v21  ;;  %v2772_v14 = vsel %vm11947_vm11, %v2770_v15, %v2771_v6  ;;  %v2777_v7 = vrot.slane %v2775_v49, 4  ;;  %v16434_v21 = vld [vmem:[#allocation39_spill] sm:$0xff]  ;;  %v10160_v15 = vpop.f32.mrb[52].mxu0  ;;  %v10273_v6 = vpop.f32.mrb[53].mxu1  ;;  %v16435_v23 = vld [vmem:[#allocation40_spill] sm:$0xff] }
 0x207   : > { %11039 = vmatmul.mubr.bf16.gmra.mrb[140].mxu0 %v9648_v36  ;;  %v9654_v16 = vcombine.low %v13813_v31, %v13826_v59  ;;  %v4149_v26 = vadd.f32 %v10159_v33, %v13586_v46  ;;  %v13833_v36 = vadd.f32 %v10268_v44, %v4146_v30  ;;  %v2778_v24 = vrot.slane %v11458_v55, 5  ;;  %v10161_v33 = vpop.f32.mrb[53].mxu0  ;;  %v11460_v55 = vld [vmem:[#allocation2 + $0xb0] sm:$0x1] }
 0x208   : > { %11042 = vmatprep.mubr.bf16.mxu0 %v9649_v53  ;;  %v2782_v20 = vrot.slane %v11459_v35, 5  ;;  %v13837_v53 = vadd.f32 %v16434_v21, %v13637_v38  ;;  %v13843_v54 = vadd.f32 %v16435_v23, %v13647_v9  ;;  %v13847_v44 = vadd.f32 %v16436_v48, %v13657_v13  ;;  %v10163_v21 = vpop.f32.mrb[54].mxu0  ;;  %v16438_v13 = vld [vmem:[#allocation29_spill] sm:$0xff] }
 0x209   : > { %v13839_v5 = vadd.f32 %v10271_v52, %v4149_v26  ;;  %v13851_v8 = vadd.f32 %v16437_v40, %v13674_v34  ;;  %v9651_v28 = vcombine.low %v2769_v2, %v2772_v14  ;;  %v2776_v38 = vsel %vm11947_vm11, %v9508_v43, %v2775_v49  ;;  %v10275_v26 = vpop.f32.mrb[54].mxu1  ;;  %v16439_v34 = vld [vmem:[#allocation42_spill] sm:$0xff]  ;;  %v10164_v14 = vpop.f32.mrb[55].mxu0  ;;  %v16440_v43 = vld [vmem:[#allocation43_spill] sm:$0xff] }
 0x20a   : > { %v9509_v30 = vrot.slane %v2644_v3, 9  ;;  %v10274_v52 = vadd.f32 %v10273_v6, %v10272_v27  ;;  %v2785_v35 = vrot.slane %v11460_v55, 5  ;;  %v10162_v9 = vadd.f32 %v10161_v33, %v10160_v15  ;;  %v10276_v23 = vpop.f32.mrb[55].mxu1  ;;  %v16441_v27 = vld [vmem:[#allocation18_spill] sm:$0xff] }
 0x20b   : > { %v13857_v48 = vadd.f32 %v16438_v13, %v13690_v47  ;;  %v13861_v40 = vadd.f32 %v16439_v34, %v13706_v10  ;;  %v2784_v2 = vrot.slane %v2782_v20, 4  ;;  %v10277_v49 = vadd.f32 %v10276_v23, %v10275_v26  ;;  %v16442_v10 = vld [vmem:[#allocation38_spill] sm:$0xff]  ;;  %v16443_v26 = vld [vmem:[#allocation20_spill] sm:$0xff] }
 0x20c   : > { %v13865_v3 = vadd.f32 %v16440_v43, %v13710_v41  ;;  %v13869_v15 = vadd.f32 %v16441_v27, %v13714_v29  ;;  %v2779_v6 = vsel %vm11947_vm11, %v2777_v7, %v2778_v24  ;;  %v4154_v47 = vadd.f32 %v10162_v9, %v13586_v46  ;;  %v16444_v41 = vld [vmem:[#allocation23_spill] sm:$0xff]  ;;  %v16445_v29 = vld [vmem:[#allocation25_spill] sm:$0xff]  ;;  %v2646_v9 = vld [vmem:[#allocation2 + $0xc0] sm:$0xe] }
 0x20d   : > { %v10165_v33 = vadd.f32 %v10164_v14, %v10163_v21  ;;  %v13876_v55 = vadd.f32 %v16442_v10, %v13718_v1  ;;  %v13880_v23 = vadd.f32 %v16443_v26, %v13744_v19  ;;  %v13884_v13 = vadd.f32 %v16444_v41, %v13748_v60  ;;  %v16446_v7 = vld [vmem:[#allocation45_spill] sm:$0xff]  ;;  %v11306_v14 = vld [vmem:[#allocation9 + $0x60] sm:$0xff]   ;;  %v16447_v27 = vld [vmem:[#allocation44_spill] sm:$0xff] }
 0x20e   : > { %v13888_v34 = vadd.f32 %v16445_v29, %v13778_v42  ;;  %v13892_v24 = vadd.f32 %v16446_v7, %v13782_v32  ;;  %v13899_v19 = vadd.f32 %v13597_v39, %v13786_v11  ;;  %v13903_v60 = vadd.f32 %v13629_v22, %v13809_v45  ;;  %v11307_v22 = vld [vmem:[#allocation9 + $0x20] sm:$0xff]   ;;  %10546 = vmatprep.subr.bf16.mxu1 %v11306_v14 }
 0x20f   : > { %11043 = vmatmul.mubr.bf16.gmra.mrb[144].mxu0 %v9650_v17  ;;  %v4157_v1 = vadd.f32 %v10165_v33, %v13586_v46  ;;  %v13895_v17 = vadd.f32 %v10274_v52, %v4154_v47  ;;  %v2783_v42 = vsel %vm11947_vm11, %v9509_v30, %v2782_v20  ;;  %v2786_v32 = vsel %vm11947_vm11, %v2784_v2, %v2785_v35  ;;  %v10166_v30 = vpop.f32.mrb[56].mxu0  ;;  %v16448_v41 = vld [vmem:[#allocation46_spill] sm:$0xff] }
 0x210   : > { %11046 = vmatprep.mubr.bf16.mxu0 %v9651_v28  ;;  %v2796_v28 = vrot.slane %v13417_v25, 5  ;;  %v13912_v52 = vadd.f32 %v13653_v63, %v13817_v0  ;;  %v9652_v39 = vcombine.low %v2776_v38, %v2779_v6  ;;  %v9653_v11 = vcombine.low %v2783_v42, %v2786_v32  ;;  %v10167_v47 = vpop.f32.mrb[57].mxu0  ;;  %10547 = vmatpush3.bf16.msra.mxu1 %v11307_v22  ;;  %v2647_v63 = vld [vmem:[#allocation2 + $0xcc] sm:$0xe] }
 0x211   : > { %v13914_v21 = vadd.f32 %v10277_v49, %v4157_v1  ;;  %v9511_v45 = vrot.slane %v2646_v9, 9  ;;  %v2799_v20 = vrot.slane %v16447_v27, 5  ;;  %v10168_v25 = vadd.f32 %v10167_v47, %v10166_v30  ;;  %v10169_v35 = vpop.f32.mrb[58].mxu0 }
 0x212   : > { %v2798_v43 = vrot.slane %v2796_v28, 4  ;;  %v2803_v0 = vrot.slane %v13466_v50, 5  ;;  %v10170_v2 = vpop.f32.mrb[59].mxu0  ;;  %v10278_v10 = vpop.f32.mrb[56].mxu1  ;;  %v9512_v26 = vrot.slane %v2647_v63, 9  ;;  %v2806_v29 = vrot.slane %v16448_v41, 5 }
 0x213   : > { %v2797_v38 = vsel %vm11947_vm11, %v9511_v45, %v2796_v28  ;;  %v10171_v6 = vadd.f32 %v10170_v2, %v10169_v35  ;;  %v4162_v33 = vadd.f32 %v10168_v25, %v13586_v46  ;;  %v10279_v7 = vpop.f32.mrb[57].mxu1 }
 0x214   : > { %v2800_v49 = vsel %vm11947_vm11, %v2798_v43, %v2799_v20  ;;  %v2805_v42 = vrot.slane %v2803_v0, 4  ;;  %v10280_v50 = vadd.f32 %v10279_v7, %v10278_v10  ;;  %v10281_v9 = vpop.f32.mrb[58].mxu1  ;;  %v2804_v14 = vsel %vm11947_vm11, %v9512_v26, %v2803_v0  ;;  %v11309_v10 = vld [vmem:[#allocation9 + $0x28] sm:$0xff]  }
 0x215   : > { %v9655_v1 = vcombine.low %v2797_v38, %v2800_v49  ;;  %v4165_v32 = vadd.f32 %v10171_v6, %v13586_v46 }
 0x216   : > { %v2807_v22 = vsel %vm11947_vm11, %v2805_v42, %v2806_v29 }
 0x217   : > { %11047 = vmatmul.mubr.bf16.gmra.mrb[148].mxu0 %v9652_v39  ;;  %v10282_v39 = vpop.f32.mrb[59].mxu1  ;;  %v9656_v27 = vcombine.low %v2804_v14, %v2807_v22 }
 0x218   : > { %11050 = vmatprep.mubr.bf16.mxu0 %v9653_v11  ;;  %v13925_v11 = vadd.f32 %v10280_v50, %v4162_v33  ;;  %v10283_v28 = vadd.f32 %v10282_v39, %v10281_v9  ;;  %v11308_v33 = vld [vmem:[#allocation9 + $0x68] sm:$0xff]  }
 0x219   : > { %10548 = vmatprep.subr.bf16.mxu1 %v11308_v33 }
 0x21a   : > { %v13934_v45 = vadd.f32 %v10283_v28, %v4165_v32  ;;  %v10284_v43 = vpop.f32.mrb[60].mxu1  ;;  %10549 = vmatpush3.bf16.msra.mxu1 %v11309_v10 }
 0x21b   : > { %v10285_v20 = vpop.f32.mrb[61].mxu1 }
 0x21c   : > { %v10172_v30 = vpop.f32.mrb[60].mxu0  ;;  %v10286_v47 = vadd.f32 %v10285_v20, %v10284_v43  ;;  %v10287_v25 = vpop.f32.mrb[62].mxu1 }
 0x21d   : > { %v10173_v35 = vpop.f32.mrb[61].mxu0  ;;  %v10288_v63 = vpop.f32.mrb[63].mxu1 }
 0x21e   : > { %v10174_v2 = vadd.f32 %v10173_v35, %v10172_v30  ;;  %v10175_v31 = vpop.f32.mrb[62].mxu0  ;;  %v10289_v59 = vadd.f32 %v10288_v63, %v10287_v25 }
 0x21f   : > { %11051 = vmatmul.mubr.bf16.gmra.mrb[152].mxu0 %v9654_v16  ;;  %v10176_v16 = vpop.f32.mrb[63].mxu0 }
 0x220   : > { %11054 = vmatprep.mubr.bf16.mxu0 %v9655_v1  ;;  %v4170_v0 = vadd.f32 %v10174_v2, %v13586_v46  ;;  %v10177_v38 = vadd.f32 %v10176_v16, %v10175_v31 }
 0x222   : > { %v4173_v49 = vadd.f32 %v10177_v38, %v13586_v46  ;;  %v13938_v6 = vadd.f32 %v10286_v47, %v4170_v0 }
 0x224   : > { %v13940_v26 = vadd.f32 %v10289_v59, %v4173_v49  ;;  %v10306_v41 = vpop.f32.mrb[64].mxu0 }
 0x225   : > { %v10307_v29 = vpop.f32.mrb[65].mxu0 }
 0x226   : > { %v10418_v7 = vpop.f32.mrb[64].mxu1  ;;  %v10308_v1 = vadd.f32 %v10307_v29, %v10306_v41  ;;  %v10309_v42 = vpop.f32.mrb[66].mxu0 }
 0x227   : > { %11055 = vmatmul.mubr.bf16.gmra.mrb[156].mxu0 %v9656_v27  ;;  %v10419_v32 = vpop.f32.mrb[65].mxu1  ;;  %v10310_v50 = vpop.f32.mrb[67].mxu0 }
 0x228   : > { %v10420_v9 = vadd.f32 %v10419_v32, %v10418_v7  ;;  %v10421_v39 = vpop.f32.mrb[66].mxu1  ;;  %v4372_v28 = vadd.f32 %v10308_v1, %v13837_v53  ;;  %v10311_v46 = vadd.f32 %v10310_v50, %v10309_v42 }
 0x229   : > { %v10422_v14 = vpop.f32.mrb[67].mxu1 }
 0x22a   : > { %v10423_v22 = vadd.f32 %v10422_v14, %v10421_v39  ;;  %v4375_v43 = vadd.f32 %v10311_v46, %v13843_v54  ;;  %v13944_v27 = vadd.f32 %v10420_v9, %v4372_v28 }
 0x22c   : > { %v10312_v20 = vpop.f32.mrb[68].mxu0  ;;  %v13946_v30 = vadd.f32 %v10423_v22, %v4375_v43 }
 0x22d   : > { %v10313_v47 = vpop.f32.mrb[69].mxu0 }
 0x22e   : > { %v10314_v35 = vadd.f32 %v10313_v47, %v10312_v20  ;;  %v10315_v63 = vpop.f32.mrb[70].mxu0 }
 0x22f   : > { %v10424_v25 = vpop.f32.mrb[68].mxu1  ;;  %v10316_v31 = vpop.f32.mrb[71].mxu0 }
 0x230   : > { %v10425_v2 = vpop.f32.mrb[69].mxu1  ;;  %v4380_v53 = vadd.f32 %v10314_v35, %v13847_v44  ;;  %v10317_v0 = vadd.f32 %v10316_v31, %v10315_v63 }
 0x231   : > { %v10426_v59 = vadd.f32 %v10425_v2, %v10424_v25  ;;  %v10427_v16 = vpop.f32.mrb[70].mxu1  ;;  %v11310_v25 = vld [vmem:[#allocation9 + $0xc0] sm:$0xff]  }
 0x232   : > { %v10428_v38 = vpop.f32.mrb[71].mxu1  ;;  %v4383_v54 = vadd.f32 %v10317_v0, %v13851_v8  ;;  %10650 = vmatprep.subr.bf16.mxu0 %v11310_v25  ;;  %v403_v25 = vld [vmem:[#allocation3 + $0xc] sm:$0x1] }
 0x233   : > { %v10429_v49 = vadd.f32 %v10428_v38, %v10427_v16  ;;  %v13950_v33 = vadd.f32 %v10426_v59, %v4380_v53  ;;  %v11312_v16 = vld [vmem:[#allocation9 + $0x80] sm:$0xff]   ;;  %v11313_v53 = vld [vmem:[#allocation9 + $0x30] sm:$0xff]  }
 0x234   : > { %v10318_v10 = vpop.f32.mrb[72].mxu0  ;;  %10651 = vmatpush3.bf16.msra.mxu0 %v11312_v16  ;;  %v457_v16 = vld [vmem:[#allocation3 + $0x14] sm:$0x1] }
 0x235   : > { %v13952_v41 = vadd.f32 %v10429_v49, %v4383_v54  ;;  %v10319_v29 = vpop.f32.mrb[73].mxu0  ;;  %v406_v54 = vld [vmem:[#allocation3 + $0x18] sm:$0x1] }
 0x236   : > { %v10320_v7 = vadd.f32 %v10319_v29, %v10318_v10  ;;  %v10321_v1 = vpop.f32.mrb[74].mxu0 }
 0x237   : > { %v10322_v32 = vpop.f32.mrb[75].mxu0 }
 0x238   : > { %v10430_v42 = vpop.f32.mrb[72].mxu1  ;;  %v4388_v9 = vadd.f32 %v10320_v7, %v13857_v48  ;;  %v10323_v39 = vadd.f32 %v10322_v32, %v10321_v1  ;;  %v11311_v48 = vld [vmem:[#allocation9 + $0x70] sm:$0xff]   ;;  %v407_v7 = vsel %vm11918_vm3, 0, %v406_v54  ;;  %v412_v54 = vld [vmem:[#allocation3 + $0x30] sm:$0x1] }
 0x239   : > { %v10431_v50 = vpop.f32.mrb[73].mxu1  ;;  %10550 = vmatprep.subr.bf16.mxu1 %v11311_v48  ;;  %408 = vst [vmem:[#allocation3 + $0x18] sm:$0x1] %v407_v7  ;;  %v460_v48 = vld [vmem:[#allocation3 + $0x20] sm:$0x1] }
 0x23a   : > { %v10432_v44 = vadd.f32 %v10431_v50, %v10430_v42  ;;  %v10433_v28 = vpop.f32.mrb[74].mxu1  ;;  %v4391_v14 = vadd.f32 %v10323_v39, %v13861_v40  ;;  %10551 = vmatpush3.bf16.msra.mxu1 %v11313_v53 }
 0x23b   : > { %v10434_v46 = vpop.f32.mrb[75].mxu1 }
 0x23c   : > { %v10435_v8 = vadd.f32 %v10434_v46, %v10433_v28  ;;  %v13956_v22 = vadd.f32 %v10432_v44, %v4388_v9  ;;  %v10324_v43 = vpop.f32.mrb[76].mxu0 }
 0x23d   : > { %v10325_v47 = vpop.f32.mrb[77].mxu0 }
 0x23e   : > { %v13958_v20 = vadd.f32 %v10435_v8, %v4391_v14  ;;  %v10326_v35 = vadd.f32 %v10325_v47, %v10324_v43  ;;  %v10327_v63 = vpop.f32.mrb[78].mxu0  ;;  %v11314_v47 = vld [vmem:[#allocation9 + $0xc8] sm:$0xff]  }
 0x23f   : > { %v10328_v31 = vpop.f32.mrb[79].mxu0  ;;  %10652 = vmatprep.subr.bf16.mxu0 %v11314_v47 }
 0x240   : > { %v4396_v0 = vadd.f32 %v10326_v35, %v13865_v3  ;;  %v10329_v40 = vadd.f32 %v10328_v31, %v10327_v63  ;;  %v404_v63 = vsel %vm11918_vm3, 0, %v403_v25  ;;  %v11319_v25 = vld [vmem:[#allocation9 + $0x98] sm:$0xff]  }
 0x241   : > { %v10436_v2 = vpop.f32.mrb[76].mxu1  ;;  %405 = vst [vmem:[#allocation3 + $0xc] sm:$0x1] %v404_v63 }
 0x242   : > { %v10437_v59 = vpop.f32.mrb[77].mxu1  ;;  %v4399_v1 = vadd.f32 %v10329_v40, %v13869_v15  ;;  %v458_v40 = vsel %vm11923_vm4, 0, %v457_v16 }
 0x243   : > { %v10438_v38 = vadd.f32 %v10437_v59, %v10436_v2  ;;  %v10439_v49 = vpop.f32.mrb[78].mxu1  ;;  %v11315_v2 = vld [vmem:[#allocation9 + $0x88] sm:$0xff]   ;;  %459 = vst [vmem:[#allocation3 + $0x14] sm:$0x1] %v458_v40 }
 0x244   : > { %v10440_v10 = vpop.f32.mrb[79].mxu1  ;;  %v10330_v50 = vpop.f32.mrb[80].mxu0  ;;  %10653 = vmatpush3.bf16.msra.mxu0 %v11315_v2  ;;  %v466_v2 = vld [vmem:[#allocation3 + $0x38] sm:$0x1] }
 0x245   : > { %v10441_v42 = vadd.f32 %v10440_v10, %v10439_v49  ;;  %v13964_v32 = vadd.f32 %v10438_v38, %v4396_v0  ;;  %v10331_v3 = vpop.f32.mrb[81].mxu0  ;;  %v461_v0 = vsel %vm11923_vm4, 0, %v460_v48  ;;  %v11316_v38 = vld [vmem:[#allocation9 + $0xd0] sm:$0xff]  }
 0x246   : > { %v10332_v39 = vadd.f32 %v10331_v3, %v10330_v50  ;;  %v10333_v44 = vpop.f32.mrb[82].mxu0  ;;  %v11317_v49 = vld [vmem:[#allocation9 + $0x90] sm:$0xff]   ;;  %462 = vst [vmem:[#allocation3 + $0x20] sm:$0x1] %v461_v0  ;;  %10654 = vmatprep.subr.bf16.mxu0 %v11316_v38 }
 0x247   : > { %v13966_v9 = vadd.f32 %v10441_v42, %v4399_v1  ;;  %v10334_v46 = vpop.f32.mrb[83].mxu0 }
 0x248   : > { %v4404_v14 = vadd.f32 %v10332_v39, %v13876_v55  ;;  %v10335_v8 = vadd.f32 %v10334_v46, %v10333_v44  ;;  %10655 = vmatpush3.bf16.msra.mxu0 %v11317_v49 }
 0x249   : > { %v10442_v28 = vpop.f32.mrb[80].mxu1 }
 0x24a   : > { %v10443_v43 = vpop.f32.mrb[81].mxu1  ;;  %v4407_v31 = vadd.f32 %v10335_v8, %v13880_v23  ;;  %v413_v23 = vsel %vm11918_vm3, 0, %v412_v54  ;;  %v409_v8 = vld [vmem:[#allocation3 + $0x24] sm:$0x1] }
 0x24b   : > { %v10444_v15 = vadd.f32 %v10443_v43, %v10442_v28  ;;  %v10445_v35 = vpop.f32.mrb[82].mxu1  ;;  %414 = vst [vmem:[#allocation3 + $0x30] sm:$0x1] %v413_v23  ;;  %v410_v47 = vsel %vm11918_vm3, 0, %v409_v8  ;;  %v463_v23 = vld [vmem:[#allocation3 + $0x2c] sm:$0x1] }
 0x24c   : > { %v10446_v59 = vpop.f32.mrb[83].mxu1  ;;  %411 = vst [vmem:[#allocation3 + $0x24] sm:$0x1] %v410_v47  ;;  %v415_v47 = vld [vmem:[#allocation3 + $0x3c] sm:$0x1] }
 0x24d   : > { %v10447_v53 = vadd.f32 %v10446_v59, %v10445_v35  ;;  %v13976_v10 = vadd.f32 %v10444_v15, %v4404_v14  ;;  %v10336_v7 = vpop.f32.mrb[84].mxu0  ;;  %v11318_v14 = vld [vmem:[#allocation9 + $0xd8] sm:$0xff]  }
 0x24e   : > { %v10337_v1 = vpop.f32.mrb[85].mxu0  ;;  %10656 = vmatprep.subr.bf16.mxu0 %v11318_v14 }
 0x24f   : > { %v13980_v42 = vadd.f32 %v10447_v53, %v4407_v31  ;;  %v10338_v50 = vadd.f32 %v10337_v1, %v10336_v7  ;;  %v10339_v3 = vpop.f32.mrb[86].mxu0  ;;  %10657 = vmatpush3.bf16.msra.mxu0 %v11319_v25  ;;  %v11320_v1 = vld [vmem:[#allocation9 + $0xe0] sm:$0xff]  }
 0x250   : > { %v10340_v39 = vpop.f32.mrb[87].mxu0  ;;  %10658 = vmatprep.subr.bf16.mxu0 %v11320_v1  ;;  %v11326_v1 = vld [vmem:[#allocation9 + $0xf0] sm:$0xff]  }
 0x251   : > { %v4412_v44 = vadd.f32 %v10338_v50, %v13884_v13  ;;  %v10341_v46 = vadd.f32 %v10340_v39, %v10339_v3  ;;  %v467_v13 = vsel %vm11923_vm4, 0, %v466_v2  ;;  %v11321_v50 = vld [vmem:[#allocation9 + $0x78] sm:$0xff]   ;;  %v464_v39 = vsel %vm11923_vm4, 0, %v463_v23  ;;  %v469_v23 = vld [vmem:[#allocation3 + $0x44] sm:$0x1] }
 0x252   : > { %v10448_v28 = vpop.f32.mrb[84].mxu1  ;;  %468 = vst [vmem:[#allocation3 + $0x38] sm:$0x1] %v467_v13  ;;  %465 = vst [vmem:[#allocation3 + $0x2c] sm:$0x1] %v464_v39  ;;  %10552 = vmatprep.subr.bf16.mxu1 %v11321_v50  ;;  %v11327_v39 = vld [vmem:[#allocation9 + $0xb0] sm:$0xff]  }
 0x253   : > { %v10449_v43 = vpop.f32.mrb[85].mxu1  ;;  %v4415_v15 = vadd.f32 %v10341_v46, %v13888_v34 }
 0x254   : > { %v10450_v35 = vadd.f32 %v10449_v43, %v10448_v28  ;;  %v10451_v63 = vpop.f32.mrb[86].mxu1  ;;  %v11322_v28 = vld [vmem:[#allocation9 + $0xa0] sm:$0xff]   ;;  %v418_v43 = vld [vmem:[#allocation3 + $0x48] sm:$0x1] }
 0x255   : > { %v10452_v31 = vpop.f32.mrb[87].mxu1  ;;  %10659 = vmatpush3.bf16.msra.mxu0 %v11322_v28  ;;  %v424_v28 = vld [vmem:[#allocation3 + $0x60] sm:$0x1] }
 0x256   : > { %v10453_v59 = vadd.f32 %v10452_v31, %v10451_v63  ;;  %v13988_v16 = vadd.f32 %v10450_v35, %v4412_v44  ;;  %v11323_v44 = vld [vmem:[#allocation9 + $0x38] sm:$0xff]   ;;  %v416_v35 = vsel %vm11918_vm3, 0, %v415_v47  ;;  %v11325_v63 = vld [vmem:[#allocation9 + $0xa8] sm:$0xff]  }
 0x257   : > { %v10342_v48 = vpop.f32.mrb[88].mxu0  ;;  %10553 = vmatpush3.bf16.msra.mxu1 %v11323_v44  ;;  %417 = vst [vmem:[#allocation3 + $0x3c] sm:$0x1] %v416_v35  ;;  %v472_v31 = vld [vmem:[#allocation3 + $0x50] sm:$0x1] }
 0x258   : > { %v10343_v53 = vpop.f32.mrb[89].mxu0  ;;  %v13990_v38 = vadd.f32 %v10453_v59, %v4415_v15  ;;  %v419_v15 = vsel %vm11918_vm3, 0, %v418_v43  ;;  %v11328_v43 = vld [vmem:[#allocation9 + $0xf8] sm:$0xff]  }
 0x259   : > { %v10344_v0 = vadd.f32 %v10343_v53, %v10342_v48  ;;  %v10345_v40 = vpop.f32.mrb[90].mxu0  ;;  %420 = vst [vmem:[#allocation3 + $0x48] sm:$0x1] %v419_v15  ;;  %v473_v48 = vsel %vm11923_vm4, 0, %v472_v31  ;;  %v11329_v47 = vld [vmem:[#allocation9 + $0xb8] sm:$0xff]  }
 0x25a   : > { %v10346_v34 = vpop.f32.mrb[91].mxu0  ;;  %474 = vst [vmem:[#allocation3 + $0x50] sm:$0x1] %v473_v48  ;;  %v478_v31 = vld [vmem:[#allocation3 + $0x68] sm:$0x1] }
 0x25b   : > { %v4420_v49 = vadd.f32 %v10344_v0, %v13892_v24  ;;  %v10454_v54 = vpop.f32.mrb[88].mxu1  ;;  %v10347_v7 = vadd.f32 %v10346_v34, %v10345_v40  ;;  %v11324_v24 = vld [vmem:[#allocation9 + $0xe8] sm:$0xff]   ;;  %v479_v48 = vsel %vm11923_vm4, 0, %v478_v31 }
 0x25c   : > { %v10455_v3 = vpop.f32.mrb[89].mxu1  ;;  %10660 = vmatprep.subr.bf16.mxu0 %v11324_v24  ;;  %v421_v24 = vld [vmem:[#allocation3 + $0x54] sm:$0x1]  ;;  %480 = vst [vmem:[#allocation3 + $0x68] sm:$0x1] %v479_v48 }
 0x25d   : > { %v4423_v46 = vadd.f32 %v10347_v7, %v13899_v19  ;;  %v10456_v14 = vadd.f32 %v10455_v3, %v10454_v54  ;;  %v10457_v8 = vpop.f32.mrb[90].mxu1  ;;  %10661 = vmatpush3.bf16.msra.mxu0 %v11325_v63  ;;  %v470_v3 = vsel %vm11923_vm4, 0, %v469_v23  ;;  %v422_v15 = vsel %vm11918_vm3, 0, %v421_v24  ;;  %v454_v23 = vld [vmem:[#allocation3 + $0x8] sm:$0x1]  ;;  %v11333_v24 = vld [vmem:[#allocation9 + $0x140] sm:$0xff]  }
 0x25e   : > { %v10458_v25 = vpop.f32.mrb[91].mxu1  ;;  %471 = vst [vmem:[#allocation3 + $0x44] sm:$0x1] %v470_v3  ;;  %10662 = vmatprep.subr.bf16.mxu0 %v11326_v1  ;;  %423 = vst [vmem:[#allocation3 + $0x54] sm:$0x1] %v422_v15  ;;  %v455_v3 = vsel %vm11923_vm4, 0, %v454_v23  ;;  %10762 = vmatprep.subr.bf16.mxu1 %v11333_v24 }
 0x25f   : > { %v10459_v2 = vadd.f32 %v10458_v25, %v10457_v8  ;;  %v10348_v19 = vpop.f32.mrb[92].mxu0  ;;  %v14000_v13 = vadd.f32 %v10456_v14, %v4420_v49  ;;  %v14021_v1 = vld [vmem:[#allocation3 + $0x4] sm:$0xf]  ;;  %456 = vst [vmem:[#allocation3 + $0x8] sm:$0x1] %v455_v3 }
 0x260   : > { %v10349_v59 = vpop.f32.mrb[93].mxu0 }
 0x261   : > { %v10350_v53 = vadd.f32 %v10349_v59, %v10348_v19  ;;  %v10351_v0 = vpop.f32.mrb[94].mxu0  ;;  %v14004_v40 = vadd.f32 %v10459_v2, %v4423_v46  ;;  %v425_v46 = vsel %vm11918_vm3, 0, %v424_v28  ;;  %10663 = vmatpush3.bf16.msra.mxu0 %v11327_v39  ;;  %v5439_v39 = vshll.u32 %v14021_v1, 16  ;;  %v475_v28 = vld [vmem:[#allocation3 + $0x5c] sm:$0x1] }
 0x262   : > { %v10352_v34 = vpop.f32.mrb[95].mxu0  ;;  %426 = vst [vmem:[#allocation3 + $0x60] sm:$0x1] %v425_v46  ;;  %10664 = vmatprep.subr.bf16.mxu0 %v11328_v43  ;;  %v5813_v43 = vld [vmem:[#allocation3] sm:$0xe] }
 0x263   : > { %v4428_v54 = vadd.f32 %v10350_v53, %v13903_v60  ;;  %v10353_v7 = vadd.f32 %v10352_v34, %v10351_v0  ;;  %v14030_v46 = vrot.slane %v5439_v39, 5 }
 0x265   : > { %v10460_v50 = vpop.f32.mrb[92].mxu1  ;;  %v4431_v49 = vadd.f32 %v10353_v7, %v13912_v52  ;;  %10665 = vmatpush3.bf16.msra.mxu0 %v11329_v47  ;;  %v400_v7 = vld [vmem:[#allocation3] sm:$0x1] }
 0x266   : > { %v10461_v44 = vpop.f32.mrb[93].mxu1  ;;  %v5413_v39 = vld [vmem:[#allocation3 + $0x8] sm:$0x1] }
 0x267   : > { %v10462_v14 = vadd.f32 %v10461_v44, %v10460_v50  ;;  %v10463_v8 = vpop.f32.mrb[94].mxu1  ;;  %v401_v50 = vsel %vm11918_vm3, 0, %v400_v7 }
 0x268   : > { %v10464_v52 = vpop.f32.mrb[95].mxu1  ;;  %402 = vst [vmem:[#allocation3] sm:$0x1] %v401_v50 }
 0x269   : > { %v10354_v60 = vpop.f32.mrb[96].mxu0  ;;  %v10465_v35 = vadd.f32 %v10464_v52, %v10463_v8  ;;  %v14014_v19 = vadd.f32 %v10462_v14, %v4428_v54  ;;  %v5879_v52 = vrot.slane %v14021_v1, 5 }
 0x26a   : > { %v10355_v25 = vpop.f32.mrb[97].mxu0 }
 0x26b   : > { %v10356_v63 = vadd.f32 %v10355_v25, %v10354_v60  ;;  %v10357_v2 = vpop.f32.mrb[98].mxu0  ;;  %v14019_v34 = vadd.f32 %v10465_v35, %v4431_v49  ;;  %v5443_v49 = vshrl.u32 %v14021_v1, 16  ;;  %v430_v25 = vld [vmem:[#allocation3 + $0x78] sm:$0x1] }
 0x26c   : > { %v10358_v59 = vpop.f32.mrb[99].mxu0 }
 0x26d   : > { %v4436_v53 = vadd.f32 %v10356_v63, %v13692_v56  ;;  %v10359_v0 = vadd.f32 %v10358_v59, %v10357_v2  ;;  %v5445_v60 = vrot.slane %v5443_v49, 4  ;;  %v431_v63 = vsel %vm11918_vm3, 0, %v430_v25 }
 0x26e   : > { %v9762_v59 = vrot.slane %v5813_v43, 9  ;;  %432 = vst [vmem:[#allocation3 + $0x78] sm:$0x1] %v431_v63  ;;  %v5449_v43 = vshll.u32 %v5413_v39, 16 }
 0x26f   : > { %v4439_v54 = vadd.f32 %v10359_v0, %v13696_v12  ;;  %v10466_v56 = vpop.f32.mrb[96].mxu1  ;;  %v476_v12 = vsel %vm11923_vm4, 0, %v475_v28  ;;  %v5446_v31 = vor.u32 %v5445_v60, %v14030_v46  ;;  %v5381_v3 = vld [vmem:[#allocation3] sm:$0xf] }
 0x270   : > { %v10467_v44 = vpop.f32.mrb[97].mxu1  ;;  %477 = vst [vmem:[#allocation3 + $0x5c] sm:$0x1] %v476_v12  ;;  %v5430_v12 = vshrl.u32 %v5381_v3, 16 }
 0x271   : > { %v10468_v14 = vadd.f32 %v10467_v44, %v10466_v56  ;;  %v10469_v8 = vpop.f32.mrb[98].mxu1  ;;  %v5881_v56 = vrot.slane %v5879_v52, 4  ;;  %v5447_v60 = vrot.slane %v5446_v31, 4 }
 0x272   : > { %v10470_v47 = vpop.f32.mrb[99].mxu1 }
 0x273   : > { %v10471_v15 = vadd.f32 %v10470_v47, %v10469_v8  ;;  %v10360_v35 = vpop.f32.mrb[100].mxu0  ;;  %v14038_v48 = vadd.f32 %v10468_v14, %v4436_v53  ;;  %v5433_v8 = vshll.u32 %v5381_v3, 16  ;;  %v5882_v47 = vrot.slane %v5413_v39, 5 }
 0x274   : > { %v10361_v2 = vpop.f32.mrb[101].mxu0  ;;  %v14045_v53 = vsel %vm11947_vm11, %v9762_v59, %v5879_v52  ;;  %v427_v59 = vld [vmem:[#allocation3 + $0x6c] sm:$0x1] }
 0x275   : > { %v10362_v0 = vadd.f32 %v10361_v2, %v10360_v35  ;;  %v10363_v7 = vpop.f32.mrb[102].mxu0  ;;  %v14040_v23 = vadd.f32 %v10471_v15, %v4439_v54  ;;  %v5432_v15 = vrot.slane %v5430_v12, 4  ;;  %v5435_v35 = vrot.slane %v5433_v8, 5  ;;  %v481_v12 = vld [vmem:[#allocation3 + $0x74] sm:$0x1] }
 0x276   : > { %v10364_v50 = vpop.f32.mrb[103].mxu0  ;;  %v14050_v2 = vsel %vm11947_vm11, %v5881_v56, %v5882_v47 }
 0x277   : > { %v4444_v49 = vadd.f32 %v10362_v0, %v13732_v57  ;;  %v10365_v44 = vadd.f32 %v10364_v50, %v10363_v7  ;;  %v5451_v57 = vrot.slane %v5449_v43, 5  ;;  %v5436_v7 = vor.u32 %v5435_v35, %v5432_v15 }
 0x278   : > { %v10472_v28 = vpop.f32.mrb[100].mxu1  ;;  %v9842_v50 = vcombine.low %v14045_v53, %v14050_v2  ;;  %v9810_v35 = vcombine.low %v5381_v3, %v14021_v1  ;;  %v11364_v53 = vld [vmem:[#allocation9 + $0x188] sm:$0xff]  }
 0x279   : > { %v10473_v24 = vpop.f32.mrb[101].mxu1  ;;  %v4447_v54 = vadd.f32 %v10365_v44, %v13734_v51  ;;  %v5452_v39 = vsel %vm11958_vm12, %v5447_v60, %v5451_v57  ;;  %v484_v44 = vld [vmem:[#allocation3 + $0x80] sm:$0x1]  ;;  %v11334_v57 = vld [vmem:[#allocation9 + $0x100] sm:$0xff]  }
 0x27a   : > { %v10474_v14 = vadd.f32 %v10473_v24, %v10472_v28  ;;  %v10475_v25 = vpop.f32.mrb[102].mxu1  ;;  %v428_v28 = vsel %vm11918_vm3, 0, %v427_v59  ;;  %v5437_v24 = vrot.slane %v5436_v7, 4  ;;  %v485_v43 = vsel %vm11923_vm4, 0, %v484_v44 }
 0x27b   : > { %v10476_v63 = vpop.f32.mrb[103].mxu1  ;;  %429 = vst [vmem:[#allocation3 + $0x6c] sm:$0x1] %v428_v28  ;;  %486 = vst [vmem:[#allocation3 + $0x80] sm:$0x1] %v485_v43 }
 0x27c   : > { %v10477_v0 = vadd.f32 %v10476_v63, %v10475_v25  ;;  %v14054_v52 = vadd.f32 %v10474_v14, %v4444_v49  ;;  %v482_v14 = vsel %vm11923_vm4, 0, %v481_v12  ;;  %v5442_v15 = vsel %vm11958_vm12, %v5437_v24, %v14030_v46 }
 0x27d   : > { %v10366_v31 = vpop.f32.mrb[104].mxu0  ;;  %483 = vst [vmem:[#allocation3 + $0x74] sm:$0x1] %v482_v14  ;;  %v9826_v63 = vcombine.low %v5442_v15, %v5452_v39  ;;  %v433_v15 = vld [vmem:[#allocation3 + $0x84] sm:$0x1] }
 0x27e   : > { %v10367_v51 = vpop.f32.mrb[105].mxu0  ;;  %v14062_v47 = vadd.f32 %v10477_v0, %v4447_v54 }
 0x27f   : > { %v10368_v56 = vadd.f32 %v10367_v51, %v10366_v31  ;;  %v10369_v8 = vpop.f32.mrb[106].mxu0  ;;  %8445 = vmatprep.mubr.bf16.mxu1 %v9826_v63 }
 0x280   : > { %v10370_v49 = vpop.f32.mrb[107].mxu0  ;;  %8446 = vmatmul.mubr.bf16.vlgmr.msra.gmra.mrb[128].mxu1 %v9810_v35  ;;  %v490_v35 = vld [vmem:[#allocation3 + $0x98] sm:$0x1] }
 0x281   : > { %v4452_v60 = vadd.f32 %v10368_v56, %v13768_v61  ;;  %v10371_v25 = vadd.f32 %v10370_v49, %v10369_v8  ;;  %v10478_v31 = vpop.f32.mrb[104].mxu1  ;;  %10763 = vmatpush3.bf16.msra.mxu1 %v11334_v57  ;;  %v436_v8 = vld [vmem:[#allocation3 + $0x90] sm:$0x1]  ;;  %v434_v57 = vsel %vm11918_vm3, 0, %v433_v15 }
 0x282   : > { %v10479_v0 = vpop.f32.mrb[105].mxu1  ;;  %v437_v49 = vsel %vm11918_vm3, 0, %v436_v8  ;;  %435 = vst [vmem:[#allocation3 + $0x84] sm:$0x1] %v434_v57 }
 0x283   : > { %v4455_v54 = vadd.f32 %v10371_v25, %v13772_v37  ;;  %v10480_v7 = vadd.f32 %v10479_v0, %v10478_v31  ;;  %v10481_v59 = vpop.f32.mrb[106].mxu1  ;;  %438 = vst [vmem:[#allocation3 + $0x90] sm:$0x1] %v437_v49  ;;  %v487_v31 = vld [vmem:[#allocation3 + $0x8c] sm:$0x1] }
 0x284   : > { %v10482_v51 = vpop.f32.mrb[107].mxu1 }
 0x285   : > { %v10483_v61 = vadd.f32 %v10482_v51, %v10481_v59  ;;  %v14072_v28 = vadd.f32 %v10480_v7, %v4452_v60  ;;  %v488_v7 = vsel %vm11923_vm4, 0, %v487_v31  ;;  %v11339_v51 = vld [vmem:[#allocation9 + $0x148] sm:$0xff]  }
 0x286   : > { %489 = vst [vmem:[#allocation3 + $0x8c] sm:$0x1] %v488_v7  ;;  %10764 = vmatprep.subr.bf16.mxu1 %v11339_v51  ;;  %v439_v7 = vld [vmem:[#allocation3 + $0x9c] sm:$0x1] }
 0x287   : > { %v10372_v44 = vpop.f32.mrb[108].mxu0  ;;  %v14074_v12 = vadd.f32 %v10483_v61, %v4455_v54  ;;  %v440_v51 = vsel %vm11918_vm3, 0, %v439_v7  ;;  %v502_v7 = vld [vmem:[#allocation3 + $0xc8] sm:$0x1] }
 0x288   : > { %v10373_v46 = vpop.f32.mrb[109].mxu0  ;;  %441 = vst [vmem:[#allocation3 + $0x9c] sm:$0x1] %v440_v51  ;;  %v499_v51 = vld [vmem:[#allocation3 + $0xbc] sm:$0x1] }
 0x289   : > { %v10374_v1 = vadd.f32 %v10373_v46, %v10372_v44  ;;  %v10375_v3 = vpop.f32.mrb[110].mxu0 }
 0x28a   : > { %v10376_v39 = vpop.f32.mrb[111].mxu0 }
 0x28b   : > { %v4460_v56 = vadd.f32 %v10374_v1, %v13801_v58  ;;  %v10377_v37 = vadd.f32 %v10376_v39, %v10375_v3  ;;  %v491_v58 = vsel %vm11923_vm4, 0, %v490_v35 }
 0x28c   : > { %v10484_v24 = vpop.f32.mrb[108].mxu1  ;;  %492 = vst [vmem:[#allocation3 + $0x98] sm:$0x1] %v491_v58 }
 0x28d   : > { %v4463_v43 = vadd.f32 %v10377_v37, %v13804_v18  ;;  %v10485_v14 = vpop.f32.mrb[109].mxu1 }
 0x28e   : > { %v10486_v60 = vadd.f32 %v10485_v14, %v10484_v24  ;;  %v10487_v25 = vpop.f32.mrb[110].mxu1 }
 0x28f   : > { %v10488_v63 = vpop.f32.mrb[111].mxu1 }
 0x290   : > { %v10489_v54 = vadd.f32 %v10488_v63, %v10487_v25  ;;  %v14084_v18 = vadd.f32 %v10486_v60, %v4460_v56  ;;  %v11340_v63 = vld [vmem:[#allocation9 + $0x108] sm:$0xff]  }
 0x291   : > { %10765 = vmatpush3.bf16.msra.mxu1 %v11340_v63 }
 0x292   : > { %v10378_v0 = vpop.f32.mrb[112].mxu0  ;;  %v14088_v46 = vadd.f32 %v10489_v54, %v4463_v43  ;;  %v442_v43 = vld [vmem:[#allocation3 + $0xa8] sm:$0x1] }
 0x293   : > { %v10379_v59 = vpop.f32.mrb[113].mxu0 }
 0x294   : > { %v10380_v61 = vadd.f32 %v10379_v59, %v10378_v0  ;;  %v10381_v44 = vpop.f32.mrb[114].mxu0  ;;  %v496_v59 = vld [vmem:[#allocation3 + $0xb0] sm:$0x1] }
 0x295   : > { %v10382_v1 = vpop.f32.mrb[115].mxu0 }
 0x296   : > { %v4468_v3 = vadd.f32 %v10380_v61, %v13833_v36  ;;  %v10383_v39 = vadd.f32 %v10382_v1, %v10381_v44  ;;  %v443_v36 = vsel %vm11918_vm3, 0, %v442_v43  ;;  %v497_v61 = vsel %vm11923_vm4, 0, %v496_v59  ;;  %v493_v44 = vld [vmem:[#allocation3 + $0xa4] sm:$0x1] }
 0x297   : > { %v10490_v37 = vpop.f32.mrb[112].mxu1  ;;  %444 = vst [vmem:[#allocation3 + $0xa8] sm:$0x1] %v443_v36  ;;  %498 = vst [vmem:[#allocation3 + $0xb0] sm:$0x1] %v497_v61  ;;  %v503_v59 = vsel %vm11923_vm4, 0, %v502_v7 }
 0x298   : > { %v4471_v56 = vadd.f32 %v10383_v39, %v13839_v5  ;;  %v10491_v8 = vpop.f32.mrb[113].mxu1  ;;  %v448_v36 = vld [vmem:[#allocation3 + $0xc0] sm:$0x1]  ;;  %504 = vst [vmem:[#allocation3 + $0xc8] sm:$0x1] %v503_v59 }
 0x299   : > { %v10492_v24 = vadd.f32 %v10491_v8, %v10490_v37  ;;  %v10493_v49 = vpop.f32.mrb[114].mxu1 }
 0x29a   : > { %v10494_v14 = vpop.f32.mrb[115].mxu1 }
 0x29b   : > { %v10495_v60 = vadd.f32 %v10494_v14, %v10493_v49  ;;  %v14092_v15 = vadd.f32 %v10492_v24, %v4468_v3  ;;  %v494_v3 = vsel %vm11923_vm4, 0, %v493_v44 }
 0x29c   : > { %495 = vst [vmem:[#allocation3 + $0xa4] sm:$0x1] %v494_v3 }
 0x29d   : > { %v10384_v25 = vpop.f32.mrb[116].mxu0  ;;  %v14096_v31 = vadd.f32 %v10495_v60, %v4471_v56 }
 0x29e   : > { %v10385_v35 = vpop.f32.mrb[117].mxu0 }
 0x29f   : > { %v10386_v57 = vadd.f32 %v10385_v35, %v10384_v25  ;;  %v10387_v58 = vpop.f32.mrb[118].mxu0 }
 0x2a0   : > { %v10388_v5 = vpop.f32.mrb[119].mxu0 }
 0x2a1   : > { %v4476_v54 = vadd.f32 %v10386_v57, %v13895_v17  ;;  %v10389_v0 = vadd.f32 %v10388_v5, %v10387_v58  ;;  %v449_v5 = vsel %vm11918_vm3, 0, %v448_v36 }
 0x2a2   : > { %v10496_v39 = vpop.f32.mrb[116].mxu1  ;;  %450 = vst [vmem:[#allocation3 + $0xc0] sm:$0x1] %v449_v5 }
 0x2a3   : > { %v4479_v1 = vadd.f32 %v10389_v0, %v13914_v21  ;;  %v10497_v17 = vpop.f32.mrb[117].mxu1  ;;  %v445_v0 = vld [vmem:[#allocation3 + $0xb4] sm:$0x1] }
 0x2a4   : > { %v10498_v56 = vadd.f32 %v10497_v17, %v10496_v39  ;;  %v10499_v37 = vpop.f32.mrb[118].mxu1 }
 0x2a5   : > { %v10500_v8 = vpop.f32.mrb[119].mxu1 }
 0x2a6   : > { %v10501_v24 = vadd.f32 %v10500_v8, %v10499_v37  ;;  %v14106_v14 = vadd.f32 %v10498_v56, %v4476_v54  ;;  %v446_v54 = vsel %vm11918_vm3, 0, %v445_v0 }
 0x2a7   : > { %v10390_v49 = vpop.f32.mrb[120].mxu0  ;;  %447 = vst [vmem:[#allocation3 + $0xb4] sm:$0x1] %v446_v54  ;;  %v11346_v54 = vld [vmem:[#allocation9 + $0x110] sm:$0xff]  }
 0x2a8   : > { %v10391_v60 = vpop.f32.mrb[121].mxu0  ;;  %v14108_v63 = vadd.f32 %v10501_v24, %v4479_v1 }
 0x2a9   : > { %v10392_v25 = vadd.f32 %v10391_v60, %v10390_v49  ;;  %v10393_v35 = vpop.f32.mrb[122].mxu0 }
 0x2aa   : > { %v10394_v21 = vpop.f32.mrb[123].mxu0 }
 0x2ab   : > { %v4484_v43 = vadd.f32 %v10392_v25, %v13925_v11  ;;  %v10395_v57 = vadd.f32 %v10394_v21, %v10393_v35  ;;  %v500_v11 = vsel %vm11923_vm4, 0, %v499_v51 }
 0x2ac   : > { %501 = vst [vmem:[#allocation3 + $0xbc] sm:$0x1] %v500_v11 }
 0x2ad   : > { %v4487_v58 = vadd.f32 %v10395_v57, %v13934_v45  ;;  %v11345_v45 = vld [vmem:[#allocation9 + $0x150] sm:$0xff]  }
 0x2ae   : > { %10766 = vmatprep.subr.bf16.mxu1 %v11345_v45 }
 0x2af   : > { %10767 = vmatpush3.bf16.msra.mxu1 %v11346_v54 }
 0x2ba   : > { %v10396_v61 = vpop.f32.mrb[124].mxu0 }
 0x2bb   : > { %v10502_v44 = vpop.f32.mrb[120].mxu1  ;;  %v10397_v1 = vpop.f32.mrb[125].mxu0 }
 0x2bc   : > { %v10503_v3 = vpop.f32.mrb[121].mxu1  ;;  %v10398_v39 = vadd.f32 %v10397_v1, %v10396_v61  ;;  %v10399_v17 = vpop.f32.mrb[126].mxu0 }
 0x2bd   : > { %v10504_v56 = vadd.f32 %v10503_v3, %v10502_v44  ;;  %v10505_v37 = vpop.f32.mrb[122].mxu1  ;;  %v10400_v8 = vpop.f32.mrb[127].mxu0 }
 0x2be   : > { %v10506_v24 = vpop.f32.mrb[123].mxu1  ;;  %v4492_v49 = vadd.f32 %v10398_v39, %v13938_v6  ;;  %v10401_v60 = vadd.f32 %v10400_v8, %v10399_v17 }
 0x2bf   : > { %v10507_v25 = vadd.f32 %v10506_v24, %v10505_v37  ;;  %v14121_v35 = vadd.f32 %v10504_v56, %v4484_v43 }
 0x2c0   : > { %v4495_v21 = vadd.f32 %v10401_v60, %v13940_v26 }
 0x2c1   : > { %16451 = vst [vmem:[#allocation26_spill] sm:$0xff] %v14121_v35  ;;  %v14124_v57 = vadd.f32 %v10507_v25, %v4487_v58 }
 0x2c2   : > { %v11028_v36 = vpop.f32.mrb[128].mxu0 }
 0x2c3   : > { %16452 = vst [vmem:[#allocation36_spill] sm:$0xff] %v14124_v57  ;;  %v10508_v5 = vpop.f32.mrb[124].mxu1  ;;  %v4702_v0 = vadd.f32 %v11028_v36, %v13950_v33  ;;  %v4693_v7 = vpop.f32.mrb[129].mxu0 }
 0x2c4   : > { %v10509_v59 = vpop.f32.mrb[125].mxu1  ;;  %v4694_v51 = vadd.f32 %v4693_v7, %v13944_v27  ;;  %v11029_v11 = vpop.f32.mrb[130].mxu0  ;;  %v5276_v7 = vld [vmem:[#allocation3 + $0x18] sm:$0xf] }
 0x2c5   : > { %v10510_v45 = vadd.f32 %v10509_v59, %v10508_v5  ;;  %v10511_v6 = vpop.f32.mrb[126].mxu1  ;;  %v4822_v61 = vmax.f32 %v4702_v0, 0.0  ;;  %v4705_v43 = vadd.f32 %v11029_v11, %v13952_v41  ;;  %v4696_v44 = vpop.f32.mrb[131].mxu0 }
 0x2c6   : > { %v10512_v26 = vpop.f32.mrb[127].mxu1  ;;  %v4820_v58 = vmax.f32 %v4694_v51, 0.0  ;;  %v4697_v1 = vadd.f32 %v4696_v44, %v13946_v30 }
 0x2c7   : > { %v10513_v3 = vadd.f32 %v10512_v26, %v10511_v6  ;;  %v10035_v39 = vpack.c.bf16 %v4822_v61, %v4822_v61  ;;  %v4823_v33 = vmax.f32 %v4705_v43, 0.0  ;;  %v14130_v17 = vadd.f32 %v10510_v45, %v4492_v49  ;;  %v5269_v26 = vld [vmem:[#allocation3 + $0xc] sm:$0xf] }
 0x2c8   : > { %v10033_v56 = vpack.c.bf16 %v4820_v58, %v4820_v58  ;;  %v4821_v37 = vmax.f32 %v4697_v1, 0.0 }
 0x2c9   : > { %v4966_v27 = vshrl.u32 %v10035_v39, 16  ;;  %v10036_v8 = vpack.c.bf16 %v4823_v33, %v4823_v33  ;;  %v14132_v24 = vadd.f32 %v10513_v3, %v4495_v21  ;;  %v4969_v60 = vshll.u32 %v10035_v39, 16  ;;  %v11351_v21 = vld [vmem:[#allocation9 + $0x158] sm:$0xff]  }
 0x2ca   : > { %v4949_v25 = vshrl.u32 %v10033_v56, 16  ;;  %v4952_v41 = vshll.u32 %v10033_v56, 16  ;;  %v10034_v36 = vpack.c.bf16 %v4821_v37, %v4821_v37  ;;  %v11032_v5 = vpop.f32.mrb[132].mxu0  ;;  %v5280_v56 = vld [vmem:[#allocation3 + $0x20] sm:$0x1]  ;;  %10768 = vmatprep.subr.bf16.mxu1 %v11351_v21 }
 0x2cb   : > { %16453 = vst [vmem:[#allocation30_spill] sm:$0xff] %v14132_v24  ;;  %v4968_v0 = vrot.slane %v4966_v27, 7  ;;  %v4974_v54 = vshrl.u32 %v10036_v8, 16  ;;  %v4977_v30 = vshll.u32 %v10036_v8, 16  ;;  %v4718_v59 = vadd.f32 %v11032_v5, %v13964_v32  ;;  %v4709_v51 = vpop.f32.mrb[133].mxu0 }
 0x2cc   : > { %v4951_v49 = vrot.slane %v4949_v25, 7  ;;  %v4957_v11 = vshrl.u32 %v10034_v36, 16  ;;  %v4960_v45 = vshll.u32 %v10034_v36, 16  ;;  %v4710_v6 = vadd.f32 %v4709_v51, %v13956_v22  ;;  %v11033_v61 = vpop.f32.mrb[134].mxu0  ;;  %v5273_v22 = vld [vmem:[#allocation3 + $0x14] sm:$0x1] }
 0x2cd   : > { %v4971_v43 = vor.u32 %v4969_v60, %v4968_v0  ;;  %v4972_v44 = vrot.slane %v4968_v0, 4  ;;  %v4976_v58 = vrot.slane %v4974_v54, 7  ;;  %v4826_v1 = vmax.f32 %v4718_v59, 0.0  ;;  %v4712_v3 = vpop.f32.mrb[135].mxu0 }
 0x2ce   : > { %v4954_v39 = vor.u32 %v4952_v41, %v4951_v49  ;;  %v4955_v33 = vrot.slane %v4951_v49, 4  ;;  %v4959_v37 = vrot.slane %v4957_v11, 7  ;;  %v4824_v27 = vmax.f32 %v4710_v6, 0.0 }
 0x2cf   : > { %v5277_v8 = vsel %vm11975_vm14, %v4971_v43, %v5276_v7  ;;  %v4979_v25 = vor.u32 %v4977_v30, %v4976_v58  ;;  %v4981_v36 = vrot.slane %v4976_v58, 4  ;;  %v10039_v5 = vpack.c.bf16 %v4826_v1, %v4826_v1  ;;  %v11352_v43 = vld [vmem:[#allocation9 + $0x118] sm:$0xff]  }
 0x2d0   : > { %5278 = vst [vmem:[#allocation3 + $0x18] sm:$0xf] %v5277_v8  ;;  %v5270_v60 = vsel %vm11975_vm14, %v4954_v39, %v5269_v26  ;;  %v4962_v0 = vor.u32 %v4960_v45, %v4959_v37  ;;  %v4964_v54 = vrot.slane %v4959_v37, 4  ;;  %v10037_v59 = vpack.c.bf16 %v4824_v27, %v4824_v27  ;;  %10769 = vmatpush3.bf16.msra.mxu1 %v11352_v43  ;;  %v5294_v43 = vld [vmem:[#allocation3 + $0x38] sm:$0x1] }
 0x2d1   : > { %5271 = vst [vmem:[#allocation3 + $0xc] sm:$0xf] %v5270_v60  ;;  %v4980_v51 = vsel %vm11968_vm13, %v4972_v44, %v4979_v25  ;;  %v5281_v49 = vsel %vm11918_vm3, %v4981_v36, %v5280_v56  ;;  %v5000_v11 = vshrl.u32 %v10039_v5, 16  ;;  %v5003_v6 = vshll.u32 %v10039_v5, 16  ;;  %v5290_v56 = vld [vmem:[#allocation3 + $0x30] sm:$0xf] }
 0x2d2   : > { %5279 = vst [vmem:[#allocation3 + $0x1c] sm:$0xf] %v4980_v51  ;;  %5282 = vst [vmem:[#allocation3 + $0x20] sm:$0x1] %v5281_v49  ;;  %v4963_v7 = vsel %vm11968_vm13, %v4955_v33, %v4962_v0  ;;  %v5274_v30 = vsel %vm11918_vm3, %v4964_v54, %v5273_v22  ;;  %v4983_v45 = vshrl.u32 %v10037_v59, 16  ;;  %v11036_v21 = vpop.f32.mrb[136].mxu0  ;;  %v4721_v44 = vadd.f32 %v11033_v61, %v13966_v9 }
 0x2d3   : > { %5272 = vst [vmem:[#allocation3 + $0x10] sm:$0xf] %v4963_v7  ;;  %5275 = vst [vmem:[#allocation3 + $0x14] sm:$0x1] %v5274_v30  ;;  %v14148_v26 = vrot.slane %v5000_v11, 7  ;;  %v4713_v58 = vadd.f32 %v4712_v3, %v13958_v20  ;;  %v4734_v1 = vadd.f32 %v11036_v21, %v13988_v16  ;;  %v4725_v39 = vpop.f32.mrb[137].mxu0 }
 0x2d4   : > { %v14153_v33 = vrot.slane %v4983_v45, 7  ;;  %v4986_v37 = vshll.u32 %v10037_v59, 16  ;;  %v4726_v27 = vadd.f32 %v4725_v39, %v13976_v10  ;;  %v11037_v8 = vpop.f32.mrb[138].mxu0  ;;  %v5283_v22 = vld [vmem:[#allocation3 + $0x24] sm:$0xf]  ;;  %v4827_v5 = vmax.f32 %v4721_v44, 0.0 }
 0x2d5   : > { %v5005_v25 = vor.u32 %v5003_v6, %v14148_v26  ;;  %v5006_v36 = vrot.slane %v14148_v26, 4  ;;  %v4825_v9 = vmax.f32 %v4713_v58, 0.0  ;;  %v4728_v61 = vpop.f32.mrb[139].mxu0  ;;  %v4830_v3 = vmax.f32 %v4734_v1, 0.0  ;;  %v5287_v26 = vld [vmem:[#allocation3 + $0x2c] sm:$0x1] }
 0x2d6   : > { %v4988_v20 = vor.u32 %v4986_v37, %v14153_v33  ;;  %v4989_v16 = vrot.slane %v14153_v33, 4  ;;  %v4828_v60 = vmax.f32 %v4726_v27, 0.0  ;;  %v10040_v10 = vpack.c.bf16 %v4827_v5, %v4827_v5 }
 0x2d7   : > { %v5291_v0 = vsel %vm11975_vm14, %v5005_v25, %v5290_v56  ;;  %v10038_v54 = vpack.c.bf16 %v4825_v9, %v4825_v9  ;;  %v4737_v59 = vadd.f32 %v11037_v8, %v13990_v38  ;;  %v10043_v49 = vpack.c.bf16 %v4830_v3, %v4830_v3  ;;  %v11355_v56 = vld [vmem:[#allocation9 + $0x1c0] sm:$0xff]  }
 0x2d8   : > { %5292 = vst [vmem:[#allocation3 + $0x30] sm:$0xf] %v5291_v0  ;;  %v5284_v51 = vsel %vm11975_vm14, %v4988_v20, %v5283_v22  ;;  %v10041_v11 = vpack.c.bf16 %v4828_v60, %v4828_v60  ;;  %v4729_v7 = vadd.f32 %v4728_v61, %v13980_v42  ;;  %v5008_v30 = vshrl.u32 %v10040_v10, 16  ;;  %v5304_v42 = vld [vmem:[#allocation3 + $0x48] sm:$0xf]  ;;  %10874 = vmatprep.subr.bf16.mxu0 %v11355_v56  ;;  %v11359_v3 = vld [vmem:[#allocation9 + $0x160] sm:$0xff]  }
 0x2d9   : > { %5285 = vst [vmem:[#allocation3 + $0x24] sm:$0xf] %v5284_v51  ;;  %v5011_v6 = vshll.u32 %v10040_v10, 16  ;;  %v4991_v45 = vshrl.u32 %v10038_v54, 16  ;;  %v4994_v21 = vshll.u32 %v10038_v54, 16  ;;  %v5034_v44 = vshrl.u32 %v10043_v49, 16  ;;  %10770 = vmatprep.subr.bf16.mxu1 %v11359_v3 }
 0x2da   : > { %v5037_v58 = vshll.u32 %v10043_v49, 16  ;;  %v5017_v1 = vshrl.u32 %v10041_v11, 16  ;;  %v5020_v39 = vshll.u32 %v10041_v11, 16  ;;  %v11040_v38 = vpop.f32.mrb[140].mxu0  ;;  %v5010_v33 = vrot.slane %v5008_v30, 7 }
 0x2db   : > { %v4993_v37 = vrot.slane %v4991_v45, 7  ;;  %v4831_v27 = vmax.f32 %v4737_v59, 0.0  ;;  %v4829_v8 = vmax.f32 %v4729_v7, 0.0  ;;  %v4741_v25 = vpop.f32.mrb[141].mxu0  ;;  %v14166_v22 = vrot.slane %v5034_v44, 7 }
 0x2dc   : > { %v14168_v5 = vrot.slane %v5017_v1, 7  ;;  %v4750_v9 = vadd.f32 %v11040_v38, %v14014_v19  ;;  %v4742_v61 = vadd.f32 %v4741_v25, %v14000_v13  ;;  %v11041_v20 = vpop.f32.mrb[142].mxu0  ;;  %v5013_v60 = vor.u32 %v5011_v6, %v5010_v33  ;;  %v5297_v51 = vld [vmem:[#allocation3 + $0x3c] sm:$0xf] }
 0x2dd   : > { %v5015_v0 = vrot.slane %v5010_v33, 4  ;;  %v4996_v10 = vor.u32 %v4994_v21, %v4993_v37  ;;  %v4998_v54 = vrot.slane %v4993_v37, 4  ;;  %v4744_v59 = vpop.f32.mrb[143].mxu0  ;;  %v5039_v49 = vor.u32 %v5037_v58, %v14166_v22  ;;  %v11360_v58 = vld [vmem:[#allocation9 + $0x120] sm:$0xff]   ;;  %v5308_v37 = vld [vmem:[#allocation3 + $0x50] sm:$0x1] }
 0x2de   : > { %v5022_v11 = vor.u32 %v5020_v39, %v14168_v5  ;;  %v5014_v7 = vsel %vm11968_vm13, %v5006_v36, %v5013_v60  ;;  %v10044_v36 = vpack.c.bf16 %v4831_v27, %v4831_v27  ;;  %v10042_v21 = vpack.c.bf16 %v4829_v8, %v4829_v8  ;;  %v5301_v27 = vld [vmem:[#allocation3 + $0x44] sm:$0x1]  ;;  %10771 = vmatpush3.bf16.msra.mxu1 %v11360_v58 }
 0x2df   : > { %v5295_v13 = vsel %vm11918_vm3, %v5015_v0, %v5294_v43  ;;  %v4997_v19 = vsel %vm11968_vm13, %v4989_v16, %v4996_v10  ;;  %v5288_v30 = vsel %vm11918_vm3, %v4998_v54, %v5287_v26  ;;  %5293 = vst [vmem:[#allocation3 + $0x34] sm:$0xf] %v5014_v7  ;;  %v5305_v6 = vsel %vm11975_vm14, %v5039_v49, %v5304_v42  ;;  %v5989_v7 = vld [vmem:[#allocation3 + $0xc] sm:$0xf] }
 0x2e0   : > { %5296 = vst [vmem:[#allocation3 + $0x38] sm:$0x1] %v5295_v13  ;;  %5286 = vst [vmem:[#allocation3 + $0x28] sm:$0xf] %v4997_v19  ;;  %v5298_v45 = vsel %vm11975_vm14, %v5022_v11, %v5297_v51  ;;  %v4834_v43 = vmax.f32 %v4750_v9, 0.0  ;;  %v4832_v44 = vmax.f32 %v4742_v61, 0.0  ;;  %v4753_v16 = vadd.f32 %v11041_v20, %v14019_v34 }
 0x2e1   : > { %5289 = vst [vmem:[#allocation3 + $0x2c] sm:$0x1] %v5288_v30  ;;  %5306 = vst [vmem:[#allocation3 + $0x48] sm:$0xf] %v5305_v6  ;;  %v4745_v26 = vadd.f32 %v4744_v59, %v14004_v40  ;;  %v5040_v1 = vrot.slane %v14166_v22, 4  ;;  %v5023_v39 = vrot.slane %v14168_v5, 4 }
 0x2e2   : > { %5299 = vst [vmem:[#allocation3 + $0x3c] sm:$0xf] %v5298_v45  ;;  %v5042_v38 = vshrl.u32 %v10044_v36, 16  ;;  %v5025_v56 = vshrl.u32 %v10042_v21, 16  ;;  %v14190_v33 = vpop.f32.mrb[144].mxu0  ;;  %v10047_v8 = vpack.c.bf16 %v4834_v43, %v4834_v43  ;;  %v10045_v25 = vpack.c.bf16 %v4832_v44, %v4832_v44 }
 0x2e3   : > { %v4835_v42 = vmax.f32 %v4753_v16, 0.0  ;;  %v4833_v9 = vmax.f32 %v4745_v26, 0.0  ;;  %v14192_v61 = vpop.f32.mrb[145].mxu0  ;;  %v5045_v40 = vshll.u32 %v10044_v36, 16  ;;  %v5028_v3 = vshll.u32 %v10042_v21, 16 }
 0x2e4   : > { %v5044_v34 = vrot.slane %v5042_v38, 7  ;;  %v5027_v20 = vrot.slane %v5025_v56, 7  ;;  %v14194_v22 = vpop.f32.mrb[146].mxu0  ;;  %v5068_v5 = vshrl.u32 %v10047_v8, 16  ;;  %v5071_v60 = vshll.u32 %v10047_v8, 16 }
 0x2e5   : > { %v5051_v0 = vshrl.u32 %v10045_v25, 16  ;;  %v5054_v10 = vshll.u32 %v10045_v25, 16  ;;  %v14196_v54 = vpop.f32.mrb[147].mxu0  ;;  %v10048_v30 = vpack.c.bf16 %v4835_v42, %v4835_v42  ;;  %v10046_v6 = vpack.c.bf16 %v4833_v9, %v4833_v9  ;;  %v5318_v44 = vld [vmem:[#allocation3 + $0x60] sm:$0xf] }
 0x2e6   : > { %v5047_v51 = vor.u32 %v5045_v40, %v5044_v34  ;;  %v5049_v59 = vrot.slane %v5044_v34, 4  ;;  %v5030_v49 = vor.u32 %v5028_v3, %v5027_v20  ;;  %v5032_v11 = vrot.slane %v5027_v20, 4  ;;  %v5311_v16 = vld [vmem:[#allocation3 + $0x54] sm:$0xf]  ;;  %v14206_v25 = vld [vmem:[#allocation3 + $0x10] sm:$0xf] }
 0x2e7   : > { %v5070_v13 = vrot.slane %v5068_v5, 7  ;;  %v5053_v19 = vrot.slane %v5051_v0, 7  ;;  %v6038_v38 = vshrl.u32 %v5989_v7, 16  ;;  %v6041_v56 = vshll.u32 %v5989_v7, 16  ;;  %v5322_v9 = vld [vmem:[#allocation3 + $0x68] sm:$0x1] }
 0x2e8   : > { %v5048_v45 = vsel %vm11968_vm13, %v5040_v1, %v5047_v51  ;;  %v5309_v36 = vsel %vm11918_vm3, %v5049_v59, %v5308_v37  ;;  %v5031_v21 = vsel %vm11968_vm13, %v5023_v39, %v5030_v49  ;;  %v5302_v43 = vsel %vm11918_vm3, %v5032_v11, %v5301_v27  ;;  %v5315_v34 = vld [vmem:[#allocation3 + $0x5c] sm:$0x1]  ;;  %v14216_v0 = vld [vmem:[#allocation3 + $0x18] sm:$0xf]  ;;  %v11367_v51 = vld [vmem:[#allocation9 + $0x168] sm:$0xff]  }
 0x2e9   : > { %5307 = vst [vmem:[#allocation3 + $0x4c] sm:$0xf] %v5048_v45  ;;  %5310 = vst [vmem:[#allocation3 + $0x50] sm:$0x1] %v5309_v36  ;;  %v5073_v26 = vor.u32 %v5071_v60, %v5070_v13  ;;  %v5056_v58 = vor.u32 %v5054_v10, %v5053_v19  ;;  %v5076_v1 = vshrl.u32 %v10048_v30, 16  ;;  %v5059_v8 = vshrl.u32 %v10046_v6, 16  ;;  %10772 = vmatprep.subr.bf16.mxu1 %v11367_v51 }
 0x2ea   : > { %5300 = vst [vmem:[#allocation3 + $0x40] sm:$0xf] %v5031_v21  ;;  %5303 = vst [vmem:[#allocation3 + $0x44] sm:$0x1] %v5302_v43  ;;  %v14208_v37 = vpop.f32.mrb[148].mxu0  ;;  %v5074_v39 = vrot.slane %v5070_v13, 4  ;;  %v9858_v13 = vcombine.low %v5989_v7, %v14206_v25  ;;  %v4766_v2 = vadd.f32 %v14190_v33, %v14054_v52 }
 0x2eb   : > { %v5319_v27 = vsel %vm11975_vm14, %v5073_v26, %v5318_v44  ;;  %v5312_v42 = vsel %vm11975_vm14, %v5056_v58, %v5311_v16  ;;  %v14214_v40 = vpop.f32.mrb[149].mxu0  ;;  %v5078_v20 = vrot.slane %v5076_v1, 7  ;;  %v5079_v3 = vshll.u32 %v10048_v30, 16  ;;  %v11356_v36 = vld [vmem:[#allocation9 + $0x180] sm:$0xff]   ;;  %v11363_v16 = vld [vmem:[#allocation9 + $0x1c8] sm:$0xff]  }
 0x2ec   : > { %5320 = vst [vmem:[#allocation3 + $0x60] sm:$0xf] %v5319_v27  ;;  %5313 = vst [vmem:[#allocation3 + $0x54] sm:$0xf] %v5312_v42  ;;  %v5061_v5 = vrot.slane %v5059_v8, 7  ;;  %v5062_v60 = vshll.u32 %v10046_v6, 16  ;;  %8606 = vmatprep.mubr.bf16.mxu0 %v9858_v13 }
 0x2ed   : > { %v14218_v10 = vpop.f32.mrb[150].mxu0  ;;  %v5057_v59 = vrot.slane %v5053_v19, 4  ;;  %v14220_v49 = vrot.slane %v6038_v38, 4  ;;  %v14222_v11 = vrot.slane %v6041_v56, 5  ;;  %v5081_v21 = vor.u32 %v5079_v3, %v5078_v20  ;;  %v14227_v6 = vld [vmem:[#allocation3 + $0x1c] sm:$0xf]  ;;  %8607 = vmatmul.mubr.bf16.vlgmr.msra.gmra.mrb[160].mxu0 %v9842_v50 }
 0x2ee   : > { %v14225_v45 = vpop.f32.mrb[151].mxu0  ;;  %v5083_v43 = vrot.slane %v5078_v20, 4  ;;  %v5064_v30 = vor.u32 %v5062_v60, %v5061_v5  ;;  %v5066_v44 = vrot.slane %v5061_v5, 4  ;;  %v6047_v26 = vshll.u32 %v14206_v25, 16  ;;  %v14241_v56 = vld [vmem:[#allocation3 + $0xc] sm:$0xf]  ;;  %10875 = vmatpush3.bf16.msra.mxu0 %v11356_v36 }
 0x2ef   : > { %v5082_v19 = vsel %vm11968_vm13, %v5074_v39, %v5081_v21  ;;  %v14243_v1 = vld [vmem:[#allocation3 + $0x10] sm:$0xf]  ;;  %v6051_v39 = vshrl.u32 %v14206_v25, 16  ;;  %v9859_v42 = vcombine.low %v14216_v0, %v14227_v6  ;;  %v4758_v50 = vadd.f32 %v14192_v61, %v14038_v48  ;;  %v14259_v25 = vld [vmem:[#allocation3 + $0x14] sm:$0x1]  ;;  %10876 = vmatprep.subr.bf16.mxu0 %v11363_v16  ;;  %v11368_v3 = vld [vmem:[#allocation9 + $0x128] sm:$0xff]  }
 0x2f0   : > { %v5323_v7 = vsel %vm11918_vm3, %v5083_v43, %v5322_v9  ;;  %v5065_v58 = vsel %vm11968_vm13, %v5057_v59, %v5064_v30  ;;  %v5316_v38 = vsel %vm11918_vm3, %v5066_v44, %v5315_v34  ;;  %5321 = vst [vmem:[#allocation3 + $0x64] sm:$0xf] %v5082_v19  ;;  %v4769_v9 = vadd.f32 %v14194_v22, %v14062_v47  ;;  %v14268_v61 = vld [vmem:[#allocation3 + $0xc] sm:$0xe] }
 0x2f1   : > { %5324 = vst [vmem:[#allocation3 + $0x68] sm:$0x1] %v5323_v7  ;;  %5314 = vst [vmem:[#allocation3 + $0x58] sm:$0xf] %v5065_v58  ;;  %v4761_v34 = vadd.f32 %v14196_v54, %v14040_v23  ;;  %v14263_v5 = vrot.slane %v6047_v26, 5  ;;  %8614 = vmatprep.mubr.bf16.mxu0 %v9859_v42  ;;  %v5454_v52 = vshrl.u32 %v14241_v56, 16  ;;  %10773 = vmatpush3.bf16.msra.mxu1 %v11368_v3 }
 0x2f2   : > { %5317 = vst [vmem:[#allocation3 + $0x5c] sm:$0x1] %v5316_v38  ;;  %v14261_v20 = vpop.f32.mrb[152].mxu0  ;;  %v5457_v33 = vshll.u32 %v14241_v56, 16  ;;  %v5463_v48 = vshll.u32 %v14243_v1, 16  ;;  %v4838_v23 = vmax.f32 %v4766_v2, 0.0  ;;  %10877 = vmatpush3.bf16.msra.mxu0 %v11364_v53 }
 0x2f3   : > { %v14270_v47 = vpop.f32.mrb[153].mxu0  ;;  %v4836_v22 = vmax.f32 %v4758_v50, 0.0  ;;  %v4839_v54 = vmax.f32 %v4769_v9, 0.0  ;;  %v4837_v60 = vmax.f32 %v4761_v34, 0.0  ;;  %v5456_v59 = vrot.slane %v5454_v52, 4 }
 0x2f4   : > { %v14272_v51 = vpop.f32.mrb[154].mxu0  ;;  %v5459_v13 = vrot.slane %v5457_v33, 5  ;;  %v14274_v36 = vrot.slane %v5463_v48, 5  ;;  %v5467_v21 = vshrl.u32 %v14243_v1, 16  ;;  %v10051_v30 = vpack.c.bf16 %v4838_v23, %v4838_v23  ;;  %v5332_v34 = vld [vmem:[#allocation3 + $0x78] sm:$0xf] }
 0x2f5   : > { %v14277_v43 = vpop.f32.mrb[155].mxu0  ;;  %v10049_v44 = vpack.c.bf16 %v4836_v22, %v4836_v22  ;;  %v10052_v16 = vpack.c.bf16 %v4839_v54, %v4839_v54  ;;  %v10050_v26 = vpack.c.bf16 %v4837_v60, %v4837_v60  ;;  %v14279_v19 = vrot.slane %v6051_v39, 4  ;;  %v5325_v52 = vld [vmem:[#allocation3 + $0x6c] sm:$0xf]  ;;  %v5336_v54 = vld [vmem:[#allocation3 + $0x80] sm:$0x1] }
 0x2f6   : > { %v5460_v7 = vor.u32 %v5459_v13, %v5456_v59  ;;  %v5469_v58 = vrot.slane %v5467_v21, 4  ;;  %v5473_v38 = vshll.u32 %v14259_v25, 16  ;;  %v5102_v42 = vshrl.u32 %v10051_v30, 16 }
 0x2f7   : > { %v5105_v2 = vshll.u32 %v10051_v30, 16  ;;  %v5085_v50 = vshrl.u32 %v10049_v44, 16  ;;  %v9763_v9 = vrot.slane %v14268_v61, 9  ;;  %v5088_v3 = vshll.u32 %v10049_v44, 16  ;;  %v11371_v44 = vld [vmem:[#allocation9 + $0x1d0] sm:$0xff]  }
 0x2f8   : > { %v5110_v33 = vshrl.u32 %v10052_v16, 16  ;;  %v5113_v53 = vshll.u32 %v10052_v16, 16  ;;  %v5093_v48 = vshrl.u32 %v10050_v26, 16  ;;  %v5104_v23 = vrot.slane %v5102_v42, 7  ;;  %v5329_v42 = vld [vmem:[#allocation3 + $0x74] sm:$0x1]  ;;  %10878 = vmatprep.subr.bf16.mxu0 %v11371_v44 }
 0x2f9   : > { %v5087_v22 = vrot.slane %v5085_v50, 7  ;;  %v5096_v39 = vshll.u32 %v10050_v26, 16  ;;  %v5470_v60 = vor.u32 %v5469_v58, %v14274_v36  ;;  %v5461_v30 = vrot.slane %v5460_v7, 4  ;;  %v11372_v26 = vld [vmem:[#allocation9 + $0x190] sm:$0xff]  }
 0x2fa   : > { %v14284_v59 = vpop.f32.mrb[156].mxu0  ;;  %v5112_v13 = vrot.slane %v5110_v33, 7  ;;  %v5095_v21 = vrot.slane %v5093_v48, 7  ;;  %v5886_v27 = vrot.slane %v14243_v1, 5  ;;  %v5107_v8 = vor.u32 %v5105_v2, %v5104_v23  ;;  %v11375_v7 = vld [vmem:[#allocation9 + $0x170] sm:$0xff]   ;;  %10879 = vmatpush3.bf16.msra.mxu0 %v11372_v26 }
 0x2fb   : > { %16456 = vst [vmem:[#allocation31_spill] sm:$0xff] %v14284_v59  ;;  %v14287_v61 = vpop.f32.mrb[157].mxu0  ;;  %v5108_v55 = vrot.slane %v5104_v23, 4  ;;  %v5090_v16 = vor.u32 %v5088_v3, %v5087_v22  ;;  %v5091_v57 = vrot.slane %v5087_v22, 4  ;;  %v5471_v3 = vrot.slane %v5470_v60, 4  ;;  %10774 = vmatprep.subr.bf16.mxu1 %v11375_v7 }
 0x2fc   : > { %v14289_v50 = vpop.f32.mrb[158].mxu0  ;;  %v5115_v24 = vor.u32 %v5113_v53, %v5112_v13  ;;  %v5117_v58 = vrot.slane %v5112_v13, 4  ;;  %v5098_v35 = vor.u32 %v5096_v39, %v5095_v21  ;;  %v5100_v59 = vrot.slane %v5095_v21, 4  ;;  %v14319_v13 = vld [vmem:[#allocation3 + $0x28] sm:$0xf] }
 0x2fd   : > { %v14291_v33 = vpop.f32.mrb[159].mxu0  ;;  %v5333_v48 = vsel %vm11975_vm14, %v5107_v8, %v5332_v34  ;;  %v5326_v2 = vsel %vm11975_vm14, %v5090_v16, %v5325_v52  ;;  %v5475_v23 = vrot.slane %v5473_v38, 5  ;;  %v14305_v34 = vld [vmem:[#allocation3 + $0x18] sm:$0xf]  ;;  %v5888_v38 = vrot.slane %v5886_v27, 4 }
 0x2fe   : > { %5334 = vst [vmem:[#allocation3 + $0x78] sm:$0xf] %v5333_v48  ;;  %5327 = vst [vmem:[#allocation3 + $0x6c] sm:$0xf] %v5326_v2  ;;  %v5116_v53 = vsel %vm11968_vm13, %v5108_v55, %v5115_v24  ;;  %v5337_v22 = vsel %vm11918_vm3, %v5117_v58, %v5336_v54  ;;  %v5099_v39 = vsel %vm11968_vm13, %v5091_v57, %v5098_v35  ;;  %v5889_v35 = vrot.slane %v14259_v25, 5  ;;  %v11376_v57 = vld [vmem:[#allocation9 + $0x130] sm:$0xff]  }
 0x2ff   : > { %v5330_v8 = vsel %vm11918_vm3, %v5100_v59, %v5329_v42  ;;  %5335 = vst [vmem:[#allocation3 + $0x7c] sm:$0xf] %v5116_v53  ;;  %5338 = vst [vmem:[#allocation3 + $0x80] sm:$0x1] %v5337_v22  ;;  %v5466_v55 = vsel %vm11958_vm12, %v5461_v30, %v14274_v36  ;;  %v5476_v24 = vsel %vm11958_vm12, %v5471_v3, %v5475_v23  ;;  %v6065_v60 = vshll.u32 %v14216_v0, 16 }
 0x300   : > { %5328 = vst [vmem:[#allocation3 + $0x70] sm:$0xf] %v5099_v39  ;;  %5331 = vst [vmem:[#allocation3 + $0x74] sm:$0x1] %v5330_v8  ;;  %v16457_v52 = vor.u32 %v14222_v11, %v14220_v49  ;;  %v9827_v59 = vcombine.low %v5466_v55, %v5476_v24  ;;  %v14321_v21 = vld [vmem:[#allocation3 + $0x1c] sm:$0xf]  ;;  %v5887_v36 = vsel %vm11947_vm11, %v9763_v9, %v5886_v27  ;;  %10775 = vmatpush3.bf16.msra.mxu1 %v11376_v57 }
 0x301   : > { %v5890_v30 = vsel %vm11947_vm11, %v5888_v38, %v5889_v35  ;;  %v9811_v25 = vcombine.low %v14241_v56, %v14243_v1  ;;  %v5478_v49 = vshrl.u32 %v14305_v34, 16  ;;  %v6054_v11 = vor.u32 %v14279_v19, %v14263_v5  ;;  %v14336_v26 = vld [vmem:[#allocation3 + $0x24] sm:$0xf]  ;;  %v14338_v27 = vld [vmem:[#allocation3 + $0x20] sm:$0x1] }
 0x302   : > { %v14316_v54 = vrot.slane %v16457_v52, 4  ;;  %v16458_v44 = vshrl.u32 %v14216_v0, 16  ;;  %8453 = vmatprep.mubr.bf16.mxu1 %v9827_v59  ;;  %v9843_v42 = vcombine.low %v5887_v36, %v5890_v30  ;;  %v5481_v9 = vshll.u32 %v14305_v34, 16  ;;  %v5815_v53 = vld [vmem:[#allocation3 + $0x18] sm:$0xe]  ;;  %v11380_v30 = vld [vmem:[#allocation9 + $0x198] sm:$0xff]  }
 0x303   : > { %8454 = vmatmul.mubr.bf16.gmra.mrb[132].mxu1 %v9811_v25  ;;  %v9860_v56 = vcombine.low %v14336_v26, %v14319_v13  ;;  %v5480_v1 = vrot.slane %v5478_v49, 4  ;;  %v5487_v58 = vshll.u32 %v14321_v21, 16  ;;  %v5491_v7 = vshrl.u32 %v14321_v21, 16 }
 0x304   : > { %v14334_v16 = vrot.slane %v16458_v44, 4  ;;  %8615 = vmatmul.mubr.bf16.gmra.mrb[164].mxu0 %v9843_v42  ;;  %v5483_v48 = vrot.slane %v5481_v9, 5  ;;  %v4782_v2 = vadd.f32 %v14208_v37, %v14084_v18  ;;  %v4774_v3 = vadd.f32 %v14214_v40, %v14072_v28  ;;  %v11379_v40 = vld [vmem:[#allocation9 + $0x1d8] sm:$0xff]  }
 0x305   : > { %v4785_v23 = vadd.f32 %v14218_v10, %v14088_v46  ;;  %8622 = vmatprep.mubr.bf16.mxu0 %v9860_v56  ;;  %v5489_v22 = vrot.slane %v5487_v58, 5  ;;  %v5493_v39 = vrot.slane %v5491_v7, 4  ;;  %v5497_v8 = vshll.u32 %v14338_v27, 16  ;;  %10880 = vmatprep.subr.bf16.mxu0 %v11379_v40  ;;  %v5350_v40 = vld [vmem:[#allocation3 + $0x98] sm:$0x1] }
 0x306   : > { %v4777_v55 = vadd.f32 %v14225_v45, %v14074_v12  ;;  %v5484_v24 = vor.u32 %v5483_v48, %v5480_v1  ;;  %v4842_v38 = vmax.f32 %v4782_v2, 0.0  ;;  %v4840_v35 = vmax.f32 %v4774_v3, 0.0  ;;  %10881 = vmatpush3.bf16.msra.mxu0 %v11380_v30  ;;  %v11381_v1 = vld [vmem:[#allocation9 + $0x1e0] sm:$0xff]   ;;  %v11384_v3 = vld [vmem:[#allocation9 + $0x178] sm:$0xff]  }
 0x307   : > { %v4843_v57 = vmax.f32 %v4785_v23, 0.0  ;;  %v5494_v18 = vor.u32 %v5493_v39, %v5489_v22  ;;  %v9764_v52 = vrot.slane %v5815_v53, 9  ;;  %v5893_v28 = vrot.slane %v14321_v21, 5  ;;  %v5346_v39 = vld [vmem:[#allocation3 + $0x90] sm:$0xf]  ;;  %10882 = vmatprep.subr.bf16.mxu0 %v11381_v1  ;;  %10776 = vmatprep.subr.bf16.mxu1 %v11384_v3 }
 0x308   : > { %v4841_v37 = vmax.f32 %v4777_v55, 0.0  ;;  %v5485_v46 = vrot.slane %v5484_v24, 4  ;;  %v10055_v10 = vpack.c.bf16 %v4842_v38, %v4842_v38  ;;  %v10053_v59 = vpack.c.bf16 %v4840_v35, %v4840_v35  ;;  %v11385_v24 = vld [vmem:[#allocation9 + $0x1a0] sm:$0xff]   ;;  %v14375_v1 = vld [vmem:[#allocation3 + $0x24] sm:$0xf] }
 0x309   : > { %v10056_v36 = vpack.c.bf16 %v4843_v57, %v4843_v57  ;;  %v5495_v25 = vrot.slane %v5494_v18, 4  ;;  %v5499_v49 = vrot.slane %v5497_v8, 5  ;;  %v14357_v12 = vsel %vm11947_vm11, %v9764_v52, %v5893_v28  ;;  %v14381_v3 = vld [vmem:[#allocation3 + $0x30] sm:$0xf] }
 0x30a   : > { %v10054_v44 = vpack.c.bf16 %v4841_v37, %v4841_v37  ;;  %v5490_v45 = vsel %vm11958_vm12, %v5485_v46, %v5489_v22  ;;  %v5136_v42 = vshrl.u32 %v10055_v10, 16  ;;  %v5119_v9 = vshrl.u32 %v10053_v59, 16  ;;  %v5339_v22 = vld [vmem:[#allocation3 + $0x84] sm:$0xf]  ;;  %10883 = vmatpush3.bf16.msra.mxu0 %v11385_v24  ;;  %v11391_v24 = vld [vmem:[#allocation9 + $0x1b0] sm:$0xff]  }
 0x30b   : > { %v5895_v56 = vrot.slane %v5893_v28, 4  ;;  %v5500_v58 = vsel %vm11958_vm12, %v5495_v25, %v5499_v49  ;;  %v5139_v7 = vshll.u32 %v10055_v10, 16  ;;  %v5122_v48 = vshll.u32 %v10053_v59, 16  ;;  %v14366_v10 = vld [vmem:[#allocation3 + $0x34] sm:$0xf]  ;;  %v11387_v49 = vld [vmem:[#allocation9 + $0x1e8] sm:$0xff]  }
 0x30c   : > { %v5144_v2 = vshrl.u32 %v10056_v36, 16  ;;  %v9828_v23 = vcombine.low %v5490_v45, %v5500_v58  ;;  %v5138_v53 = vrot.slane %v5136_v42, 7  ;;  %v5121_v8 = vrot.slane %v5119_v9, 7  ;;  %v5343_v42 = vld [vmem:[#allocation3 + $0x8c] sm:$0x1]  ;;  %10884 = vmatprep.subr.bf16.mxu0 %v11387_v49 }
 0x30d   : > { %v5127_v55 = vshrl.u32 %v10054_v44, 16  ;;  %v5147_v35 = vshll.u32 %v10056_v36, 16  ;;  %v5896_v57 = vrot.slane %v14338_v27, 5  ;;  %v9812_v18 = vcombine.low %v14305_v34, %v14321_v21  ;;  %v11386_v27 = vld [vmem:[#allocation9 + $0x138] sm:$0xff]   ;;  %v11388_v34 = vld [vmem:[#allocation9 + $0x1a8] sm:$0xff]   ;;  %v11389_v58 = vld [vmem:[#allocation9 + $0x1f0] sm:$0xff]  }
 0x30e   : > { %v5146_v38 = vrot.slane %v5144_v2, 7  ;;  %8461 = vmatprep.mubr.bf16.mxu1 %v9828_v23  ;;  %v5141_v37 = vor.u32 %v5139_v7, %v5138_v53  ;;  %v5142_v52 = vrot.slane %v5138_v53, 4  ;;  %v5124_v28 = vor.u32 %v5122_v48, %v5121_v8  ;;  %v14383_v23 = vld [vmem:[#allocation3 + $0x28] sm:$0xf]  ;;  %10777 = vmatpush3.bf16.msra.mxu1 %v11386_v27 }
 0x30f   : > { %v5130_v46 = vshll.u32 %v10054_v44, 16  ;;  %v5129_v25 = vrot.slane %v5127_v55, 7  ;;  %v5897_v36 = vsel %vm11947_vm11, %v5895_v56, %v5896_v57  ;;  %8462 = vmatmul.mubr.bf16.gmra.mrb[136].mxu1 %v9812_v18  ;;  %v5125_v45 = vrot.slane %v5121_v8, 4  ;;  %10885 = vmatpush3.bf16.msra.mxu0 %v11388_v34  ;;  %v11392_v18 = vld [vmem:[#allocation9 + $0x1f8] sm:$0xff]  }
 0x310   : > { %v5149_v59 = vor.u32 %v5147_v35, %v5146_v38  ;;  %v5151_v30 = vrot.slane %v5146_v38, 4  ;;  %v5347_v21 = vsel %vm11975_vm14, %v5141_v37, %v5346_v39  ;;  %v5340_v44 = vsel %vm11975_vm14, %v5124_v28, %v5339_v22  ;;  %10886 = vmatprep.subr.bf16.mxu0 %v11389_v58 }
 0x311   : > { %v9844_v9 = vcombine.low %v14357_v12, %v5897_v36  ;;  %5348 = vst [vmem:[#allocation3 + $0x90] sm:$0xf] %v5347_v21  ;;  %5341 = vst [vmem:[#allocation3 + $0x84] sm:$0xf] %v5340_v44  ;;  %v5132_v48 = vor.u32 %v5130_v46, %v5129_v25  ;;  %v5134_v2 = vrot.slane %v5129_v25, 4  ;;  %v14388_v12 = vrot.slane %v6054_v11, 4 }
 0x312   : > { %v5150_v56 = vsel %vm11968_vm13, %v5142_v52, %v5149_v59  ;;  %v5351_v7 = vsel %vm11918_vm3, %v5151_v30, %v5350_v40  ;;  %v14392_v53 = vrot.slane %v6065_v60, 5  ;;  %v9861_v8 = vcombine.low %v14381_v3, %v14366_v10  ;;  %v14401_v11 = vld [vmem:[#allocation3 + $0x2c] sm:$0x1]  ;;  %v5816_v21 = vld [vmem:[#allocation3 + $0x24] sm:$0xe] }
 0x313   : > { %5349 = vst [vmem:[#allocation3 + $0x94] sm:$0xf] %v5150_v56  ;;  %5352 = vst [vmem:[#allocation3 + $0x98] sm:$0x1] %v5351_v7  ;;  %8623 = vmatmul.mubr.bf16.gmra.mrb[168].mxu0 %v9844_v9  ;;  %v5133_v55 = vsel %vm11968_vm13, %v5125_v45, %v5132_v48  ;;  %v5344_v19 = vsel %vm11918_vm3, %v5134_v2, %v5343_v42  ;;  %v5502_v0 = vshrl.u32 %v14375_v1, 16  ;;  %v5505_v60 = vshll.u32 %v14375_v1, 16 }
 0x314   : > { %v6086_v22 = vshrl.u32 %v14336_v26, 16  ;;  %v6089_v38 = vshll.u32 %v14336_v26, 16  ;;  %5342 = vst [vmem:[#allocation3 + $0x88] sm:$0xf] %v5133_v55  ;;  %5345 = vst [vmem:[#allocation3 + $0x8c] sm:$0x1] %v5344_v19  ;;  %8630 = vmatprep.mubr.bf16.mxu0 %v9861_v8  ;;  %v4798_v28 = vadd.f32 %v14261_v20, %v14106_v14  ;;  %v4790_v40 = vadd.f32 %v14270_v47, %v14092_v15 }
 0x315   : > { %v5511_v35 = vshll.u32 %v14383_v23, 16  ;;  %v5515_v57 = vshrl.u32 %v14383_v23, 16  ;;  %v5504_v37 = vrot.slane %v5502_v0, 4  ;;  %v5507_v52 = vrot.slane %v5505_v60, 5  ;;  %10887 = vmatpush3.bf16.msra.mxu0 %v11391_v24  ;;  %v11393_v45 = vld [vmem:[#allocation9 + $0x1b8] sm:$0xff]   ;;  %v11395_v60 = vld [vmem:[#allocation9 + $0x200] sm:$0xff]  }
 0x316   : > { %v5521_v30 = vshll.u32 %v14401_v11, 16  ;;  %v4801_v25 = vadd.f32 %v14272_v51, %v14108_v63  ;;  %v4846_v27 = vmax.f32 %v4798_v28, 0.0  ;;  %v4844_v49 = vmax.f32 %v4790_v40, 0.0  ;;  %10888 = vmatprep.subr.bf16.mxu0 %v11392_v18  ;;  %v5353_v28 = vld [vmem:[#allocation3 + $0x9c] sm:$0xf]  ;;  %11058 = vmatprep.subr.bf16.mxu1 %v11395_v60 }
 0x317   : > { %v5513_v46 = vrot.slane %v5511_v35, 5  ;;  %v5517_v59 = vrot.slane %v5515_v57, 4  ;;  %v5508_v36 = vor.u32 %v5507_v52, %v5504_v37  ;;  %v4793_v34 = vadd.f32 %v14277_v43, %v14096_v31  ;;  %v5360_v57 = vld [vmem:[#allocation3 + $0xa8] sm:$0xf] }
 0x318   : > { %v4847_v15 = vmax.f32 %v4801_v25, 0.0  ;;  %v5900_v47 = vrot.slane %v14383_v23, 5  ;;  %v10059_v42 = vpack.c.bf16 %v4846_v27, %v4846_v27  ;;  %v10057_v9 = vpack.c.bf16 %v4844_v49, %v4844_v49 }
 0x319   : > { %v5518_v20 = vor.u32 %v5517_v59, %v5513_v46  ;;  %v5509_v44 = vrot.slane %v5508_v36, 4  ;;  %v4845_v63 = vmax.f32 %v4793_v34, 0.0  ;;  %v5523_v58 = vrot.slane %v5521_v30, 5  ;;  %10889 = vmatpush3.bf16.msra.mxu0 %v11393_v45  ;;  %v5364_v36 = vld [vmem:[#allocation3 + $0xb0] sm:$0x1] }
 0x31a   : > { %v10060_v56 = vpack.c.bf16 %v4847_v15, %v4847_v15  ;;  %v9765_v7 = vrot.slane %v5816_v21, 9  ;;  %v5170_v43 = vshrl.u32 %v10059_v42, 16  ;;  %v5153_v48 = vshrl.u32 %v10057_v9, 16  ;;  %v14431_v34 = vld [vmem:[#allocation3 + $0x30] sm:$0xf] }
 0x31b   : > { %v5519_v51 = vrot.slane %v5518_v20, 4  ;;  %v5514_v31 = vsel %vm11958_vm12, %v5509_v44, %v5513_v46  ;;  %v5902_v2 = vrot.slane %v5900_v47, 4  ;;  %v5173_v55 = vshll.u32 %v10059_v42, 16  ;;  %v14433_v15 = vld [vmem:[#allocation3 + $0x40] sm:$0xf] }
 0x31c   : > { %v5156_v19 = vshll.u32 %v10057_v9, 16  ;;  %v5178_v0 = vshrl.u32 %v10060_v56, 16  ;;  %v5172_v35 = vrot.slane %v5170_v43, 7  ;;  %v5155_v18 = vrot.slane %v5153_v48, 7  ;;  %v5357_v43 = vld [vmem:[#allocation3 + $0xa4] sm:$0x1] }
 0x31d   : > { %v5524_v8 = vsel %vm11958_vm12, %v5519_v51, %v5523_v58  ;;  %v10058_v37 = vpack.c.bf16 %v4845_v63, %v4845_v63  ;;  %v14424_v52 = vrot.slane %v6086_v22, 4  ;;  %v5181_v46 = vshll.u32 %v10060_v56, 16  ;;  %v14447_v58 = vld [vmem:[#allocation3 + $0x3c] sm:$0xf]  ;;  %v14449_v56 = vld [vmem:[#allocation3 + $0x38] sm:$0x1] }
 0x31e   : > { %v9829_v24 = vcombine.low %v5514_v31, %v5524_v8  ;;  %v5180_v40 = vrot.slane %v5178_v0, 7  ;;  %v9813_v59 = vcombine.low %v14375_v1, %v14383_v23  ;;  %v5175_v30 = vor.u32 %v5173_v55, %v5172_v35 }
 0x31f   : > { %v5158_v25 = vor.u32 %v5156_v19, %v5155_v18  ;;  %v5901_v27 = vsel %vm11947_vm11, %v9765_v7, %v5900_v47  ;;  %v5903_v49 = vrot.slane %v14401_v11, 5  ;;  %v5176_v22 = vrot.slane %v5172_v35, 4  ;;  %v14441_v11 = vld [vmem:[#allocation3 + $0x34] sm:$0xf] }
 0x320   : > { %8469 = vmatprep.mubr.bf16.mxu1 %v9829_v24  ;;  %v5183_v21 = vor.u32 %v5181_v46, %v5180_v40  ;;  %v5185_v45 = vrot.slane %v5180_v40, 4  ;;  %v5161_v20 = vshrl.u32 %v10058_v37, 16  ;;  %v5361_v1 = vsel %vm11975_vm14, %v5175_v30, %v5360_v57  ;;  %v16460_v30 = vld [vmem:[#allocation26_spill] sm:$0xff] }
 0x321   : > { %8470 = vmatmul.mubr.bf16.gmra.mrb[140].mxu1 %v9813_v59  ;;  %v5354_v23 = vsel %vm11975_vm14, %v5158_v25, %v5353_v28  ;;  %v5164_v44 = vshll.u32 %v10058_v37, 16  ;;  %v5904_v47 = vsel %vm11947_vm11, %v5902_v2, %v5903_v49  ;;  %5362 = vst [vmem:[#allocation3 + $0xa8] sm:$0xf] %v5361_v1  ;;  %v6110_v7 = vshrl.u32 %v14381_v3, 16  ;;  %v16461_v49 = vld [vmem:[#allocation30_spill] sm:$0xff] }
 0x322   : > { %5355 = vst [vmem:[#allocation3 + $0x9c] sm:$0xf] %v5354_v23  ;;  %v5184_v42 = vsel %vm11968_vm13, %v5176_v22, %v5183_v21  ;;  %v5365_v9 = vsel %vm11918_vm3, %v5185_v45, %v5364_v36  ;;  %v5163_v63 = vrot.slane %v5161_v20, 7  ;;  %v9845_v51 = vcombine.low %v5901_v27, %v5904_v47  ;;  %v16462_v21 = vld [vmem:[#allocation36_spill] sm:$0xff]  ;;  %v5817_v20 = vld [vmem:[#allocation3 + $0x30] sm:$0xe] }
 0x323   : > { %v5159_v31 = vrot.slane %v5155_v18, 4  ;;  %5363 = vst [vmem:[#allocation3 + $0xac] sm:$0xf] %v5184_v42  ;;  %5366 = vst [vmem:[#allocation3 + $0xb0] sm:$0x1] %v5365_v9  ;;  %v9862_v48 = vcombine.low %v14447_v58, %v14433_v15  ;;  %v5526_v2 = vshrl.u32 %v14431_v34, 16  ;;  %v4806_v25 = vadd.f32 %v14287_v61, %v16460_v30 }
 0x324   : > { %v5166_v8 = vor.u32 %v5164_v44, %v5163_v63  ;;  %v5168_v55 = vrot.slane %v5163_v63, 4  ;;  %8631 = vmatmul.mubr.bf16.gmra.mrb[172].mxu0 %v9845_v51  ;;  %v5529_v19 = vshll.u32 %v14431_v34, 16  ;;  %v5535_v0 = vshll.u32 %v14441_v11, 16 }
 0x325   : > { %v14459_v60 = vrot.slane %v6089_v38, 5  ;;  %8638 = vmatprep.mubr.bf16.mxu0 %v9862_v48  ;;  %v5528_v24 = vrot.slane %v5526_v2, 4  ;;  %v5539_v35 = vshrl.u32 %v14441_v11, 16  ;;  %v5545_v57 = vshll.u32 %v14449_v56, 16  ;;  %v16459_v38 = vld [vmem:[#allocation31_spill] sm:$0xff] }
 0x326   : > { %v5167_v18 = vsel %vm11968_vm13, %v5159_v31, %v5166_v8  ;;  %v5358_v37 = vsel %vm11918_vm3, %v5168_v55, %v5357_v43  ;;  %v5531_v28 = vrot.slane %v5529_v19, 5  ;;  %v5537_v40 = vrot.slane %v5535_v0, 5 }
 0x327   : > { %v14467_v46 = vrot.slane %v6110_v7, 4  ;;  %5356 = vst [vmem:[#allocation3 + $0xa0] sm:$0xf] %v5167_v18  ;;  %5359 = vst [vmem:[#allocation3 + $0xa4] sm:$0x1] %v5358_v37  ;;  %v5541_v26 = vrot.slane %v5539_v35, 4  ;;  %v4814_v59 = vadd.f32 %v16459_v38, %v14130_v17  ;;  %v4817_v22 = vadd.f32 %v14289_v50, %v16461_v49 }
 0x328   : > { %v6113_v36 = vshll.u32 %v14381_v3, 16  ;;  %v5532_v27 = vor.u32 %v5531_v28, %v5528_v24  ;;  %v4809_v45 = vadd.f32 %v14291_v33, %v16462_v21  ;;  %v4848_v44 = vmax.f32 %v4806_v25, 0.0  ;;  %v5367_v38 = vld [vmem:[#allocation3 + $0xb4] sm:$0xf]  ;;  %v5378_v21 = vld [vmem:[#allocation3 + $0xc8] sm:$0x1] }
 0x329   : > { %v5542_v1 = vor.u32 %v5541_v26, %v5537_v40  ;;  %v4850_v23 = vmax.f32 %v4814_v59, 0.0  ;;  %v5907_v47 = vrot.slane %v14441_v11, 5  ;;  %v5547_v17 = vrot.slane %v5545_v57, 5  ;;  %v14528_v3 = vld [vmem:[#allocation3 + $0x4c] sm:$0xf] }
 0x32a   : > { %v5533_v42 = vrot.slane %v5532_v27, 4  ;;  %v4851_v9 = vmax.f32 %v4817_v22, 0.0  ;;  %v4849_v63 = vmax.f32 %v4809_v45, 0.0  ;;  %v10061_v7 = vpack.c.bf16 %v4848_v44, %v4848_v44 }
 0x32b   : > { %v5543_v61 = vrot.slane %v5542_v1, 4  ;;  %v10063_v51 = vpack.c.bf16 %v4850_v23, %v4850_v23  ;;  %v9766_v31 = vrot.slane %v5817_v20, 9  ;;  %v5909_v50 = vrot.slane %v5907_v47, 4 }
 0x32c   : > { %v10064_v43 = vpack.c.bf16 %v4851_v9, %v4851_v9  ;;  %v10062_v48 = vpack.c.bf16 %v4849_v63, %v4849_v63  ;;  %v5910_v2 = vrot.slane %v14449_v56, 5  ;;  %v5538_v33 = vsel %vm11958_vm12, %v5533_v42, %v5537_v40  ;;  %v5374_v56 = vld [vmem:[#allocation3 + $0xc0] sm:$0xf]  ;;  %v14492_v42 = vld [vmem:[#allocation3 + $0x3c] sm:$0xf] }
 0x32d   : > { %v5548_v8 = vsel %vm11958_vm12, %v5543_v61, %v5547_v17  ;;  %v5204_v55 = vshrl.u32 %v10063_v51, 16  ;;  %v5187_v19 = vshrl.u32 %v10061_v7, 16  ;;  %v5207_v24 = vshll.u32 %v10063_v51, 16  ;;  %v5371_v63 = vld [vmem:[#allocation3 + $0xbc] sm:$0x1] }
 0x32e   : > { %v9830_v0 = vcombine.low %v5538_v33, %v5548_v8  ;;  %v5212_v35 = vshrl.u32 %v10064_v43, 16  ;;  %v5908_v57 = vsel %vm11947_vm11, %v9766_v31, %v5907_v47  ;;  %v5190_v28 = vshll.u32 %v10061_v7, 16  ;;  %v14490_v47 = vld [vmem:[#allocation3 + $0x4c] sm:$0xf]  ;;  %v14499_v61 = vld [vmem:[#allocation3 + $0x40] sm:$0xf] }
 0x32f   : > { %v5206_v18 = vrot.slane %v5204_v55, 7  ;;  %v5189_v37 = vrot.slane %v5187_v19, 7  ;;  %v5195_v26 = vshrl.u32 %v10062_v48, 16  ;;  %v5215_v40 = vshll.u32 %v10064_v43, 16 }
 0x330   : > { %8477 = vmatprep.mubr.bf16.mxu1 %v9830_v0  ;;  %v5214_v59 = vrot.slane %v5212_v35, 7  ;;  %v5911_v30 = vsel %vm11947_vm11, %v5909_v50, %v5910_v2  ;;  %v9814_v25 = vcombine.low %v14431_v34, %v14441_v11  ;;  %v5198_v45 = vshll.u32 %v10062_v48, 16  ;;  %v5999_v48 = vld [vmem:[#allocation3 + $0x48] sm:$0xf]  ;;  %v5418_v50 = vld [vmem:[#allocation3 + $0x44] sm:$0x1] }
 0x331   : > { %v5209_v27 = vor.u32 %v5207_v24, %v5206_v18  ;;  %v5210_v49 = vrot.slane %v5206_v18, 4  ;;  %v5192_v22 = vor.u32 %v5190_v28, %v5189_v37  ;;  %v5197_v23 = vrot.slane %v5195_v26, 7 }
 0x332   : > { %v5217_v20 = vor.u32 %v5215_v40, %v5214_v59  ;;  %v5219_v1 = vrot.slane %v5214_v59, 4  ;;  %v9846_v44 = vcombine.low %v5908_v57, %v5911_v30  ;;  %8478 = vmatmul.mubr.bf16.gmra.mrb[144].mxu1 %v9814_v25  ;;  %v5193_v34 = vrot.slane %v5189_v37, 4  ;;  %v5818_v37 = vld [vmem:[#allocation3 + $0x3c] sm:$0xe]  ;;  %v14526_v25 = vld [vmem:[#allocation3 + $0x48] sm:$0xf] }
 0x333   : > { %v5375_v9 = vsel %vm11975_vm14, %v5209_v27, %v5374_v56  ;;  %v5368_v11 = vsel %vm11975_vm14, %v5192_v22, %v5367_v38  ;;  %v5200_v31 = vor.u32 %v5198_v45, %v5197_v23  ;;  %v5202_v43 = vrot.slane %v5197_v23, 4  ;;  %v14532_v23 = vld [vmem:[#allocation3 + $0x58] sm:$0xf]  ;;  %v14677_v40 = vld [vmem:[#allocation3 + $0x88] sm:$0xf] }
 0x334   : > { %5376 = vst [vmem:[#allocation3 + $0xc0] sm:$0xf] %v5375_v9  ;;  %5369 = vst [vmem:[#allocation3 + $0xb4] sm:$0xf] %v5368_v11  ;;  %v5218_v51 = vsel %vm11968_vm13, %v5210_v49, %v5217_v20  ;;  %v5379_v7 = vsel %vm11918_vm3, %v5219_v1, %v5378_v21  ;;  %8639 = vmatmul.mubr.bf16.gmra.mrb[176].mxu0 %v9846_v44  ;;  %v6134_v2 = vshrl.u32 %v14447_v58, 16  ;;  %v6137_v32 = vshll.u32 %v14447_v58, 16 }
 0x335   : > { %5377 = vst [vmem:[#allocation3 + $0xc4] sm:$0xf] %v5218_v51  ;;  %5380 = vst [vmem:[#allocation3 + $0xc8] sm:$0x1] %v5379_v7  ;;  %v9863_v33 = vcombine.low %v5999_v48, %v14490_v47  ;;  %v5550_v8 = vshrl.u32 %v14492_v42, 16  ;;  %v5201_v55 = vsel %vm11968_vm13, %v5193_v34, %v5200_v31  ;;  %v5372_v19 = vsel %vm11918_vm3, %v5202_v43, %v5371_v63 }
 0x336   : > { %v5553_v0 = vshll.u32 %v14492_v42, 16  ;;  %v5559_v24 = vshll.u32 %v14499_v61, 16  ;;  %5370 = vst [vmem:[#allocation3 + $0xb8] sm:$0xf] %v5201_v55  ;;  %5373 = vst [vmem:[#allocation3 + $0xbc] sm:$0x1] %v5372_v19 }
 0x337   : > { %v6158_v35 = vshrl.u32 %v5999_v48, 16  ;;  %8646 = vmatprep.mubr.bf16.mxu0 %v9863_v33  ;;  %v5552_v58 = vrot.slane %v5550_v8, 4  ;;  %v5563_v57 = vshrl.u32 %v14499_v61, 16  ;;  %v5569_v18 = vshll.u32 %v5418_v50, 16  ;;  %v5419_v11 = vld [vmem:[#allocation3 + $0x50] sm:$0x1] }
 0x338   : > { %v14518_v41 = vrot.slane %v6113_v36, 5  ;;  %v5555_v28 = vrot.slane %v5553_v0, 5  ;;  %v5561_v26 = vrot.slane %v5559_v24, 5  ;;  %v5914_v56 = vrot.slane %v14499_v61, 5  ;;  %v6001_v31 = vld [vmem:[#allocation3 + $0x54] sm:$0xf] }
 0x339   : > { %v14521_v38 = vrot.slane %v6134_v2, 4  ;;  %v14523_v59 = vrot.slane %v6137_v32, 5  ;;  %v5565_v30 = vrot.slane %v5563_v57, 4  ;;  %v9767_v49 = vrot.slane %v5818_v37, 9  ;;  %v5819_v24 = vld [vmem:[#allocation3 + $0x48] sm:$0xe] }
 0x33a   : > { %v5556_v27 = vor.u32 %v5555_v28, %v5552_v58  ;;  %v5916_v22 = vrot.slane %v5914_v56, 4  ;;  %v5917_v21 = vrot.slane %v5418_v50, 5  ;;  %v14530_v36 = vrot.slane %v6158_v35, 4  ;;  %v14550_v37 = vld [vmem:[#allocation3 + $0x60] sm:$0xf] }
 0x33b   : > { %v6161_v45 = vshll.u32 %v5999_v48, 16  ;;  %v5566_v20 = vor.u32 %v5565_v30, %v5561_v26  ;;  %v5571_v1 = vrot.slane %v5569_v18, 5  ;;  %v5915_v9 = vsel %vm11947_vm11, %v9767_v49, %v5914_v56  ;;  %v14557_v49 = vld [vmem:[#allocation3 + $0x54] sm:$0xf] }
 0x33c   : > { %v5557_v44 = vrot.slane %v5556_v27, 4  ;;  %v5918_v34 = vsel %vm11947_vm11, %v5916_v22, %v5917_v21  ;;  %v5574_v63 = vshrl.u32 %v14526_v25, 16  ;;  %v5577_v43 = vshll.u32 %v14526_v25, 16  ;;  %v14555_v27 = vld [vmem:[#allocation3 + $0x64] sm:$0xf] }
 0x33d   : > { %v5567_v51 = vrot.slane %v5566_v20, 4  ;;  %v9847_v7 = vcombine.low %v5915_v9, %v5918_v34  ;;  %v5583_v48 = vshll.u32 %v14528_v3, 16  ;;  %v9864_v2 = vcombine.low %v6001_v31, %v14532_v23 }
 0x33e   : > { %v5562_v50 = vsel %vm11958_vm12, %v5557_v44, %v5561_v26  ;;  %v5576_v32 = vrot.slane %v5574_v63, 4  ;;  %v5587_v33 = vshrl.u32 %v14528_v3, 16  ;;  %v5579_v55 = vrot.slane %v5577_v43, 5 }
 0x33f   : > { %v5572_v8 = vsel %vm11958_vm12, %v5567_v51, %v5571_v1  ;;  %8647 = vmatmul.mubr.bf16.gmra.mrb[180].mxu0 %v9847_v7  ;;  %v5585_v19 = vrot.slane %v5583_v48, 5  ;;  %v5593_v0 = vshll.u32 %v5419_v11, 16  ;;  %v14547_v35 = vrot.slane %v6161_v45, 5  ;;  %v14559_v1 = vld [vmem:[#allocation3 + $0x58] sm:$0xf] }
 0x340   : > { %v9831_v58 = vcombine.low %v5562_v50, %v5572_v8  ;;  %8654 = vmatprep.mubr.bf16.mxu0 %v9864_v2  ;;  %v5589_v57 = vrot.slane %v5587_v33, 4  ;;  %v5921_v18 = vrot.slane %v14528_v3, 5  ;;  %v9815_v26 = vcombine.low %v14492_v42, %v14499_v61  ;;  %v5420_v7 = vld [vmem:[#allocation3 + $0x5c] sm:$0x1] }
 0x341   : > { %v6182_v56 = vshrl.u32 %v6001_v31, 16  ;;  %v5580_v30 = vor.u32 %v5579_v55, %v5576_v32  ;;  %v9768_v21 = vrot.slane %v5819_v24, 9  ;;  %v5924_v20 = vrot.slane %v5419_v11, 5  ;;  %v5820_v55 = vld [vmem:[#allocation3 + $0x54] sm:$0xe] }
 0x342   : > { %8485 = vmatprep.mubr.bf16.mxu1 %v9831_v58  ;;  %v5590_v22 = vor.u32 %v5589_v57, %v5585_v19  ;;  %v5923_v45 = vrot.slane %v5921_v18, 4  ;;  %v6185_v44 = vshll.u32 %v6001_v31, 16  ;;  %v5595_v34 = vrot.slane %v5593_v0, 5 }
 0x343   : > { %8486 = vmatmul.mubr.bf16.gmra.mrb[148].mxu1 %v9815_v26  ;;  %v5581_v9 = vrot.slane %v5580_v30, 4  ;;  %v6206_v63 = vshrl.u32 %v14550_v37, 16  ;;  %v5922_v61 = vsel %vm11947_vm11, %v9768_v21, %v5921_v18  ;;  %v5598_v43 = vshrl.u32 %v14557_v49, 16 }
 0x344   : > { %v5591_v42 = vrot.slane %v5590_v22, 4  ;;  %v5925_v51 = vsel %vm11947_vm11, %v5923_v45, %v5924_v20  ;;  %v9865_v11 = vcombine.low %v14550_v37, %v14555_v27  ;;  %v5601_v31 = vshll.u32 %v14557_v49, 16 }
 0x345   : > { %v9848_v48 = vcombine.low %v5922_v61, %v5925_v51  ;;  %v5607_v50 = vshll.u32 %v14559_v1, 16  ;;  %v5586_v2 = vsel %vm11958_vm12, %v5581_v9, %v5585_v19  ;;  %v5600_v33 = vrot.slane %v5598_v43, 4  ;;  %v14584_v9 = vld [vmem:[#allocation3 + $0x60] sm:$0xf]  ;;  %v14589_v43 = vld [vmem:[#allocation3 + $0x70] sm:$0xf] }
 0x346   : > { %v5596_v32 = vsel %vm11958_vm12, %v5591_v42, %v5595_v34  ;;  %v5611_v8 = vshrl.u32 %v14559_v1, 16  ;;  %v5603_v24 = vrot.slane %v5601_v31, 5  ;;  %v5617_v57 = vshll.u32 %v5420_v7, 16  ;;  %v14586_v34 = vld [vmem:[#allocation3 + $0x64] sm:$0xf] }
 0x347   : > { %v9832_v0 = vcombine.low %v5586_v2, %v5596_v32  ;;  %8655 = vmatmul.mubr.bf16.gmra.mrb[184].mxu0 %v9848_v48  ;;  %v5609_v58 = vrot.slane %v5607_v50, 5  ;;  %v14576_v18 = vrot.slane %v6182_v56, 4  ;;  %v5928_v19 = vrot.slane %v14559_v1, 5  ;;  %v6005_v2 = vld [vmem:[#allocation3 + $0x6c] sm:$0xf] }
 0x348   : > { %8662 = vmatprep.mubr.bf16.mxu0 %v9865_v11  ;;  %v5613_v30 = vrot.slane %v5611_v8, 4  ;;  %v14580_v22 = vrot.slane %v6185_v44, 5  ;;  %v9816_v21 = vcombine.low %v14526_v25, %v14528_v3  ;;  %v5604_v45 = vor.u32 %v5603_v24, %v5600_v33  ;;  %v5421_v3 = vld [vmem:[#allocation3 + $0x68] sm:$0x1] }
 0x349   : > { %8493 = vmatprep.mubr.bf16.mxu1 %v9832_v0  ;;  %v9769_v20 = vrot.slane %v5820_v55, 9  ;;  %v6209_v56 = vshll.u32 %v14550_v37, 16  ;;  %v5930_v61 = vrot.slane %v5928_v19, 4  ;;  %v5931_v51 = vrot.slane %v5420_v7, 5 }
 0x34a   : > { %v5614_v42 = vor.u32 %v5613_v30, %v5609_v58  ;;  %v14591_v44 = vrot.slane %v6206_v63, 4  ;;  %v5605_v48 = vrot.slane %v5604_v45, 4  ;;  %v5619_v11 = vrot.slane %v5617_v57, 5  ;;  %v5821_v30 = vld [vmem:[#allocation3 + $0x60] sm:$0xe] }
 0x34b   : > { %8494 = vmatmul.mubr.bf16.gmra.mrb[152].mxu1 %v9816_v21  ;;  %v5929_v25 = vsel %vm11947_vm11, %v9769_v20, %v5928_v19  ;;  %v5932_v50 = vsel %vm11947_vm11, %v5930_v61, %v5931_v51  ;;  %v5622_v37 = vshrl.u32 %v14584_v9, 16  ;;  %v5625_v7 = vshll.u32 %v14584_v9, 16 }
 0x34c   : > { %v5615_v31 = vrot.slane %v5614_v42, 4  ;;  %v9849_v32 = vcombine.low %v5929_v25, %v5932_v50  ;;  %v9866_v33 = vcombine.low %v6005_v2, %v14589_v43  ;;  %v5631_v63 = vshll.u32 %v14586_v34, 16 }
 0x34d   : > { %v5635_v8 = vshrl.u32 %v14586_v34, 16  ;;  %v5610_v55 = vsel %vm11958_vm12, %v5605_v48, %v5609_v58  ;;  %v5624_v24 = vrot.slane %v5622_v37, 4  ;;  %v5627_v57 = vrot.slane %v5625_v7, 5  ;;  %v14610_v58 = vld [vmem:[#allocation3 + $0x7c] sm:$0xf] }
 0x34e   : > { %v5620_v0 = vsel %vm11958_vm12, %v5615_v31, %v5619_v11  ;;  %v5633_v21 = vrot.slane %v5631_v63, 5  ;;  %v5641_v20 = vshll.u32 %v5421_v3, 16  ;;  %v14606_v42 = vrot.slane %v6209_v56, 5  ;;  %16463 = vst [vmem:[#allocation34_spill] sm:$0xff] %v14610_v58  ;;  %v14614_v37 = vld [vmem:[#allocation3 + $0x78] sm:$0xf] }
 0x34f   : > { %v9833_v19 = vcombine.low %v5610_v55, %v5620_v0  ;;  %8663 = vmatmul.mubr.bf16.gmra.mrb[188].mxu0 %v9849_v32  ;;  %v5637_v45 = vrot.slane %v5635_v8, 4  ;;  %v5628_v51 = vor.u32 %v5627_v57, %v5624_v24  ;;  %v5935_v25 = vrot.slane %v14586_v34, 5  ;;  %v14616_v7 = vld [vmem:[#allocation3 + $0x6c] sm:$0xf]  ;;  %v14618_v8 = vld [vmem:[#allocation3 + $0x70] sm:$0xf] }
 0x350   : > { %8670 = vmatprep.mubr.bf16.mxu0 %v9866_v33  ;;  %v9817_v48 = vcombine.low %v14557_v49, %v14559_v1  ;;  %v6230_v11 = vshrl.u32 %v6005_v2, 16  ;;  %v9770_v50 = vrot.slane %v5821_v30, 9  ;;  %v6233_v56 = vshll.u32 %v6005_v2, 16  ;;  %v5422_v1 = vld [vmem:[#allocation3 + $0x74] sm:$0x1] }
 0x351   : > { %8501 = vmatprep.mubr.bf16.mxu1 %v9833_v19  ;;  %v5638_v31 = vor.u32 %v5637_v45, %v5633_v21  ;;  %v5629_v32 = vrot.slane %v5628_v51, 4  ;;  %v5937_v63 = vrot.slane %v5935_v25, 4  ;;  %v5938_v33 = vrot.slane %v5421_v3, 5 }
 0x352   : > { %v5643_v0 = vrot.slane %v5641_v20, 5  ;;  %v5936_v24 = vsel %vm11947_vm11, %v9770_v50, %v5935_v25  ;;  %v9867_v49 = vcombine.low %v14614_v37, %v14610_v58  ;;  %v5646_v3 = vshrl.u32 %v14616_v7, 16 }
 0x353   : > { %8502 = vmatmul.mubr.bf16.gmra.mrb[156].mxu1 %v9817_v48  ;;  %v5639_v55 = vrot.slane %v5638_v31, 4  ;;  %v5634_v57 = vsel %vm11958_vm12, %v5629_v32, %v5633_v21  ;;  %v5939_v2 = vsel %vm11947_vm11, %v5937_v63, %v5938_v33  ;;  %v5649_v30 = vshll.u32 %v14616_v7, 16  ;;  %v5822_v21 = vld [vmem:[#allocation3 + $0x6c] sm:$0xe]  ;;  %v5823_v32 = vld [vmem:[#allocation3 + $0x78] sm:$0xe] }
 0x354   : > { %v9850_v45 = vcombine.low %v5936_v24, %v5939_v2  ;;  %v5655_v20 = vshll.u32 %v14618_v8, 16  ;;  %v5659_v51 = vshrl.u32 %v14618_v8, 16  ;;  %v5648_v48 = vrot.slane %v5646_v3, 4 }
 0x355   : > { %v5644_v19 = vsel %vm11958_vm12, %v5639_v55, %v5643_v0  ;;  %v5651_v31 = vrot.slane %v5649_v30, 5  ;;  %v5665_v50 = vshll.u32 %v5422_v1, 16  ;;  %v5942_v61 = vrot.slane %v14618_v8, 5 }
 0x356   : > { %v9834_v25 = vcombine.low %v5634_v57, %v5644_v19  ;;  %v5657_v63 = vrot.slane %v5655_v20, 5  ;;  %v5661_v33 = vrot.slane %v5659_v51, 4  ;;  %v14636_v26 = vrot.slane %v6230_v11, 4  ;;  %v14642_v57 = vld [vmem:[#allocation3 + $0x78] sm:$0xf] }
 0x357   : > { %8671 = vmatmul.mubr.bf16.gmra.mrb[192].mxu0 %v9850_v45  ;;  %v14638_v55 = vrot.slane %v6233_v56, 5  ;;  %v9818_v0 = vcombine.low %v14584_v9, %v14586_v34  ;;  %v5652_v24 = vor.u32 %v5651_v31, %v5648_v48  ;;  %v9771_v3 = vrot.slane %v5822_v21, 9  ;;  %v14646_v56 = vld [vmem:[#allocation3 + $0x7c] sm:$0xf]  ;;  %v5423_v48 = vld [vmem:[#allocation3 + $0x80] sm:$0x1] }
 0x358   : > { %8509 = vmatprep.mubr.bf16.mxu1 %v9834_v25  ;;  %8678 = vmatprep.mubr.bf16.mxu0 %v9867_v49  ;;  %v5662_v2 = vor.u32 %v5661_v33, %v5657_v63  ;;  %v5944_v30 = vrot.slane %v5942_v61, 4  ;;  %v5945_v19 = vrot.slane %v5422_v1, 5  ;;  %v6254_v45 = vshrl.u32 %v14614_v37, 16  ;;  %v14652_v49 = vld [vmem:[#allocation3 + $0x88] sm:$0xf] }
 0x359   : > { %v6257_v20 = vshll.u32 %v14614_v37, 16  ;;  %v5653_v11 = vrot.slane %v5652_v24, 4  ;;  %v5667_v51 = vrot.slane %v5665_v50, 5  ;;  %v5943_v9 = vsel %vm11947_vm11, %v9771_v3, %v5942_v61  ;;  %16464 = vst [vmem:[#allocation32_spill] sm:$0xff] %v14652_v49  ;;  %v6009_v61 = vld [vmem:[#allocation3 + $0x84] sm:$0xf] }
 0x35a   : > { %v5663_v25 = vrot.slane %v5662_v2, 4  ;;  %v5946_v34 = vsel %vm11947_vm11, %v5944_v30, %v5945_v19  ;;  %v5670_v1 = vshrl.u32 %v14642_v57, 16  ;;  %v5673_v21 = vshll.u32 %v14642_v57, 16 }
 0x35b   : > { %8510 = vmatmul.mubr.bf16.gmra.mrb[160].mxu1 %v9818_v0  ;;  %v5658_v37 = vsel %vm11958_vm12, %v5653_v11, %v5657_v63  ;;  %v9851_v50 = vcombine.low %v5943_v9, %v5946_v34  ;;  %v5679_v24 = vshll.u32 %v14646_v56, 16  ;;  %v5683_v2 = vshrl.u32 %v14646_v56, 16 }
 0x35c   : > { %v5668_v33 = vsel %vm11958_vm12, %v5663_v25, %v5667_v51  ;;  %v5672_v0 = vrot.slane %v5670_v1, 4  ;;  %v9868_v30 = vcombine.low %v6009_v61, %v14652_v49  ;;  %v5675_v19 = vrot.slane %v5673_v21, 5  ;;  %v14667_v51 = vld [vmem:[#allocation3 + $0x90] sm:$0xf]  ;;  %v14673_v21 = vld [vmem:[#allocation3 + $0x94] sm:$0xf] }
 0x35d   : > { %v9835_v3 = vcombine.low %v5658_v37, %v5668_v33  ;;  %v5689_v31 = vshll.u32 %v5423_v48, 16  ;;  %v14664_v28 = vrot.slane %v6254_v45, 4  ;;  %v5681_v63 = vrot.slane %v5679_v24, 5  ;;  %16466 = vst [vmem:[#allocation37_spill] sm:$0xff] %v14673_v21  ;;  %v14675_v45 = vld [vmem:[#allocation3 + $0x84] sm:$0xf] }
 0x35e   : > { %v5685_v11 = vrot.slane %v5683_v2, 4  ;;  %v5949_v9 = vrot.slane %v14646_v56, 5  ;;  %v14669_v25 = vrot.slane %v6257_v20, 5  ;;  %v9819_v34 = vcombine.low %v14616_v7, %v14618_v8 }
 0x35f   : > { %8679 = vmatmul.mubr.bf16.gmra.mrb[196].mxu0 %v9851_v50  ;;  %8517 = vmatprep.mubr.bf16.mxu1 %v9835_v3  ;;  %v6278_v1 = vshrl.u32 %v6009_v61, 16  ;;  %v5676_v37 = vor.u32 %v5675_v19, %v5672_v0  ;;  %v9772_v33 = vrot.slane %v5823_v32, 9  ;;  %v5952_v2 = vrot.slane %v5423_v48, 5 }
 0x360   : > { %16465 = vst [vmem:[#allocation19_spill] sm:$0xff] %v14669_v25  ;;  %8686 = vmatprep.mubr.bf16.mxu0 %v9868_v30  ;;  %v5686_v50 = vor.u32 %v5685_v11, %v5681_v63  ;;  %v5951_v24 = vrot.slane %v5949_v9, 4  ;;  %v6281_v17 = vshll.u32 %v6009_v61, 16  ;;  %v5691_v14 = vrot.slane %v5689_v31, 5  ;;  %v5424_v30 = vld [vmem:[#allocation3 + $0x8c] sm:$0x1] }
 0x361   : > { %v5677_v20 = vrot.slane %v5676_v37, 4  ;;  %v6302_v3 = vshrl.u32 %v14667_v51, 16  ;;  %v5950_v8 = vsel %vm11947_vm11, %v9772_v33, %v5949_v9  ;;  %v5694_v32 = vshrl.u32 %v14675_v45, 16 }
 0x362   : > { %v5687_v7 = vrot.slane %v5686_v50, 4  ;;  %v5953_v0 = vsel %vm11947_vm11, %v5951_v24, %v5952_v2  ;;  %v9869_v61 = vcombine.low %v14667_v51, %v14673_v21  ;;  %v5697_v31 = vshll.u32 %v14675_v45, 16  ;;  %v5824_v50 = vld [vmem:[#allocation3 + $0x84] sm:$0xe] }
 0x363   : > { %8518 = vmatmul.mubr.bf16.gmra.mrb[164].mxu1 %v9819_v34  ;;  %v5682_v48 = vsel %vm11958_vm12, %v5677_v20, %v5681_v63  ;;  %v5703_v19 = vshll.u32 %v14677_v40, 16  ;;  %v9852_v9 = vcombine.low %v5950_v8, %v5953_v0  ;;  %v5696_v34 = vrot.slane %v5694_v32, 4  ;;  %v14702_v0 = vld [vmem:[#allocation3 + $0x90] sm:$0xf]  ;;  %v14704_v32 = vld [vmem:[#allocation3 + $0x94] sm:$0xf] }
 0x364   : > { %v5692_v11 = vsel %vm11958_vm12, %v5687_v7, %v5691_v14  ;;  %v5707_v37 = vshrl.u32 %v14677_v40, 16  ;;  %v5699_v24 = vrot.slane %v5697_v31, 5  ;;  %v5713_v39 = vshll.u32 %v5424_v30, 16 }
 0x365   : > { %v9836_v33 = vcombine.low %v5682_v48, %v5692_v11  ;;  %v5705_v2 = vrot.slane %v5703_v19, 5  ;;  %v14694_v63 = vrot.slane %v6278_v1, 4  ;;  %v5956_v58 = vrot.slane %v14677_v40, 5  ;;  %v14707_v11 = vld [vmem:[#allocation3 + $0xa0] sm:$0xf] }
 0x366   : > { %v5709_v29 = vrot.slane %v5707_v37, 4  ;;  %v14698_v25 = vrot.slane %v6281_v17, 5  ;;  %v9820_v14 = vcombine.low %v14642_v57, %v14646_v56  ;;  %v5700_v7 = vor.u32 %v5699_v24, %v5696_v34  ;;  %16468 = vst [vmem:[#allocation21_spill] sm:$0xff] %v14707_v11  ;;  %v5425_v56 = vld [vmem:[#allocation3 + $0x98] sm:$0x1] }
 0x367   : > { %8687 = vmatmul.mubr.bf16.gmra.mrb[200].mxu0 %v9852_v9  ;;  %8525 = vmatprep.mubr.bf16.mxu1 %v9836_v33  ;;  %v9773_v8 = vrot.slane %v5824_v50, 9  ;;  %v6305_v1 = vshll.u32 %v14667_v51, 16  ;;  %v5958_v31 = vrot.slane %v5956_v58, 4  ;;  %v5959_v19 = vrot.slane %v5424_v30, 5  ;;  %v6013_v50 = vld [vmem:[#allocation3 + $0x9c] sm:$0xf] }
 0x368   : > { %16467 = vst [vmem:[#allocation22_spill] sm:$0xff] %v14698_v25  ;;  %8694 = vmatprep.mubr.bf16.mxu0 %v9869_v61  ;;  %v5710_v48 = vor.u32 %v5709_v29, %v5705_v2  ;;  %v14709_v17 = vrot.slane %v6302_v3, 4  ;;  %v5701_v9 = vrot.slane %v5700_v7, 4  ;;  %v5715_v37 = vrot.slane %v5713_v39, 5  ;;  %v11461_v25 = vld [vmem:[#allocation3 + $0x10] sm:$0xf] }
 0x369   : > { %v5957_v57 = vsel %vm11947_vm11, %v9773_v8, %v5956_v58  ;;  %v5960_v34 = vsel %vm11947_vm11, %v5958_v31, %v5959_v19  ;;  %v5718_v29 = vshrl.u32 %v14702_v0, 16  ;;  %v5721_v51 = vshll.u32 %v14702_v0, 16  ;;  %v5825_v8 = vld [vmem:[#allocation3 + $0x90] sm:$0xe] }
 0x36a   : > { %16469 = vst [vmem:[#allocation24_spill] sm:$0xff] %v14709_v17  ;;  %v5711_v61 = vrot.slane %v5710_v48, 4  ;;  %v5706_v3 = vsel %vm11958_vm12, %v5701_v9, %v5705_v2  ;;  %v9870_v30 = vcombine.low %v6013_v50, %v14707_v11  ;;  %v5727_v39 = vshll.u32 %v14704_v32, 16  ;;  %v5826_v11 = vld [vmem:[#allocation3 + $0x9c] sm:$0xe] }
 0x36b   : > { %8526 = vmatmul.mubr.bf16.gmra.mrb[168].mxu1 %v9820_v14  ;;  %v5731_v58 = vshrl.u32 %v14704_v32, 16  ;;  %v9853_v24 = vcombine.low %v5957_v57, %v5960_v34  ;;  %v5720_v14 = vrot.slane %v5718_v29, 4  ;;  %v5723_v7 = vrot.slane %v5721_v51, 5  ;;  %v14730_v29 = vld [vmem:[#allocation3 + $0xac] sm:$0xf] }
 0x36c   : > { %v5716_v33 = vsel %vm11958_vm12, %v5711_v61, %v5715_v37  ;;  %v5729_v31 = vrot.slane %v5727_v39, 5  ;;  %v5737_v20 = vshll.u32 %v5425_v56, 16  ;;  %v14724_v17 = vrot.slane %v6305_v1, 5  ;;  %16471 = vst [vmem:[#allocation41_spill] sm:$0xff] %v14730_v29  ;;  %v14732_v51 = vld [vmem:[#allocation3 + $0x9c] sm:$0xf] }
 0x36d   : > { %v9837_v48 = vcombine.low %v5706_v3, %v5716_v33  ;;  %v5733_v19 = vrot.slane %v5731_v58, 4  ;;  %v5724_v9 = vor.u32 %v5723_v7, %v5720_v14  ;;  %v5963_v49 = vrot.slane %v14704_v32, 5  ;;  %v14734_v33 = vld [vmem:[#allocation3 + $0xa0] sm:$0xf] }
 0x36e   : > { %16470 = vst [vmem:[#allocation35_spill] sm:$0xff] %v14724_v17  ;;  %v9821_v37 = vcombine.low %v14675_v45, %v14677_v40  ;;  %v6326_v57 = vshrl.u32 %v6013_v50, 16  ;;  %v9774_v34 = vrot.slane %v5825_v8, 9  ;;  %v6329_v1 = vshll.u32 %v6013_v50, 16  ;;  %v6015_v45 = vld [vmem:[#allocation3 + $0xa8] sm:$0xf] }
 0x36f   : > { %8695 = vmatmul.mubr.bf16.gmra.mrb[204].mxu0 %v9853_v24  ;;  %8533 = vmatprep.mubr.bf16.mxu1 %v9837_v48  ;;  %v5734_v61 = vor.u32 %v5733_v19, %v5729_v31  ;;  %v5725_v3 = vrot.slane %v5724_v9, 4  ;;  %v5965_v39 = vrot.slane %v5963_v49, 4  ;;  %v5966_v58 = vrot.slane %v5425_v56, 5  ;;  %v5426_v50 = vld [vmem:[#allocation3 + $0xa4] sm:$0x1] }
 0x370   : > { %8702 = vmatprep.mubr.bf16.mxu0 %v9870_v30  ;;  %v5739_v7 = vrot.slane %v5737_v20, 5  ;;  %v5964_v40 = vsel %vm11947_vm11, %v9774_v34, %v5963_v49  ;;  %v9871_v8 = vcombine.low %v6015_v45, %v14730_v29  ;;  %v5742_v48 = vshrl.u32 %v14732_v51, 16 }
 0x371   : > { %v5735_v14 = vrot.slane %v5734_v61, 4  ;;  %v5967_v30 = vsel %vm11947_vm11, %v5965_v39, %v5966_v58  ;;  %v5745_v56 = vshll.u32 %v14732_v51, 16  ;;  %v5730_v19 = vsel %vm11958_vm12, %v5725_v3, %v5729_v31 }
 0x372   : > { %v5751_v49 = vshll.u32 %v14734_v33, 16  ;;  %v5755_v9 = vshrl.u32 %v14734_v33, 16  ;;  %v9854_v61 = vcombine.low %v5964_v40, %v5967_v30  ;;  %v5744_v34 = vrot.slane %v5742_v48, 4 }
 0x373   : > { %8534 = vmatmul.mubr.bf16.gmra.mrb[172].mxu1 %v9821_v37  ;;  %v5740_v20 = vsel %vm11958_vm12, %v5735_v14, %v5739_v7  ;;  %v5747_v39 = vrot.slane %v5745_v56, 5  ;;  %v5761_v2 = vshll.u32 %v5426_v50, 16  ;;  %v5970_v21 = vrot.slane %v14734_v33, 5  ;;  %v14755_v7 = vld [vmem:[#allocation3 + $0xa8] sm:$0xf] }
 0x374   : > { %v9838_v37 = vcombine.low %v5730_v19, %v5740_v20  ;;  %v5753_v58 = vrot.slane %v5751_v49, 5  ;;  %v5757_v24 = vrot.slane %v5755_v9, 4  ;;  %v14751_v17 = vrot.slane %v6326_v57, 4 }
 0x375   : > { %v14753_v31 = vrot.slane %v6329_v1, 5  ;;  %v6350_v3 = vshrl.u32 %v6015_v45, 16  ;;  %v5748_v14 = vor.u32 %v5747_v39, %v5744_v34  ;;  %v9822_v40 = vcombine.low %v14702_v0, %v14704_v32  ;;  %v14760_v1 = vld [vmem:[#allocation3 + $0xac] sm:$0xf]  ;;  %v5427_v34 = vld [vmem:[#allocation3 + $0xb0] sm:$0x1] }
 0x376   : > { %16472 = vst [vmem:[#allocation33_spill] sm:$0xff] %v14751_v17  ;;  %8541 = vmatprep.mubr.bf16.mxu1 %v9838_v37  ;;  %v5758_v30 = vor.u32 %v5757_v24, %v5753_v58  ;;  %v5972_v48 = vrot.slane %v5970_v21, 4  ;;  %v5973_v56 = vrot.slane %v5426_v50, 5  ;;  %v6353_v19 = vshll.u32 %v6015_v45, 16 }
 0x377   : > { %16473 = vst [vmem:[#allocation39_spill] sm:$0xff] %v14753_v31  ;;  %8703 = vmatmul.mubr.bf16.gmra.mrb[208].mxu0 %v9854_v61  ;;  %v5749_v57 = vrot.slane %v5748_v14, 4  ;;  %v9775_v49 = vrot.slane %v5826_v11, 9  ;;  %v5763_v37 = vrot.slane %v5761_v2, 5  ;;  %v5766_v39 = vshrl.u32 %v14755_v7, 16 }
 0x378   : > { %8710 = vmatprep.mubr.bf16.mxu0 %v9871_v8  ;;  %v5759_v9 = vrot.slane %v5758_v30, 4  ;;  %v5974_v61 = vsel %vm11947_vm11, %v5972_v48, %v5973_v56  ;;  %v14765_v0 = vrot.slane %v6350_v3, 4  ;;  %v6018_v11 = vld [vmem:[#allocation3 + $0xb8] sm:$0xf]  ;;  %v5769_v45 = vshll.u32 %v14755_v7, 16 }
 0x379   : > { %v5754_v32 = vsel %vm11958_vm12, %v5749_v57, %v5753_v58  ;;  %v5971_v24 = vsel %vm11947_vm11, %v9775_v49, %v5970_v21  ;;  %v5768_v8 = vrot.slane %v5766_v39, 4  ;;  %v5775_v50 = vshll.u32 %v14760_v1, 16  ;;  %v14776_v48 = vld [vmem:[#allocation3 + $0xb4] sm:$0xf] }
 0x37a   : > { %16474 = vst [vmem:[#allocation40_spill] sm:$0xff] %v14765_v0  ;;  %v5764_v2 = vsel %vm11958_vm12, %v5759_v9, %v5763_v37  ;;  %v5779_v14 = vshrl.u32 %v14760_v1, 16  ;;  %v9855_v30 = vcombine.low %v5971_v24, %v5974_v61  ;;  %16475 = vst [vmem:[#allocation27_spill] sm:$0xff] %v14776_v48  ;;  %v5771_v58 = vrot.slane %v5769_v45, 5  ;;  %v6019_v61 = vld [vmem:[#allocation3 + $0xc0] sm:$0xf] }
 0x37b   : > { %8542 = vmatmul.mubr.bf16.gmra.mrb[176].mxu1 %v9822_v40  ;;  %v5827_v40 = vld [vmem:[#allocation3 + $0xa8] sm:$0xe]  ;;  %v9839_v3 = vcombine.low %v5754_v32, %v5764_v2  ;;  %v5785_v56 = vshll.u32 %v5427_v34, 16  ;;  %v9872_v21 = vcombine.low %v14776_v48, %v6018_v11  ;;  %v5777_v57 = vrot.slane %v5775_v50, 5  ;;  %v6020_v32 = vld [vmem:[#allocation3 + $0xc4] sm:$0xf] }
 0x37c   : > { %v5781_v49 = vrot.slane %v5779_v14, 4  ;;  %v5977_v20 = vrot.slane %v14760_v1, 5  ;;  %v14780_v29 = vrot.slane %v6353_v19, 5  ;;  %v9823_v9 = vcombine.low %v14732_v51, %v14734_v33  ;;  %v14784_v24 = vld [vmem:[#allocation3 + $0xb4] sm:$0xf] }
 0x37d   : > { %8549 = vmatprep.mubr.bf16.mxu1 %v9839_v3  ;;  %v5772_v37 = vor.u32 %v5771_v58, %v5768_v8  ;;  %v9776_v39 = vrot.slane %v5827_v40, 9  ;;  %v5980_v50 = vrot.slane %v5427_v34, 5  ;;  %v14787_v14 = vld [vmem:[#allocation3 + $0xb8] sm:$0xf]  ;;  %v5787_v3 = vrot.slane %v5785_v56, 5  ;;  %v14793_v8 = vpop.f32.mrb[128].mxu1 }
 0x37e   : > { %16476 = vst [vmem:[#allocation28_spill] sm:$0xff] %v14780_v29  ;;  %v5782_v11 = vor.u32 %v5781_v49, %v5777_v57  ;;  %v5979_v2 = vrot.slane %v5977_v20, 4  ;;  %v9824_v51 = vcombine.low %v14755_v7, %v14760_v1  ;;  %v5428_v33 = vld [vmem:[#allocation3 + $0xbc] sm:$0x1]  ;;  %16477 = vst [vmem:[#allocation29_spill] sm:$0xff] %v14793_v8  ;;  %v5790_v34 = vshrl.u32 %v14784_v24, 16 }
 0x37f   : > { %8711 = vmatmul.mubr.bf16.gmra.mrb[212].mxu0 %v9855_v30  ;;  %v5773_v19 = vrot.slane %v5772_v37, 4  ;;  %v5978_v30 = vsel %vm11947_vm11, %v9776_v39, %v5977_v20  ;;  %v5828_v49 = vld [vmem:[#allocation3 + $0xb4] sm:$0xe]  ;;  %v14798_v45 = vpop.f32.mrb[129].mxu1  ;;  %v5793_v7 = vshll.u32 %v14784_v24, 16  ;;  %v5799_v1 = vshll.u32 %v14787_v14, 16 }
 0x380   : > { %8718 = vmatprep.mubr.bf16.mxu0 %v9872_v21  ;;  %v5783_v40 = vrot.slane %v5782_v11, 4  ;;  %v5981_v58 = vsel %vm11947_vm11, %v5979_v2, %v5980_v50  ;;  %v9873_v21 = vcombine.low %v6019_v61, %v6020_v32  ;;  %16478 = vst [vmem:[#allocation42_spill] sm:$0xff] %v14798_v45  ;;  %v14804_v37 = vpop.f32.mrb[130].mxu1  ;;  %v5792_v61 = vrot.slane %v5790_v34, 4  ;;  %v14809_v2 = vld [vmem:[#allocation3 + $0x18] sm:$0xf] }
 0x381   : > { %v5778_v20 = vsel %vm11958_vm12, %v5773_v19, %v5777_v57  ;;  %v9856_v56 = vcombine.low %v5978_v30, %v5981_v58  ;;  %16479 = vst [vmem:[#allocation43_spill] sm:$0xff] %v14804_v37  ;;  %v5803_v32 = vshrl.u32 %v14787_v14, 16  ;;  %v5809_v11 = vshll.u32 %v5428_v33, 16  ;;  %v14813_v58 = vld [vmem:[#allocation3 + $0x1c] sm:$0xf] }
 0x382   : > { %v5788_v39 = vsel %vm11958_vm12, %v5783_v40, %v5787_v3  ;;  %v5795_v57 = vrot.slane %v5793_v7, 5  ;;  %v5801_v19 = vrot.slane %v5799_v1, 5  ;;  %v9777_v30 = vrot.slane %v5828_v49, 9  ;;  %v6630_v34 = vld [vmem:[#allocation3 + $0x20] sm:$0x1] }
 0x383   : > { %8550 = vmatmul.mubr.bf16.gmra.mrb[180].mxu1 %v9823_v9  ;;  %v14811_v9 = vpop.f32.mrb[131].mxu1  ;;  %v9840_v50 = vcombine.low %v5778_v20, %v5788_v39  ;;  %v5805_v48 = vrot.slane %v5803_v32, 4  ;;  %v5811_v29 = vrot.slane %v5809_v11, 5  ;;  %v5984_v0 = vrot.slane %v14787_v14, 5 }
 0x384   : > { %16480 = vst [vmem:[#allocation18_spill] sm:$0xff] %v14811_v9  ;;  %v5987_v31 = vrot.slane %v5428_v33, 5  ;;  %v5796_v3 = vor.u32 %v5795_v57, %v5792_v61  ;;  %v9825_v40 = vcombine.low %v14784_v24, %v14787_v14  ;;  %v6647_v17 = vshrl.u32 %v14809_v2, 16  ;;  %v6021_v33 = vld [vmem:[#allocation3 + $0x14] sm:$0x1] }
 0x385   : > { %8557 = vmatprep.mubr.bf16.mxu1 %v9840_v50  ;;  %v6650_v20 = vshll.u32 %v14809_v2, 16  ;;  %v5806_v49 = vor.u32 %v5805_v48, %v5801_v19  ;;  %v5985_v7 = vsel %vm11947_vm11, %v9777_v30, %v5984_v0  ;;  %v5986_v1 = vrot.slane %v5984_v0, 4  ;;  %v6421_v24 = vld [vmem:[#allocation3 + $0xc] sm:$0xe] }
 0x386   : > { %v6656_v39 = vshll.u32 %v14813_v58, 16  ;;  %v5797_v32 = vrot.slane %v5796_v3, 4  ;;  %v6660_v11 = vshrl.u32 %v14813_v58, 16  ;;  %v9778_v37 = vrot.slane %v6421_v24, 9 }
 0x387   : > { %8719 = vmatmul.mubr.bf16.gmra.mrb[216].mxu0 %v9856_v56  ;;  %v6649_v56 = vrot.slane %v6647_v17, 4  ;;  %v6652_v61 = vrot.slane %v6650_v20, 5  ;;  %v5807_v14 = vrot.slane %v5806_v49, 4  ;;  %v5988_v50 = vsel %vm11947_vm11, %v5986_v1, %v5987_v31  ;;  %v14830_v1 = vld [vmem:[#allocation3 + $0x24] sm:$0xf] }
 0x388   : > { %8726 = vmatprep.mubr.bf16.mxu0 %v9873_v21  ;;  %v6658_v57 = vrot.slane %v6656_v39, 5  ;;  %v6666_v21 = vshll.u32 %v6630_v34, 16  ;;  %v5802_v48 = vsel %vm11958_vm12, %v5797_v32, %v5801_v19  ;;  %v9857_v0 = vcombine.low %v5985_v7, %v5988_v50 }
 0x389   : > { %v6653_v30 = vor.u32 %v6652_v61, %v6649_v56  ;;  %v6662_v9 = vrot.slane %v6660_v11, 4  ;;  %v5812_v17 = vsel %vm11958_vm12, %v5807_v14, %v5811_v29  ;;  %v6057_v20 = vshll.u32 %v6021_v33, 16  ;;  %v7031_v56 = vld [vmem:[#allocation3 + $0x24] sm:$0xe]  ;;  %v6422_v11 = vld [vmem:[#allocation3 + $0x18] sm:$0xe] }
 0x38a   : > { %v6668_v3 = vrot.slane %v6666_v21, 5  ;;  %v9841_v45 = vcombine.low %v5802_v48, %v5812_v17  ;;  %v6487_v31 = vrot.slane %v11461_v25, 5  ;;  %v6490_v19 = vrot.slane %v6021_v33, 5 }
 0x38b   : > { %8558 = vmatmul.mubr.bf16.gmra.mrb[184].mxu1 %v9824_v51  ;;  %v6654_v49 = vrot.slane %v6653_v30, 4  ;;  %v6663_v8 = vor.u32 %v6662_v9, %v6658_v57  ;;  %v14832_v51 = vld [vmem:[#allocation3 + $0x28] sm:$0xf]  ;;  %v6059_v34 = vrot.slane %v6057_v20, 5  ;;  %v9906_v7 = vcombine.low %v14809_v2, %v14813_v58  ;;  %v6631_v58 = vld [vmem:[#allocation3 + $0x2c] sm:$0x1] }
 0x38c   : > { %v6050_v29 = vsel %vm11958_vm12, %v14316_v54, %v14263_v5  ;;  %8565 = vmatprep.mubr.bf16.mxu1 %v9841_v45  ;;  %v6488_v39 = vsel %vm11947_vm11, %v9778_v37, %v6487_v31  ;;  %v6489_v32 = vrot.slane %v6487_v31, 4  ;;  %v6671_v33 = vshrl.u32 %v14830_v1, 16 }
 0x38d   : > { %v6659_v9 = vsel %vm11958_vm12, %v6654_v49, %v6658_v57  ;;  %v6664_v25 = vrot.slane %v6663_v8, 4  ;;  %v6060_v2 = vsel %vm11958_vm12, %v14388_v12, %v6059_v34  ;;  %v6674_v5 = vshll.u32 %v14830_v1, 16  ;;  %v6022_v57 = vld [vmem:[#allocation3 + $0x20] sm:$0x1] }
 0x38e   : > { %v6680_v54 = vshll.u32 %v14832_v51, 16  ;;  %v6491_v8 = vsel %vm11947_vm11, %v6489_v32, %v6490_v19  ;;  %v9874_v37 = vcombine.low %v6050_v29, %v6060_v2  ;;  %v6684_v61 = vshrl.u32 %v14832_v51, 16  ;;  %v11462_v19 = vld [vmem:[#allocation3 + $0x1c] sm:$0xf] }
 0x38f   : > { %8727 = vmatmul.mubr.bf16.gmra.mrb[220].mxu0 %v9857_v0  ;;  %v6669_v45 = vsel %vm11958_vm12, %v6664_v25, %v6668_v3  ;;  %v9890_v14 = vcombine.low %v6488_v39, %v6491_v8  ;;  %v6673_v12 = vrot.slane %v6671_v33, 4  ;;  %v6676_v50 = vrot.slane %v6674_v5, 5 }
 0x390   : > { %v9922_v24 = vcombine.low %v6659_v9, %v6669_v45  ;;  %v6682_v21 = vrot.slane %v6680_v54, 5  ;;  %v6686_v48 = vrot.slane %v6684_v61, 4  ;;  %v6690_v0 = vshll.u32 %v6631_v58, 16 }
 0x391   : > { %v9795_v30 = vrot.slane %v7031_v56, 9  ;;  %v6677_v17 = vor.u32 %v6676_v50, %v6673_v12  ;;  %v7103_v3 = vrot.slane %v14832_v51, 5  ;;  %v7106_v20 = vrot.slane %v6631_v58, 5 }
 0x392   : > { %8928 = vmatprep.mubr.bf16.mxu0 %v9922_v24  ;;  %v9779_v49 = vrot.slane %v6422_v11, 9  ;;  %v6687_v31 = vor.u32 %v6686_v48, %v6682_v21  ;;  %v6692_v34 = vrot.slane %v6690_v0, 5  ;;  %v6494_v29 = vrot.slane %v11462_v19, 5  ;;  %v6632_v24 = vld [vmem:[#allocation3 + $0x38] sm:$0x1] }
 0x393   : > { %8566 = vmatmul.mubr.bf16.gmra.mrb[188].mxu1 %v9825_v40  ;;  %v6497_v9 = vrot.slane %v6022_v57, 5  ;;  %v6678_v25 = vrot.slane %v6677_v17, 4  ;;  %v14858_v40 = vsel %vm11947_vm11, %v9795_v30, %v7103_v3  ;;  %v7105_v39 = vrot.slane %v7103_v3, 4  ;;  %v6423_v3 = vld [vmem:[#allocation3 + $0x24] sm:$0xe] }
 0x394   : > { %8767 = vmatprep.mubr.bf16.mxu1 %v9890_v14  ;;  %v9907_v32 = vcombine.low %v14830_v1, %v14832_v51  ;;  %v6688_v56 = vrot.slane %v6687_v31, 4  ;;  %v6495_v2 = vsel %vm11947_vm11, %v9779_v49, %v6494_v29  ;;  %v6496_v58 = vrot.slane %v6494_v29, 4  ;;  %v14874_v51 = vld [vmem:[#allocation3 + $0x30] sm:$0xf] }
 0x395   : > { %v6068_v33 = vor.u32 %v14392_v53, %v14334_v16  ;;  %v6683_v5 = vsel %vm11958_vm12, %v6678_v25, %v6682_v21  ;;  %v14870_v54 = vsel %vm11947_vm11, %v7105_v39, %v7106_v20  ;;  %v6071_v45 = vshll.u32 %v11462_v19, 16  ;;  %v11398_v21 = vld [vmem:[#allocation9 + $0x208] sm:$0xff]   ;;  %v11463_v19 = vld [vmem:[#allocation9 + $0x200] sm:$0xff]  }
 0x396   : > { %v16481_v8 = vshrl.u32 %v14227_v6, 16  ;;  %v6693_v61 = vsel %vm11958_vm12, %v6688_v56, %v6692_v34  ;;  %v6498_v53 = vsel %vm11947_vm11, %v6496_v58, %v6497_v9  ;;  %v6081_v6 = vshll.u32 %v6022_v57, 16  ;;  %v6023_v57 = vld [vmem:[#allocation3 + $0x2c] sm:$0x1]  ;;  %v11464_v58 = vld [vmem:[#allocation3 + $0x28] sm:$0xf] }
 0x397   : > { %8929 = vmatmul.mubr.bf16.vlgmr.msra.gmra.mrb[224].mxu0 %v9906_v7  ;;  %v14876_v7 = vld [vmem:[#allocation3 + $0x34] sm:$0xf]  ;;  %v6069_v11 = vrot.slane %v6068_v33, 4  ;;  %v9923_v14 = vcombine.low %v6683_v5, %v6693_v61  ;;  %v9891_v12 = vcombine.low %v6495_v2, %v6498_v53  ;;  %v6073_v50 = vrot.slane %v6071_v45, 5  ;;  %v11401_v5 = vld [vmem:[#allocation9 + $0x210] sm:$0xff]  }
 0x398   : > { %v6077_v1 = vrot.slane %v16481_v8, 4  ;;  %v6695_v48 = vshrl.u32 %v14874_v51, 16  ;;  %v6698_v0 = vshll.u32 %v14874_v51, 16  ;;  %v6704_v30 = vshll.u32 %v14876_v7, 16 }
 0x399   : > { %v6708_v17 = vshrl.u32 %v14876_v7, 16  ;;  %8936 = vmatprep.mubr.bf16.mxu0 %v9923_v14  ;;  %v6074_v20 = vsel %vm11958_vm12, %v6069_v11, %v6073_v50  ;;  %v6083_v31 = vrot.slane %v6081_v6, 5  ;;  %v6714_v34 = vshll.u32 %v6632_v24, 16 }
 0x39a   : > { %v6078_v49 = vor.u32 %v6077_v1, %v6073_v50  ;;  %v6700_v29 = vrot.slane %v6698_v0, 5  ;;  %v6706_v9 = vrot.slane %v6704_v30, 5  ;;  %v9780_v2 = vrot.slane %v6423_v3, 9  ;;  %v14904_v3 = vld [vmem:[#allocation3 + $0x40] sm:$0xf] }
 0x39b   : > { %8768 = vmatmul.mubr.bf16.vlgmr.msra.gmra.mrb[192].mxu1 %v9874_v37  ;;  %v6697_v37 = vrot.slane %v6695_v48, 4  ;;  %v6710_v25 = vrot.slane %v6708_v17, 4  ;;  %v6716_v56 = vrot.slane %v6714_v34, 5  ;;  %v6501_v33 = vrot.slane %v11464_v58, 5  ;;  %v14898_v48 = vld [vmem:[#allocation3 + $0x3c] sm:$0xf] }
 0x39c   : > { %8775 = vmatprep.mubr.bf16.mxu1 %v9891_v12  ;;  %11059 = vmatpush3.bf16.msra.mxu1 %v11463_v19  ;;  %v6079_v39 = vrot.slane %v6078_v49, 4  ;;  %v6504_v1 = vrot.slane %v6023_v57, 5  ;;  %v9908_v61 = vcombine.low %v14874_v51, %v14876_v7  ;;  %v6092_v14 = vor.u32 %v14459_v60, %v14424_v52  ;;  %v11404_v49 = vld [vmem:[#allocation9 + $0x218] sm:$0xff]   ;;  %v7033_v34 = vld [vmem:[#allocation3 + $0x3c] sm:$0xe] }
 0x39d   : > { %11060 = vmatprep.subr.bf16.mxu1 %v11398_v21  ;;  %v6701_v45 = vor.u32 %v6700_v29, %v6697_v37  ;;  %v6711_v8 = vor.u32 %v6710_v25, %v6706_v9  ;;  %v6502_v11 = vsel %vm11947_vm11, %v9780_v2, %v6501_v33  ;;  %v6503_v24 = vrot.slane %v6501_v33, 4 }
 0x39e   : > { %v6084_v53 = vsel %vm11958_vm12, %v6079_v39, %v6083_v31  ;;  %v6093_v7 = vrot.slane %v6092_v14, 4  ;;  %v16482_v0 = vshrl.u32 %v14319_v13, 16  ;;  %v6105_v17 = vshll.u32 %v6023_v57, 16  ;;  %v6633_v31 = vld [vmem:[#allocation3 + $0x44] sm:$0x1] }
 0x39f   : > { %8937 = vmatmul.mubr.bf16.gmra.mrb[228].mxu0 %v9907_v32  ;;  %v9875_v12 = vcombine.low %v6074_v20, %v6084_v53  ;;  %v6702_v50 = vrot.slane %v6701_v45, 4  ;;  %v6712_v6 = vrot.slane %v6711_v8, 4  ;;  %v6095_v32 = vshll.u32 %v11464_v58, 16  ;;  %v11408_v8 = vld [vmem:[#allocation9 + $0x220] sm:$0xff]  }
 0x3a0   : > { %11061 = vmatpush3.bf16.msra.mxu1 %v11398_v21  ;;  %v6505_v51 = vsel %vm11947_vm11, %v6503_v24, %v6504_v1  ;;  %v6101_v30 = vrot.slane %v16482_v0, 4  ;;  %v6107_v37 = vrot.slane %v6105_v17, 5  ;;  %v6719_v13 = vshrl.u32 %v14898_v48, 16  ;;  %v6024_v14 = vld [vmem:[#allocation3 + $0x38] sm:$0x1] }
 0x3a1   : > { %11062 = vmatprep.subr.bf16.mxu1 %v11401_v5  ;;  %v6707_v52 = vsel %vm11958_vm12, %v6702_v50, %v6706_v9  ;;  %v6717_v60 = vsel %vm11958_vm12, %v6712_v6, %v6716_v56  ;;  %v9892_v21 = vcombine.low %v6502_v11, %v6505_v51  ;;  %v6097_v20 = vrot.slane %v6095_v32, 5  ;;  %v6424_v56 = vld [vmem:[#allocation3 + $0x30] sm:$0xe]  ;;  %v11465_v17 = vld [vmem:[#allocation3 + $0x34] sm:$0xf] }
 0x3a2   : > { %v9924_v19 = vcombine.low %v6707_v52, %v6717_v60  ;;  %v6722_v57 = vshll.u32 %v14898_v48, 16  ;;  %v6728_v9 = vshll.u32 %v14904_v3, 16  ;;  %v6732_v39 = vshrl.u32 %v14904_v3, 16 }
 0x3a3   : > { %8776 = vmatmul.mubr.bf16.gmra.mrb[196].mxu1 %v9875_v12  ;;  %v6098_v29 = vsel %vm11958_vm12, %v6093_v7, %v6097_v20  ;;  %v6102_v25 = vor.u32 %v6101_v30, %v6097_v20  ;;  %v6721_v2 = vrot.slane %v6719_v13, 4  ;;  %v6738_v33 = vshll.u32 %v6633_v31, 16 }
 0x3a4   : > { %8783 = vmatprep.mubr.bf16.mxu1 %v9892_v21  ;;  %11063 = vmatpush3.bf16.msra.mxu1 %v11401_v5  ;;  %v6724_v58 = vrot.slane %v6722_v57, 5  ;;  %v9797_v45 = vrot.slane %v7033_v34, 9  ;;  %v6730_v53 = vrot.slane %v6728_v9, 5  ;;  %v6734_v11 = vrot.slane %v6732_v39, 4  ;;  %v11411_v21 = vld [vmem:[#allocation9 + $0x228] sm:$0xff]  }
 0x3a5   : > { %8944 = vmatprep.mubr.bf16.mxu0 %v9924_v19  ;;  %11064 = vmatprep.subr.bf16.mxu1 %v11404_v49  ;;  %v6103_v1 = vrot.slane %v6102_v25, 4  ;;  %v7117_v24 = vrot.slane %v14904_v3, 5  ;;  %v6740_v50 = vrot.slane %v6738_v33, 5  ;;  %v7120_v6 = vrot.slane %v6633_v31, 5  ;;  %v14939_v25 = vld [vmem:[#allocation3 + $0x4c] sm:$0xf] }
 0x3a6   : > { %v6725_v12 = vor.u32 %v6724_v58, %v6721_v2  ;;  %v9781_v32 = vrot.slane %v6424_v56, 9  ;;  %v6735_v51 = vor.u32 %v6734_v11, %v6730_v53  ;;  %v6508_v52 = vrot.slane %v11465_v17, 5  ;;  %v6634_v39 = vld [vmem:[#allocation3 + $0x50] sm:$0x1] }
 0x3a7   : > { %8945 = vmatmul.mubr.bf16.gmra.mrb[232].mxu0 %v9908_v61  ;;  %v6108_v5 = vsel %vm11958_vm12, %v6103_v1, %v6107_v37  ;;  %v14921_v7 = vsel %vm11947_vm11, %v9797_v45, %v7117_v24  ;;  %v7119_v0 = vrot.slane %v7117_v24, 4  ;;  %v6511_v60 = vrot.slane %v6024_v14, 5  ;;  %v14931_v37 = vld [vmem:[#allocation3 + $0x48] sm:$0xf]  ;;  %v6425_v24 = vld [vmem:[#allocation3 + $0x3c] sm:$0xe] }
 0x3a8   : > { %16483 = vst [vmem:[#allocation38_spill] sm:$0xff] %v14921_v7  ;;  %11065 = vmatpush3.bf16.msra.mxu1 %v11404_v49  ;;  %v9876_v61 = vcombine.low %v6098_v29, %v6108_v5  ;;  %v6726_v30 = vrot.slane %v6725_v12, 4  ;;  %v6736_v20 = vrot.slane %v6735_v51, 4  ;;  %v9909_v34 = vcombine.low %v14898_v48, %v14904_v3  ;;  %v11414_v12 = vld [vmem:[#allocation9 + $0x230] sm:$0xff]  }
 0x3a9   : > { %11066 = vmatprep.subr.bf16.mxu1 %v11408_v8  ;;  %v14925_v31 = vsel %vm11947_vm11, %v7119_v0, %v7120_v6  ;;  %v6116_v19 = vor.u32 %v14518_v41, %v14467_v46  ;;  %v6509_v57 = vsel %vm11947_vm11, %v9781_v32, %v6508_v52  ;;  %v6510_v29 = vrot.slane %v6508_v52, 4  ;;  %v6025_v32 = vld [vmem:[#allocation3 + $0x44] sm:$0x1]  ;;  %v11466_v52 = vld [vmem:[#allocation3 + $0x40] sm:$0xf] }
 0x3aa   : > { %16484 = vst [vmem:[#allocation20_spill] sm:$0xff] %v14925_v31  ;;  %v6731_v49 = vsel %vm11958_vm12, %v6726_v30, %v6730_v53  ;;  %v6741_v48 = vsel %vm11958_vm12, %v6736_v20, %v6740_v50  ;;  %v6119_v46 = vshll.u32 %v11465_v17, 16  ;;  %v16485_v41 = vshrl.u32 %v14366_v10, 16 }
 0x3ab   : > { %8784 = vmatmul.mubr.bf16.gmra.mrb[200].mxu1 %v9876_v61  ;;  %v6117_v3 = vrot.slane %v6116_v19, 4  ;;  %v9925_v56 = vcombine.low %v6731_v49, %v6741_v48  ;;  %v6512_v2 = vsel %vm11947_vm11, %v6510_v29, %v6511_v60  ;;  %v6129_v58 = vshll.u32 %v6024_v14, 16 }
 0x3ac   : > { %v6125_v9 = vrot.slane %v16485_v41, 4  ;;  %11067 = vmatpush3.bf16.msra.mxu1 %v11408_v8  ;;  %v6743_v33 = vshrl.u32 %v14931_v37, 16  ;;  %v9893_v45 = vcombine.low %v6509_v57, %v6512_v2  ;;  %v6121_v1 = vrot.slane %v6119_v46, 5  ;;  %v14959_v41 = vld [vmem:[#allocation3 + $0x54] sm:$0xf] }
 0x3ad   : > { %11068 = vmatprep.subr.bf16.mxu1 %v11411_v21  ;;  %v6746_v53 = vshll.u32 %v14931_v37, 16  ;;  %v6752_v11 = vshll.u32 %v14939_v25, 16  ;;  %8952 = vmatprep.mubr.bf16.mxu0 %v9925_v56  ;;  %v6131_v10 = vrot.slane %v6129_v58, 5  ;;  %v6756_v8 = vshrl.u32 %v14939_v25, 16 }
 0x3ae   : > { %v6745_v50 = vrot.slane %v6743_v33, 4  ;;  %v6762_v6 = vshll.u32 %v6634_v39, 16  ;;  %8791 = vmatprep.mubr.bf16.mxu1 %v9893_v45  ;;  %v6122_v14 = vsel %vm11958_vm12, %v6117_v3, %v6121_v1  ;;  %v6126_v5 = vor.u32 %v6125_v9, %v6121_v1 }
 0x3af   : > { %8953 = vmatmul.mubr.bf16.gmra.mrb[236].mxu0 %v9909_v34  ;;  %v6748_v51 = vrot.slane %v6746_v53, 5  ;;  %v6754_v0 = vrot.slane %v6752_v11, 5  ;;  %v6758_v61 = vrot.slane %v6756_v8, 4  ;;  %v9782_v17 = vrot.slane %v6425_v24, 9  ;;  %v11416_v34 = vld [vmem:[#allocation9 + $0x238] sm:$0xff]  }
 0x3b0   : > { %v6764_v30 = vrot.slane %v6762_v6, 5  ;;  %v6515_v60 = vrot.slane %v11466_v52, 5  ;;  %11069 = vmatpush3.bf16.msra.mxu1 %v11411_v21  ;;  %v6127_v20 = vrot.slane %v6126_v5, 4  ;;  %v6518_v49 = vrot.slane %v6025_v32, 5  ;;  %v6635_v11 = vld [vmem:[#allocation3 + $0x5c] sm:$0x1] }
 0x3b1   : > { %v6749_v19 = vor.u32 %v6748_v51, %v6745_v50  ;;  %v9910_v57 = vcombine.low %v14931_v37, %v14939_v25  ;;  %11070 = vmatprep.subr.bf16.mxu1 %v11414_v12  ;;  %v6759_v29 = vor.u32 %v6758_v61, %v6754_v0  ;;  %v6140_v46 = vor.u32 %v14523_v59, %v14521_v38  ;;  %v14965_v25 = vld [vmem:[#allocation3 + $0x58] sm:$0xf]  ;;  %v7035_v8 = vld [vmem:[#allocation3 + $0x54] sm:$0xe]  ;;  %v6426_v5 = vld [vmem:[#allocation3 + $0x48] sm:$0xe] }
 0x3b2   : > { %v6516_v48 = vsel %vm11947_vm11, %v9782_v17, %v6515_v60  ;;  %v6517_v3 = vrot.slane %v6515_v60, 4  ;;  %v6132_v21 = vsel %vm11958_vm12, %v6127_v20, %v6131_v10  ;;  %v6143_v39 = vshll.u32 %v11466_v52, 16 }
 0x3b3   : > { %v6750_v9 = vrot.slane %v6749_v19, 4  ;;  %v16486_v56 = vshrl.u32 %v14433_v15, 16  ;;  %v9877_v2 = vcombine.low %v6122_v14, %v6132_v21  ;;  %v6760_v58 = vrot.slane %v6759_v29, 4 }
 0x3b4   : > { %v6519_v33 = vsel %vm11947_vm11, %v6517_v3, %v6518_v49  ;;  %v6141_v45 = vrot.slane %v6140_v46, 4  ;;  %11071 = vmatpush3.bf16.msra.mxu1 %v11414_v12  ;;  %v6145_v1 = vrot.slane %v6143_v39, 5  ;;  %v6153_v53 = vshll.u32 %v6025_v32, 16 }
 0x3b5   : > { %v6149_v37 = vrot.slane %v16486_v56, 4  ;;  %v6755_v38 = vsel %vm11958_vm12, %v6750_v9, %v6754_v0  ;;  %v9894_v59 = vcombine.low %v6516_v48, %v6519_v33  ;;  %11072 = vmatprep.subr.bf16.mxu1 %v11416_v34  ;;  %8792 = vmatmul.mubr.bf16.gmra.mrb[204].mxu1 %v9877_v2  ;;  %v6765_v15 = vsel %vm11958_vm12, %v6760_v58, %v6764_v30  ;;  %v6026_v48 = vld [vmem:[#allocation3 + $0x50] sm:$0x1]  ;;  %v11467_v2 = vld [vmem:[#allocation3 + $0x4c] sm:$0xf] }
 0x3b6   : > { %v6767_v24 = vshrl.u32 %v14959_v41, 16  ;;  %v6770_v10 = vshll.u32 %v14959_v41, 16  ;;  %v6776_v50 = vshll.u32 %v14965_v25, 16  ;;  %v9926_v12 = vcombine.low %v6755_v38, %v6765_v15 }
 0x3b7   : > { %8799 = vmatprep.mubr.bf16.mxu1 %v9894_v59  ;;  %v6146_v6 = vsel %vm11958_vm12, %v6141_v45, %v6145_v1  ;;  %v6150_v14 = vor.u32 %v6149_v37, %v6145_v1  ;;  %v6155_v32 = vrot.slane %v6153_v53, 5  ;;  %v6780_v30 = vshrl.u32 %v14965_v25, 16  ;;  %v14994_v59 = vld [vmem:[#allocation3 + $0x60] sm:$0xf] }
 0x3b8   : > { %v6769_v51 = vrot.slane %v6767_v24, 4  ;;  %v6772_v0 = vrot.slane %v6770_v10, 5  ;;  %v6778_v61 = vrot.slane %v6776_v50, 5  ;;  %11073 = vmatpush3.bf16.msra.mxu1 %v11416_v34  ;;  %8960 = vmatprep.mubr.bf16.mxu0 %v9926_v12  ;;  %v6786_v52 = vshll.u32 %v6635_v11, 16  ;;  %v15002_v24 = vld [vmem:[#allocation3 + $0x64] sm:$0xf] }
 0x3b9   : > { %v6151_v17 = vrot.slane %v6150_v14, 4  ;;  %v9799_v60 = vrot.slane %v7035_v8, 9  ;;  %v7131_v20 = vrot.slane %v14965_v25, 5  ;;  %8961 = vmatmul.mubr.bf16.gmra.mrb[240].mxu0 %v9910_v57  ;;  %v6782_v49 = vrot.slane %v6780_v30, 4  ;;  %v6427_v14 = vld [vmem:[#allocation3 + $0x54] sm:$0xe] }
 0x3ba   : > { %v6773_v19 = vor.u32 %v6772_v0, %v6769_v51  ;;  %v7134_v29 = vrot.slane %v6635_v11, 5  ;;  %v9783_v3 = vrot.slane %v6426_v5, 9  ;;  %v6788_v21 = vrot.slane %v6786_v52, 5 }
 0x3bb   : > { %v6156_v46 = vsel %vm11958_vm12, %v6151_v17, %v6155_v32  ;;  %v14984_v9 = vsel %vm11947_vm11, %v9799_v60, %v7131_v20  ;;  %v7133_v34 = vrot.slane %v7131_v20, 4  ;;  %v6783_v37 = vor.u32 %v6782_v49, %v6778_v61 }
 0x3bc   : > { %16487 = vst [vmem:[#allocation23_spill] sm:$0xff] %v14984_v9  ;;  %v9878_v39 = vcombine.low %v6146_v6, %v6156_v46  ;;  %v6774_v56 = vrot.slane %v6773_v19, 4  ;;  %v6522_v58 = vrot.slane %v11467_v2, 5  ;;  %v6525_v33 = vrot.slane %v6026_v48, 5  ;;  %v6027_v19 = vld [vmem:[#allocation3 + $0x5c] sm:$0x1] }
 0x3bd   : > { %v14988_v57 = vsel %vm11947_vm11, %v7133_v34, %v7134_v29  ;;  %v9911_v45 = vcombine.low %v14959_v41, %v14965_v25  ;;  %v6164_v38 = vor.u32 %v14547_v35, %v14530_v36  ;;  %v6784_v53 = vrot.slane %v6783_v37, 4  ;;  %v11468_v37 = vld [vmem:[#allocation3 + $0x58] sm:$0xf] }
 0x3be   : > { %16488 = vst [vmem:[#allocation25_spill] sm:$0xff] %v14988_v57  ;;  %8800 = vmatmul.mubr.bf16.gmra.mrb[208].mxu1 %v9878_v39  ;;  %v6779_v1 = vsel %vm11958_vm12, %v6774_v56, %v6778_v61  ;;  %v6523_v15 = vsel %vm11947_vm11, %v9783_v3, %v6522_v58  ;;  %v6524_v10 = vrot.slane %v6522_v58, 4  ;;  %v6167_v25 = vshll.u32 %v11467_v2, 16  ;;  %v6636_v61 = vld [vmem:[#allocation3 + $0x68] sm:$0x1] }
 0x3bf   : > { %v6165_v41 = vrot.slane %v6164_v38, 4  ;;  %v16489_v36 = vshrl.u32 %v14490_v47, 16  ;;  %v6789_v50 = vsel %vm11958_vm12, %v6784_v53, %v6788_v21  ;;  %v6177_v8 = vshll.u32 %v6026_v48, 16 }
 0x3c0   : > { %v6791_v12 = vshrl.u32 %v14994_v59, 16  ;;  %v6794_v6 = vshll.u32 %v14994_v59, 16  ;;  %v15010_v32 = vpop.f32.mrb[160].mxu0  ;;  %v9927_v5 = vcombine.low %v6779_v1, %v6789_v50  ;;  %v6526_v51 = vsel %vm11947_vm11, %v6524_v10, %v6525_v33  ;;  %v15032_v50 = vld [vmem:[#allocation3 + $0x6c] sm:$0xf] }
 0x3c1   : > { %v6173_v35 = vrot.slane %v16489_v36, 4  ;;  %v6169_v0 = vrot.slane %v6167_v25, 5  ;;  %v6800_v47 = vshll.u32 %v15002_v24, 16  ;;  %v15015_v30 = vpop.f32.mrb[161].mxu0  ;;  %v9895_v17 = vcombine.low %v6523_v15, %v6526_v51 }
 0x3c2   : > { %v6179_v52 = vrot.slane %v6177_v8, 5  ;;  %v6793_v60 = vrot.slane %v6791_v12, 4  ;;  %v6796_v20 = vrot.slane %v6794_v6, 5  ;;  %v15017_v49 = vpop.f32.mrb[162].mxu0  ;;  %8968 = vmatprep.mubr.bf16.mxu0 %v9927_v5  ;;  %v6804_v46 = vshrl.u32 %v15002_v24, 16 }
 0x3c3   : > { %v6170_v29 = vsel %vm11958_vm12, %v6165_v41, %v6169_v0  ;;  %v6174_v48 = vor.u32 %v6173_v35, %v6169_v0  ;;  %v6802_v3 = vrot.slane %v6800_v47, 5  ;;  %v15022_v21 = vpop.f32.mrb[163].mxu0  ;;  %8807 = vmatprep.mubr.bf16.mxu1 %v9895_v17  ;;  %8969 = vmatmul.mubr.bf16.gmra.mrb[244].mxu0 %v9911_v45  ;;  %v6810_v39 = vshll.u32 %v6636_v61, 16  ;;  %v15034_v8 = vld [vmem:[#allocation3 + $0x70] sm:$0xf] }
 0x3c4   : > { %v6797_v34 = vor.u32 %v6796_v20, %v6793_v60  ;;  %v9784_v56 = vrot.slane %v6427_v14, 9  ;;  %v6529_v2 = vrot.slane %v11468_v37, 5  ;;  %v6806_v33 = vrot.slane %v6804_v46, 4 }
 0x3c5   : > { %v6175_v58 = vrot.slane %v6174_v48, 4  ;;  %v6532_v38 = vrot.slane %v6027_v19, 5  ;;  %v9912_v1 = vcombine.low %v14994_v59, %v15002_v24  ;;  %v6812_v15 = vrot.slane %v6810_v39, 5  ;;  %v7037_v48 = vld [vmem:[#allocation3 + $0x6c] sm:$0xe] }
 0x3c6   : > { %v6798_v53 = vrot.slane %v6797_v34, 4  ;;  %v6530_v10 = vsel %vm11947_vm11, %v9784_v56, %v6529_v2  ;;  %v6531_v41 = vrot.slane %v6529_v2, 4  ;;  %v6807_v25 = vor.u32 %v6806_v33, %v6802_v3  ;;  %v6428_v39 = vld [vmem:[#allocation3 + $0x60] sm:$0xe] }
 0x3c7   : > { %v6180_v45 = vsel %vm11958_vm12, %v6175_v58, %v6179_v52  ;;  %v6188_v36 = vor.u32 %v14580_v22, %v14576_v18  ;;  %v6191_v35 = vshll.u32 %v11468_v37, 16  ;;  %v16490_v6 = vshrl.u32 %v14532_v23, 16  ;;  %v6637_v22 = vld [vmem:[#allocation3 + $0x74] sm:$0x1] }
 0x3c8   : > { %v9879_v12 = vcombine.low %v6170_v29, %v6180_v45  ;;  %v6803_v59 = vsel %vm11958_vm12, %v6798_v53, %v6802_v3  ;;  %v6533_v24 = vsel %vm11947_vm11, %v6531_v41, %v6532_v38  ;;  %v6808_v5 = vrot.slane %v6807_v25, 4 }
 0x3c9   : > { %v6197_v14 = vrot.slane %v16490_v6, 4  ;;  %v9896_v51 = vcombine.low %v6530_v10, %v6533_v24  ;;  %v6189_v0 = vrot.slane %v6188_v36, 4  ;;  %v6193_v61 = vrot.slane %v6191_v35, 5  ;;  %v6028_v10 = vld [vmem:[#allocation3 + $0x68] sm:$0x1] }
 0x3ca   : > { %8808 = vmatmul.mubr.bf16.gmra.mrb[212].mxu1 %v9879_v12  ;;  %v6201_v18 = vshll.u32 %v6027_v19, 16  ;;  %v6815_v47 = vshrl.u32 %v15032_v50, 16  ;;  %v6818_v17 = vshll.u32 %v15032_v50, 16  ;;  %v6824_v52 = vshll.u32 %v15034_v8, 16 }
 0x3cb   : > { %v6813_v60 = vsel %vm11958_vm12, %v6808_v5, %v6812_v15  ;;  %8815 = vmatprep.mubr.bf16.mxu1 %v9896_v51  ;;  %v6194_v23 = vsel %vm11958_vm12, %v6189_v0, %v6193_v61  ;;  %v6198_v20 = vor.u32 %v6197_v14, %v6193_v61  ;;  %v6828_v29 = vshrl.u32 %v15034_v8, 16  ;;  %v11469_v14 = vld [vmem:[#allocation3 + $0x64] sm:$0xf] }
 0x3cc   : > { %v9928_v3 = vcombine.low %v6803_v59, %v6813_v60  ;;  %v6203_v19 = vrot.slane %v6201_v18, 5  ;;  %v6817_v46 = vrot.slane %v6815_v47, 4  ;;  %v6820_v34 = vrot.slane %v6818_v17, 5  ;;  %v15067_v47 = vld [vmem:[#allocation3 + $0x78] sm:$0xf] }
 0x3cd   : > { %v6199_v56 = vrot.slane %v6198_v20, 4  ;;  %v6826_v37 = vrot.slane %v6824_v52, 5  ;;  %v6830_v2 = vrot.slane %v6828_v29, 4  ;;  %v6834_v58 = vshll.u32 %v6637_v22, 16  ;;  %v15075_v60 = vld [vmem:[#allocation3 + $0x7c] sm:$0xf] }
 0x3ce   : > { %8976 = vmatprep.mubr.bf16.mxu0 %v9928_v3  ;;  %v6821_v33 = vor.u32 %v6820_v34, %v6817_v46  ;;  %v9801_v38 = vrot.slane %v7037_v48, 9  ;;  %v7145_v53 = vrot.slane %v15034_v8, 5  ;;  %v7148_v15 = vrot.slane %v6637_v22, 5  ;;  %v6638_v48 = vld [vmem:[#allocation3 + $0x80] sm:$0x1] }
 0x3cf   : > { %8977 = vmatmul.mubr.bf16.gmra.mrb[248].mxu0 %v9912_v1  ;;  %v6204_v41 = vsel %vm11958_vm12, %v6199_v56, %v6203_v19  ;;  %v6831_v45 = vor.u32 %v6830_v2, %v6826_v37  ;;  %v6836_v25 = vrot.slane %v6834_v58, 5  ;;  %v9785_v36 = vrot.slane %v6428_v39, 9  ;;  %v6429_v3 = vld [vmem:[#allocation3 + $0x6c] sm:$0xe] }
 0x3d0   : > { %v9880_v35 = vcombine.low %v6194_v23, %v6204_v41  ;;  %v6822_v12 = vrot.slane %v6821_v33, 4  ;;  %v15055_v59 = vsel %vm11947_vm11, %v9801_v38, %v7145_v53  ;;  %v7147_v24 = vrot.slane %v7145_v53, 4  ;;  %v6029_v53 = vld [vmem:[#allocation3 + $0x74] sm:$0x1] }
 0x3d1   : > { %16491 = vst [vmem:[#allocation45_spill] sm:$0xff] %v15055_v59  ;;  %v6832_v6 = vrot.slane %v6831_v45, 4  ;;  %v6536_v5 = vrot.slane %v11469_v14, 5  ;;  %v6539_v51 = vrot.slane %v6028_v10, 5  ;;  %v9913_v1 = vcombine.low %v15032_v50, %v15034_v8 }
 0x3d2   : > { %8816 = vmatmul.mubr.bf16.gmra.mrb[216].mxu1 %v9880_v35  ;;  %v6827_v0 = vsel %vm11958_vm12, %v6822_v12, %v6826_v37  ;;  %v15063_v61 = vsel %vm11947_vm11, %v7147_v24, %v7148_v15  ;;  %v6212_v18 = vor.u32 %v14606_v42, %v14591_v44  ;;  %v6215_v22 = vshll.u32 %v11469_v14, 16 }
 0x3d3   : > { %16492 = vst [vmem:[#allocation44_spill] sm:$0xff] %v15063_v61  ;;  %v6837_v17 = vsel %vm11958_vm12, %v6832_v6, %v6836_v25  ;;  %v6537_v8 = vsel %vm11947_vm11, %v9785_v36, %v6536_v5  ;;  %v6538_v52 = vrot.slane %v6536_v5, 4  ;;  %v16493_v44 = vshrl.u32 %v14555_v27, 16 }
 0x3d4   : > { %v9929_v23 = vcombine.low %v6827_v0, %v6837_v17  ;;  %v6213_v20 = vrot.slane %v6212_v18, 4  ;;  %v6217_v29 = vrot.slane %v6215_v22, 5  ;;  %v6225_v34 = vshll.u32 %v6028_v10, 16  ;;  %v11470_v22 = vld [vmem:[#allocation3 + $0x70] sm:$0xf] }
 0x3d5   : > { %v6221_v42 = vrot.slane %v16493_v44, 4  ;;  %v6540_v46 = vsel %vm11947_vm11, %v6538_v52, %v6539_v51  ;;  %v6839_v39 = vshrl.u32 %v15067_v47, 16  ;;  %v6842_v56 = vshll.u32 %v15067_v47, 16 }
 0x3d6   : > { %v15079_v19 = vpop.f32.mrb[132].mxu1  ;;  %8984 = vmatprep.mubr.bf16.mxu0 %v9929_v23  ;;  %v9897_v58 = vcombine.low %v6537_v8, %v6540_v46  ;;  %v6218_v27 = vsel %vm11958_vm12, %v6213_v20, %v6217_v29  ;;  %v6848_v38 = vshll.u32 %v15075_v60, 16  ;;  %v6227_v41 = vrot.slane %v6225_v34, 5 }
 0x3d7   : > { %v15085_v37 = vpop.f32.mrb[164].mxu0  ;;  %v15087_v2 = vpop.f32.mrb[133].mxu1  ;;  %v6222_v33 = vor.u32 %v6221_v42, %v6217_v29  ;;  %8985 = vmatmul.mubr.bf16.gmra.mrb[252].mxu0 %v9913_v1  ;;  %v6841_v45 = vrot.slane %v6839_v39, 4  ;;  %v6844_v25 = vrot.slane %v6842_v56, 5  ;;  %v6852_v36 = vshrl.u32 %v15075_v60, 16 }
 0x3d8   : > { %v15092_v15 = vpop.f32.mrb[165].mxu0  ;;  %v15094_v10 = vpop.f32.mrb[134].mxu1  ;;  %8823 = vmatprep.mubr.bf16.mxu1 %v9897_v58  ;;  %v6850_v6 = vrot.slane %v6848_v38, 5  ;;  %v6858_v14 = vshll.u32 %v6638_v48, 16  ;;  %v9914_v5 = vcombine.low %v15067_v47, %v15075_v60  ;;  %v9786_v18 = vrot.slane %v6429_v3, 9 }
 0x3d9   : > { %v15097_v35 = vpop.f32.mrb[166].mxu0  ;;  %v15099_v12 = vpop.f32.mrb[135].mxu1  ;;  %v6223_v24 = vrot.slane %v6222_v33, 4  ;;  %v6845_v0 = vor.u32 %v6844_v25, %v6841_v45  ;;  %v6854_v1 = vrot.slane %v6852_v36, 4  ;;  %v6543_v17 = vrot.slane %v11470_v22, 5 }
 0x3da   : > { %v15103_v51 = vpop.f32.mrb[167].mxu0  ;;  %v6860_v52 = vrot.slane %v6858_v14, 5  ;;  %v6546_v23 = vrot.slane %v6029_v53, 5  ;;  %v6236_v20 = vor.u32 %v14638_v55, %v14636_v26  ;;  %v15109_v29 = vld [vmem:[#allocation3 + $0x84] sm:$0xf]  ;;  %v6239_v34 = vshll.u32 %v11470_v22, 16 }
 0x3db   : > { %v6228_v8 = vsel %vm11958_vm12, %v6223_v24, %v6227_v41  ;;  %v6846_v42 = vrot.slane %v6845_v0, 4  ;;  %v6855_v47 = vor.u32 %v6854_v1, %v6850_v6  ;;  %v6544_v60 = vsel %vm11947_vm11, %v9786_v18, %v6543_v17  ;;  %v15113_v48 = vld [vmem:[#allocation3 + $0x88] sm:$0xf]  ;;  %v7039_v33 = vld [vmem:[#allocation3 + $0x84] sm:$0xe] }
 0x3dc   : > { %v9881_v44 = vcombine.low %v6218_v27, %v6228_v8  ;;  %v6545_v3 = vrot.slane %v6543_v17, 4  ;;  %v6237_v46 = vrot.slane %v6236_v20, 4  ;;  %v16494_v39 = vshrl.u32 %v14589_v43, 16  ;;  %v6639_v45 = vld [vmem:[#allocation3 + $0x8c] sm:$0x1] }
 0x3dd   : > { %v6851_v26 = vsel %vm11958_vm12, %v6846_v42, %v6850_v6  ;;  %v6856_v55 = vrot.slane %v6855_v47, 4  ;;  %v6249_v58 = vshll.u32 %v6029_v53, 16  ;;  %v6863_v27 = vshrl.u32 %v15109_v29, 16  ;;  %v6430_v22 = vld [vmem:[#allocation3 + $0x78] sm:$0xe] }
 0x3de   : > { %v6245_v56 = vrot.slane %v16494_v39, 4  ;;  %8824 = vmatmul.mubr.bf16.gmra.mrb[220].mxu1 %v9881_v44  ;;  %v6547_v38 = vsel %vm11947_vm11, %v6545_v3, %v6546_v23  ;;  %v6241_v41 = vrot.slane %v6239_v34, 5  ;;  %v6866_v25 = vshll.u32 %v15109_v29, 16 }
 0x3df   : > { %v6872_v36 = vshll.u32 %v15113_v48, 16  ;;  %v6861_v43 = vsel %vm11958_vm12, %v6856_v55, %v6860_v52  ;;  %v9898_v24 = vcombine.low %v6544_v60, %v6547_v38  ;;  %v6251_v14 = vrot.slane %v6249_v58, 5 }
 0x3e0   : > { %v6865_v6 = vrot.slane %v6863_v27, 4  ;;  %v9930_v0 = vcombine.low %v6851_v26, %v6861_v43  ;;  %v6242_v53 = vsel %vm11958_vm12, %v6237_v46, %v6241_v41  ;;  %v6246_v1 = vor.u32 %v6245_v56, %v6241_v41  ;;  %v6030_v46 = vld [vmem:[#allocation3 + $0x80] sm:$0x1]  ;;  %v11471_v43 = vld [vmem:[#allocation3 + $0x7c] sm:$0xf] }
 0x3e1   : > { %v6868_v18 = vrot.slane %v6866_v25, 5  ;;  %8831 = vmatprep.mubr.bf16.mxu1 %v9898_v24  ;;  %v6874_v8 = vrot.slane %v6872_v36, 5  ;;  %v6876_v23 = vshrl.u32 %v15113_v48, 16  ;;  %v6882_v20 = vshll.u32 %v6639_v45, 16 }
 0x3e2   : > { %v15128_v17 = vpop.f32.mrb[136].mxu1  ;;  %v9803_v44 = vrot.slane %v7039_v33, 9  ;;  %8992 = vmatprep.mubr.bf16.mxu0 %v9930_v0  ;;  %v6247_v52 = vrot.slane %v6246_v1, 4  ;;  %v7159_v60 = vrot.slane %v15113_v48, 5  ;;  %v7162_v3 = vrot.slane %v6639_v45, 5  ;;  %v16497_v0 = vld [vmem:[#allocation19_spill] sm:$0xff] }
 0x3e3   : > { %v15131_v42 = vpop.f32.mrb[137].mxu1  ;;  %v6869_v47 = vor.u32 %v6868_v18, %v6865_v6  ;;  %8993 = vmatmul.mubr.bf16.gmra.mrb[0].mxu0 %v9914_v5  ;;  %v6878_v39 = vrot.slane %v6876_v23, 4  ;;  %v6884_v56 = vrot.slane %v6882_v20, 5  ;;  %v9915_v26 = vcombine.low %v15109_v29, %v15113_v48 }
 0x3e4   : > { %v15134_v34 = vpop.f32.mrb[138].mxu1  ;;  %v9787_v55 = vrot.slane %v6430_v22, 9  ;;  %v6252_v33 = vsel %vm11958_vm12, %v6247_v52, %v6251_v14  ;;  %v15146_v41 = vsel %vm11947_vm11, %v9803_v44, %v7159_v60  ;;  %v7161_v45 = vrot.slane %v7159_v60, 4  ;;  %v15160_v22 = vld [vmem:[#allocation3 + $0x90] sm:$0xf]  ;;  %v16498_v60 = vld [vmem:[#allocation34_spill] sm:$0xff] }
 0x3e5   : > { %v15140_v27 = vpop.f32.mrb[139].mxu1  ;;  %v6870_v38 = vrot.slane %v6869_v47, 4  ;;  %16495 = vst [vmem:[#allocation46_spill] sm:$0xff] %v15146_v41  ;;  %v9882_v25 = vcombine.low %v6242_v53, %v6252_v33  ;;  %v6879_v36 = vor.u32 %v6878_v39, %v6874_v8  ;;  %v6550_v29 = vrot.slane %v11471_v43, 5  ;;  %v15170_v33 = vld [vmem:[#allocation3 + $0x94] sm:$0xf] }
 0x3e6   : > { %v15138_v58 = vpop.f32.mrb[168].mxu0  ;;  %v6553_v48 = vrot.slane %v6030_v46, 5  ;;  %v15156_v14 = vsel %vm11947_vm11, %v7161_v45, %v7162_v3  ;;  %v6260_v1 = vor.u32 %v16497_v0, %v14664_v28  ;;  %v6263_v18 = vshll.u32 %v11471_v43, 16 }
 0x3e7   : > { %v15148_v5 = vpop.f32.mrb[169].mxu0  ;;  %v6875_v6 = vsel %vm11958_vm12, %v6870_v38, %v6874_v8  ;;  %16496 = vst [vmem:[#allocation17_spill] sm:$0xff] %v15156_v14  ;;  %8832 = vmatmul.mubr.bf16.gmra.mrb[224].mxu1 %v9882_v25  ;;  %v6880_v23 = vrot.slane %v6879_v36, 4  ;;  %v6551_v8 = vsel %vm11947_vm11, %v9787_v55, %v6550_v29  ;;  %v6552_v44 = vrot.slane %v6550_v29, 4  ;;  %v6640_v25 = vld [vmem:[#allocation3 + $0x98] sm:$0x1] }
 0x3e8   : > { %v15150_v24 = vpop.f32.mrb[170].mxu0  ;;  %v6261_v52 = vrot.slane %v6260_v1, 4  ;;  %v6265_v47 = vrot.slane %v6263_v18, 5  ;;  %v16499_v3 = vshrl.u32 %v16498_v60, 16  ;;  %v6273_v28 = vshll.u32 %v6030_v46, 16 }
 0x3e9   : > { %v15162_v53 = vpop.f32.mrb[171].mxu0  ;;  %v6885_v38 = vsel %vm11958_vm12, %v6880_v23, %v6884_v56  ;;  %v6554_v45 = vsel %vm11947_vm11, %v6552_v44, %v6553_v48  ;;  %v6887_v36 = vshrl.u32 %v15160_v22, 16  ;;  %v6890_v55 = vshll.u32 %v15160_v22, 16  ;;  %v6431_v46 = vld [vmem:[#allocation3 + $0x84] sm:$0xe] }
 0x3ea   : > { %v6269_v39 = vrot.slane %v16499_v3, 4  ;;  %v9931_v43 = vcombine.low %v6875_v6, %v6885_v38  ;;  %v9899_v29 = vcombine.low %v6551_v8, %v6554_v45  ;;  %v6266_v0 = vsel %vm11958_vm12, %v6261_v52, %v6265_v47  ;;  %v6031_v23 = vld [vmem:[#allocation3 + $0x8c] sm:$0x1] }
 0x3eb   : > { %v6275_v18 = vrot.slane %v6273_v28, 5  ;;  %v6889_v60 = vrot.slane %v6887_v36, 4  ;;  %v6892_v3 = vrot.slane %v6890_v55, 5  ;;  %v6896_v56 = vshll.u32 %v15170_v33, 16 }
 0x3ec   : > { %v6270_v1 = vor.u32 %v6269_v39, %v6265_v47  ;;  %9000 = vmatprep.mubr.bf16.mxu0 %v9931_v43  ;;  %8839 = vmatprep.mubr.bf16.mxu1 %v9899_v29  ;;  %v6900_v44 = vshrl.u32 %v15170_v33, 16  ;;  %v6906_v20 = vshll.u32 %v6640_v25, 16  ;;  %v9916_v6 = vcombine.low %v15160_v22, %v15170_v33  ;;  %v11472_v39 = vld [vmem:[#allocation3 + $0x88] sm:$0xf]  ;;  %v15186_v43 = vld [vmem:[#allocation3 + $0x9c] sm:$0xf] }
 0x3ed   : > { %9001 = vmatmul.mubr.bf16.gmra.mrb[4].mxu0 %v9915_v26  ;;  %v6893_v8 = vor.u32 %v6892_v3, %v6889_v60  ;;  %v6898_v52 = vrot.slane %v6896_v56, 5  ;;  %v9788_v47 = vrot.slane %v6431_v46, 9  ;;  %v6557_v28 = vrot.slane %v11472_v39, 5  ;;  %v16500_v33 = vld [vmem:[#allocation22_spill] sm:$0xff]  ;;  %v16501_v3 = vld [vmem:[#allocation32_spill] sm:$0xff] }
 0x3ee   : > { %v6271_v48 = vrot.slane %v6270_v1, 4  ;;  %v6902_v45 = vrot.slane %v6900_v44, 4  ;;  %v6908_v36 = vrot.slane %v6906_v20, 5  ;;  %v6560_v55 = vrot.slane %v6031_v23, 5 }
 0x3ef   : > { %v6894_v1 = vrot.slane %v6893_v8, 4  ;;  %v6558_v25 = vsel %vm11947_vm11, %v9788_v47, %v6557_v28  ;;  %v6559_v22 = vrot.slane %v6557_v28, 4  ;;  %v6284_v46 = vor.u32 %v16500_v33, %v14694_v63  ;;  %v7041_v8 = vld [vmem:[#allocation3 + $0x9c] sm:$0xe] }
 0x3f0   : > { %v6276_v38 = vsel %vm11958_vm12, %v6271_v48, %v6275_v18  ;;  %v6903_v26 = vor.u32 %v6902_v45, %v6898_v52  ;;  %v6287_v60 = vshll.u32 %v11472_v39, 16  ;;  %v16502_v56 = vshrl.u32 %v16501_v3, 16  ;;  %v15194_v18 = vld [vmem:[#allocation3 + $0xa0] sm:$0xf]  ;;  %v6641_v45 = vld [vmem:[#allocation3 + $0xa4] sm:$0x1] }
 0x3f1   : > { %v9883_v29 = vcombine.low %v6266_v0, %v6276_v38  ;;  %v6899_v20 = vsel %vm11958_vm12, %v6894_v1, %v6898_v52  ;;  %v6561_v0 = vsel %vm11947_vm11, %v6559_v22, %v6560_v55  ;;  %v6297_v48 = vshll.u32 %v6031_v23, 16 }
 0x3f2   : > { %v6293_v50 = vrot.slane %v16502_v56, 4  ;;  %v6911_v44 = vshrl.u32 %v15186_v43, 16  ;;  %v6904_v63 = vrot.slane %v6903_v26, 4  ;;  %v9900_v39 = vcombine.low %v6558_v25, %v6561_v0 }
 0x3f3   : > { %8840 = vmatmul.mubr.bf16.gmra.mrb[228].mxu1 %v9883_v29  ;;  %v6285_v28 = vrot.slane %v6284_v46, 4  ;;  %v6289_v38 = vrot.slane %v6287_v60, 5  ;;  %v6299_v29 = vrot.slane %v6297_v48, 5  ;;  %v6914_v52 = vshll.u32 %v15186_v43, 16 }
 0x3f4   : > { %v15201_v47 = vpop.f32.mrb[140].mxu1  ;;  %v6913_v3 = vrot.slane %v6911_v44, 4  ;;  %v6920_v1 = vshll.u32 %v15194_v18, 16  ;;  %v6909_v23 = vsel %vm11958_vm12, %v6904_v63, %v6908_v36  ;;  %8847 = vmatprep.mubr.bf16.mxu1 %v9900_v39  ;;  %v6924_v26 = vshrl.u32 %v15194_v18, 16  ;;  %v6432_v44 = vld [vmem:[#allocation3 + $0x90] sm:$0xe] }
 0x3f5   : > { %v15203_v33 = vpop.f32.mrb[141].mxu1  ;;  %v6290_v25 = vsel %vm11958_vm12, %v6285_v28, %v6289_v38  ;;  %v6294_v22 = vor.u32 %v6293_v50, %v6289_v38  ;;  %v9932_v60 = vcombine.low %v6899_v20, %v6909_v23  ;;  %v6916_v56 = vrot.slane %v6914_v52, 5  ;;  %v6032_v38 = vld [vmem:[#allocation3 + $0x98] sm:$0x1] }
 0x3f6   : > { %v15207_v55 = vpop.f32.mrb[142].mxu1  ;;  %v6922_v0 = vrot.slane %v6920_v1, 5  ;;  %v6930_v48 = vshll.u32 %v6641_v45, 16  ;;  %v6926_v16 = vrot.slane %v6924_v26, 4  ;;  %v9805_v14 = vrot.slane %v7041_v8, 9 }
 0x3f7   : > { %v15214_v46 = vpop.f32.mrb[143].mxu1  ;;  %v15216_v11 = vpop.f32.mrb[172].mxu0  ;;  %v6295_v13 = vrot.slane %v6294_v22, 4  ;;  %v7173_v36 = vrot.slane %v15194_v18, 5  ;;  %9008 = vmatprep.mubr.bf16.mxu0 %v9932_v60  ;;  %v6917_v50 = vor.u32 %v6916_v56, %v6913_v3  ;;  %v7176_v28 = vrot.slane %v6641_v45, 5 }
 0x3f8   : > { %v15219_v63 = vpop.f32.mrb[173].mxu0  ;;  %v6932_v39 = vrot.slane %v6930_v48, 5  ;;  %v9917_v20 = vcombine.low %v15186_v43, %v15194_v18  ;;  %9009 = vmatmul.mubr.bf16.gmra.mrb[8].mxu0 %v9916_v6  ;;  %v6927_v23 = vor.u32 %v6926_v16, %v6922_v0  ;;  %v9789_v60 = vrot.slane %v6432_v44, 9  ;;  %v11473_v56 = vld [vmem:[#allocation3 + $0x94] sm:$0xf] }
 0x3f9   : > { %v15223_v52 = vpop.f32.mrb[174].mxu0  ;;  %v6300_v1 = vsel %vm11958_vm12, %v6295_v13, %v6299_v29  ;;  %v15229_v8 = vsel %vm11947_vm11, %v9805_v14, %v7173_v36  ;;  %v7175_v22 = vrot.slane %v7173_v36, 4  ;;  %v6918_v45 = vrot.slane %v6917_v50, 4  ;;  %v15236_v6 = vld [vmem:[%s16209_s4] ss:$0 sm:$0xff]  ;;  %v16505_v14 = vld [vmem:[#allocation29_spill] sm:$0xff] }
 0x3fa   : > { %16503 = vst [vmem:[#allocation16_spill] sm:$0xff] %v15229_v8  ;;  %v15231_v26 = vpop.f32.mrb[175].mxu0  ;;  %v9884_v3 = vcombine.low %v6290_v25, %v6300_v1  ;;  %v6564_v43 = vrot.slane %v11473_v56, 5  ;;  %v6928_v18 = vrot.slane %v6927_v23, 4  ;;  %v6567_v13 = vrot.slane %v6032_v38, 5  ;;  %v16506_v29 = vld [vmem:[#allocation42_spill] sm:$0xff] }
 0x3fb   : > { %v15240_v16 = vsel %vm11947_vm11, %v7175_v22, %v7176_v28  ;;  %v10556_v48 = vadd.f32 %v16506_v29, %v16505_v14  ;;  %v6923_v25 = vsel %vm11958_vm12, %v6918_v45, %v6922_v0  ;;  %v16507_v23 = vld [vmem:[#allocation43_spill] sm:$0xff]  ;;  %v16508_v22 = vld [vmem:[#allocation18_spill] sm:$0xff]  ;;  %v15257_v14 = vld [vmem:[#allocation3 + $0xa8] sm:$0xf]  ;;  %v6321_v44 = vshll.u32 %v6032_v38, 16 }
 0x3fc   : > { %16504 = vst [vmem:[#allocation31_spill] sm:$0xff] %v15240_v16  ;;  %8848 = vmatmul.mubr.bf16.gmra.mrb[232].mxu1 %v9884_v3  ;;  %v6565_v36 = vsel %vm11947_vm11, %v9789_v60, %v6564_v43  ;;  %v6566_v50 = vrot.slane %v6564_v43, 4  ;;  %v6933_v1 = vsel %vm11958_vm12, %v6928_v18, %v6932_v39  ;;  %v10559_v41 = vadd.f32 %v16508_v22, %v16507_v23  ;;  %v16509_v43 = vld [vmem:[#allocation24_spill] sm:$0xff]  ;;  %v16510_v29 = vld [vmem:[#allocation35_spill] sm:$0xff] }
 0x3fd   : > { %v8448_v28 = vadd.f32 %v10556_v48, %v15236_v6  ;;  %v10668_v3 = vadd.f32 %v15015_v30, %v15010_v32  ;;  %v9933_v0 = vcombine.low %v6923_v25, %v6933_v1  ;;  %v10671_v60 = vadd.f32 %v15022_v21, %v15017_v49  ;;  %v15265_v18 = vld [vmem:[#allocation3 + $0xac] sm:$0xf]  ;;  %v15270_v30 = vld [vmem:[#allocation3 + $0xb0] sm:$0x1]  ;;  %v11476_v8 = vld [vmem:[#allocation3 + $0xa0] sm:$0xf] }
 0x3fe   : > { %v6568_v45 = vsel %vm11947_vm11, %v6566_v50, %v6567_v13  ;;  %v6308_v39 = vor.u32 %v16510_v29, %v16509_v43  ;;  %16511 = vst [vmem:[#allocation26_spill] sm:$0xff] %v15265_v18  ;;  %v8451_v23 = vadd.f32 %v10559_v41, %v15236_v6  ;;  %v6311_v32 = vshll.u32 %v11473_v56, 16  ;;  %16513 = vst [vmem:[#allocation36_spill] sm:$0xff] %v15270_v30  ;;  %v16514_v1 = vld [vmem:[#allocation37_spill] sm:$0xff]  ;;  %v6433_v43 = vld [vmem:[#allocation3 + $0x9c] sm:$0xe] }
 0x3ff   : > { %v9901_v48 = vcombine.low %v6565_v36, %v6568_v45  ;;  %v15268_v22 = vadd.f32 %v10668_v3, %v8448_v28  ;;  %9016 = vmatprep.mubr.bf16.mxu0 %v9933_v0  ;;  %v16515_v13 = vshrl.u32 %v16514_v1, 16  ;;  %v6935_v49 = vshrl.u32 %v15257_v14, 16  ;;  %v15279_v56 = vld [vmem:[#allocation3 + $0xb4] sm:$0xf]  ;;  %v15284_v29 = vld [vmem:[#allocation3 + $0xb8] sm:$0xf] }
 0x400   : > { %v6309_v25 = vrot.slane %v6308_v39, 4  ;;  %v15275_v21 = vadd.f32 %v10671_v60, %v8451_v23  ;;  %9017 = vmatmul.mubr.bf16.gmra.mrb[12].mxu0 %v9917_v20  ;;  %v6313_v36 = vrot.slane %v6311_v32, 5  ;;  %v6938_v41 = vshll.u32 %v15257_v14, 16  ;;  %v6033_v3 = vld [vmem:[#allocation3 + $0xa4] sm:$0x1] }
 0x401   : > { %16512 = vst [vmem:[#allocation30_spill] sm:$0xff] %v15268_v22  ;;  %v6317_v50 = vrot.slane %v16515_v13, 4  ;;  %8855 = vmatprep.mubr.bf16.mxu1 %v9901_v48  ;;  %v6944_v28 = vshll.u32 %v15265_v18, 16  ;;  %v6937_v0 = vrot.slane %v6935_v49, 4  ;;  %v6948_v45 = vshrl.u32 %v15265_v18, 16 }
 0x402   : > { %16516 = vst [vmem:[#allocation19_spill] sm:$0xff] %v15275_v21  ;;  %v6954_v38 = vshll.u32 %v15270_v30, 16  ;;  %v6940_v39 = vrot.slane %v6938_v41, 5  ;;  %v6314_v23 = vsel %vm11958_vm12, %v6309_v25, %v6313_v36  ;;  %v6323_v32 = vrot.slane %v6321_v44, 5 }
 0x403   : > { %v6318_v20 = vor.u32 %v6317_v50, %v6313_v36  ;;  %v6946_v48 = vrot.slane %v6944_v28, 5  ;;  %v6950_v1 = vrot.slane %v6948_v45, 4  ;;  %v9790_v16 = vrot.slane %v6433_v43, 9 }
 0x404   : > { %v6956_v13 = vrot.slane %v6954_v38, 5  ;;  %v6941_v22 = vor.u32 %v6940_v39, %v6937_v0  ;;  %v6571_v30 = vrot.slane %v11476_v8, 5  ;;  %v15295_v50 = vadd.f32 %v15092_v15, %v15085_v37  ;;  %v16520_v39 = vld [vmem:[#allocation39_spill] sm:$0xff] }
 0x405   : > { %v15289_v49 = vpop.f32.mrb[144].mxu1  ;;  %v6319_v21 = vrot.slane %v6318_v20, 4  ;;  %v6951_v60 = vor.u32 %v6950_v1, %v6946_v48  ;;  %v15299_v44 = vadd.f32 %v15087_v2, %v15079_v19  ;;  %v15303_v25 = vadd.f32 %v15103_v51, %v15097_v35  ;;  %v16519_v20 = vld [vmem:[#allocation33_spill] sm:$0xff]  ;;  %v15331_v1 = vld [vmem:[#allocation3 + $0xb8] sm:$0xf] }
 0x406   : > { %v15291_v61 = vpop.f32.mrb[145].mxu1  ;;  %16517 = vst [vmem:[#allocation34_spill] sm:$0xff] %v15295_v50  ;;  %v6942_v0 = vrot.slane %v6941_v22, 4  ;;  %v6573_v45 = vrot.slane %v6571_v30, 4  ;;  %v6574_v38 = vrot.slane %v6033_v3, 5  ;;  %v9918_v35 = vcombine.low %v15257_v14, %v15265_v18 }
 0x407   : > { %16518 = vst [vmem:[#allocation22_spill] sm:$0xff] %v15303_v25  ;;  %v15305_v36 = vpop.f32.mrb[176].mxu0  ;;  %v15307_v41 = vpop.f32.mrb[146].mxu1  ;;  %v6324_v28 = vsel %vm11958_vm12, %v6319_v21, %v6323_v32  ;;  %v6952_v2 = vrot.slane %v6951_v60, 4  ;;  %v15319_v51 = vadd.f32 %v15099_v12, %v15094_v10  ;;  %v6572_v22 = vsel %vm11947_vm11, %v9790_v16, %v6571_v30  ;;  %v15329_v60 = vld [vmem:[#allocation3 + $0xb4] sm:$0xf] }
 0x408   : > { %v15311_v37 = vpop.f32.mrb[177].mxu0  ;;  %v15313_v15 = vpop.f32.mrb[147].mxu1  ;;  %v9885_v19 = vcombine.low %v6314_v23, %v6324_v28  ;;  %v6575_v21 = vsel %vm11947_vm11, %v6573_v45, %v6574_v38  ;;  %v6332_v32 = vor.u32 %v16520_v39, %v16519_v20  ;;  %v6335_v23 = vshll.u32 %v11476_v8, 16  ;;  %v16521_v30 = vld [vmem:[#allocation21_spill] sm:$0xff]  ;;  %v6643_v38 = vld [vmem:[#allocation3 + $0xbc] sm:$0x1] }
 0x409   : > { %v15321_v43 = vpop.f32.mrb[178].mxu0  ;;  %v6947_v10 = vsel %vm11958_vm12, %v6942_v0, %v6946_v48  ;;  %v6957_v12 = vsel %vm11958_vm12, %v6952_v2, %v6956_v13  ;;  %v9902_v16 = vcombine.low %v6572_v22, %v6575_v21  ;;  %v16522_v28 = vshrl.u32 %v16521_v30, 16  ;;  %v7043_v0 = vld [vmem:[#allocation3 + $0xb4] sm:$0xe]  ;;  %v15345_v13 = vld [vmem:[#allocation3 + $0xc0] sm:$0xf] }
 0x40a   : > { %v15333_v14 = vpop.f32.mrb[179].mxu0  ;;  %8856 = vmatmul.mubr.bf16.gmra.mrb[236].mxu1 %v9885_v19  ;;  %v9934_v20 = vcombine.low %v6947_v10, %v6957_v12  ;;  %v6333_v8 = vrot.slane %v6332_v32, 4  ;;  %v6337_v39 = vrot.slane %v6335_v23, 5  ;;  %v6345_v18 = vshll.u32 %v6033_v3, 16 }
 0x40b   : > { %v6341_v45 = vrot.slane %v16522_v28, 4  ;;  %8863 = vmatprep.mubr.bf16.mxu1 %v9902_v16  ;;  %v6959_v59 = vshrl.u32 %v15329_v60, 16  ;;  %v6962_v19 = vshll.u32 %v15329_v60, 16  ;;  %v6968_v57 = vshll.u32 %v15331_v1, 16 }
 0x40c   : > { %v6972_v48 = vshrl.u32 %v15331_v1, 16  ;;  %9024 = vmatprep.mubr.bf16.mxu0 %v9934_v20  ;;  %v6338_v22 = vsel %vm11958_vm12, %v6333_v8, %v6337_v39  ;;  %v6978_v3 = vshll.u32 %v6643_v38, 16  ;;  %v6347_v30 = vrot.slane %v6345_v18, 5  ;;  %v6434_v20 = vld [vmem:[#allocation3 + $0xa8] sm:$0xe] }
 0x40d   : > { %v6342_v21 = vor.u32 %v6341_v45, %v6337_v39  ;;  %9025 = vmatmul.mubr.bf16.gmra.mrb[16].mxu0 %v9918_v35  ;;  %v6961_v32 = vrot.slane %v6959_v59, 4  ;;  %v6964_v23 = vrot.slane %v6962_v19, 5  ;;  %v6970_v10 = vrot.slane %v6968_v57, 5  ;;  %v6034_v18 = vld [vmem:[#allocation3 + $0xb0] sm:$0x1] }
 0x40e   : > { %v6974_v12 = vrot.slane %v6972_v48, 4  ;;  %v9807_v28 = vrot.slane %v7043_v0, 9  ;;  %v7187_v9 = vrot.slane %v15331_v1, 5  ;;  %v6980_v31 = vrot.slane %v6978_v3, 5  ;;  %v11478_v0 = vld [vmem:[#allocation3 + $0xac] sm:$0xf] }
 0x40f   : > { %v6343_v16 = vrot.slane %v6342_v21, 4  ;;  %v6965_v25 = vor.u32 %v6964_v23, %v6961_v32  ;;  %v7190_v2 = vrot.slane %v6643_v38, 5  ;;  %v9919_v57 = vcombine.low %v15329_v60, %v15331_v1  ;;  %v15383_v23 = vld [vmem:[#allocation3 + $0xc0] sm:$0xf] }
 0x410   : > { %v6975_v50 = vor.u32 %v6974_v12, %v6970_v10  ;;  %v15355_v35 = vsel %vm11947_vm11, %v9807_v28, %v7187_v9  ;;  %v7189_v59 = vrot.slane %v7187_v9, 4  ;;  %v6578_v38 = vrot.slane %v11478_v0, 5 }
 0x411   : > { %v6348_v8 = vsel %vm11958_vm12, %v6343_v16, %v6347_v30  ;;  %16523 = vst [vmem:[#allocation32_spill] sm:$0xff] %v15355_v35  ;;  %v6966_v19 = vrot.slane %v6965_v25, 4  ;;  %v9791_v32 = vrot.slane %v6434_v20, 9  ;;  %v15369_v9 = vadd.f32 %v15148_v5, %v15138_v58  ;;  %v16528_v16 = vld [vmem:[#allocation40_spill] sm:$0xff]  ;;  %v15435_v35 = vld [vmem:[#allocation3 + $0xbc] sm:$0x1] }
 0x412   : > { %v15359_v45 = vpop.f32.mrb[180].mxu0  ;;  %v9886_v39 = vcombine.low %v6338_v22, %v6348_v8  ;;  %v6976_v48 = vrot.slane %v6975_v50, 4  ;;  %v15365_v3 = vsel %vm11947_vm11, %v7189_v59, %v7190_v2  ;;  %v15373_v60 = vadd.f32 %v15131_v42, %v15128_v17  ;;  %v16529_v30 = vld [vmem:[#allocation28_spill] sm:$0xff]  ;;  %v16530_v8 = vld [vmem:[#allocation41_spill] sm:$0xff] }
 0x413   : > { %v15361_v21 = vpop.f32.mrb[181].mxu0  ;;  %16524 = vst [vmem:[#allocation29_spill] sm:$0xff] %v15365_v3  ;;  %16525 = vst [vmem:[#allocation42_spill] sm:$0xff] %v15369_v9  ;;  %v6971_v50 = vsel %vm11958_vm12, %v6966_v19, %v6970_v10  ;;  %v6581_v22 = vrot.slane %v6034_v18, 5  ;;  %v6579_v17 = vsel %vm11947_vm11, %v9791_v32, %v6578_v38  ;;  %v6580_v42 = vrot.slane %v6578_v38, 4  ;;  %v16532_v32 = vld [vmem:[#allocation27_spill] sm:$0xff] }
 0x414   : > { %v15375_v1 = vpop.f32.mrb[182].mxu0  ;;  %8864 = vmatmul.mubr.bf16.gmra.mrb[240].mxu1 %v9886_v39  ;;  %v6981_v25 = vsel %vm11958_vm12, %v6976_v48, %v6980_v31  ;;  %v15391_v12 = vadd.f32 %v15162_v53, %v15150_v24  ;;  %v15397_v31 = vadd.f32 %v15140_v27, %v15134_v34  ;;  %v6356_v28 = vor.u32 %v16529_v30, %v16528_v16  ;;  %v15403_v19 = vld [vmem:[#allocation3 + $0xc4] sm:$0xf] }
 0x415   : > { %v15385_v58 = vpop.f32.mrb[183].mxu0  ;;  %v9935_v5 = vcombine.low %v6971_v50, %v6981_v25  ;;  %v6359_v20 = vshll.u32 %v11478_v0, 16  ;;  %v16531_v59 = vshrl.u32 %v16530_v8, 16  ;;  %v6582_v24 = vsel %vm11947_vm11, %v6580_v42, %v6581_v22  ;;  %v15417_v8 = vld [vmem:[#allocation3 + $0xc8] sm:$0x1] }
 0x416   : > { %16526 = vst [vmem:[#allocation43_spill] sm:$0xff] %v15391_v12  ;;  %v15393_v10 = vpop.f32.mrb[148].mxu1  ;;  %16527 = vst [vmem:[#allocation18_spill] sm:$0xff] %v15397_v31  ;;  %v6369_v53 = vshll.u32 %v6034_v18, 16  ;;  %v6983_v38 = vshrl.u32 %v15383_v23, 16  ;;  %v6986_v34 = vshll.u32 %v15383_v23, 16  ;;  %v9903_v25 = vcombine.low %v6579_v17, %v6582_v24 }
 0x417   : > { %v6365_v39 = vrot.slane %v16531_v59, 4  ;;  %v15405_v48 = vpop.f32.mrb[149].mxu1  ;;  %9032 = vmatprep.mubr.bf16.mxu0 %v9935_v5  ;;  %v16533_v0 = vshrl.u32 %v16532_v32, 16  ;;  %v6357_v16 = vrot.slane %v6356_v28, 4  ;;  %v6361_v30 = vrot.slane %v6359_v20, 5 }
 0x418   : > { %v15411_v27 = vpop.f32.mrb[150].mxu1  ;;  %9033 = vmatmul.mubr.bf16.gmra.mrb[20].mxu0 %v9919_v57  ;;  %v16534_v18 = vshll.u32 %v15279_v56, 16  ;;  %v6985_v42 = vrot.slane %v6983_v38, 4  ;;  %v6988_v59 = vrot.slane %v6986_v34, 5  ;;  %v6992_v2 = vshll.u32 %v15403_v19, 16  ;;  %8871 = vmatprep.mubr.bf16.mxu1 %v9903_v25 }
 0x419   : > { %v15415_v50 = vrot.slane %v16533_v0, 4  ;;  %v15419_v5 = vpop.f32.mrb[151].mxu1  ;;  %v16535_v32 = vshrl.u32 %v15345_v13, 16  ;;  %v6401_v57 = vshll.u32 %v15345_v13, 16  ;;  %v6366_v17 = vor.u32 %v6365_v39, %v6361_v30  ;;  %v6435_v20 = vld [vmem:[#allocation3 + $0xb4] sm:$0xe] }
 0x41a   : > { %v6379_v22 = vrot.slane %v16534_v18, 5  ;;  %v15424_v3 = vpop.f32.mrb[184].mxu0  ;;  %v6996_v28 = vshrl.u32 %v15403_v19, 16  ;;  %v6371_v56 = vrot.slane %v6369_v53, 5  ;;  %v6989_v38 = vor.u32 %v6988_v59, %v6985_v42 }
 0x41b   : > { %v15428_v0 = vrot.slane %v16535_v32, 4  ;;  %v15432_v24 = vpop.f32.mrb[185].mxu0  ;;  %v6994_v34 = vrot.slane %v6992_v2, 5  ;;  %v7002_v18 = vshll.u32 %v15417_v8, 16  ;;  %v6362_v32 = vsel %vm11958_vm12, %v6357_v16, %v6361_v30 }
 0x41c   : > { %v15437_v12 = vpop.f32.mrb[186].mxu0  ;;  %v6367_v13 = vrot.slane %v6366_v17, 4  ;;  %v6998_v25 = vrot.slane %v6996_v28, 4  ;;  %v6585_v39 = vrot.slane %v15284_v29, 5  ;;  %v6990_v7 = vrot.slane %v6989_v38, 4 }
 0x41d   : > { %v15442_v9 = vpop.f32.mrb[187].mxu0  ;;  %v9792_v31 = vrot.slane %v6435_v20, 9  ;;  %v15446_v2 = vadd.f32 %v15219_v63, %v15216_v11  ;;  %v15450_v53 = vadd.f32 %v15203_v33, %v15201_v47  ;;  %v6588_v17 = vrot.slane %v15435_v35, 5 }
 0x41e   : > { %v15452_v42 = vpop.f32.mrb[152].mxu1  ;;  %v6372_v16 = vsel %vm11958_vm12, %v6367_v13, %v6371_v56  ;;  %v6999_v30 = vor.u32 %v6998_v25, %v6994_v34  ;;  %v6587_v59 = vrot.slane %v6585_v39, 4  ;;  %v7004_v38 = vrot.slane %v7002_v18, 5  ;;  %v11479_v25 = vld [vmem:[#allocation3 + $0xc4] sm:$0xf] }
 0x41f   : > { %16536 = vst [vmem:[#allocation24_spill] sm:$0xff] %v15446_v2  ;;  %v15457_v28 = vpop.f32.mrb[153].mxu1  ;;  %v9887_v20 = vcombine.low %v6362_v32, %v6372_v16  ;;  %v6586_v11 = vsel %vm11947_vm11, %v9792_v31, %v6585_v39  ;;  %v15463_v47 = vadd.f32 %v15231_v26, %v15223_v52  ;;  %v15471_v13 = vadd.f32 %v15214_v46, %v15207_v55 }
 0x420   : > { %v15465_v33 = vpop.f32.mrb[154].mxu1  ;;  %v7000_v63 = vrot.slane %v6999_v30, 4  ;;  %v6589_v56 = vsel %vm11947_vm11, %v6587_v59, %v6588_v17  ;;  %v6380_v32 = vor.u32 %v6379_v22, %v15415_v50  ;;  %v6411_v31 = vshrl.u32 %v11479_v25, 16 }
 0x421   : > { %16537 = vst [vmem:[#allocation35_spill] sm:$0xff] %v15463_v47  ;;  %v15474_v18 = vpop.f32.mrb[155].mxu1  ;;  %8872 = vmatmul.mubr.bf16.gmra.mrb[244].mxu1 %v9887_v20  ;;  %v9904_v39 = vcombine.low %v6586_v11, %v6589_v56  ;;  %v6383_v52 = vshll.u32 %v15284_v29, 16  ;;  %v16538_v26 = vshrl.u32 %v15284_v29, 16  ;;  %v15481_v59 = vrot.slane %v6401_v57, 5 }
 0x422   : > { %v15479_v30 = vpop.f32.mrb[188].mxu0  ;;  %v6995_v55 = vsel %vm11958_vm12, %v6990_v7, %v6994_v34  ;;  %v7005_v46 = vsel %vm11958_vm12, %v7000_v63, %v7004_v38  ;;  %v9920_v50 = vcombine.low %v15383_v23, %v15403_v19  ;;  %v6393_v29 = vshll.u32 %v15435_v35, 16  ;;  %v6036_v11 = vld [vmem:[#allocation3 + $0xc8] sm:$0x1]  ;;  %v6436_v47 = vld [vmem:[#allocation3 + $0xc0] sm:$0xe] }
 0x423   : > { %v6389_v16 = vrot.slane %v16538_v26, 4  ;;  %v15489_v22 = vpop.f32.mrb[189].mxu0  ;;  %v9936_v17 = vcombine.low %v6995_v55, %v7005_v46  ;;  %8879 = vmatprep.mubr.bf16.mxu1 %v9904_v39  ;;  %v6385_v20 = vrot.slane %v6383_v52, 5  ;;  %v6592_v56 = vrot.slane %v11479_v25, 5  ;;  %v451_v39 = vld [vmem:[#allocation3 + $0xcc] sm:$0x1] }
 0x424   : > { %v15492_v57 = vpop.f32.mrb[190].mxu0  ;;  %v6381_v26 = vrot.slane %v6380_v32, 4  ;;  %v15496_v7 = vadd.f32 %v15311_v37, %v15305_v36  ;;  %v15500_v23 = vadd.f32 %v15291_v61, %v15289_v49  ;;  %v15504_v34 = vadd.f32 %v15333_v14, %v15321_v43  ;;  %v505_v32 = vld [vmem:[#allocation3 + $0xd4] sm:$0x1]  ;;  %v15514_v49 = vld [vmem:[#allocation3 + $0xd0] sm:$0xf] }
 0x425   : > { %v15506_v38 = vpop.f32.mrb[191].mxu0  ;;  %9040 = vmatprep.mubr.bf16.mxu0 %v9936_v17  ;;  %v6390_v35 = vor.u32 %v6389_v16, %v6385_v20  ;;  %v6594_v63 = vrot.slane %v6592_v56, 4  ;;  %v6595_v36 = vrot.slane %v6036_v11, 5  ;;  %v15512_v37 = vadd.f32 %v15313_v15, %v15307_v41 }
 0x426   : > { %16539 = vst [vmem:[#allocation37_spill] sm:$0xff] %v15496_v7  ;;  %16540 = vst [vmem:[#allocation33_spill] sm:$0xff] %v15504_v34  ;;  %v15508_v52 = vpop.f32.mrb[156].mxu1  ;;  %9041 = vmatmul.mubr.bf16.gmra.mrb[24].mxu0 %v9920_v50  ;;  %v6407_v61 = vshll.u32 %v11479_v25, 16  ;;  %v6395_v55 = vrot.slane %v6393_v29, 5  ;;  %v9793_v46 = vrot.slane %v6436_v47, 9  ;;  %v6386_v34 = vsel %vm11958_vm12, %v6381_v26, %v6385_v20 }
 0x427   : > { %v15516_v43 = vpop.f32.mrb[157].mxu1  ;;  %v6391_v14 = vrot.slane %v6390_v35, 4  ;;  %v6413_v16 = vrot.slane %v6411_v31, 4  ;;  %v6596_v50 = vsel %vm11947_vm11, %v6594_v63, %v6595_v36  ;;  %v6404_v41 = vor.u32 %v15481_v59, %v15428_v0 }
 0x428   : > { %v15518_v17 = vpop.f32.mrb[158].mxu1  ;;  %v6409_v15 = vrot.slane %v6407_v61, 5  ;;  %v6417_v29 = vshll.u32 %v6036_v11, 16  ;;  %v452_v31 = vsel %vm11918_vm3, 0, %v451_v39  ;;  %v506_v2 = vsel %vm11923_vm4, 0, %v505_v32 }
 0x429   : > { %v15526_v25 = vpop.f32.mrb[159].mxu1  ;;  %v6396_v35 = vsel %vm11958_vm12, %v6391_v14, %v6395_v55  ;;  %v6593_v63 = vsel %vm11947_vm11, %v9793_v46, %v6592_v56  ;;  %453 = vst [vmem:[#allocation3 + $0xcc] sm:$0x1] %v452_v31  ;;  %507 = vst [vmem:[#allocation3 + $0xd4] sm:$0x1] %v506_v2  ;;  %v7016_v59 = vshll.u32 %v15514_v49, 16  ;;  %v15641_v4 = vadd.f32 %v15319_v51, %v15236_v6 }
 0x42a   : > { %v15534_v20 = vpop.f32.mrb[192].mxu0  ;;  %v9888_v26 = vcombine.low %v6386_v34, %v6396_v35  ;;  %v6414_v0 = vor.u32 %v6413_v16, %v6409_v15  ;;  %v9905_v11 = vcombine.low %v6593_v63, %v6596_v50  ;;  %v7020_v61 = vshrl.u32 %v15514_v49, 16  ;;  %v7030_v39 = vld [vmem:[#allocation3 + $0x18] sm:$0xe]  ;;  %v11480_v34 = vld [vmem:[#allocation3 + $0x1c] sm:$0xf] }
 0x42b   : > { %v15539_v36 = vpop.f32.mrb[193].mxu0  ;;  %v15544_v32 = vrot.slane %v7016_v59, 5  ;;  %v7096_v55 = vrot.slane %v11480_v34, 5  ;;  %v6405_v2 = vrot.slane %v6404_v41, 4  ;;  %v6419_v46 = vrot.slane %v6417_v29, 5 }
 0x42c   : > { %v15542_v14 = vpop.f32.mrb[194].mxu0  ;;  %8880 = vmatmul.mubr.bf16.gmra.mrb[248].mxu1 %v9888_v26  ;;  %v6415_v7 = vrot.slane %v6414_v0, 4  ;;  %v7022_v16 = vrot.slane %v7020_v61, 4  ;;  %v15550_v50 = vadd.f32 %v15361_v21, %v15359_v45  ;;  %v9794_v47 = vrot.slane %v7030_v39, 9  ;;  %v11481_v26 = vld [vmem:[#allocation3 + $0x20] sm:$0x1] }
 0x42d   : > { %v15546_v56 = vpop.f32.mrb[195].mxu0  ;;  %8887 = vmatprep.mubr.bf16.mxu1 %v9905_v11  ;;  %v7098_v31 = vrot.slane %v7096_v55, 4  ;;  %v7099_v63 = vrot.slane %v11481_v26, 5  ;;  %v15556_v0 = vadd.f32 %v15405_v48, %v15393_v10  ;;  %v15565_v45 = vadd.f32 %v15385_v58, %v15375_v1  ;;  %v11482_v48 = vld [vmem:[#allocation3 + $0x34] sm:$0xf] }
 0x42e   : > { %16543 = vst [vmem:[#allocation39_spill] sm:$0xff] %v15550_v50  ;;  %v15552_v35 = vpop.f32.mrb[160].mxu1  ;;  %v6420_v41 = vsel %vm11958_vm12, %v6415_v7, %v6419_v46  ;;  %v7023_v29 = vor.u32 %v7022_v16, %v15544_v32  ;;  %v15569_v21 = vadd.f32 %v15419_v5, %v15411_v27  ;;  %v7110_v61 = vrot.slane %v11482_v48, 5  ;;  %v11483_v50 = vld [vmem:[#allocation3 + $0x38] sm:$0x1] }
 0x42f   : > { %v15558_v59 = vpop.f32.mrb[161].mxu1  ;;  %16544 = vst [vmem:[#allocation21_spill] sm:$0xff] %v15565_v45  ;;  %v7100_v10 = vsel %vm11947_vm11, %v7098_v31, %v7099_v63  ;;  %v6410_v7 = vsel %vm11958_vm12, %v6405_v2, %v6409_v15  ;;  %v7097_v58 = vsel %vm11947_vm11, %v9794_v47, %v7096_v55  ;;  %v15592_v15 = vadd.f32 %v15432_v24, %v15424_v3 }
 0x430   : > { %v15571_v11 = vpop.f32.mrb[162].mxu1  ;;  %v15579_v34 = vld [vmem:[#allocation3 + $0xcc] sm:$0xf]  ;;  %v15581_v1 = vld [vmem:[#allocation3 + $0xd4] sm:$0x1]  ;;  %v9889_v27 = vcombine.low %v6410_v7, %v6420_v41  ;;  %v7024_v26 = vrot.slane %v7023_v29, 4  ;;  %v9938_v63 = vcombine.low %v7097_v58, %v7100_v10  ;;  %v15598_v29 = vadd.f32 %v15457_v28, %v15452_v42 }
 0x431   : > { %v15575_v39 = vpop.f32.mrb[163].mxu1  ;;  %16545 = vst [vmem:[#allocation40_spill] sm:$0xff] %v15581_v1  ;;  %v7007_v5 = vshrl.u32 %v15579_v34, 16  ;;  %v7010_v46 = vshll.u32 %v15579_v34, 16  ;;  %v7026_v16 = vshll.u32 %v15581_v1, 16  ;;  %v7112_v48 = vrot.slane %v7110_v61, 4 }
 0x432   : > { %v15588_v31 = vpop.f32.mrb[196].mxu0  ;;  %v7032_v41 = vld [vmem:[#allocation3 + $0x30] sm:$0xe]  ;;  %v7113_v1 = vrot.slane %v11483_v50, 5  ;;  %v15602_v10 = vadd.f32 %v15442_v9, %v15437_v12  ;;  %v15614_v12 = vadd.f32 %v15489_v22, %v15479_v30  ;;  %v9921_v30 = vcombine.low %v15579_v34, %v15514_v49 }
 0x433   : > { %v10721_v2 = vpop.f32.mrb[197].mxu0  ;;  %v7009_v45 = vrot.slane %v7007_v5, 4  ;;  %v7012_v55 = vrot.slane %v7010_v46, 5  ;;  %v7028_v47 = vrot.slane %v7026_v16, 5  ;;  %v9796_v50 = vrot.slane %v7032_v41, 9 }
 0x434   : > { %8888 = vmatmul.mubr.bf16.gmra.mrb[252].mxu1 %v9889_v27  ;;  %v15594_v7 = vpop.f32.mrb[198].mxu0  ;;  %v15606_v27 = vadd.f32 %v15474_v18, %v15465_v33  ;;  %v7114_v42 = vsel %vm11947_vm11, %v7112_v48, %v7113_v1  ;;  %v15618_v33 = vadd.f32 %v15516_v43, %v15508_v52  ;;  %v15626_v1 = vadd.f32 %v15526_v25, %v15518_v17  ;;  %v11485_v17 = vld [vmem:[#allocation3 + $0x64] sm:$0xf]  ;;  %v7034_v41 = vld [vmem:[#allocation3 + $0x48] sm:$0xe] }
 0x435   : > { %11074 = vmatprep.mubr.bf16.mxu1 %v9938_v63  ;;  %v10724_v24 = vpop.f32.mrb[199].mxu0  ;;  %v7013_v58 = vor.u32 %v7012_v55, %v7009_v45  ;;  %v7029_v46 = vsel %vm11958_vm12, %v7024_v26, %v7028_v47  ;;  %v11484_v63 = vld [vmem:[#allocation3 + $0x4c] sm:$0xf]  ;;  %v15622_v45 = vadd.f32 %v15506_v38, %v15492_v57  ;;  %v7111_v22 = vsel %vm11947_vm11, %v9796_v50, %v7110_v61 }
 0x436   : > { %v10608_v3 = vpop.f32.mrb[164].mxu1  ;;  %v7124_v9 = vrot.slane %v11484_v63, 5  ;;  %v15637_v57 = vadd.f32 %v15299_v44, %v15236_v6  ;;  %v9940_v43 = vcombine.low %v7111_v22, %v7114_v42  ;;  %v7138_v25 = vrot.slane %v11485_v17, 5 }
 0x437   : > { %v10609_v5 = vpop.f32.mrb[165].mxu1  ;;  %v7014_v16 = vrot.slane %v7013_v58, 4  ;;  %v16546_v61 = vcombine.low %v14858_v40, %v14870_v54  ;;  %v15652_v44 = vadd.f32 %v15539_v36, %v15534_v20  ;;  %v10604_v51 = vadd.f32 %v15558_v59, %v15552_v35  ;;  %v16547_v58 = vld [vmem:[#allocation18_spill] sm:$0xff]  ;;  %v11486_v36 = vld [vmem:[#allocation3 + $0x50] sm:$0x1] }
 0x438   : > { %v10611_v28 = vpop.f32.mrb[166].mxu1  ;;  %v7126_v34 = vrot.slane %v7124_v9, 4  ;;  %v10607_v40 = vadd.f32 %v15575_v39, %v15571_v11  ;;  %v15668_v20 = vadd.f32 %v15450_v53, %v15236_v6  ;;  %v7127_v50 = vrot.slane %v11486_v36, 5  ;;  %v7036_v11 = vld [vmem:[#allocation3 + $0x60] sm:$0xe] }
 0x439   : > { %v10612_v18 = vpop.f32.mrb[167].mxu1  ;;  %v7019_v48 = vsel %vm11958_vm12, %v7014_v16, %v15544_v32  ;;  %v15645_v32 = vadd.f32 %v15373_v60, %v15236_v6  ;;  %v15658_v60 = vadd.f32 %v15546_v56, %v15542_v14  ;;  %v15671_v35 = vadd.f32 %v10721_v2, %v15588_v31 }
 0x43a   : > { %v10726_v26 = vpop.f32.mrb[200].mxu0  ;;  %v9937_v38 = vcombine.low %v7019_v48, %v7029_v46  ;;  %v15664_v46 = vadd.f32 %v16547_v58, %v15236_v6  ;;  %v15675_v56 = vadd.f32 %v15471_v13, %v15236_v6  ;;  %v15679_v59 = vadd.f32 %v15500_v23, %v15236_v6 }
 0x43b   : > { %v10727_v52 = vpop.f32.mrb[201].mxu0  ;;  %v7140_v39 = vrot.slane %v7138_v25, 4  ;;  %v10610_v42 = vadd.f32 %v10609_v5, %v10608_v3  ;;  %v9798_v16 = vrot.slane %v7034_v41, 9  ;;  %v7128_v63 = vsel %vm11947_vm11, %v7126_v34, %v7127_v50  ;;  %v11487_v5 = vld [vmem:[#allocation3 + $0x68] sm:$0x1] }
 0x43c   : > { %v10729_v55 = vpop.f32.mrb[202].mxu0  ;;  %11075 = vmatmul.mubr.bf16.vlgmr.msra.gmra.mrb[0].mxu1 %v16546_v61  ;;  %9048 = vmatprep.mubr.bf16.mxu0 %v9937_v38  ;;  %v15684_v31 = vadd.f32 %v10724_v24, %v15594_v7  ;;  %v10613_v2 = vadd.f32 %v10612_v18, %v10611_v28  ;;  %v8483_v13 = vadd.f32 %v15512_v37, %v15236_v6  ;;  %v9800_v24 = vrot.slane %v7036_v11, 9 }
 0x43d   : > { %v10730_v47 = vpop.f32.mrb[203].mxu0  ;;  %11078 = vmatprep.mubr.bf16.mxu1 %v9940_v43  ;;  %9049 = vmatmul.mubr.bf16.gmra.mrb[28].mxu0 %v9921_v30  ;;  %v15690_v23 = vadd.f32 %v15556_v0, %v15236_v6  ;;  %v15694_v3 = vadd.f32 %v15569_v21, %v15236_v6  ;;  %v7141_v30 = vrot.slane %v11487_v5, 5  ;;  %v7125_v7 = vsel %vm11947_vm11, %v9798_v16, %v7124_v9  ;;  %v15702_v43 = vld [vmem:[#allocation3 + $0x7c] sm:$0xf] }
 0x43e   : > { %v10614_v54 = vpop.f32.mrb[168].mxu1  ;;  %v15698_v28 = vadd.f32 %v10727_v52, %v10726_v26  ;;  %v9942_v37 = vcombine.low %v7125_v7, %v7128_v63  ;;  %v7152_v21 = vrot.slane %v15702_v43, 5  ;;  %v15705_v17 = vadd.f32 %v10730_v47, %v10729_v55  ;;  %v16548_v26 = vld [vmem:[#allocation38_spill] sm:$0xff]  ;;  %v16549_v52 = vld [vmem:[#allocation20_spill] sm:$0xff]  ;;  %v7044_v63 = vld [vmem:[#allocation3 + $0xc0] sm:$0xe] }
 0x43f   : > { %v10615_v14 = vpop.f32.mrb[169].mxu1  ;;  %v7142_v0 = vsel %vm11947_vm11, %v7140_v39, %v7141_v30  ;;  %v8496_v34 = vadd.f32 %v15598_v29, %v15236_v6  ;;  %v8499_v9 = vadd.f32 %v15606_v27, %v15236_v6  ;;  %v16550_v41 = vcombine.low %v16548_v26, %v16549_v52 }
 0x440   : > { %v10617_v53 = vpop.f32.mrb[170].mxu1  ;;  %v10616_v18 = vadd.f32 %v10615_v14, %v10614_v54  ;;  %v8504_v54 = vadd.f32 %v15618_v33, %v15236_v6  ;;  %v8507_v55 = vadd.f32 %v15626_v1, %v15236_v6  ;;  %v7139_v47 = vsel %vm11947_vm11, %v9800_v24, %v7138_v25  ;;  %v11489_v33 = vld [vmem:[#allocation3 + $0x80] sm:$0x1]  ;;  %v16552_v24 = vld [vmem:[#allocation22_spill] sm:$0xff] }
 0x441   : > { %v10618_v48 = vpop.f32.mrb[171].mxu1  ;;  %v9944_v14 = vcombine.low %v7139_v47, %v7142_v0  ;;  %v8512_v11 = vadd.f32 %v10604_v51, %v15236_v6  ;;  %v8515_v39 = vadd.f32 %v10607_v40, %v15236_v6  ;;  %v7154_v1 = vrot.slane %v7152_v21, 4  ;;  %v16551_v51 = vld [vmem:[#allocation34_spill] sm:$0xff] }
 0x442   : > { %v10732_v22 = vpop.f32.mrb[204].mxu0  ;;  %v10619_v58 = vadd.f32 %v10618_v48, %v10617_v53  ;;  %v7155_v53 = vrot.slane %v11489_v33, 5  ;;  %v8520_v48 = vadd.f32 %v10610_v42, %v15236_v6  ;;  %v7194_v30 = vrot.slane %v15403_v19, 5 }
 0x443   : > { %v10733_v38 = vpop.f32.mrb[205].mxu0  ;;  %v15735_v40 = vadd.f32 %v16551_v51, %v15637_v57  ;;  %v8528_v42 = vadd.f32 %v10616_v18, %v15236_v6  ;;  %v9808_v19 = vrot.slane %v7044_v63, 9  ;;  %v16554_v57 = vld [vmem:[#allocation43_spill] sm:$0xff] }
 0x444   : > { %v10735_v61 = vpop.f32.mrb[206].mxu0  ;;  %11079 = vmatmul.mubr.bf16.gmra.mrb[4].mxu1 %v16550_v41  ;;  %v15720_v50 = vadd.f32 %v10733_v38, %v10732_v22  ;;  %v8523_v22 = vadd.f32 %v10613_v2, %v15236_v6  ;;  %v15739_v38 = vadd.f32 %v16552_v24, %v15641_v4  ;;  %v7197_v2 = vrot.slane %v15417_v8, 5  ;;  %v16555_v4 = vld [vmem:[#allocation24_spill] sm:$0xff]  ;;  %v16562_v24 = vld [vmem:[#allocation39_spill] sm:$0xff] }
 0x445   : > { %v10736_v36 = vpop.f32.mrb[207].mxu0  ;;  %11082 = vmatprep.mubr.bf16.mxu1 %v9942_v37  ;;  %v16553_v37 = vld [vmem:[#allocation42_spill] sm:$0xff]  ;;  %v7196_v52 = vrot.slane %v7194_v30, 4  ;;  %v15755_v47 = vadd.f32 %v16555_v4, %v15668_v20  ;;  %v15763_v18 = vsel %vm11947_vm11, %v9808_v19, %v7194_v30  ;;  %v16559_v20 = vld [vmem:[#allocation23_spill] sm:$0xff]  ;;  %v16563_v19 = vld [vmem:[#allocation21_spill] sm:$0xff] }
 0x446   : > { %v10620_v29 = vpop.f32.mrb[172].mxu1  ;;  %v15722_v27 = vadd.f32 %v10736_v36, %v10735_v61  ;;  %v15743_v0 = vadd.f32 %v16553_v37, %v15645_v32  ;;  %v15751_v36 = vadd.f32 %v16554_v57, %v15664_v46  ;;  %v16556_v32 = vld [vmem:[#allocation35_spill] sm:$0xff]  ;;  %v16558_v46 = vld [vmem:[#allocation33_spill] sm:$0xff]  ;;  %v15783_v37 = vadd.f32 %v16562_v24, %v15690_v23 }
 0x447   : > { %v10621_v16 = vpop.f32.mrb[173].mxu1  ;;  %v15800_v23 = vadd.f32 %v15614_v12, %v8504_v54  ;;  %v15818_v12 = vadd.f32 %v15684_v31, %v8523_v22 }
 0x448   : > { %v15729_v25 = vadd.f32 %v10621_v16, %v10620_v29  ;;  %v10623_v5 = vpop.f32.mrb[174].mxu1  ;;  %v15759_v29 = vadd.f32 %v16556_v32, %v15675_v56  ;;  %v16557_v16 = vld [vmem:[#allocation37_spill] sm:$0xff]  ;;  %v15779_v56 = vsel %vm11947_vm11, %v7196_v52, %v7197_v2  ;;  %v15797_v52 = vadd.f32 %v15602_v10, %v8499_v9 }
 0x449   : > { %v10624_v7 = vpop.f32.mrb[175].mxu1  ;;  %v15769_v63 = vadd.f32 %v16557_v16, %v15679_v59  ;;  %v15787_v59 = vadd.f32 %v16563_v19, %v15694_v3  ;;  %v15803_v3 = vadd.f32 %v15622_v45, %v8507_v55  ;;  %v8531_v32 = vadd.f32 %v10619_v58, %v15236_v6 }
 0x44a   : > { %v15746_v61 = vadd.f32 %v10624_v7, %v10623_v5  ;;  %v10738_v26 = vpop.f32.mrb[208].mxu0  ;;  %v15772_v5 = vadd.f32 %v16558_v46, %v8483_v13  ;;  %v16560_v7 = vld [vmem:[#allocation25_spill] sm:$0xff]  ;;  %v15790_v13 = vadd.f32 %v15592_v15, %v8496_v34  ;;  %v15806_v15 = vadd.f32 %v15652_v44, %v8512_v11 }
 0x44b   : > { %v10739_v41 = vpop.f32.mrb[209].mxu0  ;;  %v16561_v51 = vcombine.low %v16559_v20, %v16560_v7  ;;  %v15809_v34 = vadd.f32 %v15658_v60, %v8515_v39  ;;  %v15821_v45 = vadd.f32 %v15698_v28, %v8528_v42  ;;  %v7156_v44 = vsel %vm11947_vm11, %v7154_v1, %v7155_v53  ;;  %v11490_v60 = vld [vmem:[#allocation3 + $0x94] sm:$0xf]  ;;  %v16565_v1 = vld [vmem:[#allocation44_spill] sm:$0xff]  ;;  %v7040_v20 = vld [vmem:[#allocation3 + $0x90] sm:$0xe] }
 0x44c   : > { %v15765_v8 = vadd.f32 %v10739_v41, %v10738_v26  ;;  %v10741_v33 = vpop.f32.mrb[210].mxu0  ;;  %v7038_v26 = vld [vmem:[#allocation3 + $0x78] sm:$0xe]  ;;  %v9952_v41 = vcombine.low %v15763_v18, %v15779_v56  ;;  %v7166_v55 = vrot.slane %v11490_v60, 5  ;;  %v15834_v42 = vadd.f32 %v15705_v17, %v8531_v32  ;;  %v16564_v53 = vld [vmem:[#allocation45_spill] sm:$0xff] }
 0x44d   : > { %11083 = vmatmul.mubr.bf16.gmra.mrb[8].mxu1 %v16561_v51  ;;  %v10742_v30 = vpop.f32.mrb[211].mxu0  ;;  %v9802_v54 = vrot.slane %v7038_v26, 9  ;;  %v9804_v26 = vrot.slane %v7040_v20, 9 }
 0x44e   : > { %11086 = vmatprep.mubr.bf16.mxu1 %v9944_v14  ;;  %v10626_v57 = vpop.f32.mrb[176].mxu1  ;;  %v15794_v2 = vadd.f32 %v10742_v30, %v10741_v33  ;;  %v15812_v14 = vadd.f32 %v15671_v35, %v8520_v48  ;;  %v16566_v33 = vcombine.low %v16564_v53, %v16565_v1  ;;  %v7168_v16 = vrot.slane %v7166_v55, 4 }
 0x44f   : > { %v10627_v4 = vpop.f32.mrb[177].mxu1  ;;  %v7153_v58 = vsel %vm11947_vm11, %v9802_v54, %v7152_v21  ;;  %v11491_v21 = vld [vmem:[#allocation3 + $0x98] sm:$0x1]  ;;  %v7167_v60 = vsel %vm11947_vm11, %v9804_v26, %v7166_v55 }
 0x450   : > { %v15815_v10 = vadd.f32 %v10627_v4, %v10626_v57  ;;  %v10629_v9 = vpop.f32.mrb[178].mxu1  ;;  %v9946_v48 = vcombine.low %v7153_v58, %v7156_v44  ;;  %v7169_v51 = vrot.slane %v11491_v21, 5  ;;  %v16567_v57 = vld [vmem:[#allocation26_spill] sm:$0xff] }
 0x451   : > { %v10630_v11 = vpop.f32.mrb[179].mxu1  ;;  %v7180_v4 = vrot.slane %v16567_v57, 5 }
 0x452   : > { %v15825_v35 = vadd.f32 %v10630_v11, %v10629_v9  ;;  %v10744_v39 = vpop.f32.mrb[212].mxu0  ;;  %v7170_v17 = vsel %vm11947_vm11, %v7168_v16, %v7169_v51  ;;  %v8536_v9 = vadd.f32 %v15729_v25, %v15236_v6  ;;  %v7042_v16 = vld [vmem:[#allocation3 + $0xa8] sm:$0xe]  ;;  %v8539_v25 = vadd.f32 %v15746_v61, %v15236_v6 }
 0x453   : > { %v10745_v31 = vpop.f32.mrb[213].mxu0  ;;  %v7182_v1 = vrot.slane %v7180_v4, 4  ;;  %v9806_v26 = vrot.slane %v7042_v16, 9 }
 0x454   : > { %v15831_v22 = vadd.f32 %v10745_v31, %v10744_v39  ;;  %v10747_v28 = vpop.f32.mrb[214].mxu0  ;;  %v9948_v39 = vcombine.low %v7167_v60, %v7170_v17  ;;  %v15862_v55 = vadd.f32 %v15720_v50, %v8536_v9 }
 0x455   : > { %11087 = vmatmul.mubr.bf16.gmra.mrb[12].mxu1 %v16566_v33  ;;  %v10748_v46 = vpop.f32.mrb[215].mxu0  ;;  %v7181_v50 = vsel %vm11947_vm11, %v9806_v26, %v7180_v4  ;;  %v7045_v4 = vld [vmem:[#allocation3 + $0xcc] sm:$0xe] }
 0x456   : > { %11090 = vmatprep.mubr.bf16.mxu1 %v9946_v48  ;;  %v10632_v43 = vpop.f32.mrb[180].mxu1  ;;  %v15839_v7 = vadd.f32 %v10748_v46, %v10747_v28  ;;  %v16568_v48 = vld [vmem:[#allocation46_spill] sm:$0xff]  ;;  %v16569_v28 = vld [vmem:[#allocation17_spill] sm:$0xff]  ;;  %v16575_v26 = vld [vmem:[#allocation40_spill] sm:$0xff] }
 0x457   : > { %v10633_v30 = vpop.f32.mrb[181].mxu1  ;;  %v16570_v53 = vcombine.low %v16568_v48, %v16569_v28  ;;  %v16572_v48 = vld [vmem:[#allocation16_spill] sm:$0xff]  ;;  %v16573_v28 = vld [vmem:[#allocation31_spill] sm:$0xff] }
 0x458   : > { %v15841_v24 = vadd.f32 %v10633_v30, %v10632_v43  ;;  %v10635_v19 = vpop.f32.mrb[182].mxu1  ;;  %v16571_v43 = vld [vmem:[#allocation36_spill] sm:$0xff] }
 0x459   : > { %v10636_v32 = vpop.f32.mrb[183].mxu1  ;;  %v7183_v21 = vrot.slane %v16571_v43, 5 }
 0x45a   : > { %v15848_v54 = vadd.f32 %v10636_v32, %v10635_v19  ;;  %v10750_v44 = vpop.f32.mrb[216].mxu0 }
 0x45b   : > { %v10751_v11 = vpop.f32.mrb[217].mxu0  ;;  %v7184_v17 = vsel %vm11947_vm11, %v7182_v1, %v7183_v21 }
 0x45c   : > { %v15852_v58 = vadd.f32 %v10751_v11, %v10750_v44  ;;  %v10753_v31 = vpop.f32.mrb[218].mxu0  ;;  %v15872_v44 = vadd.f32 %v15722_v27, %v8539_v25  ;;  %v9950_v60 = vcombine.low %v7181_v50, %v7184_v17  ;;  %v8544_v11 = vadd.f32 %v15815_v10, %v15236_v6  ;;  %v15889_v6 = vld [vmem:[%s16209_s4] ss:$0 sm:$0xff] }
 0x45d   : > { %11091 = vmatmul.mubr.bf16.gmra.mrb[16].mxu1 %v16570_v53  ;;  %v10754_v33 = vpop.f32.mrb[219].mxu0  ;;  %v16574_v53 = vcombine.low %v16572_v48, %v16573_v28  ;;  %v8547_v10 = vadd.f32 %v15889_v6, %v15825_v35  ;;  %v7204_v17 = vrot.slane %v16575_v26, 5  ;;  %v16577_v48 = vld [vmem:[#allocation29_spill] sm:$0xff]  ;;  %v16579_v26 = vld [vmem:[#allocation30_spill] sm:$0xff] }
 0x45e   : > { %11094 = vmatprep.mubr.bf16.mxu1 %v9948_v39  ;;  %v10638_v46 = vpop.f32.mrb[184].mxu1  ;;  %v15859_v20 = vadd.f32 %v10754_v33, %v10753_v31  ;;  %v7201_v33 = vrot.slane %v15514_v49, 5  ;;  %v15896_v21 = vadd.f32 %v15765_v8, %v8544_v11 }
 0x45f   : > { %v10639_v51 = vpop.f32.mrb[185].mxu1  ;;  %v15904_v35 = vadd.f32 %v15794_v2, %v8547_v10 }
 0x460   : > { %v15865_v30 = vadd.f32 %v10639_v51, %v10638_v46  ;;  %v10641_v19 = vpop.f32.mrb[186].mxu1  ;;  %v9809_v51 = vrot.slane %v7045_v4, 9 }
 0x461   : > { %v10642_v57 = vpop.f32.mrb[187].mxu1 }
 0x462   : > { %v15869_v32 = vadd.f32 %v10642_v57, %v10641_v19  ;;  %v10756_v61 = vpop.f32.mrb[220].mxu0  ;;  %v7203_v19 = vrot.slane %v7201_v33, 4  ;;  %v7202_v11 = vsel %vm11947_vm11, %v9809_v51, %v7201_v33 }
 0x463   : > { %v10757_v9 = vpop.f32.mrb[221].mxu0 }
 0x464   : > { %v15878_v39 = vadd.f32 %v10757_v9, %v10756_v61  ;;  %v10759_v31 = vpop.f32.mrb[222].mxu0 }
 0x465   : > { %11095 = vmatmul.mubr.bf16.gmra.mrb[20].mxu1 %v16574_v53  ;;  %v10760_v1 = vpop.f32.mrb[223].mxu0  ;;  %v7205_v53 = vsel %vm11947_vm11, %v7203_v19, %v7204_v17  ;;  %v16580_v17 = vld [vmem:[#allocation19_spill] sm:$0xff] }
 0x466   : > { %11098 = vmatprep.mubr.bf16.mxu1 %v9950_v60  ;;  %v10644_v27 = vpop.f32.mrb[188].mxu1  ;;  %v15884_v16 = vadd.f32 %v10760_v1, %v10759_v31  ;;  %v16576_v31 = vld [vmem:[#allocation32_spill] sm:$0xff]  ;;  %v9953_v10 = vcombine.low %v7202_v11, %v7205_v53 }
 0x467   : > { %v10645_v25 = vpop.f32.mrb[189].mxu1  ;;  %v16578_v28 = vcombine.low %v16576_v31, %v16577_v48 }
 0x468   : > { %v15893_v46 = vadd.f32 %v10645_v25, %v10644_v27  ;;  %v10647_v43 = vpop.f32.mrb[190].mxu1 }
 0x469   : > { %v10648_v49 = vpop.f32.mrb[191].mxu1 }
 0x46a   : > { %v15899_v57 = vadd.f32 %v10648_v49, %v10647_v43  ;;  %v10890_v61 = vpop.f32.mrb[224].mxu0  ;;  %v8552_v43 = vadd.f32 %v15889_v6, %v15841_v24 }
 0x46b   : > { %v10891_v50 = vpop.f32.mrb[225].mxu0 }
 0x46c   : > { %v15901_v9 = vadd.f32 %v10891_v50, %v10890_v61  ;;  %v10893_v60 = vpop.f32.mrb[226].mxu0  ;;  %v8555_v61 = vadd.f32 %v15889_v6, %v15848_v54  ;;  %v15931_v24 = vadd.f32 %v15831_v22, %v8552_v43  ;;  %v8560_v54 = vadd.f32 %v15889_v6, %v15865_v30 }
 0x46d   : > { %11099 = vmatmul.mubr.bf16.gmra.mrb[24].mxu1 %v16578_v28  ;;  %v10894_v8 = vpop.f32.mrb[227].mxu0 }
 0x46e   : > { %11102 = vmatprep.mubr.bf16.mxu1 %v9952_v41  ;;  %v10778_v1 = vpop.f32.mrb[192].mxu1  ;;  %v15916_v27 = vadd.f32 %v10894_v8, %v10893_v60  ;;  %v15934_v53 = vadd.f32 %v15839_v7, %v8555_v61 }
 0x46f   : > { %v10779_v2 = vpop.f32.mrb[193].mxu1 }
 0x470   : > { %v10780_v4 = vadd.f32 %v10779_v2, %v10778_v1  ;;  %v10781_v25 = vpop.f32.mrb[194].mxu1 }
 0x471   : > { %v10782_v49 = vpop.f32.mrb[195].mxu1 }
 0x472   : > { %v15921_v33 = vadd.f32 %v10780_v4, %v16579_v26  ;;  %v10783_v62 = vadd.f32 %v10782_v49, %v10781_v25  ;;  %v10896_v51 = vpop.f32.mrb[228].mxu0 }
 0x473   : > { %v10897_v19 = vpop.f32.mrb[229].mxu0 }
 0x474   : > { %v15924_v18 = vadd.f32 %v10783_v62, %v16580_v17  ;;  %v15926_v56 = vadd.f32 %v10897_v19, %v10896_v51  ;;  %v10899_v41 = vpop.f32.mrb[230].mxu0  ;;  %v8563_v51 = vadd.f32 %v15889_v6, %v15869_v32  ;;  %v15943_v19 = vadd.f32 %v15852_v58, %v8560_v54 }
 0x475   : > { %11103 = vmatmul.mubr.bf16.gmra.mrb[28].mxu1 %v9953_v10  ;;  %v10900_v50 = vpop.f32.mrb[231].mxu0 }
 0x476   : > { %v10784_v60 = vpop.f32.mrb[196].mxu1  ;;  %v10901_v31 = vadd.f32 %v10900_v50, %v10899_v41 }
 0x477   : > { %v10785_v48 = vpop.f32.mrb[197].mxu1 }
 0x478   : > { %v10786_v28 = vadd.f32 %v10785_v48, %v10784_v60  ;;  %v10787_v8 = vpop.f32.mrb[198].mxu1  ;;  %v15949_v60 = vadd.f32 %v15859_v20, %v8563_v51 }
 0x479   : > { %v10788_v11 = vpop.f32.mrb[199].mxu1 }
 0x47a   : > { %v8778_v1 = vadd.f32 %v10786_v28, %v15735_v40  ;;  %v10789_v2 = vadd.f32 %v10788_v11, %v10787_v8  ;;  %v10902_v4 = vpop.f32.mrb[232].mxu0 }
 0x47b   : > { %v10903_v25 = vpop.f32.mrb[233].mxu0 }
 0x47c   : > { %v8781_v22 = vadd.f32 %v10789_v2, %v15739_v38  ;;  %v10904_v10 = vadd.f32 %v10903_v25, %v10902_v4  ;;  %v10905_v43 = vpop.f32.mrb[234].mxu0  ;;  %v8568_v38 = vadd.f32 %v15889_v6, %v15893_v46  ;;  %v8571_v46 = vadd.f32 %v15889_v6, %v15899_v57 }
 0x47d   : > { %v10906_v49 = vpop.f32.mrb[235].mxu0  ;;  %v15963_v57 = vadd.f32 %v15926_v56, %v8778_v1 }
 0x47e   : > { %v10907_v26 = vadd.f32 %v10906_v49, %v10905_v43  ;;  %v10790_v62 = vpop.f32.mrb[200].mxu1  ;;  %v15953_v2 = vadd.f32 %v15878_v39, %v8568_v38  ;;  %v15960_v39 = vadd.f32 %v15884_v16, %v8571_v46 }
 0x47f   : > { %v10791_v7 = vpop.f32.mrb[201].mxu1 }
 0x480   : > { %v10792_v40 = vadd.f32 %v10791_v7, %v10790_v62  ;;  %v10793_v17 = vpop.f32.mrb[202].mxu1 }
 0x481   : > { %v10794_v41 = vpop.f32.mrb[203].mxu1 }
 0x482   : > { %v8786_v61 = vadd.f32 %v10792_v40, %v15743_v0  ;;  %v10795_v30 = vadd.f32 %v10794_v41, %v10793_v17  ;;  %v10908_v50 = vpop.f32.mrb[236].mxu0 }
 0x483   : > { %v10909_v32 = vpop.f32.mrb[237].mxu0 }
 0x484   : > { %v8789_v48 = vadd.f32 %v10795_v30, %v15751_v36  ;;  %v10910_v28 = vadd.f32 %v10909_v32, %v10908_v50  ;;  %v10911_v8 = vpop.f32.mrb[238].mxu0 }
 0x485   : > { %v10912_v58 = vpop.f32.mrb[239].mxu0 }
 0x486   : > { %v10913_v11 = vadd.f32 %v10912_v58, %v10911_v8  ;;  %v15970_v58 = vadd.f32 %v10901_v31, %v8781_v22  ;;  %v15983_v22 = vadd.f32 %v10907_v26, %v8789_v48 }
 0x488   : > { %v10796_v4 = vpop.f32.mrb[204].mxu1 }
 0x489   : > { %v10797_v0 = vpop.f32.mrb[205].mxu1 }
 0x48a   : > { %v10798_v25 = vadd.f32 %v10797_v0, %v10796_v4  ;;  %v10799_v54 = vpop.f32.mrb[206].mxu1  ;;  %v15975_v0 = vadd.f32 %v15916_v27, %v15924_v18 }
 0x48b   : > { %v10800_v43 = vpop.f32.mrb[207].mxu1 }
 0x48c   : > { %v8794_v20 = vadd.f32 %v10798_v25, %v15755_v47  ;;  %v10801_v49 = vadd.f32 %v10800_v43, %v10799_v54  ;;  %v10914_v36 = vpop.f32.mrb[240].mxu0 }
 0x48d   : > { %v10915_v62 = vpop.f32.mrb[241].mxu0 }
 0x48e   : > { %v8797_v51 = vadd.f32 %v10801_v49, %v15759_v29  ;;  %v10916_v7 = vadd.f32 %v10915_v62, %v10914_v36  ;;  %v10917_v40 = vpop.f32.mrb[242].mxu0  ;;  %v15968_v29 = vadd.f32 %v15901_v9, %v15921_v33  ;;  %v15977_v54 = vadd.f32 %v10910_v28, %v8794_v20 }
 0x48f   : > { %v10918_v17 = vpop.f32.mrb[243].mxu0  ;;  %v15979_v49 = vadd.f32 %v10904_v10, %v8786_v61 }
 0x490   : > { %v10919_v30 = vadd.f32 %v10918_v17, %v10917_v40  ;;  %v15981_v33 = vadd.f32 %v10913_v11, %v8797_v51 }
 0x491   : > { %v10802_v41 = vpop.f32.mrb[208].mxu1 }
 0x492   : > { %v10803_v38 = vpop.f32.mrb[209].mxu1 }
 0x493   : > { %v10804_v50 = vadd.f32 %v10803_v38, %v10802_v41  ;;  %v10805_v32 = vpop.f32.mrb[210].mxu1 }
 0x494   : > { %v10806_v6 = vpop.f32.mrb[211].mxu1 }
 0x495   : > { %v8802_v47 = vadd.f32 %v10804_v50, %v15769_v63  ;;  %v10807_v8 = vadd.f32 %v10806_v6, %v10805_v32 }
 0x496   : > { %v10920_v4 = vpop.f32.mrb[244].mxu0 }
 0x497   : > { %v8805_v16 = vadd.f32 %v10807_v8, %v15772_v5  ;;  %v10921_v25 = vpop.f32.mrb[245].mxu0  ;;  %v15989_v11 = vadd.f32 %v10916_v7, %v8802_v47 }
 0x498   : > { %v10922_v56 = vadd.f32 %v10921_v25, %v10920_v4  ;;  %v10923_v1 = vpop.f32.mrb[246].mxu0 }
 0x499   : > { %v10924_v63 = vpop.f32.mrb[247].mxu0 }
 0x49a   : > { %v10925_v46 = vadd.f32 %v10924_v63, %v10923_v1 }
 0x49d   : > { %v10808_v43 = vpop.f32.mrb[212].mxu1 }
 0x49e   : > { %v10809_v9 = vpop.f32.mrb[213].mxu1 }
 0x49f   : > { %v10810_v31 = vadd.f32 %v10809_v9, %v10808_v43  ;;  %v10811_v5 = vpop.f32.mrb[214].mxu1 }
 0x4a0   : > { %v10812_v36 = vpop.f32.mrb[215].mxu1 }
 0x4a1   : > { %v8810_v27 = vadd.f32 %v10810_v31, %v15783_v37  ;;  %v10813_v18 = vadd.f32 %v10812_v36, %v10811_v5  ;;  %v15993_v37 = vadd.f32 %v10919_v30, %v8805_v16 }
 0x4a2   : > { %v10926_v28 = vpop.f32.mrb[248].mxu0 }
 0x4a3   : > { %v8813_v20 = vadd.f32 %v10813_v18, %v15787_v59  ;;  %v10927_v62 = vpop.f32.mrb[249].mxu0  ;;  %v15987_v40 = vadd.f32 %v10922_v56, %v8810_v27 }
 0x4a4   : > { %v10928_v17 = vadd.f32 %v10927_v62, %v10926_v28  ;;  %v10929_v10 = vpop.f32.mrb[250].mxu0 }
 0x4a5   : > { %v10814_v61 = vpop.f32.mrb[216].mxu1  ;;  %v10930_v41 = vpop.f32.mrb[251].mxu0  ;;  %v15991_v26 = vadd.f32 %v10925_v46, %v8813_v20 }
 0x4a6   : > { %v10815_v51 = vpop.f32.mrb[217].mxu1  ;;  %v10931_v38 = vadd.f32 %v10930_v41, %v10929_v10 }
 0x4a7   : > { %v10816_v48 = vadd.f32 %v10815_v51, %v10814_v61  ;;  %v10817_v50 = vpop.f32.mrb[218].mxu1 }
 0x4a8   : > { %v10818_v32 = vpop.f32.mrb[219].mxu1 }
 0x4a9   : > { %v8818_v59 = vadd.f32 %v10816_v48, %v15790_v13  ;;  %v10819_v6 = vadd.f32 %v10818_v32, %v10817_v50 }
 0x4aa   : > { %v10932_v8 = vpop.f32.mrb[252].mxu0 }
 0x4ab   : > { %v8821_v4 = vadd.f32 %v10819_v6, %v15797_v52  ;;  %v10933_v25 = vpop.f32.mrb[253].mxu0  ;;  %v15997_v47 = vadd.f32 %v10928_v17, %v8818_v59 }
 0x4ac   : > { %v10934_v56 = vadd.f32 %v10933_v25, %v10932_v8  ;;  %v10935_v1 = vpop.f32.mrb[254].mxu0 }
 0x4ad   : > { %v10936_v7 = vpop.f32.mrb[255].mxu0  ;;  %v15999_v46 = vadd.f32 %v10931_v38, %v8821_v4 }
 0x4ae   : > { %v10937_v63 = vadd.f32 %v10936_v7, %v10935_v1 }
 0x4b1   : > { %v10820_v43 = vpop.f32.mrb[220].mxu1 }
 0x4b2   : > { %v10821_v9 = vpop.f32.mrb[221].mxu1 }
 0x4b3   : > { %v10822_v30 = vadd.f32 %v10821_v9, %v10820_v43  ;;  %v10823_v16 = vpop.f32.mrb[222].mxu1 }
 0x4b4   : > { %v10824_v31 = vpop.f32.mrb[223].mxu1 }
 0x4b5   : > { %v8826_v13 = vadd.f32 %v10822_v30, %v15800_v23  ;;  %v10825_v5 = vadd.f32 %v10824_v31, %v10823_v16 }
 0x4b6   : > { %v10938_v52 = vpop.f32.mrb[0].mxu0 }
 0x4b7   : > { %v8829_v36 = vadd.f32 %v10825_v5, %v15803_v3  ;;  %v16003_v27 = vadd.f32 %v10934_v56, %v8826_v13  ;;  %v10939_v18 = vpop.f32.mrb[1].mxu0 }
 0x4b8   : > { %v10940_v28 = vadd.f32 %v10939_v18, %v10938_v52  ;;  %v10941_v20 = vpop.f32.mrb[2].mxu0 }
 0x4b9   : > { %v16005_v62 = vadd.f32 %v10937_v63, %v8829_v36  ;;  %v10942_v17 = vpop.f32.mrb[3].mxu0 }
 0x4ba   : > { %v10826_v10 = vpop.f32.mrb[224].mxu1  ;;  %v10943_v61 = vadd.f32 %v10942_v17, %v10941_v20 }
 0x4bb   : > { %v10827_v41 = vpop.f32.mrb[225].mxu1 }
 0x4bc   : > { %v10828_v51 = vadd.f32 %v10827_v41, %v10826_v10  ;;  %v10829_v38 = vpop.f32.mrb[226].mxu1 }
 0x4bd   : > { %v10830_v48 = vpop.f32.mrb[227].mxu1 }
 0x4be   : > { %v8834_v23 = vadd.f32 %v10828_v51, %v15806_v15  ;;  %v10831_v50 = vadd.f32 %v10830_v48, %v10829_v38 }
 0x4c0   : > { %v8837_v3 = vadd.f32 %v10831_v50, %v15809_v34  ;;  %v10944_v32 = vpop.f32.mrb[4].mxu0  ;;  %v16009_v59 = vadd.f32 %v10940_v28, %v8834_v23 }
 0x4c1   : > { %v10945_v6 = vpop.f32.mrb[5].mxu0 }
 0x4c2   : > { %v10946_v8 = vadd.f32 %v10945_v6, %v10944_v32  ;;  %v10947_v4 = vpop.f32.mrb[6].mxu0  ;;  %v16011_v25 = vadd.f32 %v10943_v61, %v8837_v3 }
 0x4c3   : > { %v10948_v56 = vpop.f32.mrb[7].mxu0 }
 0x4c4   : > { %v10949_v7 = vadd.f32 %v10948_v56, %v10947_v4 }
 0x4c6   : > { %v10832_v1 = vpop.f32.mrb[228].mxu1 }
 0x4c7   : > { %v10833_v63 = vpop.f32.mrb[229].mxu1 }
 0x4c8   : > { %v10834_v43 = vadd.f32 %v10833_v63, %v10832_v1  ;;  %v10835_v9 = vpop.f32.mrb[230].mxu1 }
 0x4c9   : > { %v10836_v30 = vpop.f32.mrb[231].mxu1 }
 0x4ca   : > { %v8842_v15 = vadd.f32 %v10834_v43, %v15812_v14  ;;  %v10837_v16 = vadd.f32 %v10836_v30, %v10835_v9 }
 0x4cb   : > { %v10950_v13 = vpop.f32.mrb[8].mxu0 }
 0x4cc   : > { %v8845_v34 = vadd.f32 %v10837_v16, %v15818_v12  ;;  %v16015_v31 = vadd.f32 %v10946_v8, %v8842_v15  ;;  %v10951_v5 = vpop.f32.mrb[9].mxu0 }
 0x4cd   : > { %v10952_v52 = vadd.f32 %v10951_v5, %v10950_v13  ;;  %v10953_v18 = vpop.f32.mrb[10].mxu0 }
 0x4ce   : > { %v16017_v36 = vadd.f32 %v10949_v7, %v8845_v34  ;;  %v10954_v20 = vpop.f32.mrb[11].mxu0 }
 0x4cf   : > { %v10838_v28 = vpop.f32.mrb[232].mxu1  ;;  %v10955_v10 = vadd.f32 %v10954_v20, %v10953_v18 }
 0x4d0   : > { %v10839_v17 = vpop.f32.mrb[233].mxu1 }
 0x4d1   : > { %v10840_v61 = vadd.f32 %v10839_v17, %v10838_v28  ;;  %v10841_v41 = vpop.f32.mrb[234].mxu1 }
 0x4d2   : > { %v10842_v51 = vpop.f32.mrb[235].mxu1 }
 0x4d3   : > { %v8850_v14 = vadd.f32 %v10840_v61, %v15821_v45  ;;  %v10843_v38 = vadd.f32 %v10842_v51, %v10841_v41  ;;  %v10956_v48 = vpop.f32.mrb[12].mxu0 }
 0x4d4   : > { %v10957_v23 = vpop.f32.mrb[13].mxu0 }
 0x4d5   : > { %v8853_v12 = vadd.f32 %v10843_v38, %v15834_v42  ;;  %v16021_v50 = vadd.f32 %v10952_v52, %v8850_v14  ;;  %v10958_v3 = vadd.f32 %v10957_v23, %v10956_v48  ;;  %v10959_v32 = vpop.f32.mrb[14].mxu0 }
 0x4d6   : > { %v10960_v6 = vpop.f32.mrb[15].mxu0 }
 0x4d7   : > { %v16023_v8 = vadd.f32 %v10955_v10, %v8853_v12  ;;  %v10961_v4 = vadd.f32 %v10960_v6, %v10959_v32 }
 0x4dd   : > { %v10844_v56 = vpop.f32.mrb[236].mxu1 }
 0x4de   : > { %v10845_v1 = vpop.f32.mrb[237].mxu1 }
 0x4df   : > { %v10846_v7 = vadd.f32 %v10845_v1, %v10844_v56  ;;  %v10847_v63 = vpop.f32.mrb[238].mxu1 }
 0x4e0   : > { %v10848_v43 = vpop.f32.mrb[239].mxu1  ;;  %v10962_v30 = vpop.f32.mrb[16].mxu0 }
 0x4e1   : > { %v8858_v45 = vadd.f32 %v10846_v7, %v15862_v55  ;;  %v10849_v9 = vadd.f32 %v10848_v43, %v10847_v63  ;;  %v10963_v15 = vpop.f32.mrb[17].mxu0 }
 0x4e2   : > { %v10964_v16 = vadd.f32 %v10963_v15, %v10962_v30  ;;  %v10965_v34 = vpop.f32.mrb[18].mxu0 }
 0x4e3   : > { %v8861_v42 = vadd.f32 %v10849_v9, %v15872_v44  ;;  %v16027_v13 = vadd.f32 %v10958_v3, %v8858_v45  ;;  %v10966_v5 = vpop.f32.mrb[19].mxu0 }
 0x4e4   : > { %v10967_v52 = vadd.f32 %v10966_v5, %v10965_v34 }
 0x4e5   : > { %v16029_v18 = vadd.f32 %v10961_v4, %v8861_v42 }
 0x4e7   : > { %v10850_v28 = vpop.f32.mrb[240].mxu1 }
 0x4e8   : > { %v10851_v20 = vpop.f32.mrb[241].mxu1 }
 0x4e9   : > { %v10852_v17 = vadd.f32 %v10851_v20, %v10850_v28  ;;  %v10853_v10 = vpop.f32.mrb[242].mxu1 }
 0x4ea   : > { %v10854_v61 = vpop.f32.mrb[243].mxu1 }
 0x4eb   : > { %v8866_v55 = vadd.f32 %v10852_v17, %v15896_v21  ;;  %v10855_v41 = vadd.f32 %v10854_v61, %v10853_v10  ;;  %v10968_v51 = vpop.f32.mrb[20].mxu0 }
 0x4ec   : > { %v10969_v14 = vpop.f32.mrb[21].mxu0 }
 0x4ed   : > { %v8869_v44 = vadd.f32 %v10855_v41, %v15904_v35  ;;  %v10970_v38 = vadd.f32 %v10969_v14, %v10968_v51  ;;  %v10971_v48 = vpop.f32.mrb[22].mxu0  ;;  %v16033_v12 = vadd.f32 %v10964_v16, %v8866_v55 }
 0x4ee   : > { %v10972_v23 = vpop.f32.mrb[23].mxu0 }
 0x4ef   : > { %v10973_v3 = vadd.f32 %v10972_v23, %v10971_v48  ;;  %v16035_v32 = vadd.f32 %v10967_v52, %v8869_v44 }
 0x4f4   : > { %v10856_v6 = vpop.f32.mrb[244].mxu1 }
 0x4f5   : > { %v10857_v4 = vpop.f32.mrb[245].mxu1 }
 0x4f6   : > { %v10858_v56 = vadd.f32 %v10857_v4, %v10856_v6  ;;  %v10859_v1 = vpop.f32.mrb[246].mxu1  ;;  %v11494_v4 = vld [vmem:[%s11907_s9] sm:$0xf] }
 0x4f7   : > { %v10860_v7 = vpop.f32.mrb[247].mxu1 }
 0x4f8   : > { %v8874_v21 = vadd.f32 %v10858_v56, %v15931_v24  ;;  %v10861_v63 = vadd.f32 %v10860_v7, %v10859_v1  ;;  %v9218_v56 = vunpack.c.l.bf16 %v11494_v4 }
 0x4f9   : > { %v10974_v43 = vpop.f32.mrb[24].mxu0 }
 0x4fa   : > { %v8877_v45 = vadd.f32 %v10861_v63, %v15934_v53  ;;  %v10975_v35 = vpop.f32.mrb[25].mxu0  ;;  %v16039_v9 = vadd.f32 %v10970_v38, %v8874_v21  ;;  %v11495_v21 = vld [vmem:[%s11907_s9 + $0xc] sm:$0xf] }
 0x4fb   : > { %v10976_v30 = vadd.f32 %v10975_v35, %v10974_v43  ;;  %v10977_v15 = vpop.f32.mrb[26].mxu0  ;;  %v9221_v63 = vunpack.c.l.bf16 %v11495_v21 }
 0x4fc   : > { %v10978_v42 = vpop.f32.mrb[27].mxu0  ;;  %v16041_v16 = vadd.f32 %v10973_v3, %v8877_v45  ;;  %v11493_v3 = vld [vmem:[%s11907_s9 + $0x8] sm:$0xf] }
 0x4fd   : > { %v10979_v34 = vadd.f32 %v10978_v42, %v10977_v15  ;;  %v9220_v6 = vunpack.c.l.bf16 %v11493_v3 }
 0x4ff   : > { %v10862_v5 = vpop.f32.mrb[248].mxu1 }
 0x500   : > { %v10863_v52 = vpop.f32.mrb[249].mxu1 }
 0x501   : > { %v10864_v28 = vadd.f32 %v10863_v52, %v10862_v5  ;;  %v10865_v20 = vpop.f32.mrb[250].mxu1 }
 0x502   : > { %v10866_v17 = vpop.f32.mrb[251].mxu1 }
 0x503   : > { %v8882_v24 = vadd.f32 %v10864_v28, %v15943_v19  ;;  %v10867_v10 = vadd.f32 %v10866_v17, %v10865_v20 }
 0x505   : > { %v8885_v53 = vadd.f32 %v10867_v10, %v15949_v60  ;;  %v16045_v61 = vadd.f32 %v10976_v30, %v8882_v24 }
 0x507   : > { %v10868_v55 = vpop.f32.mrb[252].mxu1  ;;  %v16047_v41 = vadd.f32 %v10979_v34, %v8885_v53 }
 0x508   : > { %v10869_v51 = vpop.f32.mrb[253].mxu1 }
 0x509   : > { %v10870_v14 = vadd.f32 %v10869_v51, %v10868_v55  ;;  %v10871_v44 = vpop.f32.mrb[254].mxu1  ;;  %v11497_v51 = vld [vmem:[%s11907_s9 + $0x18] sm:$0xf] }
 0x50a   : > { %v10872_v38 = vpop.f32.mrb[255].mxu1 }
 0x50b   : > { %v8890_v48 = vadd.f32 %v10870_v14, %v15953_v2  ;;  %v10873_v23 = vadd.f32 %v10872_v38, %v10871_v44  ;;  %v11496_v2 = vld [vmem:[%s11907_s9 + $0x4] sm:$0xf]  ;;  %v11498_v38 = vld [vmem:[%s11907_s9 + $0x10] sm:$0xf] }
 0x50c   : > { %v9219_v30 = vunpack.c.l.bf16 %v11496_v2 }
 0x50d   : > { %v8893_v19 = vadd.f32 %v10873_v23, %v15960_v39  ;;  %v9222_v23 = vunpack.c.l.bf16 %v11498_v38 }
 0x50f   : > { %v11076_v60 = vpop.f32.mrb[0].mxu1 }
 0x510   : > { %v9100_v1 = vadd.f32 %v11076_v60, %v15963_v57  ;;  %v9091_v7 = vpop.f32.mrb[1].mxu1  ;;  %v10980_v43 = vpop.f32.mrb[28].mxu0  ;;  %v11499_v60 = vld [vmem:[%s11907_s9 + $0x1c] sm:$0xf] }
 0x511   : > { %v9092_v45 = vadd.f32 %v9091_v7, %v15968_v29  ;;  %v11077_v35 = vpop.f32.mrb[2].mxu1  ;;  %v10981_v15 = vpop.f32.mrb[29].mxu0  ;;  %v9225_v4 = vunpack.c.l.bf16 %v11499_v60  ;;  %v11500_v7 = vld [vmem:[%s11907_s9 + $0x14] sm:$0xf] }
 0x512   : > { %v9252_v42 = vadd.f32 %v9220_v6, %v9100_v1  ;;  %v9103_v39 = vadd.f32 %v11077_v35, %v15970_v58  ;;  %v9094_v34 = vpop.f32.mrb[3].mxu1  ;;  %v10982_v5 = vadd.f32 %v10981_v15, %v10980_v43  ;;  %v10983_v52 = vpop.f32.mrb[30].mxu0  ;;  %v9223_v21 = vunpack.c.l.bf16 %v11500_v7  ;;  %v11507_v7 = vld [vmem:[%s11907_s9 + $0x3c] sm:$0xf] }
 0x513   : > { %v9250_v28 = vadd.f32 %v9218_v56, %v9092_v45  ;;  %v9095_v57 = vadd.f32 %v9094_v34, %v15975_v0  ;;  %v10984_v20 = vpop.f32.mrb[31].mxu0  ;;  %v9224_v0 = vunpack.c.l.bf16 %v11497_v51 }
 0x514   : > { %v9284_v17 = vmax.f32 %v9252_v42, 0.0  ;;  %v9253_v24 = vadd.f32 %v9221_v63, %v9103_v39  ;;  %v10985_v10 = vadd.f32 %v10984_v20, %v10983_v52  ;;  %v16060_v55 = vadd.f32 %v10982_v5, %v8890_v48  ;;  %v11501_v42 = vld [vmem:[%s11907_s9 + $0x28] sm:$0xf] }
 0x515   : > { %v9282_v29 = vmax.f32 %v9250_v28, 0.0  ;;  %v9251_v53 = vadd.f32 %v9219_v30, %v9095_v57  ;;  %v9228_v39 = vunpack.c.l.bf16 %v11501_v42  ;;  %v11503_v57 = vld [vmem:[%s11907_s9 + $0x2c] sm:$0xf] }
 0x516   : > { %9316 = vst [vmem:[%s16062_s13 + $0x10] sm:$0xff] %v9284_v17  ;;  %v9285_v58 = vmax.f32 %v9253_v24, 0.0  ;;  %v16068_v3 = vadd.f32 %v10985_v10, %v8893_v19  ;;  %v9229_v20 = vunpack.c.l.bf16 %v11503_v57  ;;  %v11504_v10 = vld [vmem:[%s11907_s9 + $0x24] sm:$0xf]  ;;  %v11511_v57 = vld [vmem:[%s11907_s9 + $0x4c] sm:$0xf] }
 0x517   : > { %9314 = vst [vmem:[%s16062_s13] sm:$0xff] %v9282_v29  ;;  %v9283_v14 = vmax.f32 %v9251_v53, 0.0  ;;  %v11080_v44 = vpop.f32.mrb[4].mxu1  ;;  %v9227_v29 = vunpack.c.l.bf16 %v11504_v10  ;;  %v11512_v10 = vld [vmem:[%s11907_s9 + $0x44] sm:$0xf] }
 0x518   : > { %9317 = vst [vmem:[%s16062_s13 + $0x18] sm:$0xff] %v9285_v58  ;;  %v9116_v48 = vadd.f32 %v11080_v44, %v15977_v54  ;;  %v9107_v6 = vpop.f32.mrb[5].mxu1 }
 0x519   : > { %9315 = vst [vmem:[%s16062_s13 + $0x8] sm:$0xff] %v9283_v14  ;;  %v9108_v56 = vadd.f32 %v9107_v6, %v15979_v49  ;;  %v11081_v1 = vpop.f32.mrb[6].mxu1 }
 0x51a   : > { %v9256_v63 = vadd.f32 %v9224_v0, %v9116_v48  ;;  %v9119_v19 = vadd.f32 %v11081_v1, %v15981_v33  ;;  %v9110_v43 = vpop.f32.mrb[7].mxu1  ;;  %v11502_v33 = vld [vmem:[%s11907_s9 + $0x20] sm:$0xf]  ;;  %v11505_v48 = vld [vmem:[%s11907_s9 + $0x38] sm:$0xf] }
 0x51b   : > { %v9254_v45 = vadd.f32 %v9222_v23, %v9108_v56  ;;  %v9111_v54 = vadd.f32 %v9110_v43, %v15983_v22  ;;  %v9226_v52 = vunpack.c.l.bf16 %v11502_v33  ;;  %v9232_v6 = vunpack.c.l.bf16 %v11505_v48  ;;  %v11508_v43 = vld [vmem:[%s11907_s9 + $0x34] sm:$0xf] }
 0x51c   : > { %v9288_v35 = vmax.f32 %v9256_v63, 0.0  ;;  %v9257_v2 = vadd.f32 %v9225_v4, %v9119_v19 }
 0x51d   : > { %v9286_v30 = vmax.f32 %v9254_v45, 0.0  ;;  %v9255_v15 = vadd.f32 %v9223_v21, %v9111_v54  ;;  %v9233_v21 = vunpack.c.l.bf16 %v11507_v7  ;;  %v9231_v45 = vunpack.c.l.bf16 %v11508_v43  ;;  %v11516_v7 = vld [vmem:[%s11907_s9 + $0x54] sm:$0xf] }
 0x51e   : > { %9320 = vst [vmem:[%s16062_s13 + $0x30] sm:$0xff] %v9288_v35  ;;  %v9289_v49 = vmax.f32 %v9257_v2, 0.0 }
 0x51f   : > { %9318 = vst [vmem:[%s16062_s13 + $0x20] sm:$0xff] %v9286_v30  ;;  %v9287_v34 = vmax.f32 %v9255_v15, 0.0 }
 0x520   : > { %v11084_v5 = vpop.f32.mrb[8].mxu1  ;;  %9321 = vst [vmem:[%s16062_s13 + $0x38] sm:$0xff] %v9289_v49 }
 0x521   : > { %v9132_v28 = vadd.f32 %v11084_v5, %v15987_v40  ;;  %v9123_v22 = vpop.f32.mrb[9].mxu1  ;;  %9319 = vst [vmem:[%s16062_s13 + $0x28] sm:$0xff] %v9287_v34  ;;  %v11509_v34 = vld [vmem:[%s11907_s9 + $0x48] sm:$0xf] }
 0x522   : > { %v9124_v17 = vadd.f32 %v9123_v22, %v15989_v11  ;;  %v11085_v24 = vpop.f32.mrb[10].mxu1  ;;  %v9236_v5 = vunpack.c.l.bf16 %v11509_v34  ;;  %v11519_v34 = vld [vmem:[%s11907_s9 + $0x6c] sm:$0xf] }
 0x523   : > { %v9260_v53 = vadd.f32 %v9228_v39, %v9132_v28  ;;  %v9135_v58 = vadd.f32 %v11085_v24, %v15991_v26  ;;  %v9126_v51 = vpop.f32.mrb[11].mxu1  ;;  %v11506_v26 = vld [vmem:[%s11907_s9 + $0x30] sm:$0xf] }
 0x524   : > { %v9258_v0 = vadd.f32 %v9226_v52, %v9124_v17  ;;  %v9127_v40 = vadd.f32 %v9126_v51, %v15993_v37  ;;  %v9230_v56 = vunpack.c.l.bf16 %v11506_v26  ;;  %v11515_v26 = vld [vmem:[%s11907_s9 + $0x5c] sm:$0xf] }
 0x525   : > { %v9292_v14 = vmax.f32 %v9260_v53, 0.0  ;;  %v9261_v44 = vadd.f32 %v9229_v20, %v9135_v58  ;;  %v9237_v20 = vunpack.c.l.bf16 %v11511_v57 }
 0x526   : > { %v9290_v38 = vmax.f32 %v9258_v0, 0.0  ;;  %v9259_v23 = vadd.f32 %v9227_v29, %v9127_v40  ;;  %v9235_v29 = vunpack.c.l.bf16 %v11512_v10 }
 0x527   : > { %9324 = vst [vmem:[%s16062_s13 + $0x50] sm:$0xff] %v9292_v14  ;;  %v9293_v11 = vmax.f32 %v9261_v44, 0.0 }
 0x528   : > { %9322 = vst [vmem:[%s16062_s13 + $0x40] sm:$0xff] %v9290_v38  ;;  %v9291_v60 = vmax.f32 %v9259_v23, 0.0  ;;  %v11088_v4 = vpop.f32.mrb[12].mxu1  ;;  %v11513_v23 = vld [vmem:[%s11907_s9 + $0x58] sm:$0xf] }
 0x529   : > { %9325 = vst [vmem:[%s16062_s13 + $0x58] sm:$0xff] %v9293_v11  ;;  %v9148_v1 = vadd.f32 %v11088_v4, %v16003_v27  ;;  %v9139_v37 = vpop.f32.mrb[13].mxu1  ;;  %v9240_v11 = vunpack.c.l.bf16 %v11513_v23  ;;  %v11524_v23 = vld [vmem:[%s11907_s9 + $0x74] sm:$0xf] }
 0x52a   : > { %9323 = vst [vmem:[%s16062_s13 + $0x48] sm:$0xff] %v9291_v60  ;;  %v9140_v63 = vadd.f32 %v9139_v37, %v15997_v47  ;;  %v11089_v19 = vpop.f32.mrb[14].mxu1 }
 0x52b   : > { %v9264_v54 = vadd.f32 %v9232_v6, %v9148_v1  ;;  %v9151_v35 = vadd.f32 %v11089_v19, %v16005_v62  ;;  %v9142_v2 = vpop.f32.mrb[15].mxu1  ;;  %v11510_v62 = vld [vmem:[%s11907_s9 + $0x40] sm:$0xf] }
 0x52c   : > { %v9262_v30 = vadd.f32 %v9230_v56, %v9140_v63  ;;  %v9143_v27 = vadd.f32 %v9142_v2, %v15999_v46  ;;  %v9234_v28 = vunpack.c.l.bf16 %v11510_v62  ;;  %v9241_v56 = vunpack.c.l.bf16 %v11515_v26  ;;  %v11520_v62 = vld [vmem:[%s11907_s9 + $0x64] sm:$0xf] }
 0x52d   : > { %v9296_v15 = vmax.f32 %v9264_v54, 0.0  ;;  %v9265_v49 = vadd.f32 %v9233_v21, %v9151_v35  ;;  %v9239_v21 = vunpack.c.l.bf16 %v11516_v7 }
 0x52e   : > { %v9294_v42 = vmax.f32 %v9262_v30, 0.0  ;;  %v9263_v39 = vadd.f32 %v9231_v45, %v9143_v27  ;;  %v11517_v27 = vld [vmem:[%s11907_s9 + $0x68] sm:$0xf] }
 0x52f   : > { %9328 = vst [vmem:[%s16062_s13 + $0x70] sm:$0xff] %v9296_v15  ;;  %v9297_v47 = vmax.f32 %v9265_v49, 0.0  ;;  %v9244_v15 = vunpack.c.l.bf16 %v11517_v27 }
 0x530   : > { %9326 = vst [vmem:[%s16062_s13 + $0x60] sm:$0xff] %v9294_v42  ;;  %v9295_v33 = vmax.f32 %v9263_v39, 0.0  ;;  %v11092_v52 = vpop.f32.mrb[16].mxu1 }
 0x531   : > { %9329 = vst [vmem:[%s16062_s13 + $0x78] sm:$0xff] %v9297_v47  ;;  %v9164_v22 = vadd.f32 %v11092_v52, %v16015_v31  ;;  %v9155_v46 = vpop.f32.mrb[17].mxu1 }
 0x532   : > { %9327 = vst [vmem:[%s16062_s13 + $0x68] sm:$0xff] %v9295_v33  ;;  %v9156_v17 = vadd.f32 %v9155_v46, %v16009_v59  ;;  %v11093_v24 = vpop.f32.mrb[18].mxu1 }
 0x533   : > { %v9268_v53 = vadd.f32 %v9236_v5, %v9164_v22  ;;  %v9167_v58 = vadd.f32 %v11093_v24, %v16017_v36  ;;  %v9158_v51 = vpop.f32.mrb[19].mxu1  ;;  %v11514_v36 = vld [vmem:[%s11907_s9 + $0x50] sm:$0xf]  ;;  %v9245_v5 = vunpack.c.l.bf16 %v11519_v34 }
 0x534   : > { %v9266_v0 = vadd.f32 %v9234_v28, %v9156_v17  ;;  %v9159_v31 = vadd.f32 %v9158_v51, %v16011_v25  ;;  %v9238_v60 = vunpack.c.l.bf16 %v11514_v36  ;;  %v9243_v28 = vunpack.c.l.bf16 %v11520_v62 }
 0x535   : > { %v9300_v40 = vmax.f32 %v9268_v53, 0.0  ;;  %v9269_v14 = vadd.f32 %v9237_v20, %v9167_v58  ;;  %v11521_v53 = vld [vmem:[%s11907_s9 + $0x78] sm:$0xf] }
 0x536   : > { %v9298_v44 = vmax.f32 %v9266_v0, 0.0  ;;  %v9267_v38 = vadd.f32 %v9235_v29, %v9159_v31  ;;  %v9248_v58 = vunpack.c.l.bf16 %v11521_v53 }
 0x537   : > { %9332 = vst [vmem:[%s16062_s13 + $0x90] sm:$0xff] %v9300_v40  ;;  %v9301_v59 = vmax.f32 %v9269_v14, 0.0  ;;  %v11523_v14 = vld [vmem:[%s11907_s9 + $0x7c] sm:$0xf] }
 0x538   : > { %9330 = vst [vmem:[%s16062_s13 + $0x80] sm:$0xff] %v9298_v44  ;;  %v9299_v48 = vmax.f32 %v9267_v38, 0.0  ;;  %v11096_v6 = vpop.f32.mrb[20].mxu1  ;;  %v9249_v44 = vunpack.c.l.bf16 %v11523_v14 }
 0x539   : > { %9333 = vst [vmem:[%s16062_s13 + $0x98] sm:$0xff] %v9301_v59  ;;  %v9180_v4 = vadd.f32 %v11096_v6, %v16027_v13  ;;  %v9171_v25 = vpop.f32.mrb[21].mxu1 }
 0x53a   : > { %9331 = vst [vmem:[%s16062_s13 + $0x88] sm:$0xff] %v9299_v48  ;;  %v9172_v1 = vadd.f32 %v9171_v25, %v16021_v50  ;;  %v11097_v37 = vpop.f32.mrb[22].mxu1 }
 0x53b   : > { %v9272_v63 = vadd.f32 %v9240_v11, %v9180_v4  ;;  %v9183_v19 = vadd.f32 %v11097_v37, %v16029_v18  ;;  %v9174_v43 = vpop.f32.mrb[23].mxu1  ;;  %v11518_v18 = vld [vmem:[%s11907_s9 + $0x60] sm:$0xf]  ;;  %v9247_v11 = vunpack.c.l.bf16 %v11524_v23 }
 0x53c   : > { %v9270_v45 = vadd.f32 %v9238_v60, %v9172_v1  ;;  %v9175_v13 = vadd.f32 %v9174_v43, %v16023_v8  ;;  %v9242_v39 = vunpack.c.l.bf16 %v11518_v18 }
 0x53d   : > { %v9304_v54 = vmax.f32 %v9272_v63, 0.0  ;;  %v9273_v35 = vadd.f32 %v9241_v56, %v9183_v19 }
 0x53e   : > { %v9302_v2 = vmax.f32 %v9270_v45, 0.0  ;;  %v9271_v30 = vadd.f32 %v9239_v21, %v9175_v13 }
 0x53f   : > { %9336 = vst [vmem:[%s16062_s13 + $0xb0] sm:$0xff] %v9304_v54  ;;  %v9305_v50 = vmax.f32 %v9273_v35, 0.0 }
 0x540   : > { %9334 = vst [vmem:[%s16062_s13 + $0xa0] sm:$0xff] %v9302_v2  ;;  %v9303_v49 = vmax.f32 %v9271_v30, 0.0  ;;  %v11100_v42 = vpop.f32.mrb[24].mxu1 }
 0x541   : > { %9337 = vst [vmem:[%s16062_s13 + $0xb8] sm:$0xff] %v9305_v50  ;;  %v9196_v47 = vadd.f32 %v11100_v42, %v16039_v9  ;;  %v9187_v8 = vpop.f32.mrb[25].mxu1 }
 0x542   : > { %9335 = vst [vmem:[%s16062_s13 + $0xa8] sm:$0xff] %v9303_v49  ;;  %v9188_v33 = vadd.f32 %v9187_v8, %v16033_v12  ;;  %v11101_v52 = vpop.f32.mrb[26].mxu1 }
 0x543   : > { %v9276_v22 = vadd.f32 %v9244_v15, %v9196_v47  ;;  %v9199_v46 = vadd.f32 %v11101_v52, %v16041_v16  ;;  %v9190_v57 = vpop.f32.mrb[27].mxu1  ;;  %v11522_v16 = vld [vmem:[%s11907_s9 + $0x70] sm:$0xf]  ;;  %s11689_s9 = smov [#allocation10]  }
 0x544   : > { %v9274_v20 = vadd.f32 %v9242_v39, %v9188_v33  ;;  %v9191_v9 = vadd.f32 %v9190_v57, %v16035_v32  ;;  %v9246_v31 = vunpack.c.l.bf16 %v11522_v16  ;;  %s11615_s24 = sshll.u32 %s11689_s9, 4  ;;  %s11616_s24 = int_to_ptr.vmem [resolvable:$false] %s11615_s24 }
 0x545   : > { %v9308_v17 = vmax.f32 %v9276_v22, 0.0  ;;  %v9277_v24 = vadd.f32 %v9245_v5, %v9199_v46  ;;  %s11617_s26 = scalar_lea.vmem %s11616_s24, 8192  ;;  %p11618_p7 = scmp.lt.s32.totalorder %s16158_s11, %s11616_s24 }
 0x546   : > { %v9306_v10 = vmax.f32 %v9274_v20, 0.0  ;;  %v9275_v29 = vadd.f32 %v9243_v28, %v9191_v9  ;;  %p11619_p9 = scmp.lt.s32.totalorder %s11617_s26, %s11611_s8 }
 0x547   : > { %9340 = vst [vmem:[%s16062_s13 + $0xd0] sm:$0xff] %v9308_v17  ;;  %v9309_v12 = vmax.f32 %v9277_v24, 0.0 }
 0x548   : > { %9338 = vst [vmem:[%s16062_s13 + $0xc0] sm:$0xff] %v9306_v10  ;;  %v9307_v51 = vmax.f32 %v9275_v29, 0.0  ;;  %v11104_v0 = vpop.f32.mrb[28].mxu1  ;;  %p11620_p12 = por %p11619_p9, %p11618_p7 }
 0x549   : > { %9341 = vst [vmem:[%s16062_s13 + $0xd8] sm:$0xff] %v9309_v12  ;;  %v9212_v32 = vadd.f32 %v11104_v0, %v16060_v55  ;;  %v9203_v40 = vpop.f32.mrb[29].mxu1 }
 0x54a   : > { %9339 = vst [vmem:[%s16062_s13 + $0xc8] sm:$0xff] %v9307_v51  ;;  %v9204_v38 = vadd.f32 %v9203_v40, %v16045_v61  ;;  %v11105_v59 = vpop.f32.mrb[30].mxu1  ;;  %p11621_p1 = pnand %p11620_p12, %p11614_p3 }
 0x54b   : > { %v9280_v48 = vadd.f32 %v9248_v58, %v9212_v32  ;;  %v9215_v6 = vadd.f32 %v11105_v59, %v16068_v3  ;;  %v9206_v36 = vpop.f32.mrb[31].mxu1 }
 0x54c   : > { %v9278_v60 = vadd.f32 %v9246_v31, %v9204_v38  ;;  %v9207_v55 = vadd.f32 %v9206_v36, %v16047_v41 }
 0x54d   : > { %v9312_v4 = vmax.f32 %v9280_v48, 0.0  ;;  %v9281_v25 = vadd.f32 %v9249_v44, %v9215_v6 }
 0x54e   : > { %v9310_v61 = vmax.f32 %v9278_v60, 0.0  ;;  %v9279_v26 = vadd.f32 %v9247_v11, %v9207_v55 }
 0x54f   : > { %9344 = vst [vmem:[%s16062_s13 + $0xf0] sm:$0xff] %v9312_v4  ;;  %v9313_v56 = vmax.f32 %v9281_v25, 0.0 }
 0x550   : > { %9342 = vst [vmem:[%s16062_s13 + $0xe0] sm:$0xff] %v9310_v61  ;;  %v9311_v41 = vmax.f32 %v9279_v26, 0.0 }
 0x551   : > { %9345 = vst [vmem:[%s16062_s13 + $0xf8] sm:$0xff] %v9313_v56 }
 0x552   : > { %9343 = vst [vmem:[%s16062_s13 + $0xe8] sm:$0xff] %v9311_v41 }
 0x553   : > { %11624 = shalt.err (!%p11621_p1)
}
 0x554   : > { %s11625_s15 = scalar_lea.hbm %s16156_s6, 4096  ;;  %s11629_s28 = scalar_lea.hbm %s16210_s5, 8192 }
 0x555   : > { %p11626_p13 = scmp.ne.s32.totalorder %s16156_s6, %s11625_s15  ;;  %p11630_p4 = scmp.lt.u32.totalorder %s16156_s6, %s16210_s5 }
 0x556   : > { %p11631_p5 = scmp.lt.u32.totalorder %s11629_s28, %s11625_s15  ;;  %p11633_p11 = scmp.lt.u32.totalorder %s11625_s15, %s16156_s6 }
 0x557   : > { %p11627_p6 = pnand %p11626_p13, %p16581_p0 }
 0x558   : > { %p11632_p8 = por %p11631_p5, %p11630_p4 }
 0x559   : > { %p11628_p10 = pneg %p11627_p6 }
 0x55a   : > { %p11634_p2 = por %p11633_p11, %p11632_p8 }
 0x55c   : > { %p11635_p3 = pnand %p11634_p2, %p11628_p10 }
 0x55e   : > { %11638 = shalt.err (!%p11635_p3)
}
 0x55f   : > { %s11690_s30 = smov 128   ;;  %s11691_s17 = smov 8  }
 0x560   : > { %11116 = dma.vmem_to_hbm [thread:$0]  (%p16581_p0), %s16158_s11, 4096, %s16156_s6, %s9347_s22, %s11690_s30, %s11690_s30, %s11691_s17  }
 0x561 PF: > { %s9375_s7 = sand.u32 1, %s11669_s18   ;;  %p16582_p7 = scmp.ne.s32.totalorder %s16265_s25, 0 }
 0x562   : > { %p16583_p9 = scmp.ge.s32.totalorder %s11681_s21, 2  ;;  %s9376_s8 = scalar_lea.sflag [#allocation6], %s9375_s7 }
 0x564   : > { %p11130_p12 = pnand %p16583_p9, %p16582_p7 }
 0x566   : > { %11664 = dma.done.wait (!%p11130_p12), %s9376_s8, 4096  }
 0x567   : > { %11666 = vsyncadd (!%p11130_p12), %s9376_s8, 4294963200  ;;  %p19_p1 = scmp.ge.s32.totalorder %s11838_s29, 4   ;;  %s16584_s18 = smov %s11673_s19 }
 0x568   : > { %s16585_s19 = smov %s11677_s20  ;;  %s16586_s20 = smov %s11854_s27 }
 0x569   : > { %s16587_s21 = smov %s11838_s29  ;;  %21 = sbr.rel (!%p19_p1) target bundleno = 6 (0x6), region = 99 }
 0x570   :  { %9381 = vsyncpa [#allocation5], 1 }
 0x571   :  { %9383 = vsyncpa [#allocation5 + $0x1], 1 }
 0x572   :  { %9384 = vsyncpa [#allocation8], 1 }
 0x573   :  { %9385 = vsyncpa [#allocation6], 1 }
 0x574   :  { %9387 = vsyncpa [#allocation6 + $0x1], 1 }

</bundles_post_ra>
